<compile_context>
chip_gen: v7x
topology: tpu7x:2x2x1
jax: 0.10.0
libtpu: 0.0.40
codegen_flags: <defaults>
</compile_context>

<pallas_src>
import functools

import jax
import jax.numpy as jnp
from jax.experimental import pallas as pl
from jax.experimental.pallas import tpu as pltpu


def _local_op_kernel(x_ref, w1_ref, b1_ref, w2_ref, b2_ref, o_ref, h1_ref, *,
                     n_samples, c_in, c_out):
    # x_ref : (TM, S*Cin)    lane-dense input block (compute dtype)
    # w1_ref: (Cout, Cin)    conv1 weight, BN1 scale folded in (compute dtype)
    # w2_ref: (Cout, Cout)   conv2 weight, BN2 scale folded in (compute dtype)
    # b1/b2 : (Cout, 1)      folded BatchNorm biases (f32)
    # o_ref : (Cout, TM)     transposed, lane-dense output block (f32)
    # h1_ref: (S*Cout, TM)   VMEM scratch holding all relu(conv1) activations
    tm = x_ref.shape[0]

    # ---- Pass 1: conv1 + bn1 + relu for every neighbour sample -------------
    # Only w1 is touched here, so it can stay MXU-resident across the S matmuls.
    w1 = w1_ref[...]
    b1 = jnp.broadcast_to(b1_ref[...], (c_out, tm))        # hoisted out of the loop
    for s in range(n_samples):                              # static: Cin-wide lane slices
        xs = x_ref[:, s * c_in:(s + 1) * c_in]              # (TM, Cin) static lane slice
        # (Cout, Cin) x (TM, Cin)^T -> (Cout, TM): transposed orientation keeps
        # lanes fully packed even when Cout < 128.
        h = jax.lax.dot_general(w1, xs, (((1,), (1,)), ((), ())),
                                preferred_element_type=jnp.float32)
        h1_ref[s * c_out:(s + 1) * c_out, :] = (
            jnp.maximum(h + b1, 0.0).astype(h1_ref.dtype))  # store bounds live range

    # ---- Pass 2: conv2 + bn2 + relu, running max over S ---------------------
    # Only w2 is touched here.
    w2 = w2_ref[...]
    b2 = jnp.broadcast_to(b2_ref[...], (c_out, tm))         # hoisted out of the loop
    acc = jnp.full((c_out, tm), -jnp.inf, jnp.float32)
    for s in range(n_samples):
        hs = h1_ref[s * c_out:(s + 1) * c_out, :]            # (Cout, TM) sublane slice
        h = jnp.dot(w2, hs, preferred_element_type=jnp.float32)
        acc = jnp.maximum(acc, jnp.maximum(h + b2, 0.0))

    o_ref[...] = acc.astype(o_ref.dtype)                     # already (Cout, TM): no transpose


def _choose_tile_m(m, s, c_in, c_out, itemsize, *,
                   vmem_budget_bytes=16 * 1024 * 1024, target=1024, min_steps=2):
    """Row tile: multiple of 128, whole working set within the VMEM budget.

    The working set counts the double-buffered input block, the double-buffered
    (f32) output block AND the persistent h1 scratch — not just the input.  The
    16 MiB default budget is safe on v7x's 64 MiB/TC; raise it (and
    vmem_limit_bytes) on v5e/v6e's 128 MiB parts for very large M.
    """
    row_bytes = (2 * s * c_in * itemsize      # x block, double-buffered
                 + 2 * c_out * 4              # f32 output block, double-buffered
                 + s * c_out * itemsize)      # h1 scratch (single copy)
    cap = max(128, (vmem_budget_bytes // max(row_bytes, 1)) // 128 * 128)
    m_ceil = pl.cdiv(m, 128) * 128
    tm = max(128, min(target, cap, m_ceil))
    # Keep >= min_steps grid steps when possible so the double buffer overlaps
    # (min_steps=4 recommended on v7x so both TensorCores get >= 2 steps each).
    while tm > 128 and pl.cdiv(m, tm) < min_steps:
        tm -= 128
    # Prefer a tile that divides M exactly: no masked partial edge block.
    for cand in range(tm, max(128, tm // 2) - 1, -128):
        if m % cand == 0:
            return cand
    return tm


def local_op_pallas(x, params, *, compute_dtype=jnp.bfloat16, tile_m=None,
                    vmem_budget_bytes=16 * 1024 * 1024,
                    vmem_limit_bytes=32 * 1024 * 1024,
                    min_steps=2):
    """x: (B, N, S, Cin) float32  ->  (B, Cout, N) float32 (PyTorch layout)."""
    B, N, S, Cin = x.shape
    w1 = params["w1"]            # (Cin, Cout)  == conv1.weight.squeeze().T
    w2 = params["w2"]            # (Cout, Cout) == conv2.weight.squeeze().T
    Cout = w1.shape[1]
    eps = 1e-5

    # Fold eval-mode BatchNorm into the conv weights + a per-channel bias, and
    # pre-transpose the weights to (Cout, Cin') for the transposed kernel.
    def fold_bn(w, gamma, beta, mean, var):
        scale = gamma / jnp.sqrt(var + eps)                       # (Cout,)
        w_t = (w * scale[None, :]).T.astype(compute_dtype)        # (Cout, Cin')
        bias = (beta - mean * scale).reshape(Cout, 1).astype(jnp.float32)
        return w_t, bias

    w1t, b1 = fold_bn(w1, params["bn1_g"], params["bn1_b"], params["bn1_m"], params["bn1_v"])
    w2t, b2 = fold_bn(w2, params["bn2_g"], params["bn2_b"], params["bn2_m"], params["bn2_v"])

    M = B * N
    # Lane-dense input: (M, S*Cin) is a free reshape of the contiguous input.
    # The bf16 cast halves the kernel's HBM read traffic (in a real model the
    # producer would already emit bf16, so this cast fuses away).
    x2d = x.reshape(M, S * Cin).astype(compute_dtype)

    if tile_m is None:
        tile_m = _choose_tile_m(M, S, Cin, Cout, jnp.dtype(compute_dtype).itemsize,
                                vmem_budget_bytes=vmem_budget_bytes,
                                min_steps=min_steps)

    grid_m = pl.cdiv(M, tile_m)   # no jnp.pad: a partial last block is edge-masked

    kernel = functools.partial(_local_op_kernel, n_samples=S, c_in=Cin, c_out=Cout)

    out = pl.pallas_call(
        kernel,
        out_shape=jax.ShapeDtypeStruct((Cout, M), jnp.float32),
        grid_spec=pltpu.PrefetchScalarGridSpec(
            num_scalar_prefetch=0,
            grid=(grid_m,),
            in_specs=[
                pl.BlockSpec((tile_m, S * Cin), lambda i: (i, 0)),  # lane-dense x block
                pl.BlockSpec((Cout, Cin), lambda i: (0, 0)),        # w1 (folded, transposed)
                pl.BlockSpec((Cout, 1), lambda i: (0, 0)),          # b1 (folded)
                pl.BlockSpec((Cout, Cout), lambda i: (0, 0)),       # w2 (folded, transposed)
                pl.BlockSpec((Cout, 1), lambda i: (0, 0)),          # b2 (folded)
            ],
            out_specs=pl.BlockSpec((Cout, tile_m), lambda i: (0, i)),  # lane-dense output
            scratch_shapes=[pltpu.VMEM((S * Cout, tile_m), compute_dtype)],  # h1 activations
        ),
        compiler_params=pltpu.CompilerParams(
            dimension_semantics=("parallel",),
            vmem_limit_bytes=vmem_limit_bytes,
        ),
    )(x2d, w1t, b1, w2t, b2)

    # (Cout, M) -> (Cout, B, N) -> (B, Cout, N): only the two small leading
    # (non-lane) dims of the output slab are permuted; the lane dim stays minor.
    return jnp.transpose(out.reshape(Cout, B, N), (1, 0, 2))


def local_op_reference(x, params):
    """Pure-JAX f32 reference mirroring the PyTorch forward (eval-mode BN)."""
    eps = 1e-5
    h = jnp.einsum("bnsc,co->bnso", x, params["w1"])
    h = (h - params["bn1_m"]) / jnp.sqrt(params["bn1_v"] + eps) * params["bn1_g"] + params["bn1_b"]
    h = jnp.maximum(h, 0.0)
    h = jnp.einsum("bnso,op->bnsp", h, params["w2"])
    h = (h - params["bn2_m"]) / jnp.sqrt(params["bn2_v"] + eps) * params["bn2_g"] + params["bn2_b"]
    h = jnp.maximum(h, 0.0)
    h = jnp.max(h, axis=2)              # max over S -> (B, N, Cout)
    return jnp.transpose(h, (0, 2, 1))  # -> (B, Cout, N)


def make_params(key, in_channels, out_channels):
    ks = jax.random.split(key, 10)
    return {
        # conv weights stored pre-transposed: (Cin, Cout) / (Cout, Cout)
        "w1": jax.random.normal(ks[0], (in_channels, out_channels), jnp.float32) * 0.1,
        "w2": jax.random.normal(ks[1], (out_channels, out_channels), jnp.float32) * 0.1,
        "bn1_g": 1.0 + 0.1 * jax.random.normal(ks[2], (out_channels,), jnp.float32),
        "bn1_b": 0.1 * jax.random.normal(ks[3], (out_channels,), jnp.float32),
        "bn1_m": 0.1 * jax.random.normal(ks[4], (out_channels,), jnp.float32),
        "bn1_v": jnp.abs(jax.random.normal(ks[5], (out_channels,), jnp.float32)) + 0.5,
        "bn2_g": 1.0 + 0.1 * jax.random.normal(ks[6], (out_channels,), jnp.float32),
        "bn2_b": 0.1 * jax.random.normal(ks[7], (out_channels,), jnp.float32),
        "bn2_m": 0.1 * jax.random.normal(ks[8], (out_channels,), jnp.float32),
        "bn2_v": jnp.abs(jax.random.normal(ks[9], (out_channels,), jnp.float32)) + 0.5,
    }


if __name__ == "__main__":
    B, N, S = 2, 512, 16          # batch, points, samples-per-point
    Cin, Cout = 16, 32            # in_channels, out_channels

    key = jax.random.PRNGKey(0)
    kx, kp = jax.random.split(key)
    x = jax.random.normal(kx, (B, N, S, Cin), jnp.float32)
    params = make_params(kp, Cin, Cout)

    ref = local_op_reference(x, params)

    # f32 path: tight check of the kernel structure (BN folding, two-pass, max over S).
    run_f32 = jax.jit(functools.partial(local_op_pallas, compute_dtype=jnp.float32))
    out_f32 = jax.block_until_ready(run_f32(x, params))
    assert out_f32.shape == (B, Cout, N), out_f32.shape
    err_f32 = float(jnp.max(jnp.abs(out_f32 - ref)))
    assert jnp.allclose(out_f32, ref, atol=1e-3, rtol=1e-3), f"f32 mismatch (max err {err_f32})"

    # bf16 path (default): halved HBM traffic / native MXU dtype; looser tolerance.
    run_bf16 = jax.jit(local_op_pallas)
    out_bf16 = jax.block_until_ready(run_bf16(x, params))
    assert out_bf16.shape == (B, Cout, N), out_bf16.shape
    err_bf16 = float(jnp.max(jnp.abs(out_bf16 - ref)))
    assert jnp.allclose(out_bf16, ref, atol=5e-2, rtol=5e-2), f"bf16 mismatch (max err {err_bf16})"

    print("KERNEL_OK")
</pallas_src>

<mosaic_0001>
module attributes {stable_mosaic.version = 11 : i64} {
  func.func @_local_op_kernel(%arg0: i32, %arg1: memref<512x256xf32, #tpu.memory_space<vmem>>, %arg2: memref<32x16xf32, #tpu.memory_space<vmem>>, %arg3: memref<32x1xf32, #tpu.memory_space<vmem>>, %arg4: memref<32x32xf32, #tpu.memory_space<vmem>>, %arg5: memref<32x1xf32, #tpu.memory_space<vmem>>, %arg6: memref<32x512xf32, #tpu.memory_space<vmem>>, %arg7: memref<512x512xf32, #tpu.memory_space<vmem>>) attributes {dimension_semantics = [#tpu.dimension_semantics<parallel>], iteration_bounds = array<i64: 2>, scalar_prefetch = 0 : i64, scratch_operands = 1 : i64, tpu.core_type = #tpu.core_type<tc>, window_params = [{transform_indices = @transform_0, window_bounds = array<i64: 512, 256>}, {pipeline_mode = #tpu.pipeline_mode<synchronous>, transform_indices = @transform_1, window_bounds = array<i64: 32, 16>}, {pipeline_mode = #tpu.pipeline_mode<synchronous>, transform_indices = @transform_2, window_bounds = array<i64: 32, 1>}, {pipeline_mode = #tpu.pipeline_mode<synchronous>, transform_indices = @transform_3, window_bounds = array<i64: 32, 32>}, {pipeline_mode = #tpu.pipeline_mode<synchronous>, transform_indices = @transform_4, window_bounds = array<i64: 32, 1>}, {transform_indices = @transform_5, window_bounds = array<i64: 32, 512>}]} {
    %c0 = arith.constant 0 : index
    %c0_0 = arith.constant 0 : index
    %0 = vector.load %arg2[%c0, %c0_0] : memref<32x16xf32, #tpu.memory_space<vmem>>, vector<32x16xf32>
    %c0_1 = arith.constant 0 : index
    %c0_2 = arith.constant 0 : index
    %1 = vector.load %arg3[%c0_1, %c0_2] : memref<32x1xf32, #tpu.memory_space<vmem>>, vector<32x1xf32>
    %2 = vector.shape_cast %1 : vector<32x1xf32> to vector<32x1xf32>
    %3 = vector.broadcast %2 : vector<32x1xf32> to vector<32x512xf32>
    %c0_3 = arith.constant 0 : index
    %c0_4 = arith.constant 0 : index
    %4 = vector.load %arg1[%c0_3, %c0_4] : memref<512x256xf32, #tpu.memory_space<vmem>>, vector<512x16xf32>
    %cst = arith.constant dense<0.000000e+00> : vector<32x512xf32>
    %5 = tpu.matmul %0, %4, %cst {dimension_numbers = #tpu.dot_dimension_numbers<[1], [1], [0], [0], [0, 0, 1, 0], [], []>} : vector<32x16xf32>, vector<512x16xf32>, vector<32x512xf32> -> vector<32x512xf32>
    %6 = arith.addf %5, %3 : vector<32x512xf32>
    %cst_5 = arith.constant 0.000000e+00 : f32
    %7 = vector.broadcast %cst_5 : f32 to vector<32x512xf32>
    %8 = arith.maximumf %6, %7 : vector<32x512xf32>
    %c0_6 = arith.constant 0 : index
    %c0_7 = arith.constant 0 : index
    %9 = vector.load %arg7[%c0_6, %c0_7] : memref<512x512xf32, #tpu.memory_space<vmem>>, vector<32x512xf32>
    tpu.vector_store %arg7[%c0_6, %c0_7], %8 {strides = array<i32>} : memref<512x512xf32, #tpu.memory_space<vmem>>, vector<32x512xf32>,
    %c0_8 = arith.constant 0 : index
    %c16 = arith.constant 16 : index
    %10 = vector.load %arg1[%c0_8, %c16] : memref<512x256xf32, #tpu.memory_space<vmem>>, vector<512x16xf32>
    %cst_9 = arith.constant dense<0.000000e+00> : vector<32x512xf32>
    %11 = tpu.matmul %0, %10, %cst_9 {dimension_numbers = #tpu.dot_dimension_numbers<[1], [1], [0], [0], [0, 0, 1, 0], [], []>} : vector<32x16xf32>, vector<512x16xf32>, vector<32x512xf32> -> vector<32x512xf32>
    %12 = arith.addf %11, %3 : vector<32x512xf32>
    %cst_10 = arith.constant 0.000000e+00 : f32
    %13 = vector.broadcast %cst_10 : f32 to vector<32x512xf32>
    %14 = arith.maximumf %12, %13 : vector<32x512xf32>
    %c32 = arith.constant 32 : index
    %c0_11 = arith.constant 0 : index
    %15 = vector.load %arg7[%c32, %c0_11] : memref<512x512xf32, #tpu.memory_space<vmem>>, vector<32x512xf32>
    tpu.vector_store %arg7[%c32, %c0_11], %14 {strides = array<i32>} : memref<512x512xf32, #tpu.memory_space<vmem>>, vector<32x512xf32>,
    %c0_12 = arith.constant 0 : index
    %c32_13 = arith.constant 32 : index
    %16 = vector.load %arg1[%c0_12, %c32_13] : memref<512x256xf32, #tpu.memory_space<vmem>>, vector<512x16xf32>
    %cst_14 = arith.constant dense<0.000000e+00> : vector<32x512xf32>
    %17 = tpu.matmul %0, %16, %cst_14 {dimension_numbers = #tpu.dot_dimension_numbers<[1], [1], [0], [0], [0, 0, 1, 0], [], []>} : vector<32x16xf32>, vector<512x16xf32>, vector<32x512xf32> -> vector<32x512xf32>
    %18 = arith.addf %17, %3 : vector<32x512xf32>
    %cst_15 = arith.constant 0.000000e+00 : f32
    %19 = vector.broadcast %cst_15 : f32 to vector<32x512xf32>
    %20 = arith.maximumf %18, %19 : vector<32x512xf32>
    %c64 = arith.constant 64 : index
    %c0_16 = arith.constant 0 : index
    %21 = vector.load %arg7[%c64, %c0_16] : memref<512x512xf32, #tpu.memory_space<vmem>>, vector<32x512xf32>
    tpu.vector_store %arg7[%c64, %c0_16], %20 {strides = array<i32>} : memref<512x512xf32, #tpu.memory_space<vmem>>, vector<32x512xf32>,
    %c0_17 = arith.constant 0 : index
    %c48 = arith.constant 48 : index
    %22 = vector.load %arg1[%c0_17, %c48] : memref<512x256xf32, #tpu.memory_space<vmem>>, vector<512x16xf32>
    %cst_18 = arith.constant dense<0.000000e+00> : vector<32x512xf32>
    %23 = tpu.matmul %0, %22, %cst_18 {dimension_numbers = #tpu.dot_dimension_numbers<[1], [1], [0], [0], [0, 0, 1, 0], [], []>} : vector<32x16xf32>, vector<512x16xf32>, vector<32x512xf32> -> vector<32x512xf32>
    %24 = arith.addf %23, %3 : vector<32x512xf32>
    %cst_19 = arith.constant 0.000000e+00 : f32
    %25 = vector.broadcast %cst_19 : f32 to vector<32x512xf32>
    %26 = arith.maximumf %24, %25 : vector<32x512xf32>
    %c96 = arith.constant 96 : index
    %c0_20 = arith.constant 0 : index
    %27 = vector.load %arg7[%c96, %c0_20] : memref<512x512xf32, #tpu.memory_space<vmem>>, vector<32x512xf32>
    tpu.vector_store %arg7[%c96, %c0_20], %26 {strides = array<i32>} : memref<512x512xf32, #tpu.memory_space<vmem>>, vector<32x512xf32>,
    %c0_21 = arith.constant 0 : index
    %c64_22 = arith.constant 64 : index
    %28 = vector.load %arg1[%c0_21, %c64_22] : memref<512x256xf32, #tpu.memory_space<vmem>>, vector<512x16xf32>
    %cst_23 = arith.constant dense<0.000000e+00> : vector<32x512xf32>
    %29 = tpu.matmul %0, %28, %cst_23 {dimension_numbers = #tpu.dot_dimension_numbers<[1], [1], [0], [0], [0, 0, 1, 0], [], []>} : vector<32x16xf32>, vector<512x16xf32>, vector<32x512xf32> -> vector<32x512xf32>
    %30 = arith.addf %29, %3 : vector<32x512xf32>
    %cst_24 = arith.constant 0.000000e+00 : f32
    %31 = vector.broadcast %cst_24 : f32 to vector<32x512xf32>
    %32 = arith.maximumf %30, %31 : vector<32x512xf32>
    %c128 = arith.constant 128 : index
    %c0_25 = arith.constant 0 : index
    %33 = vector.load %arg7[%c128, %c0_25] : memref<512x512xf32, #tpu.memory_space<vmem>>, vector<32x512xf32>
    tpu.vector_store %arg7[%c128, %c0_25], %32 {strides = array<i32>} : memref<512x512xf32, #tpu.memory_space<vmem>>, vector<32x512xf32>,
    %c0_26 = arith.constant 0 : index
    %c80 = arith.constant 80 : index
    %34 = vector.load %arg1[%c0_26, %c80] : memref<512x256xf32, #tpu.memory_space<vmem>>, vector<512x16xf32>
    %cst_27 = arith.constant dense<0.000000e+00> : vector<32x512xf32>
    %35 = tpu.matmul %0, %34, %cst_27 {dimension_numbers = #tpu.dot_dimension_numbers<[1], [1], [0], [0], [0, 0, 1, 0], [], []>} : vector<32x16xf32>, vector<512x16xf32>, vector<32x512xf32> -> vector<32x512xf32>
    %36 = arith.addf %35, %3 : vector<32x512xf32>
    %cst_28 = arith.constant 0.000000e+00 : f32
    %37 = vector.broadcast %cst_28 : f32 to vector<32x512xf32>
    %38 = arith.maximumf %36, %37 : vector<32x512xf32>
    %c160 = arith.constant 160 : index
    %c0_29 = arith.constant 0 : index
    %39 = vector.load %arg7[%c160, %c0_29] : memref<512x512xf32, #tpu.memory_space<vmem>>, vector<32x512xf32>
    tpu.vector_store %arg7[%c160, %c0_29], %38 {strides = array<i32>} : memref<512x512xf32, #tpu.memory_space<vmem>>, vector<32x512xf32>,
    %c0_30 = arith.constant 0 : index
    %c96_31 = arith.constant 96 : index
    %40 = vector.load %arg1[%c0_30, %c96_31] : memref<512x256xf32, #tpu.memory_space<vmem>>, vector<512x16xf32>
    %cst_32 = arith.constant dense<0.000000e+00> : vector<32x512xf32>
    %41 = tpu.matmul %0, %40, %cst_32 {dimension_numbers = #tpu.dot_dimension_numbers<[1], [1], [0], [0], [0, 0, 1, 0], [], []>} : vector<32x16xf32>, vector<512x16xf32>, vector<32x512xf32> -> vector<32x512xf32>
    %42 = arith.addf %41, %3 : vector<32x512xf32>
    %cst_33 = arith.constant 0.000000e+00 : f32
    %43 = vector.broadcast %cst_33 : f32 to vector<32x512xf32>
    %44 = arith.maximumf %42, %43 : vector<32x512xf32>
    %c192 = arith.constant 192 : index
    %c0_34 = arith.constant 0 : index
    %45 = vector.load %arg7[%c192, %c0_34] : memref<512x512xf32, #tpu.memory_space<vmem>>, vector<32x512xf32>
    tpu.vector_store %arg7[%c192, %c0_34], %44 {strides = array<i32>} : memref<512x512xf32, #tpu.memory_space<vmem>>, vector<32x512xf32>,
    %c0_35 = arith.constant 0 : index
    %c112 = arith.constant 112 : index
    %46 = vector.load %arg1[%c0_35, %c112] : memref<512x256xf32, #tpu.memory_space<vmem>>, vector<512x16xf32>
    %cst_36 = arith.constant dense<0.000000e+00> : vector<32x512xf32>
    %47 = tpu.matmul %0, %46, %cst_36 {dimension_numbers = #tpu.dot_dimension_numbers<[1], [1], [0], [0], [0, 0, 1, 0], [], []>} : vector<32x16xf32>, vector<512x16xf32>, vector<32x512xf32> -> vector<32x512xf32>
    %48 = arith.addf %47, %3 : vector<32x512xf32>
    %cst_37 = arith.constant 0.000000e+00 : f32
    %49 = vector.broadcast %cst_37 : f32 to vector<32x512xf32>
    %50 = arith.maximumf %48, %49 : vector<32x512xf32>
    %c224 = arith.constant 224 : index
    %c0_38 = arith.constant 0 : index
    %51 = vector.load %arg7[%c224, %c0_38] : memref<512x512xf32, #tpu.memory_space<vmem>>, vector<32x512xf32>
    tpu.vector_store %arg7[%c224, %c0_38], %50 {strides = array<i32>} : memref<512x512xf32, #tpu.memory_space<vmem>>, vector<32x512xf32>,
    %c0_39 = arith.constant 0 : index
    %c128_40 = arith.constant 128 : index
    %52 = vector.load %arg1[%c0_39, %c128_40] : memref<512x256xf32, #tpu.memory_space<vmem>>, vector<512x16xf32>
    %cst_41 = arith.constant dense<0.000000e+00> : vector<32x512xf32>
    %53 = tpu.matmul %0, %52, %cst_41 {dimension_numbers = #tpu.dot_dimension_numbers<[1], [1], [0], [0], [0, 0, 1, 0], [], []>} : vector<32x16xf32>, vector<512x16xf32>, vector<32x512xf32> -> vector<32x512xf32>
    %54 = arith.addf %53, %3 : vector<32x512xf32>
    %cst_42 = arith.constant 0.000000e+00 : f32
    %55 = vector.broadcast %cst_42 : f32 to vector<32x512xf32>
    %56 = arith.maximumf %54, %55 : vector<32x512xf32>
    %c256 = arith.constant 256 : index
    %c0_43 = arith.constant 0 : index
    %57 = vector.load %arg7[%c256, %c0_43] : memref<512x512xf32, #tpu.memory_space<vmem>>, vector<32x512xf32>
    tpu.vector_store %arg7[%c256, %c0_43], %56 {strides = array<i32>} : memref<512x512xf32, #tpu.memory_space<vmem>>, vector<32x512xf32>,
    %c0_44 = arith.constant 0 : index
    %c144 = arith.constant 144 : index
    %58 = vector.load %arg1[%c0_44, %c144] : memref<512x256xf32, #tpu.memory_space<vmem>>, vector<512x16xf32>
    %cst_45 = arith.constant dense<0.000000e+00> : vector<32x512xf32>
    %59 = tpu.matmul %0, %58, %cst_45 {dimension_numbers = #tpu.dot_dimension_numbers<[1], [1], [0], [0], [0, 0, 1, 0], [], []>} : vector<32x16xf32>, vector<512x16xf32>, vector<32x512xf32> -> vector<32x512xf32>
    %60 = arith.addf %59, %3 : vector<32x512xf32>
    %cst_46 = arith.constant 0.000000e+00 : f32
    %61 = vector.broadcast %cst_46 : f32 to vector<32x512xf32>
    %62 = arith.maximumf %60, %61 : vector<32x512xf32>
    %c288 = arith.constant 288 : index
    %c0_47 = arith.constant 0 : index
    %63 = vector.load %arg7[%c288, %c0_47] : memref<512x512xf32, #tpu.memory_space<vmem>>, vector<32x512xf32>
    tpu.vector_store %arg7[%c288, %c0_47], %62 {strides = array<i32>} : memref<512x512xf32, #tpu.memory_space<vmem>>, vector<32x512xf32>,
    %c0_48 = arith.constant 0 : index
    %c160_49 = arith.constant 160 : index
    %64 = vector.load %arg1[%c0_48, %c160_49] : memref<512x256xf32, #tpu.memory_space<vmem>>, vector<512x16xf32>
    %cst_50 = arith.constant dense<0.000000e+00> : vector<32x512xf32>
    %65 = tpu.matmul %0, %64, %cst_50 {dimension_numbers = #tpu.dot_dimension_numbers<[1], [1], [0], [0], [0, 0, 1, 0], [], []>} : vector<32x16xf32>, vector<512x16xf32>, vector<32x512xf32> -> vector<32x512xf32>
    %66 = arith.addf %65, %3 : vector<32x512xf32>
    %cst_51 = arith.constant 0.000000e+00 : f32
    %67 = vector.broadcast %cst_51 : f32 to vector<32x512xf32>
    %68 = arith.maximumf %66, %67 : vector<32x512xf32>
    %c320 = arith.constant 320 : index
    %c0_52 = arith.constant 0 : index
    %69 = vector.load %arg7[%c320, %c0_52] : memref<512x512xf32, #tpu.memory_space<vmem>>, vector<32x512xf32>
    tpu.vector_store %arg7[%c320, %c0_52], %68 {strides = array<i32>} : memref<512x512xf32, #tpu.memory_space<vmem>>, vector<32x512xf32>,
    %c0_53 = arith.constant 0 : index
    %c176 = arith.constant 176 : index
    %70 = vector.load %arg1[%c0_53, %c176] : memref<512x256xf32, #tpu.memory_space<vmem>>, vector<512x16xf32>
    %cst_54 = arith.constant dense<0.000000e+00> : vector<32x512xf32>
    %71 = tpu.matmul %0, %70, %cst_54 {dimension_numbers = #tpu.dot_dimension_numbers<[1], [1], [0], [0], [0, 0, 1, 0], [], []>} : vector<32x16xf32>, vector<512x16xf32>, vector<32x512xf32> -> vector<32x512xf32>
    %72 = arith.addf %71, %3 : vector<32x512xf32>
    %cst_55 = arith.constant 0.000000e+00 : f32
    %73 = vector.broadcast %cst_55 : f32 to vector<32x512xf32>
    %74 = arith.maximumf %72, %73 : vector<32x512xf32>
    %c352 = arith.constant 352 : index
    %c0_56 = arith.constant 0 : index
    %75 = vector.load %arg7[%c352, %c0_56] : memref<512x512xf32, #tpu.memory_space<vmem>>, vector<32x512xf32>
    tpu.vector_store %arg7[%c352, %c0_56], %74 {strides = array<i32>} : memref<512x512xf32, #tpu.memory_space<vmem>>, vector<32x512xf32>,
    %c0_57 = arith.constant 0 : index
    %c192_58 = arith.constant 192 : index
    %76 = vector.load %arg1[%c0_57, %c192_58] : memref<512x256xf32, #tpu.memory_space<vmem>>, vector<512x16xf32>
    %cst_59 = arith.constant dense<0.000000e+00> : vector<32x512xf32>
    %77 = tpu.matmul %0, %76, %cst_59 {dimension_numbers = #tpu.dot_dimension_numbers<[1], [1], [0], [0], [0, 0, 1, 0], [], []>} : vector<32x16xf32>, vector<512x16xf32>, vector<32x512xf32> -> vector<32x512xf32>
    %78 = arith.addf %77, %3 : vector<32x512xf32>
    %cst_60 = arith.constant 0.000000e+00 : f32
    %79 = vector.broadcast %cst_60 : f32 to vector<32x512xf32>
    %80 = arith.maximumf %78, %79 : vector<32x512xf32>
    %c384 = arith.constant 384 : index
    %c0_61 = arith.constant 0 : index
    %81 = vector.load %arg7[%c384, %c0_61] : memref<512x512xf32, #tpu.memory_space<vmem>>, vector<32x512xf32>
    tpu.vector_store %arg7[%c384, %c0_61], %80 {strides = array<i32>} : memref<512x512xf32, #tpu.memory_space<vmem>>, vector<32x512xf32>,
    %c0_62 = arith.constant 0 : index
    %c208 = arith.constant 208 : index
    %82 = vector.load %arg1[%c0_62, %c208] : memref<512x256xf32, #tpu.memory_space<vmem>>, vector<512x16xf32>
    %cst_63 = arith.constant dense<0.000000e+00> : vector<32x512xf32>
    %83 = tpu.matmul %0, %82, %cst_63 {dimension_numbers = #tpu.dot_dimension_numbers<[1], [1], [0], [0], [0, 0, 1, 0], [], []>} : vector<32x16xf32>, vector<512x16xf32>, vector<32x512xf32> -> vector<32x512xf32>
    %84 = arith.addf %83, %3 : vector<32x512xf32>
    %cst_64 = arith.constant 0.000000e+00 : f32
    %85 = vector.broadcast %cst_64 : f32 to vector<32x512xf32>
    %86 = arith.maximumf %84, %85 : vector<32x512xf32>
    %c416 = arith.constant 416 : index
    %c0_65 = arith.constant 0 : index
    %87 = vector.load %arg7[%c416, %c0_65] : memref<512x512xf32, #tpu.memory_space<vmem>>, vector<32x512xf32>
    tpu.vector_store %arg7[%c416, %c0_65], %86 {strides = array<i32>} : memref<512x512xf32, #tpu.memory_space<vmem>>, vector<32x512xf32>,
    %c0_66 = arith.constant 0 : index
    %c224_67 = arith.constant 224 : index
    %88 = vector.load %arg1[%c0_66, %c224_67] : memref<512x256xf32, #tpu.memory_space<vmem>>, vector<512x16xf32>
    %cst_68 = arith.constant dense<0.000000e+00> : vector<32x512xf32>
    %89 = tpu.matmul %0, %88, %cst_68 {dimension_numbers = #tpu.dot_dimension_numbers<[1], [1], [0], [0], [0, 0, 1, 0], [], []>} : vector<32x16xf32>, vector<512x16xf32>, vector<32x512xf32> -> vector<32x512xf32>
    %90 = arith.addf %89, %3 : vector<32x512xf32>
    %cst_69 = arith.constant 0.000000e+00 : f32
    %91 = vector.broadcast %cst_69 : f32 to vector<32x512xf32>
    %92 = arith.maximumf %90, %91 : vector<32x512xf32>
    %c448 = arith.constant 448 : index
    %c0_70 = arith.constant 0 : index
    %93 = vector.load %arg7[%c448, %c0_70] : memref<512x512xf32, #tpu.memory_space<vmem>>, vector<32x512xf32>
    tpu.vector_store %arg7[%c448, %c0_70], %92 {strides = array<i32>} : memref<512x512xf32, #tpu.memory_space<vmem>>, vector<32x512xf32>,
    %c0_71 = arith.constant 0 : index
    %c240 = arith.constant 240 : index
    %94 = vector.load %arg1[%c0_71, %c240] : memref<512x256xf32, #tpu.memory_space<vmem>>, vector<512x16xf32>
    %cst_72 = arith.constant dense<0.000000e+00> : vector<32x512xf32>
    %95 = tpu.matmul %0, %94, %cst_72 {dimension_numbers = #tpu.dot_dimension_numbers<[1], [1], [0], [0], [0, 0, 1, 0], [], []>} : vector<32x16xf32>, vector<512x16xf32>, vector<32x512xf32> -> vector<32x512xf32>
    %96 = arith.addf %95, %3 : vector<32x512xf32>
    %cst_73 = arith.constant 0.000000e+00 : f32
    %97 = vector.broadcast %cst_73 : f32 to vector<32x512xf32>
    %98 = arith.maximumf %96, %97 : vector<32x512xf32>
    %c480 = arith.constant 480 : index
    %c0_74 = arith.constant 0 : index
    %99 = vector.load %arg7[%c480, %c0_74] : memref<512x512xf32, #tpu.memory_space<vmem>>, vector<32x512xf32>
    tpu.vector_store %arg7[%c480, %c0_74], %98 {strides = array<i32>} : memref<512x512xf32, #tpu.memory_space<vmem>>, vector<32x512xf32>,
    %c0_75 = arith.constant 0 : index
    %c0_76 = arith.constant 0 : index
    %100 = vector.load %arg4[%c0_75, %c0_76] : memref<32x32xf32, #tpu.memory_space<vmem>>, vector<32x32xf32>
    %c0_77 = arith.constant 0 : index
    %c0_78 = arith.constant 0 : index
    %101 = vector.load %arg5[%c0_77, %c0_78] : memref<32x1xf32, #tpu.memory_space<vmem>>, vector<32x1xf32>
    %102 = vector.shape_cast %101 : vector<32x1xf32> to vector<32x1xf32>
    %103 = vector.broadcast %102 : vector<32x1xf32> to vector<32x512xf32>
    %cst_79 = arith.constant 0xFF800000 : f32
    %104 = vector.broadcast %cst_79 : f32 to vector<32x512xf32>
    %c0_80 = arith.constant 0 : index
    %c0_81 = arith.constant 0 : index
    %105 = vector.load %arg7[%c0_80, %c0_81] : memref<512x512xf32, #tpu.memory_space<vmem>>, vector<32x512xf32>
    %cst_82 = arith.constant dense<0.000000e+00> : vector<32x512xf32>
    %106 = tpu.matmul %100, %105, %cst_82 {dimension_numbers = #tpu.dot_dimension_numbers<[1], [0], [0], [1], [0, 0, 1, 1], [], []>} : vector<32x32xf32>, vector<32x512xf32>, vector<32x512xf32> -> vector<32x512xf32>
    %107 = arith.addf %106, %103 : vector<32x512xf32>
    %cst_83 = arith.constant 0.000000e+00 : f32
    %108 = vector.broadcast %cst_83 : f32 to vector<32x512xf32>
    %109 = arith.maximumf %107, %108 : vector<32x512xf32>
    %110 = arith.maximumf %104, %109 : vector<32x512xf32>
    %c32_84 = arith.constant 32 : index
    %c0_85 = arith.constant 0 : index
    %111 = vector.load %arg7[%c32_84, %c0_85] : memref<512x512xf32, #tpu.memory_space<vmem>>, vector<32x512xf32>
    %cst_86 = arith.constant dense<0.000000e+00> : vector<32x512xf32>
    %112 = tpu.matmul %100, %111, %cst_86 {dimension_numbers = #tpu.dot_dimension_numbers<[1], [0], [0], [1], [0, 0, 1, 1], [], []>} : vector<32x32xf32>, vector<32x512xf32>, vector<32x512xf32> -> vector<32x512xf32>
    %113 = arith.addf %112, %103 : vector<32x512xf32>
    %cst_87 = arith.constant 0.000000e+00 : f32
    %114 = vector.broadcast %cst_87 : f32 to vector<32x512xf32>
    %115 = arith.maximumf %113, %114 : vector<32x512xf32>
    %116 = arith.maximumf %110, %115 : vector<32x512xf32>
    %c64_88 = arith.constant 64 : index
    %c0_89 = arith.constant 0 : index
    %117 = vector.load %arg7[%c64_88, %c0_89] : memref<512x512xf32, #tpu.memory_space<vmem>>, vector<32x512xf32>
    %cst_90 = arith.constant dense<0.000000e+00> : vector<32x512xf32>
    %118 = tpu.matmul %100, %117, %cst_90 {dimension_numbers = #tpu.dot_dimension_numbers<[1], [0], [0], [1], [0, 0, 1, 1], [], []>} : vector<32x32xf32>, vector<32x512xf32>, vector<32x512xf32> -> vector<32x512xf32>
    %119 = arith.addf %118, %103 : vector<32x512xf32>
    %cst_91 = arith.constant 0.000000e+00 : f32
    %120 = vector.broadcast %cst_91 : f32 to vector<32x512xf32>
    %121 = arith.maximumf %119, %120 : vector<32x512xf32>
    %122 = arith.maximumf %116, %121 : vector<32x512xf32>
    %c96_92 = arith.constant 96 : index
    %c0_93 = arith.constant 0 : index
    %123 = vector.load %arg7[%c96_92, %c0_93] : memref<512x512xf32, #tpu.memory_space<vmem>>, vector<32x512xf32>
    %cst_94 = arith.constant dense<0.000000e+00> : vector<32x512xf32>
    %124 = tpu.matmul %100, %123, %cst_94 {dimension_numbers = #tpu.dot_dimension_numbers<[1], [0], [0], [1], [0, 0, 1, 1], [], []>} : vector<32x32xf32>, vector<32x512xf32>, vector<32x512xf32> -> vector<32x512xf32>
    %125 = arith.addf %124, %103 : vector<32x512xf32>
    %cst_95 = arith.constant 0.000000e+00 : f32
    %126 = vector.broadcast %cst_95 : f32 to vector<32x512xf32>
    %127 = arith.maximumf %125, %126 : vector<32x512xf32>
    %128 = arith.maximumf %122, %127 : vector<32x512xf32>
    %c128_96 = arith.constant 128 : index
    %c0_97 = arith.constant 0 : index
    %129 = vector.load %arg7[%c128_96, %c0_97] : memref<512x512xf32, #tpu.memory_space<vmem>>, vector<32x512xf32>
    %cst_98 = arith.constant dense<0.000000e+00> : vector<32x512xf32>
    %130 = tpu.matmul %100, %129, %cst_98 {dimension_numbers = #tpu.dot_dimension_numbers<[1], [0], [0], [1], [0, 0, 1, 1], [], []>} : vector<32x32xf32>, vector<32x512xf32>, vector<32x512xf32> -> vector<32x512xf32>
    %131 = arith.addf %130, %103 : vector<32x512xf32>
    %cst_99 = arith.constant 0.000000e+00 : f32
    %132 = vector.broadcast %cst_99 : f32 to vector<32x512xf32>
    %133 = arith.maximumf %131, %132 : vector<32x512xf32>
    %134 = arith.maximumf %128, %133 : vector<32x512xf32>
    %c160_100 = arith.constant 160 : index
    %c0_101 = arith.constant 0 : index
    %135 = vector.load %arg7[%c160_100, %c0_101] : memref<512x512xf32, #tpu.memory_space<vmem>>, vector<32x512xf32>
    %cst_102 = arith.constant dense<0.000000e+00> : vector<32x512xf32>
    %136 = tpu.matmul %100, %135, %cst_102 {dimension_numbers = #tpu.dot_dimension_numbers<[1], [0], [0], [1], [0, 0, 1, 1], [], []>} : vector<32x32xf32>, vector<32x512xf32>, vector<32x512xf32> -> vector<32x512xf32>
    %137 = arith.addf %136, %103 : vector<32x512xf32>
    %cst_103 = arith.constant 0.000000e+00 : f32
    %138 = vector.broadcast %cst_103 : f32 to vector<32x512xf32>
    %139 = arith.maximumf %137, %138 : vector<32x512xf32>
    %140 = arith.maximumf %134, %139 : vector<32x512xf32>
    %c192_104 = arith.constant 192 : index
    %c0_105 = arith.constant 0 : index
    %141 = vector.load %arg7[%c192_104, %c0_105] : memref<512x512xf32, #tpu.memory_space<vmem>>, vector<32x512xf32>
    %cst_106 = arith.constant dense<0.000000e+00> : vector<32x512xf32>
    %142 = tpu.matmul %100, %141, %cst_106 {dimension_numbers = #tpu.dot_dimension_numbers<[1], [0], [0], [1], [0, 0, 1, 1], [], []>} : vector<32x32xf32>, vector<32x512xf32>, vector<32x512xf32> -> vector<32x512xf32>
    %143 = arith.addf %142, %103 : vector<32x512xf32>
    %cst_107 = arith.constant 0.000000e+00 : f32
    %144 = vector.broadcast %cst_107 : f32 to vector<32x512xf32>
    %145 = arith.maximumf %143, %144 : vector<32x512xf32>
    %146 = arith.maximumf %140, %145 : vector<32x512xf32>
    %c224_108 = arith.constant 224 : index
    %c0_109 = arith.constant 0 : index
    %147 = vector.load %arg7[%c224_108, %c0_109] : memref<512x512xf32, #tpu.memory_space<vmem>>, vector<32x512xf32>
    %cst_110 = arith.constant dense<0.000000e+00> : vector<32x512xf32>
    %148 = tpu.matmul %100, %147, %cst_110 {dimension_numbers = #tpu.dot_dimension_numbers<[1], [0], [0], [1], [0, 0, 1, 1], [], []>} : vector<32x32xf32>, vector<32x512xf32>, vector<32x512xf32> -> vector<32x512xf32>
    %149 = arith.addf %148, %103 : vector<32x512xf32>
    %cst_111 = arith.constant 0.000000e+00 : f32
    %150 = vector.broadcast %cst_111 : f32 to vector<32x512xf32>
    %151 = arith.maximumf %149, %150 : vector<32x512xf32>
    %152 = arith.maximumf %146, %151 : vector<32x512xf32>
    %c256_112 = arith.constant 256 : index
    %c0_113 = arith.constant 0 : index
    %153 = vector.load %arg7[%c256_112, %c0_113] : memref<512x512xf32, #tpu.memory_space<vmem>>, vector<32x512xf32>
    %cst_114 = arith.constant dense<0.000000e+00> : vector<32x512xf32>
    %154 = tpu.matmul %100, %153, %cst_114 {dimension_numbers = #tpu.dot_dimension_numbers<[1], [0], [0], [1], [0, 0, 1, 1], [], []>} : vector<32x32xf32>, vector<32x512xf32>, vector<32x512xf32> -> vector<32x512xf32>
    %155 = arith.addf %154, %103 : vector<32x512xf32>
    %cst_115 = arith.constant 0.000000e+00 : f32
    %156 = vector.broadcast %cst_115 : f32 to vector<32x512xf32>
    %157 = arith.maximumf %155, %156 : vector<32x512xf32>
    %158 = arith.maximumf %152, %157 : vector<32x512xf32>
    %c288_116 = arith.constant 288 : index
    %c0_117 = arith.constant 0 : index
    %159 = vector.load %arg7[%c288_116, %c0_117] : memref<512x512xf32, #tpu.memory_space<vmem>>, vector<32x512xf32>
    %cst_118 = arith.constant dense<0.000000e+00> : vector<32x512xf32>
    %160 = tpu.matmul %100, %159, %cst_118 {dimension_numbers = #tpu.dot_dimension_numbers<[1], [0], [0], [1], [0, 0, 1, 1], [], []>} : vector<32x32xf32>, vector<32x512xf32>, vector<32x512xf32> -> vector<32x512xf32>
    %161 = arith.addf %160, %103 : vector<32x512xf32>
    %cst_119 = arith.constant 0.000000e+00 : f32
    %162 = vector.broadcast %cst_119 : f32 to vector<32x512xf32>
    %163 = arith.maximumf %161, %162 : vector<32x512xf32>
    %164 = arith.maximumf %158, %163 : vector<32x512xf32>
    %c320_120 = arith.constant 320 : index
    %c0_121 = arith.constant 0 : index
    %165 = vector.load %arg7[%c320_120, %c0_121] : memref<512x512xf32, #tpu.memory_space<vmem>>, vector<32x512xf32>
    %cst_122 = arith.constant dense<0.000000e+00> : vector<32x512xf32>
    %166 = tpu.matmul %100, %165, %cst_122 {dimension_numbers = #tpu.dot_dimension_numbers<[1], [0], [0], [1], [0, 0, 1, 1], [], []>} : vector<32x32xf32>, vector<32x512xf32>, vector<32x512xf32> -> vector<32x512xf32>
    %167 = arith.addf %166, %103 : vector<32x512xf32>
    %cst_123 = arith.constant 0.000000e+00 : f32
    %168 = vector.broadcast %cst_123 : f32 to vector<32x512xf32>
    %169 = arith.maximumf %167, %168 : vector<32x512xf32>
    %170 = arith.maximumf %164, %169 : vector<32x512xf32>
    %c352_124 = arith.constant 352 : index
    %c0_125 = arith.constant 0 : index
    %171 = vector.load %arg7[%c352_124, %c0_125] : memref<512x512xf32, #tpu.memory_space<vmem>>, vector<32x512xf32>
    %cst_126 = arith.constant dense<0.000000e+00> : vector<32x512xf32>
    %172 = tpu.matmul %100, %171, %cst_126 {dimension_numbers = #tpu.dot_dimension_numbers<[1], [0], [0], [1], [0, 0, 1, 1], [], []>} : vector<32x32xf32>, vector<32x512xf32>, vector<32x512xf32> -> vector<32x512xf32>
    %173 = arith.addf %172, %103 : vector<32x512xf32>
    %cst_127 = arith.constant 0.000000e+00 : f32
    %174 = vector.broadcast %cst_127 : f32 to vector<32x512xf32>
    %175 = arith.maximumf %173, %174 : vector<32x512xf32>
    %176 = arith.maximumf %170, %175 : vector<32x512xf32>
    %c384_128 = arith.constant 384 : index
    %c0_129 = arith.constant 0 : index
    %177 = vector.load %arg7[%c384_128, %c0_129] : memref<512x512xf32, #tpu.memory_space<vmem>>, vector<32x512xf32>
    %cst_130 = arith.constant dense<0.000000e+00> : vector<32x512xf32>
    %178 = tpu.matmul %100, %177, %cst_130 {dimension_numbers = #tpu.dot_dimension_numbers<[1], [0], [0], [1], [0, 0, 1, 1], [], []>} : vector<32x32xf32>, vector<32x512xf32>, vector<32x512xf32> -> vector<32x512xf32>
    %179 = arith.addf %178, %103 : vector<32x512xf32>
    %cst_131 = arith.constant 0.000000e+00 : f32
    %180 = vector.broadcast %cst_131 : f32 to vector<32x512xf32>
    %181 = arith.maximumf %179, %180 : vector<32x512xf32>
    %182 = arith.maximumf %176, %181 : vector<32x512xf32>
    %c416_132 = arith.constant 416 : index
    %c0_133 = arith.constant 0 : index
    %183 = vector.load %arg7[%c416_132, %c0_133] : memref<512x512xf32, #tpu.memory_space<vmem>>, vector<32x512xf32>
    %cst_134 = arith.constant dense<0.000000e+00> : vector<32x512xf32>
    %184 = tpu.matmul %100, %183, %cst_134 {dimension_numbers = #tpu.dot_dimension_numbers<[1], [0], [0], [1], [0, 0, 1, 1], [], []>} : vector<32x32xf32>, vector<32x512xf32>, vector<32x512xf32> -> vector<32x512xf32>
    %185 = arith.addf %184, %103 : vector<32x512xf32>
    %cst_135 = arith.constant 0.000000e+00 : f32
    %186 = vector.broadcast %cst_135 : f32 to vector<32x512xf32>
    %187 = arith.maximumf %185, %186 : vector<32x512xf32>
    %188 = arith.maximumf %182, %187 : vector<32x512xf32>
    %c448_136 = arith.constant 448 : index
    %c0_137 = arith.constant 0 : index
    %189 = vector.load %arg7[%c448_136, %c0_137] : memref<512x512xf32, #tpu.memory_space<vmem>>, vector<32x512xf32>
    %cst_138 = arith.constant dense<0.000000e+00> : vector<32x512xf32>
    %190 = tpu.matmul %100, %189, %cst_138 {dimension_numbers = #tpu.dot_dimension_numbers<[1], [0], [0], [1], [0, 0, 1, 1], [], []>} : vector<32x32xf32>, vector<32x512xf32>, vector<32x512xf32> -> vector<32x512xf32>
    %191 = arith.addf %190, %103 : vector<32x512xf32>
    %cst_139 = arith.constant 0.000000e+00 : f32
    %192 = vector.broadcast %cst_139 : f32 to vector<32x512xf32>
    %193 = arith.maximumf %191, %192 : vector<32x512xf32>
    %194 = arith.maximumf %188, %193 : vector<32x512xf32>
    %c480_140 = arith.constant 480 : index
    %c0_141 = arith.constant 0 : index
    %195 = vector.load %arg7[%c480_140, %c0_141] : memref<512x512xf32, #tpu.memory_space<vmem>>, vector<32x512xf32>
    %cst_142 = arith.constant dense<0.000000e+00> : vector<32x512xf32>
    %196 = tpu.matmul %100, %195, %cst_142 {dimension_numbers = #tpu.dot_dimension_numbers<[1], [0], [0], [1], [0, 0, 1, 1], [], []>} : vector<32x32xf32>, vector<32x512xf32>, vector<32x512xf32> -> vector<32x512xf32>
    %197 = arith.addf %196, %103 : vector<32x512xf32>
    %cst_143 = arith.constant 0.000000e+00 : f32
    %198 = vector.broadcast %cst_143 : f32 to vector<32x512xf32>
    %199 = arith.maximumf %197, %198 : vector<32x512xf32>
    %200 = arith.maximumf %194, %199 : vector<32x512xf32>
    %c0_144 = arith.constant 0 : index
    %c0_145 = arith.constant 0 : index
    %201 = vector.load %arg6[%c0_144, %c0_145] : memref<32x512xf32, #tpu.memory_space<vmem>>, vector<32x512xf32>
    tpu.vector_store %arg6[%c0_144, %c0_145], %200 {strides = array<i32>} : memref<32x512xf32, #tpu.memory_space<vmem>>, vector<32x512xf32>,
    return
  }
  func.func @transform_0(%arg0: i32) -> (i32, i32) {
    %c0_i32 = arith.constant 0 : i32
    %c0_i32_0 = arith.constant 0 : i32
    return %arg0, %c0_i32 : i32, i32
  }
  func.func @transform_1(%arg0: i32) -> (i32, i32) {
    %c0_i32 = arith.constant 0 : i32
    %c0_i32_0 = arith.constant 0 : i32
    %c0_i32_1 = arith.constant 0 : i32
    return %c0_i32, %c0_i32_0 : i32, i32
  }
  func.func @transform_2(%arg0: i32) -> (i32, i32) {
    %c0_i32 = arith.constant 0 : i32
    %c0_i32_0 = arith.constant 0 : i32
    %c0_i32_1 = arith.constant 0 : i32
    return %c0_i32, %c0_i32_0 : i32, i32
  }
  func.func @transform_3(%arg0: i32) -> (i32, i32) {
    %c0_i32 = arith.constant 0 : i32
    %c0_i32_0 = arith.constant 0 : i32
    %c0_i32_1 = arith.constant 0 : i32
    return %c0_i32, %c0_i32_0 : i32, i32
  }
  func.func @transform_4(%arg0: i32) -> (i32, i32) {
    %c0_i32 = arith.constant 0 : i32
    %c0_i32_0 = arith.constant 0 : i32
    %c0_i32_1 = arith.constant 0 : i32
    return %c0_i32, %c0_i32_0 : i32, i32
  }
  func.func @transform_5(%arg0: i32) -> (i32, i32) {
    %c0_i32 = arith.constant 0 : i32
    %c0_i32_0 = arith.constant 0 : i32
    return %c0_i32, %arg0 : i32, i32
  }
}

</mosaic_0001>

<bundles_post_ra>
// kernel: local_op_pallas.1
= control target key start
LH: loop header
LB: loop body
LE: loop exit
PB: predicated region body
PF: predicated region fallthrough
CT: control target
= control target key end

     0   :  { %s20017_s18 = smov 0   ;;  %s20019_s19 = smov 0   ;;  %s27484_s0 = inlined_call_operand.vmem [shape: f32[1024,256], index: 0, kind: input, shape index: {}]   ;;  %s27485_s1 = inlined_call_operand.vmem [shape: f32[32,16], index: 1, kind: input, shape index: {}]   ;;  %s27486_s2 = inlined_call_operand.vmem [shape: f32[32,1], index: 2, kind: input, shape index: {}]   ;;  %s27487_s3 = inlined_call_operand.vmem [shape: f32[32,32], index: 3, kind: input, shape index: {}]   ;;  %s27488_s4 = inlined_call_operand.vmem [shape: f32[32,1], index: 4, kind: input, shape index: {}]   ;;  %s27489_s5 = inlined_call_operand.vmem [shape: f32[32,1024], index: 5, kind: output, shape index: {}]  }
   0x1   :  { %s20021_s20 = smov 0  }
   0x2 LB: > { %s20030_s21 = sadd.s32 4294967295, %s19976_s20   ;;  %s20032_s22 = sadd.s32 1, %s19976_s20   ;;  %s19976_s20 = sphi %s20021_s20, %s28055_s20   ;;  %s19972_s19 = sphi %s20019_s19, %s28054_s19   ;;  %s19968_s18 = sphi %s20017_s18, %s28053_s18  }
   0x3   : > { %s129_s23 = ssub.s32 %s19976_s20, %s20032_s22  ;;  %s132_s24 = sadd.s32 1, %s19972_s19 }
   0x4   : > { %p130_p0 = scmp.eq.s32.totalorder %s129_s23, 0  ;;  %p142_p1 = scmp.ne.s32.totalorder %s19972_s19, %s19968_s18 }
   0x5   : > { %p143_p2 = scmp.eq.s32.totalorder %s20030_s21, 1  ;;  %p13282_p3 = scmp.ge.s32.totalorder %s19976_s20, 1 }
   0x6   : > { %s20040_s25 = scalar_select %p130_p0, %s19972_s19, %s132_s24  }
   0x7   : > { %p20042_p4 = por %p143_p2, %p142_p1  ;;  %p189_p5 = scmp.lt.s32.totalorder %s19976_s20, 3 }
   0x9   : > { %p190_p6 = pnand %p13282_p3, %p189_p5 }
   0xb   : > { %193 = sbr.rel (%p190_p6) target bundleno = 1667 (0x683), region = 40 }
  0x12   : > { %v231_v0 = vld [vmem:[%s27486_s2 + $0x10] sm:$0xff]  ;;  %v229_v1 = vld [vmem:[%s27486_s2] sm:$0xff]  ;;  %s13284_s6 = sshll.u32 %s20030_s21, 6  ;;  %v19978_v2 = vmov 0   ;;  %vm317_vm0 = vcmask 130048   ;;  %v232_v4 = vld [vmem:[%s27486_s2 + $0x18] sm:$0xff] }
  0x13   : > { %17680 = vset.pattern.permute.xlu1 %v19978_v2  ;;  %17679 = vset.pattern.permute.xlu0 %v19978_v2  ;;  %p218_p7 = scmp.lt.s32.totalorder %s13284_s6, 127  ;;  %v20056_v3 = vld [vmem:[%s27485_s1] sm:$0xff]  ;;  %v230_v5 = vld [vmem:[%s27486_s2 + $0x8] sm:$0xff]  ;;  %vm20075_vm1 = vmpackc.low %vm317_vm0, %vm317_vm0  ;;  %s19979_s17 = smov 112   ;;  %vm9558_vm2 = vcmask 261120  }
  0x14   : > { %245 = vperm.xlu1 %17680, %v231_v0   ;;  %235 = vperm.xlu0 %17679, %v229_v1   ;;  %s19980_s24 = smov 96   ;;  %s19982_s7 = smov 64  }
  0x15   : > { %s28057_s6 = smov (!%p218_p7, %s13284_s6), 127  ;;  %14606 = vmatprep.mubr.msk.f32.mxu0 %vm317_vm0, %v20056_v3  ;;  %14646 = vmatprep.mubr.msk.f32.mxu1 %vm317_vm0, %v20056_v3  ;;  %s19983_s10 = smov 48  }
  0x16   : > { %s14572_s13 = sshll.u32 %s28057_s6, 4  ;;  %s19981_s6 = smov 80  }
  0x17   : > { %s20071_s16 = scalar_lea.vmem %s27484_s0, %s14572_s13  ;;  %s19984_s23 = smov 32  }
  0x18   : > { %250 = vperm.xlu1 %17680, %v232_v4   ;;  %240 = vperm.xlu0 %17679, %v230_v5   ;;  %v20080_v7 = vld [vmem:[%s20071_s16 + $0x20] sm:$0xff]  ;;  %v20083_v8 = vld [vmem:[%s20071_s16 + $0x30] sm:$0xff]  ;;  %s19985_s29 = smov 16   ;;  %s14573_s11 = sshll.u32 (%p20042_p4), %s20030_s21, 5 }
  0x19   : > { %v732_v9 = vld [vmem:[%s20071_s16] sm:$0xff]  ;;  %v20088_v10 = vpack.i.bf16 %v20083_v8, %v20080_v7  ;;  %v733_v11 = vld [vmem:[%s20071_s16 + $0x10] sm:$0xff]  ;;  %v15863_v46 = vpack.c.bf16 %v20083_v8, %v20080_v7  ;;  %s13180_s14 = scalar_lea.vmem (%p20042_p4), %s27489_s5, %s14573_s11 }
  0x1a   : > { %v20092_v12 = vld [vmem:[%s20071_s16 + $0x100] sm:$0xff]  ;;  %v20095_v13 = vld [vmem:[%s20071_s16 + $0x110] sm:$0xff]  ;;  %v20097_v14 = vpack.i.bf16 %v733_v11, %v732_v9  ;;  %v15857_v18 = vpack.c.bf16 %v733_v11, %v732_v9 }
  0x1b   : > { %v15854_v15 = vpack.c.bf16 %v20095_v13, %v20092_v12  ;;  %v20102_v16 = vld [vmem:[%s20071_s16 + $0x300] sm:$0xff]  ;;  %v20105_v17 = vld [vmem:[%s20071_s16 + $0x310] sm:$0xff]  ;;  %v20252_v61 = vpack.i.bf16 %v20095_v13, %v20092_v12 }
  0x1c   : > { %v20108_v19 = vld [vmem:[%s20071_s16 + $0x200] sm:$0xff]  ;;  %17687 = vrot.lane.b32.xlu1 %v20088_v10, %s19979_s17  ;;  %v15902_v20 = vpack.c.bf16 %v20105_v17, %v20102_v16  ;;  %v20115_v21 = vld [vmem:[%s20071_s16 + $0x210] sm:$0xff]  ;;  %17682 = vrot.lane.b32.xlu0 %v20097_v14, %s19979_s17 }
  0x1d   : > { %v20118_v22 = vld [vmem:[%s20071_s16 + $0x60] sm:$0xff]  ;;  %v20121_v23 = vld [vmem:[%s20071_s16 + $0x70] sm:$0xff]  ;;  %15856 = vmatprep.subr.msk.bf16.mxu0 %vm20075_vm1, %v15854_v15  ;;  %v15905_v24 = vpack.c.bf16 %v20115_v21, %v20108_v19 }
  0x1e   : > { %v20131_v25 = vpack.i.bf16 %v20121_v23, %v20118_v22  ;;  %v20134_v26 = vld [vmem:[%s20071_s16 + $0x40] sm:$0xff]  ;;  %v20137_v27 = vld [vmem:[%s20071_s16 + $0x50] sm:$0xff]  ;;  %15904 = vmatprep.subr.msk.bf16.mxu1 %vm20075_vm1, %v15902_v20  ;;  %15859 = vmatpush3.bf16.xpose.msk.msra.mxu0 %vm20075_vm1, %v15857_v18 }
  0x1f   : > { %v20140_v28 = vld [vmem:[%s20071_s16 + $0xa0] sm:$0xff]  ;;  %v20148_v29 = vpack.i.bf16 %v20137_v27, %v20134_v26  ;;  %v20151_v30 = vld [vmem:[%s20071_s16 + $0xb0] sm:$0xff]  ;;  %15907 = vmatpush3.bf16.xpose.msk.msra.mxu1 %vm20075_vm1, %v15905_v24  ;;  %v15869_v1 = vpack.c.bf16 %v20137_v27, %v20134_v26 }
  0x20   : > { %v20154_v31 = vld [vmem:[%s20071_s16 + $0x80] sm:$0xff]  ;;  %v20157_v32 = vld [vmem:[%s20071_s16 + $0x90] sm:$0xff]  ;;  %17697 = vrot.lane.b32.xlu1 %v20131_v25, %s19979_s17  ;;  %v20170_v36 = vpack.i.bf16 %v20151_v30, %v20140_v28 }
  0x21   : > { %v271_v33 = vld [vmem:[%s20071_s16 + $0x120] sm:$0xff]  ;;  %v272_v34 = vld [vmem:[%s20071_s16 + $0x130] sm:$0xff]  ;;  %17692 = vrot.lane.b32.xlu0 %v20148_v29, %s19979_s17  ;;  %v20185_v41 = vpack.i.bf16 %v20157_v32, %v20154_v31 }
  0x22   : > { %v20164_v35 = vld [vmem:[%s20071_s16 + $0x320] sm:$0xff]  ;;  %v15860_v37 = vpack.c.bf16 %v272_v34, %v271_v33  ;;  %v20173_v38 = vld [vmem:[%s20071_s16 + $0x330] sm:$0xff]  ;;  %v20239_v57 = vpack.i.bf16 %v272_v34, %v271_v33 }
  0x23   : > { %v20176_v39 = vld [vmem:[%s20071_s16 + $0x220] sm:$0xff]  ;;  %v20179_v40 = vld [vmem:[%s20071_s16 + $0x230] sm:$0xff]  ;;  %v15908_v42 = vpack.c.bf16 %v20173_v38, %v20164_v35 }
  0x24   : > { %v20190_v43 = vld [vmem:[%s20071_s16 + $0xe0] sm:$0xff]  ;;  %v20193_v44 = vld [vmem:[%s20071_s16 + $0xf0] sm:$0xff]  ;;  %15862 = vmatprep.subr.msk.bf16.mxu0 %vm20075_vm1, %v15860_v37  ;;  %v15911_v50 = vpack.c.bf16 %v20179_v40, %v20176_v39  ;;  %17707 = vrot.lane.b32.xlu1 %v20170_v36, %s19979_s17  ;;  %v15875_v37 = vpack.c.bf16 %v20121_v23, %v20118_v22  ;;  %v20334_v23 = vpack.i.bf16 %v20179_v40, %v20176_v39 }
  0x25   : > { %v20196_v45 = vld [vmem:[%s20071_s16 + $0xc0] sm:$0xff]  ;;  %v20203_v47 = vld [vmem:[%s20071_s16 + $0xd0] sm:$0xff]  ;;  %15910 = vmatprep.subr.msk.bf16.mxu1 %vm20075_vm1, %v15908_v42  ;;  %v20221_v54 = vpack.i.bf16 %v20193_v44, %v20190_v43  ;;  %17702 = vrot.lane.b32.xlu0 %v20185_v41, %s19979_s17  ;;  %v15881_v39 = vpack.c.bf16 %v20157_v32, %v20154_v31 }
  0x26   : > { %v273_v48 = vld [vmem:[%s20071_s16 + $0x140] sm:$0xff]  ;;  %v274_v49 = vld [vmem:[%s20071_s16 + $0x150] sm:$0xff]  ;;  %v20229_v56 = vpack.i.bf16 %v20203_v47, %v20196_v45  ;;  %15865 = vmatpush3.bf16.xpose.msk.msra.mxu0 %vm20075_vm1, %v15863_v46 }
  0x27   : > { %v15866_v51 = vpack.c.bf16 %v274_v49, %v273_v48  ;;  %v20212_v52 = vld [vmem:[%s20071_s16 + $0x340] sm:$0xff]  ;;  %v20215_v53 = vld [vmem:[%s20071_s16 + $0x350] sm:$0xff]  ;;  %15913 = vmatpush3.bf16.xpose.msk.msra.mxu1 %vm20075_vm1, %v15911_v50  ;;  %v20272_v8 = vpack.i.bf16 %v274_v49, %v273_v48 }
  0x28   : > { %v15914_v55 = vpack.c.bf16 %v20215_v53, %v20212_v52  ;;  %17717 = vrot.lane.b32.xlu1 %v20221_v54, %s19979_s17  ;;  %v20244_v58 = vld [vmem:[%s20071_s16 + $0x240] sm:$0xff]  ;;  %v290_v59 = vld [vmem:[%s20071_s16 + $0x250] sm:$0xff] }
  0x29   : > { %15868 = vmatprep.subr.msk.bf16.mxu0 %vm20075_vm1, %v15866_v51  ;;  %v754_v60 = vld [vmem:[%s20071_s16 + $0x160] sm:$0xff]  ;;  %17712 = vrot.lane.b32.xlu0 %v20229_v56, %s19979_s17  ;;  %v755_v62 = vld [vmem:[%s20071_s16 + $0x170] sm:$0xff]  ;;  %v15917_v2 = vpack.c.bf16 %v290_v59, %v20244_v58 }
  0x2a   : > { %15916 = vmatprep.subr.msk.bf16.mxu1 %vm20075_vm1, %v15914_v55  ;;  %v20256_v63 = vld [vmem:[%s20071_s16 + $0x360] sm:$0xff]  ;;  %v20259_v0 = vld [vmem:[%s20071_s16 + $0x370] sm:$0xff]  ;;  %v15872_v4 = vpack.c.bf16 %v755_v62, %v754_v60  ;;  %v20266_v5 = vpack.i.bf16 %v755_v62, %v754_v60  ;;  %v20344_v62 = vpack.i.bf16 %v20115_v21, %v20108_v19  ;;  %v20357_v19 = vpack.i.bf16 %v290_v59, %v20244_v58 }
  0x2b   : > { %v15920_v7 = vpack.c.bf16 %v20259_v0, %v20256_v63  ;;  %v758_v9 = vld [vmem:[%s20071_s16 + $0x1a0] sm:$0xff]  ;;  %v759_v11 = vld [vmem:[%s20071_s16 + $0x1b0] sm:$0xff] }
  0x2c   : > { %17727 = vrot.lane.b32.xlu1 %v20239_v57, %s19979_s17  ;;  %v756_v12 = vld [vmem:[%s20071_s16 + $0x180] sm:$0xff]  ;;  %v757_v13 = vld [vmem:[%s20071_s16 + $0x190] sm:$0xff]  ;;  %v20286_v15 = vpack.i.bf16 %v759_v11, %v758_v9 }
  0x2d   : > { %17722 = vrot.lane.b32.xlu0 %v20252_v61, %s19979_s17  ;;  %v291_v18 = vld [vmem:[%s20071_s16 + $0x260] sm:$0xff]  ;;  %v292_v20 = vld [vmem:[%s20071_s16 + $0x270] sm:$0xff]  ;;  %v20297_v26 = vpack.i.bf16 %v757_v13, %v756_v12  ;;  %v15878_v49 = vpack.c.bf16 %v757_v13, %v756_v12 }
  0x2e   : > { %15871 = vmatpush3.bf16.xpose.msk.msra.mxu0 %vm20075_vm1, %v15869_v1  ;;  %v20293_v24 = vld [vmem:[%s20071_s16 + $0x1e0] sm:$0xff]  ;;  %v20300_v27 = vld [vmem:[%s20071_s16 + $0x1f0] sm:$0xff]  ;;  %v15923_v48 = vpack.c.bf16 %v292_v20, %v291_v18 }
  0x2f   : > { %15919 = vmatpush3.bf16.xpose.msk.msra.mxu1 %vm20075_vm1, %v15917_v2  ;;  %15874 = vmatprep.subr.msk.bf16.mxu0 %vm20075_vm1, %v15872_v4  ;;  %v20303_v33 = vld [vmem:[%s20071_s16 + $0x380] sm:$0xff]  ;;  %v20306_v34 = vld [vmem:[%s20071_s16 + $0x390] sm:$0xff]  ;;  %v20316_v50 = vpack.i.bf16 %v20300_v27, %v20293_v24  ;;  %v15884_v4 = vpack.c.bf16 %v759_v11, %v758_v9 }
  0x30   : > { %17737 = vrot.lane.b32.xlu1 %v20266_v5, %s19979_s17  ;;  %15922 = vmatprep.subr.msk.bf16.mxu1 %vm20075_vm1, %v15920_v7  ;;  %v760_v42 = vld [vmem:[%s20071_s16 + $0x1c0] sm:$0xff]  ;;  %v761_v46 = vld [vmem:[%s20071_s16 + $0x1d0] sm:$0xff]  ;;  %v15926_v51 = vpack.c.bf16 %v20306_v34, %v20303_v33  ;;  %v20352_v7 = vpack.i.bf16 %v292_v20, %v291_v18  ;;  %v15887_v18 = vpack.c.bf16 %v20151_v30, %v20140_v28 }
  0x31   : > { %17732 = vrot.lane.b32.xlu0 %v20272_v8, %s19979_s17  ;;  %v20322_v22 = vpack.i.bf16 %v761_v46, %v760_v42  ;;  %v293_v55 = vld [vmem:[%s20071_s16 + $0x280] sm:$0xff]  ;;  %v294_v60 = vld [vmem:[%s20071_s16 + $0x290] sm:$0xff]  ;;  %v20403_v28 = vpack.i.bf16 %v20173_v38, %v20164_v35  ;;  %v20411_v30 = vpack.i.bf16 %v20105_v17, %v20102_v16  ;;  %v15896_v35 = vpack.c.bf16 %v20300_v27, %v20293_v24 }
  0x32   : > { %v311_v1 = vld [vmem:[%s20071_s16 + $0x3a0] sm:$0xff]  ;;  %v312_v2 = vld [vmem:[%s20071_s16 + $0x3b0] sm:$0xff]  ;;  %v15929_v40 = vpack.c.bf16 %v294_v60, %v293_v55  ;;  %v20376_v59 = vpack.i.bf16 %v294_v60, %v293_v55  ;;  %v15893_v60 = vpack.c.bf16 %v20203_v47, %v20196_v45  ;;  %v20423_v38 = vpack.i.bf16 %v20259_v0, %v20256_v63  ;;  %v20501_v0 = vld [vmem:[%s27485_s1 + $0x18] sm:$0xff] }
  0x33   : > { %v15932_v12 = vpack.c.bf16 %v312_v2, %v311_v1  ;;  %v774_v21 = vld [vmem:[%s20071_s16 + $0x2a0] sm:$0xff]  ;;  %v775_v31 = vld [vmem:[%s20071_s16 + $0x2b0] sm:$0xff]  ;;  %v20429_v16 = vpack.i.bf16 %v20215_v53, %v20212_v52  ;;  %v20439_v17 = vpack.i.bf16 %v312_v2, %v311_v1  ;;  %v17821_v45 = vpack.i.bf16 %v20306_v34, %v20303_v33 }
  0x34   : > { %17747 = vrot.lane.b32.xlu1 %v20286_v15, %s19979_s17  ;;  %v20369_v32 = vpack.i.bf16 %v775_v31, %v774_v21  ;;  %v778_v58 = vld [vmem:[%s20071_s16 + $0x2e0] sm:$0xff]  ;;  %v779_v9 = vld [vmem:[%s20071_s16 + $0x2f0] sm:$0xff]  ;;  %v15899_v47 = vpack.c.bf16 %v20193_v44, %v20190_v43  ;;  %v20467_v43 = vld [vmem:[%s27485_s1 + $0x8] sm:$0xff] }
  0x35   : > { %17742 = vrot.lane.b32.xlu0 %v20297_v26, %s19979_s17  ;;  %v313_v11 = vld [vmem:[%s20071_s16 + $0x3c0] sm:$0xff]  ;;  %v314_v13 = vld [vmem:[%s20071_s16 + $0x3d0] sm:$0xff]  ;;  %v15947_v52 = vpack.c.bf16 %v779_v9, %v778_v58 }
  0x36   : > { %15877 = vmatpush3.bf16.xpose.msk.msra.mxu0 %vm20075_vm1, %v15875_v37  ;;  %v776_v20 = vld [vmem:[%s20071_s16 + $0x2c0] sm:$0xff]  ;;  %v777_v37 = vld [vmem:[%s20071_s16 + $0x2d0] sm:$0xff]  ;;  %v20454_v63 = vpack.i.bf16 %v314_v13, %v313_v11 }
  0x37   : > { %15925 = vmatpush3.bf16.xpose.msk.msra.mxu1 %vm20075_vm1, %v15923_v48  ;;  %15880 = vmatprep.subr.msk.bf16.mxu0 %vm20075_vm1, %v15878_v49  ;;  %v15935_v48 = vpack.c.bf16 %v775_v31, %v774_v21  ;;  %v15890_v49 = vpack.c.bf16 %v761_v46, %v760_v42  ;;  %v20391_v55 = vpack.i.bf16 %v777_v37, %v776_v20  ;;  %v315_v42 = vld [vmem:[%s20071_s16 + $0x3e0] sm:$0xff]  ;;  %v316_v46 = vld [vmem:[%s20071_s16 + $0x3f0] sm:$0xff] }
  0x38   : > { %17757 = vrot.lane.b32.xlu1 %v20316_v50, %s19979_s17  ;;  %15928 = vmatprep.subr.msk.bf16.mxu1 %vm20075_vm1, %v15926_v51  ;;  %v20387_v51 = vpack.i.bf16 %v779_v9, %v778_v58  ;;  %v20451_v53 = vpack.i.bf16 %v316_v46, %v315_v42  ;;  %v20484_v44 = vld [vmem:[%s27485_s1 + $0x10] sm:$0xff] }
  0x39   : > { %17752 = vrot.lane.b32.xlu0 %v20322_v22, %s19979_s17 }
  0x3c   : > { %17767 = vrot.lane.b32.xlu1 %v20334_v23, %s19979_s17 }
  0x3d   : > { %17762 = vrot.lane.b32.xlu0 %v20344_v62, %s19979_s17 }
  0x3e   : > { %15883 = vmatpush3.bf16.xpose.msk.msra.mxu0 %vm20075_vm1, %v15881_v39  ;;  %v15938_v39 = vpack.c.bf16 %v314_v13, %v313_v11 }
  0x3f   : > { %15931 = vmatpush3.bf16.xpose.msk.msra.mxu1 %vm20075_vm1, %v15929_v40  ;;  %15886 = vmatprep.subr.msk.bf16.mxu0 %vm20075_vm1, %v15884_v4  ;;  %v15941_v40 = vpack.c.bf16 %v777_v37, %v776_v20  ;;  %v15944_v4 = vpack.c.bf16 %v316_v46, %v315_v42 }
  0x40   : > { %17777 = vrot.lane.b32.xlu1 %v20352_v7, %s19979_s17  ;;  %15934 = vmatprep.subr.msk.bf16.mxu1 %vm20075_vm1, %v15932_v12 }
  0x41   : > { %17772 = vrot.lane.b32.xlu0 %v20357_v19, %s19979_s17 }
  0x44   : > { %17787 = vrot.lane.b32.xlu1 %v20369_v32, %s19979_s17 }
  0x45   : > { %17782 = vrot.lane.b32.xlu0 %v20376_v59, %s19979_s17 }
  0x46   : > { %15889 = vmatpush3.bf16.xpose.msk.msra.mxu0 %vm20075_vm1, %v15887_v18 }
  0x47   : > { %15937 = vmatpush3.bf16.xpose.msk.msra.mxu1 %vm20075_vm1, %v15935_v48  ;;  %15892 = vmatprep.subr.msk.bf16.mxu0 %vm20075_vm1, %v15890_v49 }
  0x48   : > { %17797 = vrot.lane.b32.xlu1 %v20387_v51, %s19979_s17  ;;  %15940 = vmatprep.subr.msk.bf16.mxu1 %vm20075_vm1, %v15938_v39 }
  0x49   : > { %17792 = vrot.lane.b32.xlu0 %v20391_v55, %s19979_s17 }
  0x4c   : > { %17807 = vrot.lane.b32.xlu1 %v20403_v28, %s19979_s17 }
  0x4d   : > { %17802 = vrot.lane.b32.xlu0 %v20411_v30, %s19979_s17 }
  0x4e   : > { %15895 = vmatpush3.bf16.xpose.msk.msra.mxu0 %vm20075_vm1, %v15893_v60 }
  0x4f   : > { %15943 = vmatpush3.bf16.xpose.msk.msra.mxu1 %vm20075_vm1, %v15941_v40  ;;  %15898 = vmatprep.subr.msk.bf16.mxu0 %vm20075_vm1, %v15896_v35 }
  0x50   : > { %17817 = vrot.lane.b32.xlu1 %v20423_v38, %s19979_s17  ;;  %15946 = vmatprep.subr.msk.bf16.mxu1 %vm20075_vm1, %v15944_v4 }
  0x51   : > { %17812 = vrot.lane.b32.xlu0 %v20429_v16, %s19979_s17 }
  0x54   : > { %17827 = vrot.lane.b32.xlu1 %v20439_v17, %s19979_s17 }
  0x55   : > { %17822 = vrot.lane.b32.xlu0 %v17821_v45, %s19979_s17 }
  0x56   : > { %15901 = vmatpush3.bf16.xpose.msk.msra.mxu0 %vm20075_vm1, %v15899_v47 }
  0x57   : > { %15949 = vmatpush3.bf16.xpose.msk.msra.mxu1 %vm20075_vm1, %v15947_v52 }
  0x58   : > { %17837 = vrot.lane.b32.xlu1 %v20451_v53, %s19979_s17 }
  0x59   : > { %17832 = vrot.lane.b32.xlu0 %v20454_v63, %s19979_s17 }
  0x5c   : > { %17847 = vrot.lane.b32.xlu1 %v20088_v10, %s19980_s24 }
  0x5d   : > { %17842 = vrot.lane.b32.xlu0 %v20097_v14, %s19980_s24  ;;  %14607 = vmatmul.mubr.msk.f32.vlgmr.msra.gmra.mrb[0].mxu0 %vm317_vm0, %v20056_v3 }
  0x5e   : > { %14647 = vmatmul.mubr.msk.f32.vlgmr.msra.gmra.mrb[0].mxu1 %vm317_vm0, %v20056_v3  ;;  %14608 = vmatprep.mubr.msk.f32.mxu0 %vm317_vm0, %v20467_v43 }
  0x5f   : > { %14648 = vmatprep.mubr.msk.f32.mxu1 %vm317_vm0, %v20467_v43 }
  0x60   : > { %17857 = vrot.lane.b32.xlu1 %v20131_v25, %s19980_s24 }
  0x61   : > { %17852 = vrot.lane.b32.xlu0 %v20148_v29, %s19980_s24  ;;  %14609 = vmatmul.mubr.msk.f32.gmra.mrb[2].mxu0 %vm317_vm0, %v20467_v43 }
  0x62   : > { %14649 = vmatmul.mubr.msk.f32.gmra.mrb[2].mxu1 %vm317_vm0, %v20467_v43  ;;  %14610 = vmatprep.mubr.msk.f32.mxu0 %vm317_vm0, %v20484_v44 }
  0x63   : > { %14650 = vmatprep.mubr.msk.f32.mxu1 %vm317_vm0, %v20484_v44 }
  0x64   : > { %17867 = vrot.lane.b32.xlu1 %v20170_v36, %s19980_s24 }
  0x65   : > { %17862 = vrot.lane.b32.xlu0 %v20185_v41, %s19980_s24  ;;  %14611 = vmatmul.mubr.msk.f32.gmra.mrb[4].mxu0 %vm317_vm0, %v20484_v44 }
  0x66   : > { %14651 = vmatmul.mubr.msk.f32.gmra.mrb[4].mxu1 %vm317_vm0, %v20484_v44  ;;  %14612 = vmatprep.mubr.msk.f32.mxu0 %vm317_vm0, %v20501_v0 }
  0x67   : > { %14652 = vmatprep.mubr.msk.f32.mxu1 %vm317_vm0, %v20501_v0 }
  0x68   : > { %17877 = vrot.lane.b32.xlu1 %v20221_v54, %s19980_s24 }
  0x69   : > { %17872 = vrot.lane.b32.xlu0 %v20229_v56, %s19980_s24  ;;  %14613 = vmatmul.mubr.msk.f32.gmra.mrb[6].mxu0 %vm317_vm0, %v20501_v0 }
  0x6a   : > { %14653 = vmatmul.mubr.msk.f32.gmra.mrb[6].mxu1 %vm317_vm0, %v20501_v0  ;;  %14686 = vmatprep.mubr.msk.f32.mxu0 %vm317_vm0, %v20056_v3 }
  0x6b   : > { %14726 = vmatprep.mubr.msk.f32.mxu1 %vm317_vm0, %v20056_v3 }
  0x6c   : > { %17887 = vrot.lane.b32.xlu1 %v20239_v57, %s19980_s24 }
  0x6d   : > { %17882 = vrot.lane.b32.xlu0 %v20252_v61, %s19980_s24 }
  0x70   : > { %17897 = vrot.lane.b32.xlu1 %v20266_v5, %s19980_s24 }
  0x71   : > { %17892 = vrot.lane.b32.xlu0 %v20272_v8, %s19980_s24 }
  0x74   : > { %17907 = vrot.lane.b32.xlu1 %v20286_v15, %s19980_s24 }
  0x75   : > { %17902 = vrot.lane.b32.xlu0 %v20297_v26, %s19980_s24 }
  0x78   : > { %17917 = vrot.lane.b32.xlu1 %v20316_v50, %s19980_s24 }
  0x79   : > { %17912 = vrot.lane.b32.xlu0 %v20322_v22, %s19980_s24 }
  0x7c   : > { %17927 = vrot.lane.b32.xlu1 %v20334_v23, %s19980_s24 }
  0x7d   : > { %17922 = vrot.lane.b32.xlu0 %v20344_v62, %s19980_s24 }
  0x80   : > { %17937 = vrot.lane.b32.xlu1 %v20352_v7, %s19980_s24 }
  0x81   : > { %17932 = vrot.lane.b32.xlu0 %v20357_v19, %s19980_s24 }
  0x84   : > { %17947 = vrot.lane.b32.xlu1 %v20369_v32, %s19980_s24 }
  0x85   : > { %17942 = vrot.lane.b32.xlu0 %v20376_v59, %s19980_s24 }
  0x88   : > { %17957 = vrot.lane.b32.xlu1 %v20387_v51, %s19980_s24 }
  0x89   : > { %17952 = vrot.lane.b32.xlu0 %v20391_v55, %s19980_s24 }
  0x8c   : > { %17967 = vrot.lane.b32.xlu1 %v20403_v28, %s19980_s24 }
  0x8d   : > { %17962 = vrot.lane.b32.xlu0 %v20411_v30, %s19980_s24 }
  0x90   : > { %17977 = vrot.lane.b32.xlu1 %v20423_v38, %s19980_s24 }
  0x91   : > { %17972 = vrot.lane.b32.xlu0 %v20429_v16, %s19980_s24 }
  0x93   : > { %v20567_v3 = vpop.permute.xlu1 %245  ;;  %v20569_v24 = vpop.permute.xlu0 %235 }
  0x94   : > { %27634 = vst [vmem:[#allocation4_spill] sm:$0xff] %v20567_v3  ;;  %27635 = vst [vmem:[#allocation5_spill] sm:$0xff] %v20569_v24  ;;  %17987 = vrot.lane.b32.xlu1 %v20439_v17, %s19980_s24 }
  0x95   : > { %17982 = vrot.lane.b32.xlu0 %v17821_v45, %s19980_s24 }
  0x97   : > { %v20574_v27 = vpop.permute.xlu1 %250  ;;  %v20576_v33 = vpop.permute.xlu0 %240 }
  0x98   : > { %27636 = vst [vmem:[#allocation6_spill] sm:$0xff] %v20574_v27  ;;  %27637 = vst [vmem:[#allocation7_spill] sm:$0xff] %v20576_v33  ;;  %17997 = vrot.lane.b32.xlu1 %v20451_v53, %s19980_s24  ;;  %v2544_v27 = vld [vmem:[%s20071_s16 + $0x1e0] sm:$0xff] }
  0x99   : > { %17992 = vrot.lane.b32.xlu0 %v20454_v63, %s19980_s24 }
  0x9b   : > { %v17688_v34 = vpop.permute.xlu1 %17687  ;;  %v17683_v62 = vpop.permute.xlu0 %17682 }
  0x9c   : > { %18007 = vrot.lane.b32.xlu1 %v20088_v10, %s19981_s6 }
  0x9d   : > { %18002 = vrot.lane.b32.xlu0 %v20097_v14, %s19981_s6 }
  0x9f   : > { %v20586_v1 = vpop.permute.xlu1 %17697  ;;  %v17693_v2 = vpop.permute.xlu0 %17692 }
  0xa0   : > { %18017 = vrot.lane.b32.xlu1 %v20131_v25, %s19981_s6  ;;  %v17685_v25 = vunpack.i.h.bf16 %v17683_v62  ;;  %v17694_v60 = vunpack.i.l.bf16 %v17693_v2  ;;  %v17699_v47 = vunpack.i.l.bf16 %v20586_v1 }
  0xa1   : > { %18012 = vrot.lane.b32.xlu0 %v20148_v29, %s19981_s6  ;;  %v17684_v29 = vunpack.i.l.bf16 %v17683_v62 }
  0xa3   : > { %v20592_v12 = vpop.permute.xlu1 %17707  ;;  %v20594_v21 = vpop.permute.xlu0 %17702 }
  0xa4   : > { %18027 = vrot.lane.b32.xlu1 %v20170_v36, %s19981_s6 }
  0xa5   : > { %18022 = vrot.lane.b32.xlu0 %v20185_v41, %s19981_s6 }
  0xa7   : > { %v20600_v10 = vpop.permute.xlu1 %17717  ;;  %v20602_v14 = vpop.permute.xlu0 %17712 }
  0xa8   : > { %18037 = vrot.lane.b32.xlu1 %v20221_v54, %s19981_s6  ;;  %v15953_v54 = vpack.c.bf16 %v17685_v25, %v17684_v29  ;;  %v20679_v25 = vld [vmem:[%s20071_s16 + $0x300] sm:$0xff]  ;;  %v20682_v29 = vld [vmem:[%s20071_s16 + $0x310] sm:$0xff] }
  0xa9   : > { %18032 = vrot.lane.b32.xlu0 %v20229_v56, %s19981_s6 }
  0xab   : > { %v17728_v31 = vpop.permute.xlu1 %17727  ;;  %v17723_v58 = vpop.permute.xlu0 %17722 }
  0xac   : > { %v17730_v9 = vunpack.i.h.bf16 %v17728_v31  ;;  %v17729_v11 = vunpack.i.l.bf16 %v17728_v31  ;;  %v17725_v36 = vunpack.i.h.bf16 %v17723_v58  ;;  %v17724_v13 = vunpack.i.l.bf16 %v17723_v58  ;;  %18047 = vrot.lane.b32.xlu1 %v20239_v57, %s19981_s6 }
  0xad   : > { %18042 = vrot.lane.b32.xlu0 %v20252_v61, %s19981_s6  ;;  %v17690_v57 = vunpack.i.h.bf16 %v17688_v34  ;;  %v17689_v61 = vunpack.i.l.bf16 %v17688_v34 }
  0xae   : > { %v15956_v41 = vpack.c.bf16 %v17730_v9, %v17729_v11  ;;  %v15950_v18 = vpack.c.bf16 %v17725_v36, %v17724_v13  ;;  %v1974_v9 = vld [vmem:[%s20071_s16 + $0x360] sm:$0xff]  ;;  %v1975_v11 = vld [vmem:[%s20071_s16 + $0x370] sm:$0xff]  ;;  %v20701_v36 = vpack.i.bf16 %v20682_v29, %v20679_v25  ;;  %v17705_v13 = vunpack.i.h.bf16 %v20594_v21 }
  0xaf   : > { %v17738_v20 = vpop.permute.xlu1 %17737  ;;  %v17733_v56 = vpop.permute.xlu0 %17732  ;;  %v15959_v28 = vpack.c.bf16 %v17690_v57, %v17689_v61 }
  0xb0   : > { %18057 = vrot.lane.b32.xlu1 %v20266_v5, %s19981_s6  ;;  %15952 = vmatprep.subr.msk.bf16.mxu0 %vm20075_vm1, %v15950_v18  ;;  %v17735_v49 = vunpack.i.h.bf16 %v17733_v56  ;;  %v17734_v39 = vunpack.i.l.bf16 %v17733_v56  ;;  %v1952_v5 = vld [vmem:[%s20071_s16 + $0x200] sm:$0xff]  ;;  %v17740_v38 = vunpack.i.h.bf16 %v17738_v20  ;;  %v17739_v4 = vunpack.i.l.bf16 %v17738_v20 }
  0xb1   : > { %18052 = vrot.lane.b32.xlu0 %v20272_v8, %s19981_s6  ;;  %15955 = vmatpush3.bf16.xpose.msk.msra.mxu0 %vm20075_vm1, %v15953_v54  ;;  %v1953_v8 = vld [vmem:[%s20071_s16 + $0x210] sm:$0xff]  ;;  %v1972_v18 = vld [vmem:[%s20071_s16 + $0x340] sm:$0xff] }
  0xb2   : > { %15958 = vmatprep.subr.msk.bf16.mxu0 %vm20075_vm1, %v15956_v41  ;;  %v15962_v46 = vpack.c.bf16 %v17735_v49, %v17734_v39  ;;  %v15968_v45 = vpack.c.bf16 %v17740_v38, %v17739_v4  ;;  %v17704_v41 = vunpack.i.l.bf16 %v20594_v21  ;;  %v1973_v54 = vld [vmem:[%s20071_s16 + $0x350] sm:$0xff] }
  0xb3   : > { %v20622_v37 = vpop.permute.xlu1 %17747  ;;  %v17743_v48 = vpop.permute.xlu0 %17742 }
  0xb4   : > { %18067 = vrot.lane.b32.xlu1 %v20286_v15, %s19981_s6  ;;  %v20640_v15 = vpack.i.bf16 %v1953_v8, %v1952_v5  ;;  %v17744_v62 = vunpack.i.l.bf16 %v17743_v48  ;;  %v17749_v20 = vunpack.i.l.bf16 %v20622_v37  ;;  %v20719_v8 = vpack.i.bf16 %v1973_v54, %v1972_v18  ;;  %v2514_v18 = vld [vmem:[%s20071_s16] sm:$0xff]  ;;  %v2515_v54 = vld [vmem:[%s20071_s16 + $0x10] sm:$0xff] }
  0xb5   : > { %18062 = vrot.lane.b32.xlu0 %v20297_v26, %s19981_s6  ;;  %v17695_v26 = vunpack.i.h.bf16 %v17693_v2  ;;  %v1971_v2 = vld [vmem:[%s20071_s16 + $0x330] sm:$0xff] }
  0xb7   : > { %v20630_v30 = vpop.permute.xlu1 %17757  ;;  %v20632_v42 = vpop.permute.xlu0 %17752 }
  0xb8   : > { %18077 = vrot.lane.b32.xlu1 %v20316_v50, %s19981_s6  ;;  %v15965_v50 = vpack.c.bf16 %v17695_v26, %v17694_v60  ;;  %v15977_v26 = vpack.c.bf16 %v17705_v13, %v17704_v41  ;;  %v2516_v13 = vld [vmem:[%s20071_s16 + $0x20] sm:$0xff]  ;;  %v2517_v41 = vld [vmem:[%s20071_s16 + $0x30] sm:$0xff] }
  0xb9   : > { %18072 = vrot.lane.b32.xlu0 %v20322_v22, %s19981_s6  ;;  %15961 = vmatpush3.bf16.xpose.msk.msra.mxu0 %vm20075_vm1, %v15959_v28 }
  0xba   : > { %15964 = vmatprep.subr.msk.bf16.mxu0 %vm20075_vm1, %v15962_v46  ;;  %v1977_v46 = vld [vmem:[%s20071_s16 + $0x390] sm:$0xff] }
  0xbb   : > { %v20644_v40 = vpop.permute.xlu1 %17767  ;;  %v20646_v35 = vpop.permute.xlu0 %17762 }
  0xbc   : > { %18087 = vrot.lane.b32.xlu1 %v20334_v23, %s19981_s6  ;;  %v17700_v23 = vunpack.i.h.bf16 %v20586_v1  ;;  %v17765_v56 = vunpack.i.h.bf16 %v20646_v35  ;;  %v17764_v57 = vunpack.i.l.bf16 %v20646_v35 }
  0xbd   : > { %18082 = vrot.lane.b32.xlu0 %v20640_v15, %s19981_s6 }
  0xbe   : > { %v15971_v1 = vpack.c.bf16 %v17700_v23, %v17699_v47  ;;  %v17710_v23 = vunpack.i.h.bf16 %v20592_v12  ;;  %v17709_v47 = vunpack.i.l.bf16 %v20592_v12 }
  0xbf   : > { %v20652_v22 = vpop.permute.xlu1 %17777  ;;  %v20654_v16 = vpop.permute.xlu0 %17772 }
  0xc0   : > { %18097 = vrot.lane.b32.xlu1 %v20352_v7, %s19981_s6  ;;  %v17745_v7 = vunpack.i.h.bf16 %v17743_v48 }
  0xc1   : > { %18092 = vrot.lane.b32.xlu0 %v20357_v19, %s19981_s6  ;;  %15967 = vmatpush3.bf16.xpose.msk.msra.mxu0 %vm20075_vm1, %v15965_v50  ;;  %v20675_v19 = vld [vmem:[%s20071_s16 + $0x320] sm:$0xff]  ;;  %v16001_v50 = vpack.c.bf16 %v17765_v56, %v17764_v57 }
  0xc2   : > { %15970 = vmatprep.subr.msk.bf16.mxu0 %vm20075_vm1, %v15968_v45  ;;  %v2520_v57 = vld [vmem:[%s20071_s16 + $0x60] sm:$0xff] }
  0xc3   : > { %v20666_v52 = vpop.permute.xlu1 %17787  ;;  %v20668_v34 = vpop.permute.xlu0 %17782 }
  0xc4   : > { %18107 = vrot.lane.b32.xlu1 %v20369_v32, %s19981_s6  ;;  %v15974_v32 = vpack.c.bf16 %v17745_v7, %v17744_v62 }
  0xc5   : > { %18102 = vrot.lane.b32.xlu0 %v20376_v59, %s19981_s6  ;;  %v20693_v59 = vpack.i.bf16 %v1971_v2, %v20675_v19  ;;  %v17755_v2 = vunpack.i.h.bf16 %v20632_v42 }
  0xc7   : > { %v20684_v31 = vpop.permute.xlu1 %17797  ;;  %v20686_v58 = vpop.permute.xlu0 %17792 }
  0xc8   : > { %18117 = vrot.lane.b32.xlu1 %v20387_v51, %s19981_s6  ;;  %v20707_v51 = vpack.i.bf16 %v1975_v11, %v1974_v9  ;;  %v17770_v9 = vunpack.i.h.bf16 %v20644_v40  ;;  %v17769_v11 = vunpack.i.l.bf16 %v20644_v40 }
  0xc9   : > { %18112 = vrot.lane.b32.xlu0 %v20391_v55, %s19981_s6  ;;  %15973 = vmatpush3.bf16.xpose.msk.msra.mxu0 %vm20075_vm1, %v15971_v1  ;;  %v17750_v55 = vunpack.i.h.bf16 %v20622_v37  ;;  %v1976_v37 = vld [vmem:[%s20071_s16 + $0x380] sm:$0xff]  ;;  %v17754_v1 = vunpack.i.l.bf16 %v20632_v42  ;;  %v15983_v42 = vpack.c.bf16 %v17710_v23, %v17709_v47 }
  0xca   : > { %15976 = vmatprep.subr.msk.bf16.mxu0 %vm20075_vm1, %v15974_v32  ;;  %v20733_v45 = vpack.i.bf16 %v1977_v46, %v1976_v37  ;;  %v16007_v56 = vpack.c.bf16 %v17770_v9, %v17769_v11  ;;  %v17760_v46 = vunpack.i.h.bf16 %v20630_v30  ;;  %v2524_v23 = vld [vmem:[%s20071_s16 + $0xa0] sm:$0xff] }
  0xcb   : > { %v17808_v61 = vpop.permute.xlu1 %17807  ;;  %v17803_v48 = vpop.permute.xlu0 %17802  ;;  %v15980_v4 = vpack.c.bf16 %v17750_v55, %v17749_v20  ;;  %v15986_v20 = vpack.c.bf16 %v17755_v2, %v17754_v1  ;;  %v2522_v47 = vld [vmem:[%s20071_s16 + $0x80] sm:$0xff]  ;;  %v2523_v2 = vld [vmem:[%s20071_s16 + $0x90] sm:$0xff] }
  0xcc   : > { %v17810_v21 = vunpack.i.h.bf16 %v17808_v61  ;;  %v17809_v49 = vunpack.i.l.bf16 %v17808_v61  ;;  %v17805_v39 = vunpack.i.h.bf16 %v17803_v48  ;;  %v17804_v5 = vunpack.i.l.bf16 %v17803_v48  ;;  %18127 = vrot.lane.b32.xlu1 %v20693_v59, %s19981_s6  ;;  %v2521_v61 = vld [vmem:[%s20071_s16 + $0x70] sm:$0xff] }
  0xcd   : > { %18122 = vrot.lane.b32.xlu0 %v20701_v36, %s19981_s6  ;;  %v20789_v37 = vpack.i.bf16 %v2521_v61, %v2520_v57 }
  0xce   : > { %v15998_v28 = vpack.c.bf16 %v17805_v39, %v17804_v5  ;;  %v16004_v60 = vpack.c.bf16 %v17810_v21, %v17809_v49  ;;  %v20773_v21 = vpack.i.bf16 %v2515_v54, %v2514_v18  ;;  %v2519_v49 = vld [vmem:[%s20071_s16 + $0x50] sm:$0xff]  ;;  %v17715_v39 = vunpack.i.h.bf16 %v20602_v14  ;;  %v2526_v54 = vld [vmem:[%s20071_s16 + $0xc0] sm:$0xff] }
  0xcf   : > { %v20723_v35 = vpop.permute.xlu1 %17817  ;;  %v17813_v38 = vpop.permute.xlu0 %17812  ;;  %v17714_v5 = vunpack.i.l.bf16 %v20602_v14  ;;  %v17774_v14 = vunpack.i.l.bf16 %v20654_v16  ;;  %v2529_v18 = vld [vmem:[%s20071_s16 + $0xf0] sm:$0xff] }
  0xd0   : > { %18137 = vrot.lane.b32.xlu1 %v20707_v51, %s19981_s6  ;;  %16000 = vmatprep.subr.msk.bf16.mxu1 %vm20075_vm1, %v15998_v28  ;;  %v17815_v12 = vunpack.i.h.bf16 %v17813_v38  ;;  %v17814_v32 = vunpack.i.l.bf16 %v17813_v38  ;;  %v17820_v38 = vunpack.i.h.bf16 %v20723_v35 }
  0xd1   : > { %18132 = vrot.lane.b32.xlu0 %v20719_v8, %s19981_s6  ;;  %15979 = vmatpush3.bf16.xpose.msk.msra.mxu0 %vm20075_vm1, %v15977_v26  ;;  %v17759_v26 = vunpack.i.l.bf16 %v20630_v30  ;;  %v2525_v30 = vld [vmem:[%s20071_s16 + $0xb0] sm:$0xff] }
  0xd2   : > { %16003 = vmatpush3.bf16.xpose.msk.msra.mxu1 %vm20075_vm1, %v16001_v50  ;;  %15982 = vmatprep.subr.msk.bf16.mxu0 %vm20075_vm1, %v15980_v4  ;;  %v16010_v48 = vpack.c.bf16 %v17815_v12, %v17814_v32  ;;  %v17819_v4 = vunpack.i.l.bf16 %v20723_v35  ;;  %v20813_v12 = vpack.i.bf16 %v2525_v30, %v2524_v23  ;;  %v20862_v30 = vld [vmem:[%s20071_s16 + $0x160] sm:$0xff] }
  0xd3   : > { %v20741_v7 = vpop.permute.xlu1 %17827  ;;  %v20743_v62 = vpop.permute.xlu0 %17822  ;;  %16006 = vmatprep.subr.msk.bf16.mxu1 %vm20075_vm1, %v16004_v60  ;;  %v17775_v60 = vunpack.i.h.bf16 %v20654_v16  ;;  %v15989_v16 = vpack.c.bf16 %v17715_v39, %v17714_v5  ;;  %v15992_v11 = vpack.c.bf16 %v17760_v46, %v17759_v26  ;;  %v2532_v46 = vld [vmem:[%s20071_s16 + $0x120] sm:$0xff]  ;;  %v2533_v26 = vld [vmem:[%s20071_s16 + $0x130] sm:$0xff] }
  0xd4   : > { %18147 = vrot.lane.b32.xlu1 %v20439_v17, %s19981_s6  ;;  %v20765_v17 = vpack.i.bf16 %v2517_v41, %v2516_v13  ;;  %v16016_v32 = vpack.c.bf16 %v17820_v38, %v17819_v4  ;;  %v20819_v13 = vpack.i.bf16 %v2523_v2, %v2522_v47  ;;  %v2528_v41 = vld [vmem:[%s20071_s16 + $0xe0] sm:$0xff]  ;;  %v17824_v39 = vunpack.i.l.bf16 %v20743_v62  ;;  %v20865_v47 = vld [vmem:[%s20071_s16 + $0x170] sm:$0xff] }
  0xd5   : > { %18142 = vrot.lane.b32.xlu0 %v20733_v45, %s19981_s6  ;;  %v16013_v35 = vpack.c.bf16 %v17775_v60, %v17774_v14  ;;  %v2531_v60 = vld [vmem:[%s20071_s16 + $0x110] sm:$0xff]  ;;  %27638 = vst [vmem:[#allocation8_spill] sm:$0xff] %v20865_v47 }
  0xd7   : > { %v20759_v55 = vpop.permute.xlu1 %17837  ;;  %v20761_v40 = vpop.permute.xlu0 %17832 }
  0xd8   : > { %18157 = vrot.lane.b32.xlu1 %v20451_v53, %s19981_s6  ;;  %v2518_v53 = vld [vmem:[%s20071_s16 + $0x40] sm:$0xff] }
  0xd9   : > { %18152 = vrot.lane.b32.xlu0 %v20454_v63, %s19981_s6  ;;  %15985 = vmatpush3.bf16.xpose.msk.msra.mxu0 %vm20075_vm1, %v15983_v42  ;;  %v20801_v50 = vpack.i.bf16 %v2519_v49, %v2518_v53  ;;  %v2527_v42 = vld [vmem:[%s20071_s16 + $0xd0] sm:$0xff]  ;;  %v17779_v53 = vunpack.i.l.bf16 %v20652_v22  ;;  %v20841_v49 = vpack.i.bf16 %v2529_v18, %v2528_v41  ;;  %v17784_v41 = vunpack.i.l.bf16 %v20668_v34 }
  0xda   : > { %16009 = vmatpush3.bf16.xpose.msk.msra.mxu1 %vm20075_vm1, %v16007_v56  ;;  %15988 = vmatprep.subr.msk.bf16.mxu0 %vm20075_vm1, %v15986_v20  ;;  %v17720_v20 = vunpack.i.h.bf16 %v20600_v10  ;;  %v17719_v56 = vunpack.i.l.bf16 %v20600_v10  ;;  %v17825_v10 = vunpack.i.h.bf16 %v20743_v62  ;;  %v20847_v5 = vpack.i.bf16 %v2527_v42, %v2526_v54 }
  0xdb   : > { %16012 = vmatprep.subr.msk.bf16.mxu1 %vm20075_vm1, %v16010_v48  ;;  %v20785_v63 = vpop.permute.xlu1 %17847  ;;  %v20787_v28 = vpop.permute.xlu0 %17842  ;;  %v17780_v48 = vunpack.i.h.bf16 %v20652_v22  ;;  %v2530_v22 = vld [vmem:[%s20071_s16 + $0x100] sm:$0xff]  ;;  %v20859_v62 = vpack.i.bf16 %v2533_v26, %v2532_v46  ;;  %v18216_v42 = vpack.i.bf16 %v20865_v47, %v20862_v30  ;;  %v2541_v26 = vld [vmem:[%s20071_s16 + $0x1b0] sm:$0xff] }
  0xdc   : > { %18167 = vrot.lane.b32.xlu1 %v20765_v17, %s19982_s7  ;;  %v15995_v14 = vpack.c.bf16 %v17720_v20, %v17719_v56  ;;  %v16022_v2 = vpack.c.bf16 %v17825_v10, %v17824_v39  ;;  %v17845_v20 = vunpack.i.h.bf16 %v20787_v28  ;;  %v17844_v56 = vunpack.i.l.bf16 %v20787_v28  ;;  %v2540_v46 = vld [vmem:[%s20071_s16 + $0x1a0] sm:$0xff] }
  0xdd   : > { %18162 = vrot.lane.b32.xlu0 %v20773_v21, %s19982_s7  ;;  %v16019_v23 = vpack.c.bf16 %v17780_v48, %v17779_v53  ;;  %v17829_v10 = vunpack.i.l.bf16 %v20741_v7 }
  0xde   : > { %v16049_v3 = vpack.c.bf16 %v17845_v20, %v17844_v56 }
  0xdf   : > { %v20807_v1 = vpop.permute.xlu1 %17857  ;;  %v20809_v9 = vpop.permute.xlu0 %17852 }
  0xe0   : > { %18177 = vrot.lane.b32.xlu1 %v20789_v37, %s19982_s7 }
  0xe1   : > { %18172 = vrot.lane.b32.xlu0 %v20801_v50, %s19982_s7  ;;  %15991 = vmatpush3.bf16.xpose.msk.msra.mxu0 %vm20075_vm1, %v15989_v16  ;;  %v20871_v16 = vpack.i.bf16 %v2531_v60, %v2530_v22 }
  0xe2   : > { %16015 = vmatpush3.bf16.xpose.msk.msra.mxu1 %vm20075_vm1, %v16013_v35  ;;  %15994 = vmatprep.subr.msk.bf16.mxu0 %vm20075_vm1, %v15992_v11  ;;  %v2534_v11 = vld [vmem:[%s20071_s16 + $0x140] sm:$0xff]  ;;  %v2535_v35 = vld [vmem:[%s20071_s16 + $0x150] sm:$0xff] }
  0xe3   : > { %16018 = vmatprep.subr.msk.bf16.mxu1 %vm20075_vm1, %v16016_v32  ;;  %v20833_v57 = vpop.permute.xlu1 %17867  ;;  %v20835_v61 = vpop.permute.xlu0 %17862  ;;  %v17785_v32 = vunpack.i.h.bf16 %v20668_v34  ;;  %v17830_v34 = vunpack.i.h.bf16 %v20741_v7  ;;  %v20891_v39 = vpack.i.bf16 %v2535_v35, %v2534_v11  ;;  %v20904_v11 = vld [vmem:[%s27485_s1] sm:$0xff]  ;;  %v20908_v35 = vpack.i.bf16 %v2541_v26, %v2540_v46 }
  0xe4   : > { %18187 = vrot.lane.b32.xlu1 %v20813_v12, %s19982_s7  ;;  %v17849_v46 = vunpack.i.l.bf16 %v20785_v63  ;;  %v17834_v26 = vunpack.i.l.bf16 %v20761_v40 }
  0xe5   : > { %18182 = vrot.lane.b32.xlu0 %v20819_v13, %s19982_s7  ;;  %v16025_v7 = vpack.c.bf16 %v17785_v32, %v17784_v41  ;;  %27639 = vst [vmem:[#allocation9_spill] sm:$0xff] %v20908_v35  ;;  %v16028_v33 = vpack.c.bf16 %v17830_v34, %v17829_v10  ;;  %v17790_v10 = vunpack.i.h.bf16 %v20666_v52 }
  0xe7   : > { %v20853_v38 = vpop.permute.xlu1 %17877  ;;  %v20855_v4 = vpop.permute.xlu0 %17872 }
  0xe8   : > { %18197 = vrot.lane.b32.xlu1 %v20841_v49, %s19982_s7 }
  0xe9   : > { %18192 = vrot.lane.b32.xlu0 %v20847_v5, %s19982_s7  ;;  %15997 = vmatpush3.bf16.xpose.msk.msra.mxu0 %vm20075_vm1, %v15995_v14  ;;  %v2538_v14 = vld [vmem:[%s20071_s16 + $0x180] sm:$0xff] }
  0xea   : > { %16021 = vmatpush3.bf16.xpose.msk.msra.mxu1 %vm20075_vm1, %v16019_v23  ;;  %v2539_v23 = vld [vmem:[%s20071_s16 + $0x190] sm:$0xff] }
  0xeb   : > { %16024 = vmatprep.subr.msk.bf16.mxu1 %vm20075_vm1, %v16022_v2  ;;  %v17888_v18 = vpop.permute.xlu1 %17887  ;;  %v17883_v54 = vpop.permute.xlu0 %17882  ;;  %v20917_v32 = vpack.i.bf16 %v2539_v23, %v2538_v14  ;;  %v2552_v14 = vld [vmem:[%s20071_s16 + $0x260] sm:$0xff] }
  0xec   : > { %v17885_v48 = vunpack.i.h.bf16 %v17883_v54  ;;  %v17884_v53 = vunpack.i.l.bf16 %v17883_v54  ;;  %18207 = vrot.lane.b32.xlu1 %v20859_v62, %s19982_s7  ;;  %v17890_v28 = vunpack.i.h.bf16 %v17888_v18  ;;  %v17889_v22 = vunpack.i.l.bf16 %v17888_v18  ;;  %v2545_v18 = vld [vmem:[%s20071_s16 + $0x1f0] sm:$0xff] }
  0xed   : > { %18202 = vrot.lane.b32.xlu0 %v20871_v16, %s19982_s7  ;;  %27640 = vst [vmem:[#allocation10_spill] sm:$0xff] %v20917_v32  ;;  %v20931_v56 = vpack.i.bf16 %v2545_v18, %v2544_v27  ;;  %v17835_v27 = vunpack.i.h.bf16 %v20761_v40  ;;  %v2553_v18 = vld [vmem:[%s20071_s16 + $0x270] sm:$0xff] }
  0xee   : > { %v16046_v60 = vpack.c.bf16 %v17885_v48, %v17884_v53  ;;  %v2542_v48 = vld [vmem:[%s20071_s16 + $0x1c0] sm:$0xff]  ;;  %v2543_v53 = vld [vmem:[%s20071_s16 + $0x1d0] sm:$0xff]  ;;  %v16052_v41 = vpack.c.bf16 %v17890_v28, %v17889_v22 }
  0xef   : > { %v20897_v2 = vpop.permute.xlu1 %17897  ;;  %v17893_v54 = vpop.permute.xlu0 %17892  ;;  %27641 = vst [vmem:[#allocation11_spill] sm:$0xff] %v20931_v56  ;;  %v20933_v34 = vpack.i.bf16 %v2543_v53, %v2542_v48  ;;  %v20970_v48 = vld [vmem:[%s20071_s16 + $0x240] sm:$0xff]  ;;  %v20973_v53 = vld [vmem:[%s20071_s16 + $0x250] sm:$0xff] }
  0xf0   : > { %18217 = vrot.lane.b32.xlu1 %v18216_v42, %s19982_s7  ;;  %14687 = vmatmul.mubr.msk.f32.vlgmr.msra.gmra.mrb[8].mxu0 %vm317_vm0, %v20904_v11  ;;  %v17895_v28 = vunpack.i.h.bf16 %v17893_v54  ;;  %v17894_v22 = vunpack.i.l.bf16 %v17893_v54  ;;  %27643 = vst [vmem:[#allocation13_spill] sm:$0xff] %v20970_v48 }
  0xf1   : > { %18212 = vrot.lane.b32.xlu0 %v20891_v39, %s19982_s7  ;;  %16048 = vmatprep.subr.msk.bf16.mxu0 %vm20075_vm1, %v16046_v60  ;;  %27642 = vst [vmem:[#allocation12_spill] sm:$0xff] %v20933_v34 }
  0xf2   : > { %16027 = vmatpush3.bf16.xpose.msk.msra.mxu1 %vm20075_vm1, %v16025_v7  ;;  %16051 = vmatpush3.bf16.xpose.msk.msra.mxu0 %vm20075_vm1, %v16049_v3  ;;  %v17789_v3 = vunpack.i.l.bf16 %v20666_v52  ;;  %v20950_v52 = vld [vmem:[%s20071_s16 + $0x220] sm:$0xff] }
  0xf3   : > { %16030 = vmatprep.subr.msk.bf16.mxu1 %vm20075_vm1, %v16028_v33  ;;  %v20925_v42 = vpop.permute.xlu1 %17907  ;;  %v20927_v20 = vpop.permute.xlu0 %17902  ;;  %14688 = vmatprep.mubr.msk.f32.mxu0 %vm317_vm0, %v20467_v43  ;;  %v17850_v33 = vunpack.i.h.bf16 %v20785_v63  ;;  %v20953_v63 = vld [vmem:[%s20071_s16 + $0x230] sm:$0xff] }
  0xf4   : > { %18227 = vrot.lane.b32.xlu1 %v20908_v35, %s19982_s7  ;;  %14689 = vmatmul.mubr.msk.f32.gmra.mrb[10].mxu0 %vm317_vm0, %v20467_v43  ;;  %v16031_v23 = vpack.c.bf16 %v17790_v10, %v17789_v3  ;;  %v18246_v7 = vpack.i.bf16 %v20953_v63, %v20950_v52  ;;  %v16058_v35 = vpack.c.bf16 %v17895_v28, %v17894_v22  ;;  %v17855_v28 = vunpack.i.h.bf16 %v20809_v9 }
  0xf5   : > { %18222 = vrot.lane.b32.xlu0 %v20917_v32, %s19982_s7  ;;  %14690 = vmatprep.mubr.msk.f32.mxu0 %vm317_vm0, %v20484_v44  ;;  %v16055_v54 = vpack.c.bf16 %v17850_v33, %v17849_v46  ;;  %v20991_v33 = vpack.i.bf16 %v2553_v18, %v2552_v14  ;;  %v18251_v46 = vpack.i.bf16 %v20973_v53, %v20970_v48  ;;  %v17840_v22 = vunpack.i.h.bf16 %v20759_v55  ;;  %v2555_v18 = vld [vmem:[%s20071_s16 + $0x290] sm:$0xff] }
  0xf6   : > { %16054 = vmatprep.subr.msk.bf16.mxu0 %vm20075_vm1, %v16052_v41  ;;  %v16034_v41 = vpack.c.bf16 %v17835_v27, %v17834_v26  ;;  %v17795_v27 = vunpack.i.h.bf16 %v20686_v58  ;;  %v17794_v26 = vunpack.i.l.bf16 %v20686_v58  ;;  %v17839_v14 = vunpack.i.l.bf16 %v20759_v55  ;;  %v2556_v58 = vld [vmem:[%s20071_s16 + $0x2a0] sm:$0xff]  ;;  %v2561_v32 = vld [vmem:[%s20071_s16 + $0x2f0] sm:$0xff] }
  0xf7   : > { %v20957_v60 = vpop.permute.xlu1 %17917  ;;  %v20959_v40 = vpop.permute.xlu0 %17912 }
  0xf8   : > { %18237 = vrot.lane.b32.xlu1 %v20931_v56, %s19982_s7  ;;  %14691 = vmatmul.mubr.msk.f32.gmra.mrb[12].mxu0 %vm317_vm0, %v20484_v44  ;;  %v16037_v56 = vpack.c.bf16 %v17795_v27, %v17794_v26  ;;  %v16040_v24 = vpack.c.bf16 %v17840_v22, %v17839_v14  ;;  %v2558_v27 = vld [vmem:[%s20071_s16 + $0x2c0] sm:$0xff]  ;;  %v2559_v26 = vld [vmem:[%s20071_s16 + $0x2d0] sm:$0xff]  ;;  %v17800_v22 = vunpack.i.h.bf16 %v20684_v31  ;;  %v17859_v14 = vunpack.i.l.bf16 %v20807_v1 }
  0xf9   : > { %18232 = vrot.lane.b32.xlu0 %v20933_v34, %s19982_s7  ;;  %14692 = vmatprep.mubr.msk.f32.mxu0 %vm317_vm0, %v20501_v0 }
  0xfa   : > { %16033 = vmatpush3.bf16.xpose.msk.msra.mxu1 %vm20075_vm1, %v16031_v23  ;;  %16057 = vmatpush3.bf16.xpose.msk.msra.mxu0 %vm20075_vm1, %v16055_v54  ;;  %v17900_v23 = vunpack.i.h.bf16 %v20897_v2  ;;  %v17899_v54 = vunpack.i.l.bf16 %v20897_v2 }
  0xfb   : > { %16036 = vmatprep.subr.msk.bf16.mxu1 %vm20075_vm1, %v16034_v41  ;;  %16060 = vmatprep.subr.msk.bf16.mxu0 %vm20075_vm1, %v16058_v35  ;;  %v20987_v10 = vpop.permute.xlu1 %17927  ;;  %v20989_v3 = vpop.permute.xlu0 %17922  ;;  %v17854_v35 = vunpack.i.l.bf16 %v20809_v9  ;;  %v2557_v9 = vld [vmem:[%s20071_s16 + $0x2b0] sm:$0xff] }
  0xfc   : > { %18247 = vrot.lane.b32.xlu1 %v18246_v7, %s19982_s7  ;;  %14693 = vmatmul.mubr.msk.f32.gmra.mrb[14].mxu0 %vm317_vm0, %v20501_v0  ;;  %v2554_v7 = vld [vmem:[%s20071_s16 + $0x280] sm:$0xff]  ;;  %v21020_v2 = vpack.i.bf16 %v2557_v9, %v2556_v58  ;;  %v16064_v48 = vpack.c.bf16 %v17900_v23, %v17899_v54  ;;  %v17864_v9 = vunpack.i.l.bf16 %v20835_v61 }
  0xfd   : > { %18242 = vrot.lane.b32.xlu0 %v20640_v15, %s19982_s7  ;;  %14766 = vmatprep.mubr.msk.f32.mxu0 %vm317_vm0, %v20904_v11  ;;  %v16061_v34 = vpack.c.bf16 %v17855_v28, %v17854_v35  ;;  %v2560_v15 = vld [vmem:[%s20071_s16 + $0x2e0] sm:$0xff]  ;;  %v21025_v47 = vpack.i.bf16 %v2555_v18, %v2554_v7  ;;  %v17925_v7 = vunpack.i.h.bf16 %v20989_v3  ;;  %v17924_v18 = vunpack.i.l.bf16 %v20989_v3 }
  0xfe   : > { %27644 = vst [vmem:[#allocation14_spill] sm:$0xff] %v21020_v2  ;;  %v17910_v3 = vunpack.i.h.bf16 %v20925_v42 }
  0xff   : > { %v21014_v41 = vpop.permute.xlu1 %17937  ;;  %v21016_v55 = vpop.permute.xlu0 %17932 }
 0x100   : > { %18257 = vrot.lane.b32.xlu1 %v20991_v33, %s19982_s7 }
 0x101   : > { %18252 = vrot.lane.b32.xlu0 %v18251_v46, %s19982_s7  ;;  %v21041_v46 = vpack.i.bf16 %v2561_v32, %v2560_v15  ;;  %v21053_v32 = vpack.i.bf16 %v2559_v26, %v2558_v27 }
 0x102   : > { %16039 = vmatpush3.bf16.xpose.msk.msra.mxu1 %vm20075_vm1, %v16037_v56  ;;  %16063 = vmatpush3.bf16.xpose.msk.msra.mxu0 %vm20075_vm1, %v16061_v34  ;;  %v17799_v56 = vunpack.i.l.bf16 %v20684_v31  ;;  %v17860_v34 = vunpack.i.h.bf16 %v20807_v1 }
 0x103   : > { %16042 = vmatprep.subr.msk.bf16.mxu1 %vm20075_vm1, %v16040_v24  ;;  %16066 = vmatprep.subr.msk.bf16.mxu0 %vm20075_vm1, %v16064_v48  ;;  %v21037_v28 = vpop.permute.xlu1 %17947  ;;  %v21039_v35 = vpop.permute.xlu0 %17942  ;;  %27645 = vst [vmem:[#allocation15_spill] sm:$0xff] %v21041_v46  ;;  %v17905_v24 = vunpack.i.h.bf16 %v20927_v20  ;;  %v17904_v48 = vunpack.i.l.bf16 %v20927_v20  ;;  %27646 = vst [vmem:[#allocation16_spill] sm:$0xff] %v21053_v32  ;;  %v17865_v20 = vunpack.i.h.bf16 %v20835_v61  ;;  %v2573_v61 = vld [vmem:[%s20071_s16 + $0x3b0] sm:$0xff] }
 0x104   : > { %18267 = vrot.lane.b32.xlu1 %v21020_v2, %s19982_s7  ;;  %v16043_v31 = vpack.c.bf16 %v17800_v22, %v17799_v56  ;;  %v16067_v58 = vpack.c.bf16 %v17860_v34, %v17859_v14  ;;  %v2572_v14 = vld [vmem:[%s20071_s16 + $0x3a0] sm:$0xff]  ;;  %v2575_v2 = vld [vmem:[%s20071_s16 + $0x3d0] sm:$0xff] }
 0x105   : > { %18262 = vrot.lane.b32.xlu0 %v21025_v47, %s19982_s7  ;;  %v16070_v1 = vpack.c.bf16 %v17905_v24, %v17904_v48  ;;  %v17909_v24 = vunpack.i.l.bf16 %v20925_v42  ;;  %v2577_v42 = vld [vmem:[%s20071_s16 + $0x3f0] sm:$0xff] }
 0x107   : > { %v21055_v23 = vpop.permute.xlu1 %17957  ;;  %v21057_v54 = vpop.permute.xlu0 %17952 }
 0x108   : > { %18277 = vrot.lane.b32.xlu1 %v21041_v46, %s19982_s7 }
 0x109   : > { %18272 = vrot.lane.b32.xlu0 %v21053_v32, %s19982_s7  ;;  %v2574_v32 = vld [vmem:[%s20071_s16 + $0x3c0] sm:$0xff] }
 0x10a   : > { %16045 = vmatpush3.bf16.xpose.msk.msra.mxu1 %vm20075_vm1, %v16043_v31  ;;  %16069 = vmatpush3.bf16.xpose.msk.msra.mxu0 %vm20075_vm1, %v16067_v58 }
 0x10b   : > { %16072 = vmatprep.subr.msk.bf16.mxu0 %vm20075_vm1, %v16070_v1  ;;  %v17968_v15 = vpop.permute.xlu1 %17967  ;;  %v17963_v27 = vpop.permute.xlu0 %17962  ;;  %v21083_v1 = vpack.i.bf16 %v2573_v61, %v2572_v14 }
 0x10c   : > { %v17970_v26 = vunpack.i.h.bf16 %v17968_v15  ;;  %v17969_v22 = vunpack.i.l.bf16 %v17968_v15  ;;  %v17965_v56 = vunpack.i.h.bf16 %v17963_v27  ;;  %v17964_v34 = vunpack.i.l.bf16 %v17963_v27  ;;  %18287 = vrot.lane.b32.xlu1 %v20693_v59, %s19982_s7  ;;  %v2576_v15 = vld [vmem:[%s20071_s16 + $0x3e0] sm:$0xff] }
 0x10d   : > { %18282 = vrot.lane.b32.xlu0 %v20701_v36, %s19982_s7  ;;  %v16073_v59 = vpack.c.bf16 %v17865_v20, %v17864_v9  ;;  %v16097_v27 = vpack.c.bf16 %v17925_v7, %v17924_v18  ;;  %v16076_v36 = vpack.c.bf16 %v17910_v3, %v17909_v24  ;;  %v21111_v9 = vpack.i.bf16 %v2575_v2, %v2574_v32 }
 0x10e   : > { %v16094_v48 = vpack.c.bf16 %v17965_v56, %v17964_v34  ;;  %v16100_v46 = vpack.c.bf16 %v17970_v26, %v17969_v22  ;;  %v17870_v7 = vunpack.i.h.bf16 %v20833_v57  ;;  %v17869_v18 = vunpack.i.l.bf16 %v20833_v57 }
 0x10f   : > { %v21081_v31 = vpop.permute.xlu1 %17977  ;;  %v17973_v58 = vpop.permute.xlu0 %17972  ;;  %v17930_v26 = vunpack.i.h.bf16 %v20987_v10  ;;  %v17929_v22 = vunpack.i.l.bf16 %v20987_v10  ;;  %v17915_v56 = vunpack.i.h.bf16 %v20959_v40  ;;  %v17914_v34 = vunpack.i.l.bf16 %v20959_v40 }
 0x110   : > { %18297 = vrot.lane.b32.xlu1 %v20707_v51, %s19982_s7  ;;  %16096 = vmatprep.subr.msk.bf16.mxu1 %vm20075_vm1, %v16094_v48  ;;  %v17975_v2 = vunpack.i.h.bf16 %v17973_v58  ;;  %v17974_v32 = vunpack.i.l.bf16 %v17973_v58  ;;  %v17875_v3 = vunpack.i.h.bf16 %v20855_v4  ;;  %v17935_v24 = vunpack.i.h.bf16 %v21016_v55 }
 0x111   : > { %18292 = vrot.lane.b32.xlu0 %v20719_v8, %s19982_s7  ;;  %14727 = vmatmul.mubr.msk.f32.vlgmr.msra.gmra.mrb[8].mxu1 %vm317_vm0, %v20904_v11  ;;  %v21109_v8 = vpack.i.bf16 %v2577_v42, %v2576_v15  ;;  %v16103_v14 = vpack.c.bf16 %v17930_v26, %v17929_v22  ;;  %v16082_v40 = vpack.c.bf16 %v17915_v56, %v17914_v34  ;;  %v17934_v48 = vunpack.i.l.bf16 %v21016_v55 }
 0x112   : > { %16075 = vmatpush3.bf16.xpose.msk.msra.mxu0 %vm20075_vm1, %v16073_v59  ;;  %16099 = vmatpush3.bf16.xpose.msk.msra.mxu1 %vm20075_vm1, %v16097_v27  ;;  %v16106_v61 = vpack.c.bf16 %v17975_v2, %v17974_v32  ;;  %v17920_v58 = vunpack.i.h.bf16 %v20957_v60  ;;  %v17919_v15 = vunpack.i.l.bf16 %v20957_v60  ;;  %v17980_v59 = vunpack.i.h.bf16 %v21081_v31 }
 0x113   : > { %16078 = vmatprep.subr.msk.bf16.mxu0 %vm20075_vm1, %v16076_v36  ;;  %v21103_v51 = vpop.permute.xlu1 %17987  ;;  %v21105_v20 = vpop.permute.xlu0 %17982  ;;  %14728 = vmatprep.mubr.msk.f32.mxu1 %vm317_vm0, %v20467_v43  ;;  %v17979_v27 = vunpack.i.l.bf16 %v21081_v31  ;;  %v16109_v42 = vpack.c.bf16 %v17935_v24, %v17934_v48  ;;  %v17940_v36 = vunpack.i.h.bf16 %v21014_v41  ;;  %v21235_v24 = vld [vmem:[%s20071_s16 + $0x330] sm:$0xff]  ;;  %v17949_v48 = vunpack.i.l.bf16 %v21037_v28 }
 0x114   : > { %18307 = vrot.lane.b32.xlu1 %v21083_v1, %s19982_s7  ;;  %16102 = vmatprep.subr.msk.bf16.mxu1 %vm20075_vm1, %v16100_v46  ;;  %v16079_v46 = vpack.c.bf16 %v17870_v7, %v17869_v18  ;;  %v16088_v60 = vpack.c.bf16 %v17920_v58, %v17919_v15  ;;  %v17939_v7 = vunpack.i.l.bf16 %v21014_v41  ;;  %v17985_v18 = vunpack.i.h.bf16 %v21105_v20 }
 0x115   : > { %18302 = vrot.lane.b32.xlu0 %v20733_v45, %s19982_s7  ;;  %14729 = vmatmul.mubr.msk.f32.gmra.mrb[10].mxu1 %vm317_vm0, %v20467_v43  ;;  %v16112_v31 = vpack.c.bf16 %v17980_v59, %v17979_v27  ;;  %v17984_v26 = vunpack.i.l.bf16 %v21105_v20  ;;  %v17945_v20 = vunpack.i.h.bf16 %v21039_v35  ;;  %v3162_v59 = vld [vmem:[%s20071_s16 + $0x360] sm:$0xff]  ;;  %v3163_v27 = vld [vmem:[%s20071_s16 + $0x370] sm:$0xff] }
 0x116   : > { %14730 = vmatprep.mubr.msk.f32.mxu1 %vm317_vm0, %v20484_v44 }
 0x117   : > { %v21129_v57 = vpop.permute.xlu1 %17997  ;;  %v21131_v10 = vpop.permute.xlu0 %17992  ;;  %v16118_v41 = vpack.c.bf16 %v17985_v18, %v17984_v26  ;;  %v27648_v26 = vld [vmem:[#allocation13_spill] sm:$0xff] }
 0x118   : > { %18317 = vrot.lane.b32.xlu1 %v21109_v8, %s19982_s7 }
 0x119   : > { %18312 = vrot.lane.b32.xlu0 %v21111_v9, %s19982_s7  ;;  %14731 = vmatmul.mubr.msk.f32.gmra.mrb[12].mxu1 %vm317_vm0, %v20484_v44  ;;  %v17874_v44 = vunpack.i.l.bf16 %v20855_v4 }
 0x11a   : > { %16081 = vmatpush3.bf16.xpose.msk.msra.mxu0 %vm20075_vm1, %v16079_v46  ;;  %16105 = vmatpush3.bf16.xpose.msk.msra.mxu1 %vm20075_vm1, %v16103_v14  ;;  %v21220_v46 = vld [vmem:[%s20071_s16 + $0x210] sm:$0xff]  ;;  %v17990_v14 = vunpack.i.h.bf16 %v21103_v51 }
 0x11b   : > { %16084 = vmatprep.subr.msk.bf16.mxu0 %vm20075_vm1, %v16082_v40  ;;  %16108 = vmatprep.subr.msk.bf16.mxu1 %vm20075_vm1, %v16106_v61  ;;  %v21147_v43 = vpop.permute.xlu1 %18007  ;;  %v21149_v45 = vpop.permute.xlu0 %18002  ;;  %v16085_v55 = vpack.c.bf16 %v17875_v3, %v17874_v44  ;;  %v17989_v40 = vunpack.i.l.bf16 %v21103_v51  ;;  %v21232_v61 = vld [vmem:[%s20071_s16 + $0x340] sm:$0xff]  ;;  %v17950_v51 = vunpack.i.h.bf16 %v21037_v28 }
 0x11c   : > { %14732 = vmatprep.mubr.msk.f32.mxu1 %vm317_vm0, %v20501_v0  ;;  %18327 = vrot.lane.b32.xlu1 %v20765_v17, %s19983_s10 }
 0x11d   : > { %18322 = vrot.lane.b32.xlu0 %v20773_v21, %s19983_s10  ;;  %14733 = vmatmul.mubr.msk.f32.gmra.mrb[14].mxu1 %vm317_vm0, %v20501_v0 }
 0x11e   : > { %14806 = vmatprep.mubr.msk.f32.mxu1 %vm317_vm0, %v20904_v11 }
 0x11f   : > { %v21169_v4 = vpop.permute.xlu1 %18017  ;;  %v21171_v17 = vpop.permute.xlu0 %18012 }
 0x120   : > { %18337 = vrot.lane.b32.xlu1 %v20789_v37, %s19983_s10  ;;  %v17880_v37 = vunpack.i.h.bf16 %v20853_v38 }
 0x121   : > { %18332 = vrot.lane.b32.xlu0 %v20801_v50, %s19983_s10  ;;  %v17879_v50 = vunpack.i.l.bf16 %v20853_v38  ;;  %v16115_v38 = vpack.c.bf16 %v17940_v36, %v17939_v7  ;;  %v18391_v36 = vpack.i.bf16 %v20950_v52, %v21235_v24 }
 0x122   : > { %16087 = vmatpush3.bf16.xpose.msk.msra.mxu0 %vm20075_vm1, %v16085_v55  ;;  %16111 = vmatpush3.bf16.xpose.msk.msra.mxu1 %vm20075_vm1, %v16109_v42 }
 0x123   : > { %16090 = vmatprep.subr.msk.bf16.mxu0 %vm20075_vm1, %v16088_v60  ;;  %16114 = vmatprep.subr.msk.bf16.mxu1 %vm20075_vm1, %v16112_v31  ;;  %v21185_v0 = vpop.permute.xlu1 %18027  ;;  %v21187_v21 = vpop.permute.xlu0 %18022  ;;  %v16091_v34 = vpack.c.bf16 %v17880_v37, %v17879_v50  ;;  %v18396_v60 = vpack.i.bf16 %v21232_v61, %v20953_v63  ;;  %v16124_v31 = vpack.c.bf16 %v17990_v14, %v17989_v40 }
 0x124   : > { %18347 = vrot.lane.b32.xlu1 %v20813_v12, %s19983_s10 }
 0x125   : > { %18342 = vrot.lane.b32.xlu0 %v20819_v13, %s19983_s10 }
 0x127   : > { %v21199_v22 = vpop.permute.xlu1 %18037  ;;  %v21201_v56 = vpop.permute.xlu0 %18032 }
 0x128   : > { %18357 = vrot.lane.b32.xlu1 %v20841_v49, %s19983_s10  ;;  %v18376_v49 = vpack.i.bf16 %v20679_v25, %v20862_v30  ;;  %v18005_v25 = vunpack.i.h.bf16 %v21149_v45  ;;  %v18004_v30 = vunpack.i.l.bf16 %v21149_v45  ;;  %v21246_v45 = vld [vmem:[%s20071_s16 + $0x350] sm:$0xff] }
 0x129   : > { %18352 = vrot.lane.b32.xlu0 %v20847_v5, %s19983_s10  ;;  %v17944_v5 = vunpack.i.l.bf16 %v21039_v35  ;;  %v21229_v35 = vld [vmem:[%s20071_s16 + $0x200] sm:$0xff] }
 0x12a   : > { %16093 = vmatpush3.bf16.xpose.msk.msra.mxu0 %vm20075_vm1, %v16091_v34  ;;  %16117 = vmatpush3.bf16.xpose.msk.msra.mxu1 %vm20075_vm1, %v16115_v38  ;;  %v18381_v28 = vpack.i.bf16 %v21229_v35, %v20682_v29  ;;  %v16145_v37 = vpack.c.bf16 %v18005_v25, %v18004_v30  ;;  %v27647_v29 = vld [vmem:[#allocation8_spill] sm:$0xff]  ;;  %v21269_v38 = vpack.i.bf16 %v3163_v27, %v3162_v59  ;;  %v21289_v25 = vld [vmem:[%s27485_s1 + $0x8] sm:$0xff]  ;;  %v18010_v30 = vunpack.i.h.bf16 %v21147_v43 }
 0x12b   : > { %16120 = vmatprep.subr.msk.bf16.mxu1 %vm20075_vm1, %v16118_v41  ;;  %v18048_v12 = vpop.permute.xlu1 %18047  ;;  %v18043_v13 = vpop.permute.xlu0 %18042  ;;  %v16121_v55 = vpack.c.bf16 %v17945_v20, %v17944_v5  ;;  %v17995_v5 = vunpack.i.h.bf16 %v21131_v10 }
 0x12c   : > { %v18045_v2 = vunpack.i.h.bf16 %v18043_v13  ;;  %v18044_v32 = vunpack.i.l.bf16 %v18043_v13  ;;  %18367 = vrot.lane.b32.xlu1 %v20859_v62, %s19983_s10  ;;  %v18050_v62 = vunpack.i.h.bf16 %v18048_v12  ;;  %v18049_v3 = vunpack.i.l.bf16 %v18048_v12  ;;  %v27649_v13 = vld [vmem:[#allocation5_spill] sm:$0xff]  ;;  %v3164_v12 = vld [vmem:[%s20071_s16 + $0x380] sm:$0xff] }
 0x12d   : > { %18362 = vrot.lane.b32.xlu0 %v20871_v16, %s19983_s10  ;;  %v18386_v16 = vpack.i.bf16 %v20675_v19, %v21220_v46 }
 0x12e   : > { %v16142_v44 = vpack.c.bf16 %v18045_v2, %v18044_v32  ;;  %v16148_v7 = vpack.c.bf16 %v18050_v62, %v18049_v3  ;;  %v17994_v2 = vunpack.i.l.bf16 %v21131_v10  ;;  %v18009_v62 = vunpack.i.l.bf16 %v21147_v43  ;;  %v27650_v3 = vld [vmem:[#allocation7_spill] sm:$0xff] }
 0x12f   : > { %v21239_v58 = vpop.permute.xlu1 %18057  ;;  %v21241_v15 = vpop.permute.xlu0 %18052 }
 0x130   : > { %v588_v42 = vpop.f32.mrb[0].mxu0  ;;  %18377 = vrot.lane.b32.xlu1 %v18376_v49, %s19983_s10  ;;  %16144 = vmatprep.subr.msk.bf16.mxu0 %vm20075_vm1, %v16142_v44  ;;  %v18055_v59 = vunpack.i.h.bf16 %v21241_v15  ;;  %v18054_v27 = vunpack.i.l.bf16 %v21241_v15 }
 0x131   : > { %v677_v19 = vpop.f32.mrb[0].mxu1  ;;  %18372 = vrot.lane.b32.xlu0 %v20891_v39, %s19983_s10  ;;  %v590_v50 = vpop.f32.mrb[1].mxu0  ;;  %14767 = vmatmul.mubr.msk.f32.vlgmr.msra.gmra.mrb[16].mxu0 %vm317_vm0, %v20904_v11  ;;  %v16127_v39 = vpack.c.bf16 %v17950_v51, %v17949_v48  ;;  %v589_v52 = vadd.f32 %v588_v42, %v27649_v13  ;;  %v21308_v42 = vld [vmem:[%s27485_s1 + $0x10] sm:$0xff] }
 0x132   : > { %v679_v18 = vpop.f32.mrb[1].mxu1  ;;  %16123 = vmatpush3.bf16.xpose.msk.msra.mxu1 %vm20075_vm1, %v16121_v55  ;;  %16147 = vmatpush3.bf16.xpose.msk.msra.mxu0 %vm20075_vm1, %v16145_v37  ;;  %v678_v32 = vadd.f32 %v677_v19, %v27649_v13  ;;  %v591_v14 = vadd.f32 %v590_v50, %v27649_v13 }
 0x133   : > { %16126 = vmatprep.subr.msk.bf16.mxu1 %vm20075_vm1, %v16124_v31  ;;  %v21278_v49 = vpop.permute.xlu1 %18067  ;;  %v21280_v20 = vpop.permute.xlu0 %18062  ;;  %14768 = vmatprep.mubr.msk.f32.mxu0 %vm317_vm0, %v21289_v25  ;;  %v680_v10 = vadd.f32 %v679_v18, %v27649_v13  ;;  %v700_v31 = vmax.f32 %v589_v52, 0.0 }
 0x134   : > { %v594_v40 = vpop.f32.mrb[2].mxu0  ;;  %18387 = vrot.lane.b32.xlu1 %v18386_v16, %s19983_s10  ;;  %16150 = vmatprep.subr.msk.bf16.mxu0 %vm20075_vm1, %v16148_v7  ;;  %v702_v18 = vmax.f32 %v678_v32, 0.0  ;;  %v16151_v7 = vpack.c.bf16 %v18010_v30, %v18009_v62  ;;  %v3165_v32 = vld [vmem:[%s20071_s16 + $0x390] sm:$0xff]  ;;  %v17999_v30 = vunpack.i.l.bf16 %v21129_v57  ;;  %v18014_v62 = vunpack.i.l.bf16 %v21171_v17 }
 0x135   : > { %v595_v44 = vadd.f32 %v594_v40, %v27650_v3  ;;  %v683_v51 = vpop.f32.mrb[2].mxu1  ;;  %18382 = vrot.lane.b32.xlu0 %v18381_v28, %s19983_s10  ;;  %v596_v48 = vpop.f32.mrb[3].mxu0  ;;  %14769 = vmatmul.mubr.msk.f32.gmra.mrb[18].mxu0 %vm317_vm0, %v21289_v25  ;;  %v18000_v28 = vunpack.i.h.bf16 %v21129_v57  ;;  %v701_v40 = vmax.f32 %v591_v14, 0.0  ;;  %v703_v63 = vmax.f32 %v680_v10, 0.0 }
 0x136   : > { %v684_v16 = vadd.f32 %v683_v51, %v27650_v3  ;;  %v597_v55 = vadd.f32 %v596_v48, %v27650_v3  ;;  %v685_v43 = vpop.f32.mrb[3].mxu1  ;;  %14770 = vmatprep.mubr.msk.f32.mxu0 %vm317_vm0, %v21308_v42  ;;  %v16130_v14 = vpack.c.bf16 %v17995_v5, %v17994_v2 }
 0x137   : > { %v704_v15 = vmax.f32 %v595_v44, 0.0  ;;  %v686_v37 = vadd.f32 %v685_v43, %v27650_v3  ;;  %v21316_v19 = vpop.permute.xlu1 %18077  ;;  %v21318_v50 = vpop.permute.xlu0 %18072 }
 0x138   : > { %v706_v51 = vmax.f32 %v684_v16, 0.0  ;;  %v705_v48 = vmax.f32 %v597_v55, 0.0  ;;  %v600_v34 = vpop.f32.mrb[4].mxu0  ;;  %18397 = vrot.lane.b32.xlu1 %v18396_v60, %s19983_s10  ;;  %v16154_v16 = vpack.c.bf16 %v18055_v59, %v18054_v27  ;;  %v27655_v59 = vld [vmem:[#allocation4_spill] sm:$0xff] }
 0x139   : > { %v21321_v41 = vpack.c.bf16 %v704_v15, %v700_v31  ;;  %v707_v52 = vmax.f32 %v686_v37, 0.0  ;;  %v689_v44 = vpop.f32.mrb[4].mxu1  ;;  %18392 = vrot.lane.b32.xlu0 %v18391_v36, %s19983_s10  ;;  %v602_v43 = vpop.f32.mrb[5].mxu0  ;;  %14771 = vmatmul.mubr.msk.f32.gmra.mrb[20].mxu0 %vm317_vm0, %v21308_v42  ;;  %v18015_v36 = vunpack.i.h.bf16 %v21171_v17  ;;  %v601_v27 = vadd.f32 %v600_v34, %v27655_v59 }
 0x13a   : > { %v21328_v55 = vpack.c.bf16 %v706_v51, %v702_v18  ;;  %v21330_v3 = vpack.c.bf16 %v705_v48, %v701_v40  ;;  %v691_v60 = vpop.f32.mrb[5].mxu1  ;;  %16129 = vmatpush3.bf16.xpose.msk.msra.mxu1 %vm20075_vm1, %v16127_v39  ;;  %16153 = vmatpush3.bf16.xpose.msk.msra.mxu0 %vm20075_vm1, %v16151_v7  ;;  %v690_v31 = vadd.f32 %v689_v44, %v27655_v59  ;;  %v27657_v39 = vunpack.i.h.bf16 %v21057_v54  ;;  %v21362_v40 = vld [vmem:[%s27485_s1 + $0x18] sm:$0xff]  ;;  %v27659_v7 = vld [vmem:[#allocation6_spill] sm:$0xff] }
 0x13b   : > { %27651 = vst [vmem:[#allocation8_spill] sm:$0xff] %v21321_v41  ;;  %v21337_v10 = vpack.c.bf16 %v707_v52, %v703_v63  ;;  %v21341_v5 = vpop.permute.xlu1 %18087  ;;  %v21343_v2 = vpop.permute.xlu0 %18082  ;;  %16132 = vmatprep.subr.msk.bf16.mxu1 %vm20075_vm1, %v16130_v14  ;;  %16156 = vmatprep.subr.msk.bf16.mxu0 %vm20075_vm1, %v16154_v16  ;;  %v21351_v17 = vpack.i.bf16 %v3165_v32, %v3164_v12  ;;  %v27656_v63 = vunpack.i.l.bf16 %v21057_v54  ;;  %v18060_v51 = vunpack.i.h.bf16 %v21239_v58  ;;  %v3732_v41 = vld [vmem:[%s20071_s16 + $0x1e0] sm:$0xff] }
 0x13c   : > { %27652 = vst [vmem:[#allocation13_spill] sm:$0xff] %v21328_v55  ;;  %27653 = vst [vmem:[#allocation5_spill] sm:$0xff] %v21330_v3  ;;  %v606_v57 = vpop.f32.mrb[6].mxu0  ;;  %v603_v37 = vadd.f32 %v602_v43, %v27655_v59  ;;  %v692_v34 = vadd.f32 %v691_v60, %v27655_v59  ;;  %14772 = vmatprep.mubr.msk.f32.mxu0 %vm317_vm0, %v21362_v40  ;;  %v27658_v12 = vpack.i.bf16 %v27647_v29, %v20973_v53  ;;  %v3733_v3 = vld [vmem:[%s20071_s16 + $0x1f0] sm:$0xff] }
 0x13d   : > { %27654 = vst [vmem:[#allocation17_spill] sm:$0xff] %v21337_v10  ;;  %v16133_v15 = vpack.c.bf16 %v27657_v39, %v27656_v63  ;;  %v695_v18 = vpop.f32.mrb[6].mxu1  ;;  %v608_v54 = vpop.f32.mrb[7].mxu0  ;;  %v18059_v48 = vunpack.i.l.bf16 %v21239_v58  ;;  %v607_v52 = vadd.f32 %v606_v57, %v27659_v7  ;;  %v27660_v43 = vpack.i.bf16 %v27648_v26, %v21246_v45  ;;  %14773 = vmatmul.mubr.msk.f32.gmra.mrb[22].mxu0 %vm317_vm0, %v21362_v40 }
 0x13e   : > { %18407 = vrot.lane.b32.xlu1 %v27658_v12, %s19983_s10  ;;  %v696_v44 = vadd.f32 %v695_v18, %v27659_v7  ;;  %v697_v32 = vpop.f32.mrb[7].mxu1  ;;  %v16136_v53 = vpack.c.bf16 %v18000_v28, %v17999_v30  ;;  %v16157_v29 = vpack.c.bf16 %v18015_v36, %v18014_v62  ;;  %v609_v14 = vadd.f32 %v608_v54, %v27659_v7 }
 0x13f   : > { %18402 = vrot.lane.b32.xlu0 %v27660_v43, %s19983_s10  ;;  %v698_v16 = vadd.f32 %v697_v32, %v27659_v7  ;;  %v21382_v58 = vpop.permute.xlu1 %18097  ;;  %v21384_v60 = vpop.permute.xlu0 %18092  ;;  %14846 = vmatprep.mubr.msk.f32.mxu0 %vm317_vm0, %v20904_v11  ;;  %v708_v57 = vmax.f32 %v601_v27, 0.0  ;;  %v710_v26 = vmax.f32 %v690_v31, 0.0  ;;  %v712_v63 = vmax.f32 %v607_v52, 0.0  ;;  %v3749_v7 = vld [vmem:[%s20071_s16 + $0x2f0] sm:$0xff] }
 0x140   : > { %v714_v39 = vmax.f32 %v696_v44, 0.0  ;;  %v709_v18 = vmax.f32 %v603_v37, 0.0  ;;  %v711_v12 = vmax.f32 %v692_v34, 0.0  ;;  %v713_v43 = vmax.f32 %v609_v14, 0.0  ;;  %v27665_v44 = vld [vmem:[#allocation10_spill] sm:$0xff]  ;;  %v27666_v14 = vld [vmem:[#allocation9_spill] sm:$0xff] }
 0x141   : > { %v715_v28 = vmax.f32 %v698_v16, 0.0  ;;  %v16160_v30 = vpack.c.bf16 %v18060_v51, %v18059_v48  ;;  %v21390_v36 = vpack.c.bf16 %v712_v63, %v708_v57  ;;  %v17960_v34 = vunpack.i.h.bf16 %v21055_v23 }
 0x142   : > { %18417 = vrot.lane.b32.xlu1 %v20991_v33, %s19983_s10  ;;  %v21392_v62 = vpack.c.bf16 %v714_v39, %v710_v26  ;;  %16135 = vmatpush3.bf16.xpose.msk.msra.mxu1 %vm20075_vm1, %v16133_v15  ;;  %v21398_v27 = vpack.c.bf16 %v713_v43, %v709_v18  ;;  %v17959_v54 = vunpack.i.l.bf16 %v21055_v23  ;;  %v18020_v15 = vunpack.i.h.bf16 %v21169_v4 }
 0x143   : > { %27661 = vst [vmem:[#allocation18_spill] sm:$0xff] %v21390_v36  ;;  %18412 = vrot.lane.b32.xlu0 %v21269_v38, %s19983_s10  ;;  %v21400_v31 = vpack.c.bf16 %v715_v28, %v711_v12  ;;  %16159 = vmatpush3.bf16.xpose.msk.msra.mxu0 %vm20075_vm1, %v16157_v29  ;;  %v21406_v33 = vpop.permute.xlu1 %18107  ;;  %v21408_v37 = vpop.permute.xlu0 %18102  ;;  %v18019_v51 = vunpack.i.l.bf16 %v21169_v4  ;;  %v18065_v48 = vunpack.i.h.bf16 %v21280_v20  ;;  %v18064_v52 = vunpack.i.l.bf16 %v21280_v20  ;;  %v27667_v28 = vld [vmem:[#allocation14_spill] sm:$0xff] }
 0x144   : > { %27662 = vst [vmem:[#allocation19_spill] sm:$0xff] %v21392_v62  ;;  %27663 = vst [vmem:[#allocation20_spill] sm:$0xff] %v21398_v27  ;;  %16138 = vmatprep.subr.msk.bf16.mxu1 %vm20075_vm1, %v16136_v53  ;;  %16162 = vmatprep.subr.msk.bf16.mxu0 %vm20075_vm1, %v16160_v30  ;;  %v16139_v53 = vpack.c.bf16 %v17960_v34, %v17959_v54  ;;  %v18085_v20 = vunpack.i.h.bf16 %v21343_v2  ;;  %v18084_v16 = vunpack.i.l.bf16 %v21343_v2  ;;  %v18024_v43 = vunpack.i.l.bf16 %v21187_v21  ;;  %v3765_v27 = vld [vmem:[%s20071_s16 + $0x3f0] sm:$0xff] }
 0x145   : > { %27664 = vst [vmem:[#allocation21_spill] sm:$0xff] %v21400_v31  ;;  %v16163_v29 = vpack.c.bf16 %v18020_v15, %v18019_v51  ;;  %v16166_v4 = vpack.c.bf16 %v18065_v48, %v18064_v52  ;;  %v18070_v2 = vunpack.i.h.bf16 %v21278_v49  ;;  %v18069_v30 = vunpack.i.l.bf16 %v21278_v49  ;;  %v27668_v52 = vld [vmem:[#allocation12_spill] sm:$0xff] }
 0x146   : > { %18427 = vrot.lane.b32.xlu1 %v21351_v17, %s19983_s10  ;;  %v16193_v51 = vpack.c.bf16 %v18085_v20, %v18084_v16  ;;  %v27669_v16 = vld [vmem:[#allocation11_spill] sm:$0xff] }
 0x147   : > { %18422 = vrot.lane.b32.xlu0 %v27665_v44, %s19983_s10  ;;  %v21422_v32 = vpop.permute.xlu1 %18117  ;;  %v21424_v23 = vpop.permute.xlu0 %18112  ;;  %v16172_v49 = vpack.c.bf16 %v18070_v2, %v18069_v30 }
 0x14a   : > { %18437 = vrot.lane.b32.xlu1 %v27666_v14, %s19983_s10  ;;  %16141 = vmatpush3.bf16.xpose.msk.msra.mxu1 %vm20075_vm1, %v16139_v53  ;;  %v18089_v53 = vunpack.i.l.bf16 %v21341_v5  ;;  %v18029_v14 = vunpack.i.l.bf16 %v21185_v0 }
 0x14b   : > { %18432 = vrot.lane.b32.xlu0 %v21025_v47, %s19983_s10  ;;  %16165 = vmatpush3.bf16.xpose.msk.msra.mxu0 %vm20075_vm1, %v16163_v29  ;;  %v18128_v57 = vpop.permute.xlu1 %18127  ;;  %v18123_v26 = vpop.permute.xlu0 %18122  ;;  %v18025_v47 = vunpack.i.h.bf16 %v21187_v21  ;;  %v18030_v29 = vunpack.i.h.bf16 %v21185_v0  ;;  %v3751_v0 = vld [vmem:[%s20071_s16 + $0x310] sm:$0xff] }
 0x14c   : > { %16168 = vmatprep.subr.msk.bf16.mxu0 %vm20075_vm1, %v16166_v4  ;;  %v18130_v63 = vunpack.i.h.bf16 %v18128_v57  ;;  %v18129_v39 = vunpack.i.l.bf16 %v18128_v57  ;;  %v18125_v18 = vunpack.i.h.bf16 %v18123_v26  ;;  %v18124_v12 = vunpack.i.l.bf16 %v18123_v26  ;;  %v27670_v26 = vld [vmem:[#allocation16_spill] sm:$0xff] }
 0x14d   : > { %v16169_v21 = vpack.c.bf16 %v18025_v47, %v18024_v43  ;;  %v18074_v57 = vunpack.i.l.bf16 %v21318_v50  ;;  %v3719_v47 = vld [vmem:[%s20071_s16 + $0x110] sm:$0xff] }
 0x14e   : > { %18447 = vrot.lane.b32.xlu1 %v27667_v28, %s19983_s10  ;;  %v16190_v34 = vpack.c.bf16 %v18125_v18, %v18124_v12  ;;  %v16196_v48 = vpack.c.bf16 %v18130_v63, %v18129_v39  ;;  %v3750_v63 = vld [vmem:[%s20071_s16 + $0x300] sm:$0xff]  ;;  %v16175_v28 = vpack.c.bf16 %v18030_v29, %v18029_v14  ;;  %v18034_v29 = vunpack.i.l.bf16 %v21201_v56 }
 0x14f   : > { %18442 = vrot.lane.b32.xlu0 %v21083_v1, %s19983_s10  ;;  %v21446_v54 = vpop.permute.xlu1 %18137  ;;  %v18133_v15 = vpop.permute.xlu0 %18132  ;;  %v3718_v12 = vld [vmem:[%s20071_s16 + $0x100] sm:$0xff]  ;;  %v21496_v30 = vpack.i.bf16 %v3751_v0, %v3750_v63 }
 0x150   : > { %16192 = vmatprep.subr.msk.bf16.mxu1 %vm20075_vm1, %v16190_v34  ;;  %v18135_v4 = vunpack.i.h.bf16 %v18133_v15  ;;  %v18134_v20 = vunpack.i.l.bf16 %v18133_v15  ;;  %v21502_v15 = vpack.i.bf16 %v3719_v47, %v3718_v12  ;;  %v18140_v14 = vunpack.i.h.bf16 %v21446_v54  ;;  %v3736_v0 = vld [vmem:[%s20071_s16 + $0x220] sm:$0xff]  ;;  %v3737_v12 = vld [vmem:[%s20071_s16 + $0x230] sm:$0xff] }
 0x151   : > { %14807 = vmatmul.mubr.msk.f32.vlgmr.msra.gmra.mrb[16].mxu1 %vm317_vm0, %v20904_v11 }
 0x152   : > { %18457 = vrot.lane.b32.xlu1 %v21111_v9, %s19983_s10  ;;  %16195 = vmatpush3.bf16.xpose.msk.msra.mxu1 %vm20075_vm1, %v16193_v51  ;;  %v18090_v9 = vunpack.i.h.bf16 %v21341_v5  ;;  %v18075_v5 = vunpack.i.h.bf16 %v21318_v50  ;;  %v16202_v2 = vpack.c.bf16 %v18135_v4, %v18134_v20  ;;  %v27671_v50 = vld [vmem:[#allocation15_spill] sm:$0xff]  ;;  %v18139_v4 = vunpack.i.l.bf16 %v21446_v54 }
 0x153   : > { %18452 = vrot.lane.b32.xlu0 %v27668_v52, %s19983_s10  ;;  %16171 = vmatpush3.bf16.xpose.msk.msra.mxu0 %vm20075_vm1, %v16169_v21  ;;  %v21460_v1 = vpop.permute.xlu1 %18147  ;;  %v21462_v44 = vpop.permute.xlu0 %18142  ;;  %v3702_v21 = vld [vmem:[%s20071_s16] sm:$0xff]  ;;  %v18095_v52 = vunpack.i.h.bf16 %v21384_v60 }
 0x154   : > { %14808 = vmatprep.mubr.msk.f32.mxu1 %vm317_vm0, %v21289_v25  ;;  %16174 = vmatprep.subr.msk.bf16.mxu0 %vm20075_vm1, %v16172_v49  ;;  %v16199_v43 = vpack.c.bf16 %v18090_v9, %v18089_v53  ;;  %v16178_v34 = vpack.c.bf16 %v18075_v5, %v18074_v57  ;;  %v3703_v49 = vld [vmem:[%s20071_s16 + $0x10] sm:$0xff]  ;;  %v18496_v9 = vpack.i.bf16 %v21220_v46, %v21229_v35  ;;  %v18035_v53 = vunpack.i.h.bf16 %v21201_v56 }
 0x155   : > { %16198 = vmatprep.subr.msk.bf16.mxu1 %vm20075_vm1, %v16196_v48  ;;  %14809 = vmatmul.mubr.msk.f32.gmra.mrb[18].mxu1 %vm317_vm0, %v21289_v25  ;;  %v18080_v46 = vunpack.i.h.bf16 %v21316_v19  ;;  %v18079_v35 = vunpack.i.l.bf16 %v21316_v19  ;;  %v21534_v56 = vpack.i.bf16 %v3703_v49, %v3702_v21  ;;  %v3721_v5 = vld [vmem:[%s20071_s16 + $0x130] sm:$0xff]  ;;  %v21572_v21 = vpack.i.bf16 %v3737_v12, %v3736_v0  ;;  %v3706_v0 = vld [vmem:[%s20071_s16 + $0x40] sm:$0xff] }
 0x156   : > { %18467 = vrot.lane.b32.xlu1 %v27669_v16, %s19983_s10  ;;  %14810 = vmatprep.mubr.msk.f32.mxu1 %vm317_vm0, %v21308_v42  ;;  %v3720_v16 = vld [vmem:[%s20071_s16 + $0x120] sm:$0xff]  ;;  %v16181_v19 = vpack.c.bf16 %v18035_v53, %v18034_v29  ;;  %v18040_v49 = vunpack.i.h.bf16 %v21199_v22  ;;  %v18104_v12 = vunpack.i.l.bf16 %v21408_v37 }
 0x157   : > { %18462 = vrot.lane.b32.xlu0 %v27670_v26, %s19983_s10  ;;  %v21486_v39 = vpop.permute.xlu1 %18157  ;;  %v21488_v18 = vpop.permute.xlu0 %18152  ;;  %v16208_v26 = vpack.c.bf16 %v18140_v14, %v18139_v4  ;;  %v16184_v47 = vpack.c.bf16 %v18080_v46, %v18079_v35  ;;  %v3722_v14 = vld [vmem:[%s20071_s16 + $0x140] sm:$0xff]  ;;  %v3723_v4 = vld [vmem:[%s20071_s16 + $0x150] sm:$0xff] }
 0x158   : > { %v3739_v35 = vld [vmem:[%s20071_s16 + $0x250] sm:$0xff] }
 0x159   : > { %14811 = vmatmul.mubr.msk.f32.gmra.mrb[20].mxu1 %vm317_vm0, %v21308_v42 }
 0x15a   : > { %18477 = vrot.lane.b32.xlu1 %v27671_v50, %s19983_s10  ;;  %16201 = vmatpush3.bf16.xpose.msk.msra.mxu1 %vm20075_vm1, %v16199_v43  ;;  %v18100_v50 = vunpack.i.h.bf16 %v21382_v58 }
 0x15b   : > { %18472 = vrot.lane.b32.xlu0 %v21109_v8, %s19983_s10  ;;  %16177 = vmatpush3.bf16.xpose.msk.msra.mxu0 %vm20075_vm1, %v16175_v28  ;;  %v21508_v51 = vpop.permute.xlu1 %18167  ;;  %v21510_v48 = vpop.permute.xlu0 %18162  ;;  %v18094_v8 = vunpack.i.l.bf16 %v21384_v60  ;;  %v21537_v60 = vld [vmem:[%s20071_s16 + $0x320] sm:$0xff] }
 0x15c   : > { %16204 = vmatprep.subr.msk.bf16.mxu1 %vm20075_vm1, %v16202_v2  ;;  %16180 = vmatprep.subr.msk.bf16.mxu0 %vm20075_vm1, %v16178_v34  ;;  %v18506_v63 = vpack.i.bf16 %v21235_v24, %v21537_v60  ;;  %v3704_v28 = vld [vmem:[%s20071_s16 + $0x20] sm:$0xff]  ;;  %v3705_v2 = vld [vmem:[%s20071_s16 + $0x30] sm:$0xff]  ;;  %v18099_v34 = vunpack.i.l.bf16 %v21382_v58 }
 0x15d   : > { %14812 = vmatprep.mubr.msk.f32.mxu1 %vm317_vm0, %v21362_v40  ;;  %v16205_v57 = vpack.c.bf16 %v18095_v52, %v18094_v8  ;;  %v18039_v52 = vunpack.i.l.bf16 %v21199_v22  ;;  %v18145_v8 = vunpack.i.h.bf16 %v21462_v44  ;;  %v21581_v58 = vpack.i.bf16 %v3705_v2, %v3704_v28  ;;  %v3738_v22 = vld [vmem:[%s20071_s16 + $0x240] sm:$0xff] }
 0x15e   : > { %18487 = vrot.lane.b32.xlu1 %v21496_v30, %s19984_s23  ;;  %14813 = vmatmul.mubr.msk.f32.gmra.mrb[22].mxu1 %vm317_vm0, %v21362_v40  ;;  %v16211_v46 = vpack.c.bf16 %v18100_v50, %v18099_v34  ;;  %v18165_v2 = vunpack.i.h.bf16 %v21510_v48  ;;  %v18164_v50 = vunpack.i.l.bf16 %v21510_v48 }
 0x15f   : > { %18482 = vrot.lane.b32.xlu0 %v21502_v15, %s19984_s23  ;;  %14886 = vmatprep.mubr.msk.f32.mxu1 %vm317_vm0, %v20904_v11  ;;  %v21541_v54 = vpop.permute.xlu1 %18177  ;;  %v21543_v20 = vpop.permute.xlu0 %18172  ;;  %v21556_v11 = vpack.i.bf16 %v3721_v5, %v3720_v16  ;;  %v16187_v16 = vpack.c.bf16 %v18040_v49, %v18039_v52  ;;  %v18526_v5 = vpack.i.bf16 %v21246_v45, %v21232_v61  ;;  %v3707_v61 = vld [vmem:[%s20071_s16 + $0x50] sm:$0xff]  ;;  %v18105_v45 = vunpack.i.h.bf16 %v21408_v37 }
 0x160   : > { %v18150_v52 = vunpack.i.h.bf16 %v21460_v1 }
 0x162   : > { %18497 = vrot.lane.b32.xlu1 %v18496_v9, %s19984_s23  ;;  %16207 = vmatpush3.bf16.xpose.msk.msra.mxu1 %vm20075_vm1, %v16205_v57  ;;  %v18144_v9 = vunpack.i.l.bf16 %v21462_v44  ;;  %v21599_v57 = vpack.i.bf16 %v3723_v4, %v3722_v14  ;;  %v3724_v4 = vld [vmem:[%s20071_s16 + $0x160] sm:$0xff] }
 0x163   : > { %18492 = vrot.lane.b32.xlu0 %v21534_v56, %s19984_s23  ;;  %16183 = vmatpush3.bf16.xpose.msk.msra.mxu0 %vm20075_vm1, %v16181_v19  ;;  %v21562_v43 = vpop.permute.xlu1 %18187  ;;  %v21564_v24 = vpop.permute.xlu0 %18182 }
 0x164   : > { %16210 = vmatprep.subr.msk.bf16.mxu1 %vm20075_vm1, %v16208_v26  ;;  %16186 = vmatprep.subr.msk.bf16.mxu0 %vm20075_vm1, %v16184_v47  ;;  %v16214_v44 = vpack.c.bf16 %v18145_v8, %v18144_v9  ;;  %v18149_v8 = vunpack.i.l.bf16 %v21460_v1  ;;  %v21618_v9 = vpack.i.bf16 %v3707_v61, %v3706_v0  ;;  %v3741_v1 = vld [vmem:[%s20071_s16 + $0x270] sm:$0xff]  ;;  %v21637_v0 = vld [vmem:[%s27485_s1] sm:$0xff] }
 0x166   : > { %18507 = vrot.lane.b32.xlu1 %v18506_v63, %s19984_s23  ;;  %v21605_v63 = vpack.i.bf16 %v3739_v35, %v3738_v22  ;;  %v3740_v22 = vld [vmem:[%s20071_s16 + $0x260] sm:$0xff]  ;;  %v16217_v35 = vpack.c.bf16 %v18105_v45, %v18104_v12 }
 0x167   : > { %18502 = vrot.lane.b32.xlu0 %v21556_v11, %s19984_s23  ;;  %v21583_v53 = vpop.permute.xlu1 %18197  ;;  %v21585_v29 = vpop.permute.xlu0 %18192 }
 0x16a   : > { %18517 = vrot.lane.b32.xlu1 %v21572_v21, %s19984_s23  ;;  %16213 = vmatpush3.bf16.xpose.msk.msra.mxu1 %vm20075_vm1, %v16211_v46  ;;  %v3725_v46 = vld [vmem:[%s20071_s16 + $0x170] sm:$0xff] }
 0x16b   : > { %18512 = vrot.lane.b32.xlu0 %v21581_v58, %s19984_s23  ;;  %16189 = vmatpush3.bf16.xpose.msk.msra.mxu0 %vm20075_vm1, %v16187_v16  ;;  %v18208_v19 = vpop.permute.xlu1 %18207  ;;  %v18203_v26 = vpop.permute.xlu0 %18202  ;;  %v16241_v16 = vpack.c.bf16 %v18165_v2, %v18164_v50  ;;  %v21641_v61 = vpack.i.bf16 %v3725_v46, %v3724_v4  ;;  %v18110_v2 = vunpack.i.h.bf16 %v21406_v33  ;;  %v18109_v50 = vunpack.i.l.bf16 %v21406_v33  ;;  %v3726_v4 = vld [vmem:[%s20071_s16 + $0x180] sm:$0xff]  ;;  %v3727_v46 = vld [vmem:[%s20071_s16 + $0x190] sm:$0xff] }
 0x16c   : > { %16216 = vmatprep.subr.msk.bf16.mxu1 %vm20075_vm1, %v16214_v44  ;;  %v18205_v47 = vunpack.i.h.bf16 %v18203_v26  ;;  %v18204_v28 = vunpack.i.l.bf16 %v18203_v26  ;;  %v18210_v34 = vunpack.i.h.bf16 %v18208_v19  ;;  %v18209_v49 = vunpack.i.l.bf16 %v18208_v19  ;;  %v3709_v19 = vld [vmem:[%s20071_s16 + $0x70] sm:$0xff] }
 0x16d   : > { %v16220_v26 = vpack.c.bf16 %v18150_v52, %v18149_v8  ;;  %v18155_v52 = vunpack.i.h.bf16 %v21488_v18  ;;  %v18154_v8 = vunpack.i.l.bf16 %v21488_v18  ;;  %v16223_v18 = vpack.c.bf16 %v18110_v2, %v18109_v50 }
 0x16e   : > { %18527 = vrot.lane.b32.xlu1 %v18526_v5, %s19984_s23  ;;  %v16238_v37 = vpack.c.bf16 %v18205_v47, %v18204_v28  ;;  %v16244_v44 = vpack.c.bf16 %v18210_v34, %v18209_v49  ;;  %v3708_v5 = vld [vmem:[%s20071_s16 + $0x60] sm:$0xff]  ;;  %v21655_v47 = vpack.i.bf16 %v3741_v1, %v3740_v22  ;;  %v18170_v34 = vunpack.i.h.bf16 %v21508_v51 }
 0x16f   : > { %18522 = vrot.lane.b32.xlu0 %v21599_v57, %s19984_s23  ;;  %v21620_v14 = vpop.permute.xlu1 %18217  ;;  %v18213_v48 = vpop.permute.xlu0 %18212  ;;  %v21657_v28 = vpack.i.bf16 %v3709_v19, %v3708_v5  ;;  %v18169_v49 = vunpack.i.l.bf16 %v21508_v51  ;;  %v3742_v22 = vld [vmem:[%s20071_s16 + $0x280] sm:$0xff]  ;;  %v16226_v1 = vpack.c.bf16 %v18155_v52, %v18154_v8  ;;  %v21691_v19 = vpack.i.bf16 %v3727_v46, %v3726_v4 }
 0x170   : > { %16240 = vmatprep.subr.msk.bf16.mxu0 %vm20075_vm1, %v16238_v37  ;;  %v18215_v37 = vunpack.i.h.bf16 %v18213_v48  ;;  %v18214_v33 = vunpack.i.l.bf16 %v18213_v48  ;;  %v3743_v48 = vld [vmem:[%s20071_s16 + $0x290] sm:$0xff]  ;;  %v18114_v52 = vunpack.i.l.bf16 %v21424_v23  ;;  %v18175_v8 = vunpack.i.h.bf16 %v21543_v20 }
 0x171   : > { %v21705_v50 = vpack.i.bf16 %v3743_v48, %v3742_v22  ;;  %v18159_v4 = vunpack.i.l.bf16 %v21486_v39  ;;  %v18220_v46 = vunpack.i.h.bf16 %v21620_v14  ;;  %v3761_v22 = vld [vmem:[%s20071_s16 + $0x3b0] sm:$0xff] }
 0x172   : > { %18537 = vrot.lane.b32.xlu1 %v21605_v63, %s19984_s23  ;;  %14847 = vmatmul.mubr.msk.f32.vlgmr.msra.gmra.mrb[24].mxu0 %vm317_vm0, %v21637_v0  ;;  %v16250_v5 = vpack.c.bf16 %v18215_v37, %v18214_v33  ;;  %v18174_v37 = vunpack.i.l.bf16 %v21543_v20  ;;  %v18160_v33 = vunpack.i.h.bf16 %v21486_v39  ;;  %v3760_v20 = vld [vmem:[%s20071_s16 + $0x3a0] sm:$0xff]  ;;  %v3729_v39 = vld [vmem:[%s20071_s16 + $0x1b0] sm:$0xff] }
 0x173   : > { %18532 = vrot.lane.b32.xlu0 %v21618_v9, %s19984_s23  ;;  %16219 = vmatpush3.bf16.xpose.msk.msra.mxu1 %vm20075_vm1, %v16217_v35  ;;  %v21647_v45 = vpop.permute.xlu1 %18227  ;;  %v21649_v12 = vpop.permute.xlu0 %18222  ;;  %v16247_v35 = vpack.c.bf16 %v18170_v34, %v18169_v49  ;;  %v18115_v49 = vunpack.i.h.bf16 %v21424_v23  ;;  %v18219_v23 = vunpack.i.l.bf16 %v21620_v14 }
 0x174   : > { %16243 = vmatpush3.bf16.xpose.msk.msra.mxu0 %vm20075_vm1, %v16241_v16  ;;  %16222 = vmatprep.subr.msk.bf16.mxu1 %vm20075_vm1, %v16220_v26  ;;  %v3710_v16 = vld [vmem:[%s20071_s16 + $0x80] sm:$0xff]  ;;  %v16253_v48 = vpack.c.bf16 %v18175_v8, %v18174_v37  ;;  %v3713_v37 = vld [vmem:[%s20071_s16 + $0xb0] sm:$0xff] }
 0x175   : > { %14848 = vmatprep.mubr.msk.f32.mxu0 %vm317_vm0, %v21289_v25  ;;  %16246 = vmatprep.subr.msk.bf16.mxu0 %vm20075_vm1, %v16244_v44  ;;  %v3711_v44 = vld [vmem:[%s20071_s16 + $0x90] sm:$0xff]  ;;  %v16229_v14 = vpack.c.bf16 %v18115_v49, %v18114_v52  ;;  %v16256_v62 = vpack.c.bf16 %v18220_v46, %v18219_v23  ;;  %v3712_v8 = vld [vmem:[%s20071_s16 + $0xa0] sm:$0xff]  ;;  %v18119_v46 = vunpack.i.l.bf16 %v21422_v32  ;;  %v18180_v23 = vunpack.i.h.bf16 %v21541_v54 }
 0x176   : > { %18547 = vrot.lane.b32.xlu1 %v21269_v38, %s19984_s23  ;;  %14849 = vmatmul.mubr.msk.f32.gmra.mrb[26].mxu0 %vm317_vm0, %v21289_v25  ;;  %v21707_v34 = vpack.i.bf16 %v3711_v44, %v3710_v16  ;;  %v21737_v16 = vpack.i.bf16 %v3761_v22, %v3760_v20  ;;  %v3744_v44 = vld [vmem:[%s20071_s16 + $0x2a0] sm:$0xff]  ;;  %v18179_v20 = vunpack.i.l.bf16 %v21541_v54  ;;  %v18225_v22 = vunpack.i.h.bf16 %v21649_v12  ;;  %v3731_v54 = vld [vmem:[%s20071_s16 + $0x1d0] sm:$0xff] }
 0x177   : > { %18542 = vrot.lane.b32.xlu0 %v21641_v61, %s19984_s23  ;;  %v21673_v51 = vpop.permute.xlu1 %18237  ;;  %v21675_v38 = vpop.permute.xlu0 %18232  ;;  %14850 = vmatprep.mubr.msk.f32.mxu0 %vm317_vm0, %v21308_v42 }
 0x178   : > { %v16259_v10 = vpack.c.bf16 %v18180_v23, %v18179_v20  ;;  %v3714_v23 = vld [vmem:[%s20071_s16 + $0xc0] sm:$0xff]  ;;  %v3715_v20 = vld [vmem:[%s20071_s16 + $0xd0] sm:$0xff] }
 0x17a   : > { %18557 = vrot.lane.b32.xlu1 %v21655_v47, %s19984_s23  ;;  %14851 = vmatmul.mubr.msk.f32.gmra.mrb[28].mxu0 %vm317_vm0, %v21308_v42 }
 0x17b   : > { %18552 = vrot.lane.b32.xlu0 %v21657_v28, %s19984_s23  ;;  %16225 = vmatpush3.bf16.xpose.msk.msra.mxu1 %vm20075_vm1, %v16223_v18  ;;  %v21697_v26 = vpop.permute.xlu1 %18247  ;;  %v21699_v2 = vpop.permute.xlu0 %18242 }
 0x17c   : > { %16249 = vmatpush3.bf16.xpose.msk.msra.mxu0 %vm20075_vm1, %v16247_v35  ;;  %16228 = vmatprep.subr.msk.bf16.mxu1 %vm20075_vm1, %v16226_v1  ;;  %v3728_v35 = vld [vmem:[%s20071_s16 + $0x1a0] sm:$0xff]  ;;  %v3745_v1 = vld [vmem:[%s20071_s16 + $0x2b0] sm:$0xff] }
 0x17d   : > { %16252 = vmatprep.subr.msk.bf16.mxu0 %vm20075_vm1, %v16250_v5  ;;  %14852 = vmatprep.mubr.msk.f32.mxu0 %vm317_vm0, %v21362_v40  ;;  %v16232_v5 = vpack.c.bf16 %v18160_v33, %v18159_v4  ;;  %v21743_v31 = vpack.i.bf16 %v3729_v39, %v3728_v35  ;;  %v21759_v33 = vpack.i.bf16 %v3745_v1, %v3744_v44  ;;  %v18120_v4 = vunpack.i.h.bf16 %v21422_v32  ;;  %v3762_v39 = vld [vmem:[%s20071_s16 + $0x3c0] sm:$0xff] }
 0x17e   : > { %18567 = vrot.lane.b32.xlu1 %v21351_v17, %s19984_s23  ;;  %14853 = vmatmul.mubr.msk.f32.gmra.mrb[30].mxu0 %vm317_vm0, %v21362_v40  ;;  %v21771_v35 = vpack.i.bf16 %v3713_v37, %v3712_v8  ;;  %v3730_v44 = vld [vmem:[%s20071_s16 + $0x1c0] sm:$0xff] }
 0x17f   : > { %18562 = vrot.lane.b32.xlu0 %v21691_v19, %s19984_s23  ;;  %v21727_v18 = vpop.permute.xlu1 %18257  ;;  %v21729_v17 = vpop.permute.xlu0 %18252  ;;  %14926 = vmatprep.mubr.msk.f32.mxu0 %vm317_vm0, %v21637_v0  ;;  %v3746_v1 = vld [vmem:[%s20071_s16 + $0x2c0] sm:$0xff]  ;;  %v16235_v55 = vpack.c.bf16 %v18120_v4, %v18119_v46  ;;  %v21789_v37 = vpack.i.bf16 %v3731_v54, %v3730_v44 }
 0x182   : > { %18577 = vrot.lane.b32.xlu1 %v21705_v50, %s19984_s23 }
 0x183   : > { %18572 = vrot.lane.b32.xlu0 %v21707_v34, %s19984_s23  ;;  %16231 = vmatpush3.bf16.xpose.msk.msra.mxu1 %vm20075_vm1, %v16229_v14  ;;  %v21749_v49 = vpop.permute.xlu1 %18267  ;;  %v21751_v52 = vpop.permute.xlu0 %18262  ;;  %v3763_v14 = vld [vmem:[%s20071_s16 + $0x3d0] sm:$0xff] }
 0x184   : > { %16255 = vmatpush3.bf16.xpose.msk.msra.mxu0 %vm20075_vm1, %v16253_v48  ;;  %16234 = vmatprep.subr.msk.bf16.mxu1 %vm20075_vm1, %v16232_v5  ;;  %v3747_v5 = vld [vmem:[%s20071_s16 + $0x2d0] sm:$0xff] }
 0x185   : > { %16258 = vmatprep.subr.msk.bf16.mxu0 %vm20075_vm1, %v16256_v62  ;;  %v18224_v62 = vunpack.i.l.bf16 %v21649_v12  ;;  %v21785_v12 = vpack.i.bf16 %v3763_v14, %v3762_v39  ;;  %v21795_v46 = vpack.i.bf16 %v3747_v5, %v3746_v1  ;;  %v18244_v14 = vunpack.i.l.bf16 %v21699_v2 }
 0x186   : > { %18587 = vrot.lane.b32.xlu1 %v21737_v16, %s19984_s23  ;;  %v18230_v1 = vunpack.i.h.bf16 %v21647_v45 }
 0x187   : > { %18582 = vrot.lane.b32.xlu0 %v21743_v31, %s19984_s23  ;;  %v21775_v48 = vpop.permute.xlu1 %18277  ;;  %v21777_v32 = vpop.permute.xlu0 %18272  ;;  %v16262_v8 = vpack.c.bf16 %v18225_v22, %v18224_v62  ;;  %v18185_v22 = vunpack.i.h.bf16 %v21564_v24  ;;  %v18184_v62 = vunpack.i.l.bf16 %v21564_v24  ;;  %v18229_v24 = vunpack.i.l.bf16 %v21647_v45 }
 0x189   : > { %v16265_v45 = vpack.c.bf16 %v18185_v22, %v18184_v62  ;;  %v16268_v59 = vpack.c.bf16 %v18230_v1, %v18229_v24  ;;  %v3716_v62 = vld [vmem:[%s20071_s16 + $0xe0] sm:$0xff] }
 0x18a   : > { %18597 = vrot.lane.b32.xlu1 %v21759_v33, %s19984_s23 }
 0x18b   : > { %18592 = vrot.lane.b32.xlu0 %v21771_v35, %s19984_s23  ;;  %16237 = vmatpush3.bf16.xpose.msk.msra.mxu1 %vm20075_vm1, %v16235_v55  ;;  %v18288_v36 = vpop.permute.xlu1 %18287  ;;  %v18283_v4 = vpop.permute.xlu0 %18282 }
 0x18c   : > { %16261 = vmatpush3.bf16.xpose.msk.msra.mxu0 %vm20075_vm1, %v16259_v10  ;;  %v18285_v39 = vunpack.i.h.bf16 %v18283_v4  ;;  %v18284_v55 = vunpack.i.l.bf16 %v18283_v4  ;;  %v18245_v10 = vunpack.i.h.bf16 %v21699_v2  ;;  %v18290_v44 = vunpack.i.h.bf16 %v18288_v36  ;;  %v3764_v4 = vld [vmem:[%s20071_s16 + $0x3e0] sm:$0xff] }
 0x18d   : > { %16264 = vmatprep.subr.msk.bf16.mxu0 %vm20075_vm1, %v16262_v8  ;;  %v18289_v54 = vunpack.i.l.bf16 %v18288_v36  ;;  %v21811_v8 = vpack.i.bf16 %v3715_v20, %v3714_v23  ;;  %v21823_v23 = vpack.i.bf16 %v3765_v27, %v3764_v4  ;;  %v3748_v20 = vld [vmem:[%s20071_s16 + $0x2e0] sm:$0xff] }
 0x18e   : > { %18607 = vrot.lane.b32.xlu1 %v21785_v12, %s19984_s23  ;;  %v16286_v5 = vpack.c.bf16 %v18285_v39, %v18284_v55  ;;  %v16289_v39 = vpack.c.bf16 %v18245_v10, %v18244_v14  ;;  %v3717_v10 = vld [vmem:[%s20071_s16 + $0xf0] sm:$0xff]  ;;  %v18190_v14 = vunpack.i.h.bf16 %v21562_v43 }
 0x18f   : > { %18602 = vrot.lane.b32.xlu0 %v21789_v37, %s19984_s23  ;;  %v21815_v2 = vpop.permute.xlu1 %18297  ;;  %v18293_v36 = vpop.permute.xlu0 %18292  ;;  %v16292_v55 = vpack.c.bf16 %v18290_v44, %v18289_v54  ;;  %v18189_v44 = vunpack.i.l.bf16 %v21562_v43  ;;  %v18249_v54 = vunpack.i.l.bf16 %v21697_v26  ;;  %v18234_v43 = vunpack.i.l.bf16 %v21675_v38 }
 0x190   : > { %16288 = vmatprep.subr.msk.bf16.mxu1 %vm20075_vm1, %v16286_v5  ;;  %v21831_v5 = vpack.i.bf16 %v3733_v3, %v3732_v41  ;;  %v21849_v41 = vpack.i.bf16 %v3749_v7, %v3748_v20  ;;  %v18250_v3 = vunpack.i.h.bf16 %v21697_v26  ;;  %v18295_v1 = vunpack.i.h.bf16 %v18293_v36 }
 0x191   : > { %v18294_v24 = vunpack.i.l.bf16 %v18293_v36  ;;  %v21863_v7 = vpack.i.bf16 %v3717_v10, %v3716_v62  ;;  %v16271_v36 = vpack.c.bf16 %v18190_v14, %v18189_v44  ;;  %v18300_v10 = vunpack.i.h.bf16 %v21815_v2 }
 0x192   : > { %18617 = vrot.lane.b32.xlu1 %v21795_v46, %s19984_s23  ;;  %14887 = vmatmul.mubr.msk.f32.vlgmr.msra.gmra.mrb[24].mxu1 %vm317_vm0, %v21637_v0  ;;  %v18299_v14 = vunpack.i.l.bf16 %v21815_v2  ;;  %v18195_v44 = vunpack.i.h.bf16 %v21585_v29  ;;  %v18240_v2 = vunpack.i.h.bf16 %v21673_v51 }
 0x193   : > { %18612 = vrot.lane.b32.xlu0 %v21811_v8, %s19984_s23  ;;  %16291 = vmatpush3.bf16.xpose.msk.msra.mxu1 %vm20075_vm1, %v16289_v39  ;;  %v21837_v22 = vpop.permute.xlu1 %18307  ;;  %v21839_v27 = vpop.permute.xlu0 %18302  ;;  %v16298_v39 = vpack.c.bf16 %v18295_v1, %v18294_v24  ;;  %v18254_v1 = vunpack.i.l.bf16 %v21729_v17  ;;  %v18239_v24 = vunpack.i.l.bf16 %v21673_v51 }
 0x194   : > { %16267 = vmatpush3.bf16.xpose.msk.msra.mxu0 %vm20075_vm1, %v16265_v45  ;;  %14888 = vmatprep.mubr.msk.f32.mxu1 %vm317_vm0, %v21289_v25  ;;  %v16295_v45 = vpack.c.bf16 %v18250_v3, %v18249_v54  ;;  %v18194_v3 = vunpack.i.l.bf16 %v21585_v29  ;;  %v18255_v54 = vunpack.i.h.bf16 %v21729_v17  ;;  %v4347_v29 = vld [vmem:[%s20071_s16 + $0x330] sm:$0xff] }
 0x195   : > { %16270 = vmatprep.subr.msk.bf16.mxu0 %vm20075_vm1, %v16268_v59  ;;  %16294 = vmatprep.subr.msk.bf16.mxu1 %vm20075_vm1, %v16292_v55  ;;  %v18235_v59 = vunpack.i.h.bf16 %v21675_v38  ;;  %v4328_v38 = vld [vmem:[%s20071_s16 + $0x200] sm:$0xff]  ;;  %v4329_v55 = vld [vmem:[%s20071_s16 + $0x210] sm:$0xff]  ;;  %v18666_v51 = vpack.i.bf16 %v4347_v29, %v21537_v60  ;;  %v18304_v60 = vunpack.i.l.bf16 %v21839_v27 }
 0x196   : > { %18627 = vrot.lane.b32.xlu1 %v21823_v23, %s19984_s23  ;;  %14889 = vmatmul.mubr.msk.f32.gmra.mrb[26].mxu1 %vm317_vm0, %v21289_v25 }
 0x197   : > { %18622 = vrot.lane.b32.xlu0 %v21831_v5, %s19984_s23  ;;  %v21865_v26 = vpop.permute.xlu1 %18317  ;;  %v21867_v4 = vpop.permute.xlu0 %18312  ;;  %14890 = vmatprep.mubr.msk.f32.mxu1 %vm317_vm0, %v21308_v42  ;;  %v16274_v20 = vpack.c.bf16 %v18235_v59, %v18234_v43  ;;  %v16277_v43 = vpack.c.bf16 %v18195_v44, %v18194_v3 }
 0x19a   : > { %18637 = vrot.lane.b32.xlu1 %v21849_v41, %s19984_s23  ;;  %14891 = vmatmul.mubr.msk.f32.gmra.mrb[28].mxu1 %vm317_vm0, %v21308_v42  ;;  %v18656_v42 = vpack.i.bf16 %v4329_v55, %v4328_v38  ;;  %v18199_v38 = vunpack.i.l.bf16 %v21583_v53  ;;  %v18260_v55 = vunpack.i.h.bf16 %v21727_v18 }
 0x19b   : > { %18632 = vrot.lane.b32.xlu0 %v21863_v7, %s19984_s23  ;;  %16297 = vmatpush3.bf16.xpose.msk.msra.mxu1 %vm20075_vm1, %v16295_v45  ;;  %v21883_v25 = vpop.permute.xlu1 %18327  ;;  %v21885_v62 = vpop.permute.xlu0 %18322  ;;  %v16280_v45 = vpack.c.bf16 %v18240_v2, %v18239_v24  ;;  %v18309_v24 = vunpack.i.l.bf16 %v21837_v22 }
 0x19c   : > { %16273 = vmatpush3.bf16.xpose.msk.msra.mxu0 %vm20075_vm1, %v16271_v36  ;;  %14892 = vmatprep.mubr.msk.f32.mxu1 %vm317_vm0, %v21362_v40  ;;  %v16301_v36 = vpack.c.bf16 %v18255_v54, %v18254_v1 }
 0x19d   : > { %16276 = vmatprep.subr.msk.bf16.mxu0 %vm20075_vm1, %v16274_v20  ;;  %16300 = vmatprep.subr.msk.bf16.mxu1 %vm20075_vm1, %v16298_v39  ;;  %v18305_v39 = vunpack.i.h.bf16 %v21839_v27  ;;  %v18259_v20 = vunpack.i.l.bf16 %v21727_v18  ;;  %v4348_v27 = vld [vmem:[%s20071_s16 + $0x340] sm:$0xff]  ;;  %v18325_v18 = vunpack.i.h.bf16 %v21885_v62 }
 0x19e   : > { %18647 = vrot.lane.b32.xlu1 %v21496_v30, %s19985_s29  ;;  %14893 = vmatmul.mubr.msk.f32.gmra.mrb[30].mxu1 %vm317_vm0, %v21362_v40  ;;  %v16304_v30 = vpack.c.bf16 %v18300_v10, %v18299_v14  ;;  %v4349_v10 = vld [vmem:[%s20071_s16 + $0x350] sm:$0xff] }
 0x19f   : > { %18642 = vrot.lane.b32.xlu0 %v21502_v15, %s19985_s29  ;;  %v21908_v59 = vpop.permute.xlu1 %18337  ;;  %v21910_v17 = vpop.permute.xlu0 %18332  ;;  %14966 = vmatprep.mubr.msk.f32.mxu1 %vm317_vm0, %v21637_v0  ;;  %v16310_v44 = vpack.c.bf16 %v18305_v39, %v18304_v60  ;;  %v16307_v54 = vpack.c.bf16 %v18260_v55, %v18259_v20  ;;  %v4351_v39 = vld [vmem:[%s20071_s16 + $0x370] sm:$0xff] }
 0x1a2   : > { %18657 = vrot.lane.b32.xlu1 %v18656_v42, %s19985_s29 }
 0x1a3   : > { %18652 = vrot.lane.b32.xlu0 %v21534_v56, %s19985_s29  ;;  %16303 = vmatpush3.bf16.xpose.msk.msra.mxu1 %vm20075_vm1, %v16301_v36  ;;  %v21922_v40 = vpop.permute.xlu1 %18347  ;;  %v21924_v15 = vpop.permute.xlu0 %18342  ;;  %v18200_v56 = vunpack.i.h.bf16 %v21583_v53  ;;  %v18686_v53 = vpack.i.bf16 %v4349_v10, %v4348_v27  ;;  %v18329_v27 = vunpack.i.l.bf16 %v21883_v25 }
 0x1a4   : > { %16279 = vmatpush3.bf16.xpose.msk.msra.mxu0 %vm20075_vm1, %v16277_v43  ;;  %16306 = vmatprep.subr.msk.bf16.mxu1 %vm20075_vm1, %v16304_v30  ;;  %v18264_v30 = vunpack.i.l.bf16 %v21751_v52 }
 0x1a5   : > { %16282 = vmatprep.subr.msk.bf16.mxu0 %vm20075_vm1, %v16280_v45  ;;  %v16283_v3 = vpack.c.bf16 %v18200_v56, %v18199_v38  ;;  %v4350_v45 = vld [vmem:[%s20071_s16 + $0x360] sm:$0xff] }
 0x1a6   : > { %18667 = vrot.lane.b32.xlu1 %v18666_v51, %s19985_s29  ;;  %v18706_v20 = vpack.i.bf16 %v4351_v39, %v4350_v45  ;;  %v18335_v45 = vunpack.i.h.bf16 %v21910_v17  ;;  %v18334_v39 = vunpack.i.l.bf16 %v21910_v17 }
 0x1a7   : > { %18662 = vrot.lane.b32.xlu0 %v21556_v11, %s19985_s29  ;;  %v21941_v14 = vpop.permute.xlu1 %18357  ;;  %v21943_v42 = vpop.permute.xlu0 %18352  ;;  %v18324_v11 = vunpack.i.l.bf16 %v21885_v62  ;;  %v18265_v62 = vunpack.i.h.bf16 %v21751_v52 }
 0x1a9   : > { %v16313_v55 = vpack.c.bf16 %v18265_v62, %v18264_v30 }
 0x1aa   : > { %18677 = vrot.lane.b32.xlu1 %v21572_v21, %s19985_s29  ;;  %v18310_v21 = vunpack.i.h.bf16 %v21837_v22  ;;  %v16337_v22 = vpack.c.bf16 %v18325_v18, %v18324_v11  ;;  %v18314_v18 = vunpack.i.l.bf16 %v21867_v4  ;;  %v4352_v11 = vld [vmem:[%s20071_s16 + $0x380] sm:$0xff] }
 0x1ab   : > { %18672 = vrot.lane.b32.xlu0 %v21581_v58, %s19985_s29  ;;  %16309 = vmatpush3.bf16.xpose.msk.msra.mxu1 %vm20075_vm1, %v16307_v54  ;;  %v18368_v1 = vpop.permute.xlu1 %18367  ;;  %v18363_v2 = vpop.permute.xlu0 %18362 }
 0x1ac   : > { %16285 = vmatpush3.bf16.xpose.msk.msra.mxu0 %vm20075_vm1, %v16283_v3  ;;  %v18365_v29 = vunpack.i.h.bf16 %v18363_v2  ;;  %v18364_v58 = vunpack.i.l.bf16 %v18363_v2  ;;  %16312 = vmatprep.subr.msk.bf16.mxu1 %vm20075_vm1, %v16310_v44  ;;  %v18370_v43 = vunpack.i.h.bf16 %v18368_v1  ;;  %v18369_v36 = vunpack.i.l.bf16 %v18368_v1  ;;  %v4353_v1 = vld [vmem:[%s20071_s16 + $0x390] sm:$0xff] }
 0x1ad   : > { %v16316_v38 = vpack.c.bf16 %v18310_v21, %v18309_v24  ;;  %v18269_v44 = vunpack.i.l.bf16 %v21749_v49  ;;  %v22015_v24 = vld [vmem:[%s27485_s1 + $0x10] sm:$0xff] }
 0x1ae   : > { %18687 = vrot.lane.b32.xlu1 %v18686_v53, %s19985_s29  ;;  %v16334_v51 = vpack.c.bf16 %v18365_v29, %v18364_v58  ;;  %v16340_v52 = vpack.c.bf16 %v18370_v43, %v18369_v36  ;;  %v18315_v53 = vunpack.i.h.bf16 %v21867_v4  ;;  %v18726_v29 = vpack.i.bf16 %v4353_v1, %v4352_v11  ;;  %v22040_v43 = vld [vmem:[%s27485_s1 + $0x18] sm:$0xff] }
 0x1af   : > { %18682 = vrot.lane.b32.xlu0 %v21599_v57, %s19985_s29  ;;  %v21966_v60 = vpop.permute.xlu1 %18377  ;;  %v18373_v56 = vpop.permute.xlu0 %18372  ;;  %v18330_v57 = vunpack.i.h.bf16 %v21883_v25  ;;  %v18270_v25 = vunpack.i.h.bf16 %v21749_v49  ;;  %v18275_v36 = vunpack.i.h.bf16 %v21777_v32 }
 0x1b0   : > { %16336 = vmatprep.subr.msk.bf16.mxu0 %vm20075_vm1, %v16334_v51  ;;  %v18375_v3 = vunpack.i.h.bf16 %v18373_v56  ;;  %v18374_v54 = vunpack.i.l.bf16 %v18373_v56  ;;  %v16322_v58 = vpack.c.bf16 %v18315_v53, %v18314_v18  ;;  %v18274_v51 = vunpack.i.l.bf16 %v21777_v32 }
 0x1b1   : > { %v16343_v49 = vpack.c.bf16 %v18330_v57, %v18329_v27  ;;  %v16319_v4 = vpack.c.bf16 %v18270_v25, %v18269_v44  ;;  %v18319_v56 = vunpack.i.l.bf16 %v21865_v26  ;;  %v18380_v57 = vunpack.i.h.bf16 %v21966_v60 }
 0x1b2   : > { %18697 = vrot.lane.b32.xlu1 %v21605_v63, %s19985_s29  ;;  %v18339_v53 = vunpack.i.l.bf16 %v21908_v59 }
 0x1b3   : > { %18692 = vrot.lane.b32.xlu0 %v21618_v9, %s19985_s29  ;;  %14927 = vmatmul.mubr.msk.f32.vlgmr.msra.gmra.mrb[32].mxu0 %vm317_vm0, %v21637_v0  ;;  %v21982_v10 = vpop.permute.xlu1 %18387  ;;  %v21984_v63 = vpop.permute.xlu0 %18382  ;;  %v21991_v9 = vld [vmem:[%s27485_s1 + $0x8] sm:$0xff] }
 0x1b4   : > { %16315 = vmatpush3.bf16.xpose.msk.msra.mxu1 %vm20075_vm1, %v16313_v55  ;;  %16339 = vmatpush3.bf16.xpose.msk.msra.mxu0 %vm20075_vm1, %v16337_v22  ;;  %v18320_v22 = vunpack.i.h.bf16 %v21865_v26  ;;  %v16325_v55 = vpack.c.bf16 %v18275_v36, %v18274_v51  ;;  %v18384_v27 = vunpack.i.l.bf16 %v21984_v63  ;;  %v18389_v36 = vunpack.i.l.bf16 %v21982_v10 }
 0x1b5   : > { %16318 = vmatprep.subr.msk.bf16.mxu1 %vm20075_vm1, %v16316_v38  ;;  %14928 = vmatprep.mubr.msk.f32.mxu0 %vm317_vm0, %v21991_v9  ;;  %v18385_v51 = vunpack.i.h.bf16 %v21984_v63  ;;  %v18344_v63 = vunpack.i.l.bf16 %v21924_v15 }
 0x1b6   : > { %18707 = vrot.lane.b32.xlu1 %v18706_v20, %s19985_s29  ;;  %16342 = vmatprep.subr.msk.bf16.mxu0 %vm20075_vm1, %v16340_v52  ;;  %v16349_v52 = vpack.c.bf16 %v18335_v45, %v18334_v39  ;;  %v16328_v26 = vpack.c.bf16 %v18320_v22, %v18319_v56 }
 0x1b7   : > { %18702 = vrot.lane.b32.xlu0 %v21641_v61, %s19985_s29  ;;  %14929 = vmatmul.mubr.msk.f32.gmra.mrb[34].mxu0 %vm317_vm0, %v21991_v9  ;;  %v22008_v2 = vpop.permute.xlu1 %18397  ;;  %v22010_v21 = vpop.permute.xlu0 %18392  ;;  %v16346_v61 = vpack.c.bf16 %v18375_v3, %v18374_v54  ;;  %v18279_v3 = vunpack.i.l.bf16 %v21775_v48  ;;  %v18340_v54 = vunpack.i.h.bf16 %v21908_v59  ;;  %v27672_v59 = vld [vmem:[#allocation7_spill] sm:$0xff] }
 0x1b8   : > { %14930 = vmatprep.mubr.msk.f32.mxu0 %vm317_vm0, %v22015_v24  ;;  %v18394_v56 = vunpack.i.l.bf16 %v22010_v21 }
 0x1ba   : > { %18717 = vrot.lane.b32.xlu1 %v21655_v47, %s19985_s29  ;;  %v18379_v47 = vunpack.i.l.bf16 %v21966_v60 }
 0x1bb   : > { %18712 = vrot.lane.b32.xlu0 %v21657_v28, %s19985_s29  ;;  %14931 = vmatmul.mubr.msk.f32.gmra.mrb[36].mxu0 %vm317_vm0, %v22015_v24  ;;  %v22029_v62 = vpop.permute.xlu1 %18407  ;;  %v22031_v30 = vpop.permute.xlu0 %18402 }
 0x1bc   : > { %16321 = vmatpush3.bf16.xpose.msk.msra.mxu1 %vm20075_vm1, %v16319_v4  ;;  %16345 = vmatpush3.bf16.xpose.msk.msra.mxu0 %vm20075_vm1, %v16343_v49  ;;  %v18410_v28 = vunpack.i.h.bf16 %v22029_v62  ;;  %v16382_v49 = vpack.c.bf16 %v18384_v27, %v18380_v57 }
 0x1bd   : > { %16324 = vmatprep.subr.msk.bf16.mxu1 %vm20075_vm1, %v16322_v58  ;;  %14932 = vmatprep.mubr.msk.f32.mxu0 %vm317_vm0, %v22040_v43  ;;  %v16355_v58 = vpack.c.bf16 %v18340_v54, %v18339_v53 }
 0x1be   : > { %18727 = vrot.lane.b32.xlu1 %v18726_v29, %s19985_s29  ;;  %16348 = vmatprep.subr.msk.bf16.mxu0 %vm20075_vm1, %v16346_v61  ;;  %v16352_v17 = vpack.c.bf16 %v18410_v28, %v18379_v47 }
 0x1bf   : > { %18722 = vrot.lane.b32.xlu0 %v21691_v19, %s19985_s29  ;;  %14933 = vmatmul.mubr.msk.f32.gmra.mrb[38].mxu0 %vm317_vm0, %v22040_v43  ;;  %v22057_v32 = vpop.permute.xlu1 %18417  ;;  %v22059_v38 = vpop.permute.xlu0 %18412 }
 0x1c0   : > { %15006 = vmatprep.mubr.msk.f32.mxu0 %vm317_vm0, %v21637_v0 }
 0x1c2   : > { %18737 = vrot.lane.b32.xlu1 %v21705_v50, %s19985_s29 }
 0x1c3   : > { %18732 = vrot.lane.b32.xlu0 %v21707_v34, %s19985_s29  ;;  %v22071_v19 = vpop.permute.xlu1 %18427  ;;  %v18423_v20 = vpop.permute.xlu0 %18422  ;;  %v18280_v34 = vunpack.i.h.bf16 %v21775_v48 }
 0x1c4   : > { %16327 = vmatpush3.bf16.xpose.msk.msra.mxu1 %vm20075_vm1, %v16325_v55  ;;  %16351 = vmatpush3.bf16.xpose.msk.msra.mxu0 %vm20075_vm1, %v16349_v52  ;;  %v18425_v50 = vunpack.i.h.bf16 %v18423_v20  ;;  %v18424_v25 = vunpack.i.l.bf16 %v18423_v20  ;;  %v1182_v44 = vpop.f32.mrb[8].mxu0 }
 0x1c5   : > { %16330 = vmatprep.subr.msk.bf16.mxu1 %vm20075_vm1, %v16328_v26  ;;  %16354 = vmatprep.subr.msk.bf16.mxu0 %vm20075_vm1, %v16352_v17  ;;  %v1184_v60 = vpop.f32.mrb[9].mxu0  ;;  %v1183_v18 = vadd.f32 %v1182_v44, %v27649_v13  ;;  %v16331_v29 = vpack.c.bf16 %v18280_v34, %v18279_v3 }
 0x1c6   : > { %18747 = vrot.lane.b32.xlu1 %v21737_v16, %s19985_s29  ;;  %v16358_v4 = vpack.c.bf16 %v18425_v50, %v18424_v25  ;;  %v1185_v48 = vadd.f32 %v1184_v60, %v27649_v13  ;;  %v16385_v50 = vpack.c.bf16 %v18389_v36, %v18385_v51  ;;  %v27675_v25 = vld [vmem:[#allocation4_spill] sm:$0xff] }
 0x1c7   : > { %18742 = vrot.lane.b32.xlu0 %v21743_v31, %s19985_s29  ;;  %v18438_v11 = vpop.permute.xlu1 %18437  ;;  %v22088_v1 = vpop.permute.xlu0 %18432  ;;  %v18345_v31 = vunpack.i.h.bf16 %v21924_v15  ;;  %v1294_v45 = vmax.f32 %v1183_v18, 0.0 }
 0x1c8   : > { %v1188_v61 = vpop.f32.mrb[10].mxu0  ;;  %v1295_v17 = vmax.f32 %v1185_v48, 0.0  ;;  %v18440_v26 = vunpack.i.h.bf16 %v18438_v11  ;;  %v18439_v20 = vunpack.i.l.bf16 %v18438_v11  ;;  %v27676_v11 = vld [vmem:[#allocation6_spill] sm:$0xff]  ;;  %v18399_v48 = vunpack.i.l.bf16 %v22008_v2 }
 0x1c9   : > { %v1189_v47 = vadd.f32 %v1188_v61, %v27672_v59  ;;  %v1190_v16 = vpop.f32.mrb[11].mxu0  ;;  %v16361_v60 = vpack.c.bf16 %v18345_v31, %v18344_v63  ;;  %v18395_v61 = vunpack.i.h.bf16 %v22010_v21 }
 0x1ca   : > { %18757 = vrot.lane.b32.xlu1 %v21759_v33, %s19985_s29  ;;  %v1191_v28 = vadd.f32 %v1190_v16, %v27672_v59  ;;  %v16364_v18 = vpack.c.bf16 %v18440_v26, %v18439_v20  ;;  %v18404_v16 = vunpack.i.l.bf16 %v22031_v30 }
 0x1cb   : > { %18752 = vrot.lane.b32.xlu0 %v21771_v35, %s19985_s29  ;;  %v1298_v39 = vmax.f32 %v1189_v47, 0.0  ;;  %v22104_v33 = vpop.permute.xlu1 %18447  ;;  %v22106_v22 = vpop.permute.xlu0 %18442  ;;  %v18390_v35 = vunpack.i.h.bf16 %v21982_v10  ;;  %v18400_v47 = vunpack.i.h.bf16 %v22008_v2 }
 0x1cc   : > { %16333 = vmatpush3.bf16.xpose.msk.msra.mxu1 %vm20075_vm1, %v16331_v29  ;;  %16357 = vmatpush3.bf16.xpose.msk.msra.mxu0 %vm20075_vm1, %v16355_v58  ;;  %v1299_v55 = vmax.f32 %v1191_v28, 0.0  ;;  %v1194_v52 = vpop.f32.mrb[12].mxu0  ;;  %v18349_v28 = vunpack.i.l.bf16 %v21922_v40 }
 0x1cd   : > { %16384 = vmatprep.subr.msk.bf16.mxu1 %vm20075_vm1, %v16382_v49  ;;  %16360 = vmatprep.subr.msk.bf16.mxu0 %vm20075_vm1, %v16358_v4  ;;  %v22115_v57 = vpack.c.bf16 %v1298_v39, %v1294_v45  ;;  %v1196_v10 = vpop.f32.mrb[13].mxu0  ;;  %v1195_v44 = vadd.f32 %v1194_v52, %v27675_v25  ;;  %v16388_v15 = vpack.c.bf16 %v18394_v56, %v18390_v35  ;;  %v5405_v39 = vld [vmem:[%s20071_s16 + $0x318] sm:$0xff] }
 0x1ce   : > { %18767 = vrot.lane.b32.xlu1 %v21785_v12, %s19985_s29  ;;  %v22119_v27 = vpack.c.bf16 %v1299_v55, %v1295_v17  ;;  %v1197_v54 = vadd.f32 %v1196_v10, %v27675_v25  ;;  %v16391_v35 = vpack.c.bf16 %v18399_v48, %v18395_v61  ;;  %v5373_v55 = vld [vmem:[%s20071_s16 + $0x118] sm:$0xff]  ;;  %v16394_v52 = vpack.c.bf16 %v18404_v16, %v18400_v47  ;;  %v5388_v10 = vld [vmem:[%s20071_s16 + $0x208] sm:$0xff] }
 0x1cf   : > { %27673 = vst [vmem:[#allocation10_spill] sm:$0xff] %v22115_v57  ;;  %18762 = vrot.lane.b32.xlu0 %v21789_v37, %s19985_s29  ;;  %v22124_v34 = vpop.permute.xlu1 %18457  ;;  %v18453_v3 = vpop.permute.xlu0 %18452  ;;  %v18350_v37 = vunpack.i.h.bf16 %v21922_v40  ;;  %v1302_v29 = vmax.f32 %v1195_v44, 0.0  ;;  %v5404_v40 = vld [vmem:[%s20071_s16 + $0x308] sm:$0xff]  ;;  %v18409_v44 = vunpack.i.l.bf16 %v22029_v62  ;;  %v18414_v62 = vunpack.i.l.bf16 %v22059_v38  ;;  %v5417_v57 = vld [vmem:[%s20071_s16 + $0x3d8] sm:$0xff] }
 0x1d0   : > { %27674 = vst [vmem:[#allocation9_spill] sm:$0xff] %v22119_v27  ;;  %v1200_v53 = vpop.f32.mrb[14].mxu0  ;;  %v1303_v31 = vmax.f32 %v1197_v54, 0.0  ;;  %v18455_v36 = vunpack.i.h.bf16 %v18453_v3  ;;  %v18454_v51 = vunpack.i.l.bf16 %v18453_v3  ;;  %v22177_v26 = vpack.i.bf16 %v5405_v39, %v5404_v40  ;;  %v5357_v54 = vld [vmem:[%s20071_s16 + $0x18] sm:$0xff] }
 0x1d1   : > { %v1201_v12 = vadd.f32 %v1200_v53, %v27676_v11  ;;  %v1202_v49 = vpop.f32.mrb[15].mxu0  ;;  %v18405_v3 = vunpack.i.h.bf16 %v22031_v30  ;;  %v18415_v53 = vunpack.i.h.bf16 %v22059_v38 }
 0x1d2   : > { %18777 = vrot.lane.b32.xlu1 %v21795_v46, %s19985_s29  ;;  %v1203_v4 = vadd.f32 %v1202_v49, %v27676_v11  ;;  %v16370_v63 = vpack.c.bf16 %v18455_v36, %v18454_v51  ;;  %v5391_v36 = vld [vmem:[%s20071_s16 + $0x238] sm:$0xff]  ;;  %v18420_v51 = vunpack.i.h.bf16 %v22057_v32 }
 0x1d3   : > { %18772 = vrot.lane.b32.xlu0 %v21811_v8, %s19985_s29  ;;  %14967 = vmatmul.mubr.msk.f32.vlgmr.msra.gmra.mrb[32].mxu1 %vm317_vm0, %v21637_v0  ;;  %v1306_v58 = vmax.f32 %v1201_v12, 0.0  ;;  %v22142_v46 = vpop.permute.xlu1 %18467  ;;  %v22144_v8 = vpop.permute.xlu0 %18462  ;;  %v18354_v12 = vunpack.i.l.bf16 %v21943_v42 }
 0x1d4   : > { %16363 = vmatpush3.bf16.xpose.msk.msra.mxu0 %vm20075_vm1, %v16361_v60  ;;  %16387 = vmatpush3.bf16.xpose.msk.msra.mxu1 %vm20075_vm1, %v16385_v50  ;;  %v1307_v21 = vmax.f32 %v1203_v4, 0.0  ;;  %v5389_v50 = vld [vmem:[%s20071_s16 + $0x218] sm:$0xff]  ;;  %v18470_v30 = vunpack.i.h.bf16 %v22142_v46  ;;  %v18469_v60 = vunpack.i.l.bf16 %v22142_v46  ;;  %v16397_v4 = vpack.c.bf16 %v18409_v44, %v18405_v3 }
 0x1d5   : > { %16390 = vmatprep.subr.msk.bf16.mxu1 %vm20075_vm1, %v16388_v15  ;;  %14968 = vmatprep.mubr.msk.f32.mxu1 %vm317_vm0, %v21991_v9  ;;  %v22153_v45 = vpack.c.bf16 %v1306_v58, %v1302_v29  ;;  %v5356_v15 = vld [vmem:[%s20071_s16 + $0x8] sm:$0xff]  ;;  %v22211_v38 = vpack.i.bf16 %v5389_v50, %v5388_v10  ;;  %v5375_v58 = vld [vmem:[%s20071_s16 + $0x138] sm:$0xff]  ;;  %v16400_v46 = vpack.c.bf16 %v18415_v53, %v18414_v62  ;;  %v18360_v10 = vunpack.i.h.bf16 %v21941_v14 }
 0x1d6   : > { %18787 = vrot.lane.b32.xlu1 %v21823_v23, %s19985_s29  ;;  %16366 = vmatprep.subr.msk.bf16.mxu0 %vm20075_vm1, %v16364_v18  ;;  %v22159_v2 = vpack.c.bf16 %v1307_v21, %v1303_v31  ;;  %v5372_v23 = vld [vmem:[%s20071_s16 + $0x108] sm:$0xff]  ;;  %v18355_v18 = vunpack.i.h.bf16 %v21943_v42  ;;  %v22219_v49 = vpack.i.bf16 %v5357_v54, %v5356_v15  ;;  %v5407_v42 = vld [vmem:[%s20071_s16 + $0x338] sm:$0xff]  ;;  %v16376_v47 = vpack.c.bf16 %v18470_v30, %v18469_v60 }
 0x1d7   : > { %27677 = vst [vmem:[#allocation14_spill] sm:$0xff] %v22153_v45  ;;  %18782 = vrot.lane.b32.xlu0 %v21831_v5, %s19985_s29  ;;  %14969 = vmatmul.mubr.msk.f32.gmra.mrb[34].mxu1 %vm317_vm0, %v21991_v9  ;;  %v22167_v56 = vpop.permute.xlu1 %18477  ;;  %v22169_v17 = vpop.permute.xlu0 %18472  ;;  %v16367_v5 = vpack.c.bf16 %v18350_v37, %v18349_v28  ;;  %v22183_v20 = vpack.i.bf16 %v5373_v55, %v5372_v23  ;;  %v5406_v37 = vld [vmem:[%s20071_s16 + $0x328] sm:$0xff]  ;;  %v5359_v23 = vld [vmem:[%s20071_s16 + $0x38] sm:$0xff]  ;;  %v18430_v55 = vunpack.i.h.bf16 %v22071_v19  ;;  %v18359_v50 = vunpack.i.l.bf16 %v21941_v14 }
 0x1d8   : > { %27678 = vst [vmem:[#allocation12_spill] sm:$0xff] %v22159_v2  ;;  %14970 = vmatprep.mubr.msk.f32.mxu1 %vm317_vm0, %v22015_v24  ;;  %v5374_v29 = vld [vmem:[%s20071_s16 + $0x128] sm:$0xff]  ;;  %v16373_v16 = vpack.c.bf16 %v18355_v18, %v18354_v12  ;;  %v22233_v31 = vpack.i.bf16 %v5407_v42, %v5406_v37  ;;  %v5409_v15 = vld [vmem:[%s20071_s16 + $0x358] sm:$0xff] }
 0x1d9   : > { %v22237_v21 = vpack.i.bf16 %v5375_v58, %v5374_v29  ;;  %v5390_v28 = vld [vmem:[%s20071_s16 + $0x228] sm:$0xff]  ;;  %v5377_v60 = vld [vmem:[%s20071_s16 + $0x158] sm:$0xff] }
 0x1da   : > { %18797 = vrot.lane.b32.xlu1 %v21849_v41, %s19985_s29  ;;  %v22265_v44 = vpack.i.bf16 %v5391_v36, %v5390_v28  ;;  %v5376_v14 = vld [vmem:[%s20071_s16 + $0x148] sm:$0xff] }
 0x1db   : > { %18792 = vrot.lane.b32.xlu0 %v21863_v7, %s19985_s29  ;;  %14971 = vmatmul.mubr.msk.f32.gmra.mrb[36].mxu1 %vm317_vm0, %v22015_v24  ;;  %v22193_v41 = vpop.permute.xlu1 %18487  ;;  %v22195_v7 = vpop.permute.xlu0 %18482  ;;  %v22291_v36 = vpack.i.bf16 %v5377_v60, %v5376_v14 }
 0x1dc   : > { %16369 = vmatpush3.bf16.xpose.msk.msra.mxu0 %vm20075_vm1, %v16367_v5  ;;  %16393 = vmatpush3.bf16.xpose.msk.msra.mxu1 %vm20075_vm1, %v16391_v35  ;;  %v5358_v35 = vld [vmem:[%s20071_s16 + $0x28] sm:$0xff]  ;;  %v18484_v5 = vunpack.i.l.bf16 %v22195_v7 }
 0x1dd   : > { %16396 = vmatprep.subr.msk.bf16.mxu1 %vm20075_vm1, %v16394_v52  ;;  %14972 = vmatprep.mubr.msk.f32.mxu1 %vm317_vm0, %v22040_v43  ;;  %v18429_v52 = vunpack.i.l.bf16 %v22071_v19  ;;  %v22269_v3 = vpack.i.bf16 %v5359_v23, %v5358_v35 }
 0x1de   : > { %18807 = vrot.lane.b32.xlu1 %v22177_v26, %s19979_s17  ;;  %16372 = vmatprep.subr.msk.bf16.mxu0 %vm20075_vm1, %v16370_v63 }
 0x1df   : > { %18802 = vrot.lane.b32.xlu0 %v22183_v20, %s19979_s17  ;;  %14973 = vmatmul.mubr.msk.f32.gmra.mrb[38].mxu1 %vm317_vm0, %v22040_v43  ;;  %v22223_v48 = vpop.permute.xlu1 %18497  ;;  %v22225_v61 = vpop.permute.xlu0 %18492  ;;  %v16406_v18 = vpack.c.bf16 %v18430_v55, %v18429_v52 }
 0x1e0   : > { %15046 = vmatprep.mubr.msk.f32.mxu1 %vm317_vm0, %v21637_v0  ;;  %v18419_v0 = vunpack.i.l.bf16 %v22057_v32  ;;  %v18485_v32 = vunpack.i.h.bf16 %v22195_v7  ;;  %v5408_v7 = vld [vmem:[%s20071_s16 + $0x348] sm:$0xff]  ;;  %v18495_v35 = vunpack.i.h.bf16 %v22225_v61  ;;  %v18494_v23 = vunpack.i.l.bf16 %v22225_v61 }
 0x1e2   : > { %18817 = vrot.lane.b32.xlu1 %v22211_v38, %s19979_s17  ;;  %v16403_v54 = vpack.c.bf16 %v18420_v51, %v18419_v0  ;;  %v16430_v12 = vpack.c.bf16 %v18485_v32, %v18484_v5  ;;  %v5392_v51 = vld [vmem:[%s20071_s16 + $0x248] sm:$0xff]  ;;  %v5393_v0 = vld [vmem:[%s20071_s16 + $0x258] sm:$0xff] }
 0x1e3   : > { %18812 = vrot.lane.b32.xlu0 %v22219_v49, %s19979_s17  ;;  %v22247_v40 = vpop.permute.xlu1 %18507  ;;  %v22249_v39 = vpop.permute.xlu0 %18502  ;;  %v5360_v5 = vld [vmem:[%s20071_s16 + $0x48] sm:$0xff]  ;;  %v22319_v14 = vpack.i.bf16 %v5393_v0, %v5392_v51  ;;  %v5379_v51 = vld [vmem:[%s20071_s16 + $0x178] sm:$0xff] }
 0x1e4   : > { %16375 = vmatpush3.bf16.xpose.msk.msra.mxu0 %vm20075_vm1, %v16373_v16  ;;  %16399 = vmatpush3.bf16.xpose.msk.msra.mxu1 %vm20075_vm1, %v16397_v4  ;;  %v1271_v63 = vpop.f32.mrb[8].mxu1  ;;  %v16379_v4 = vpack.c.bf16 %v18360_v10, %v18359_v50  ;;  %v18434_v16 = vunpack.i.l.bf16 %v22088_v1  ;;  %v18445_v10 = vunpack.i.h.bf16 %v22106_v22  ;;  %v18444_v50 = vunpack.i.l.bf16 %v22106_v22 }
 0x1e5   : > { %16378 = vmatprep.subr.msk.bf16.mxu0 %vm20075_vm1, %v16376_v47  ;;  %16402 = vmatprep.subr.msk.bf16.mxu1 %vm20075_vm1, %v16400_v46  ;;  %v1273_v19 = vpop.f32.mrb[9].mxu1  ;;  %v1272_v53 = vadd.f32 %v1271_v63, %v27649_v13  ;;  %v22284_v46 = vpack.i.bf16 %v5409_v15, %v5408_v7  ;;  %v18435_v47 = vunpack.i.h.bf16 %v22088_v1  ;;  %v5361_v63 = vld [vmem:[%s20071_s16 + $0x58] sm:$0xff]  ;;  %v18505_v15 = vunpack.i.h.bf16 %v22249_v39 }
 0x1e6   : > { %18827 = vrot.lane.b32.xlu1 %v22233_v31, %s19979_s17  ;;  %v1274_v37 = vadd.f32 %v1273_v19, %v27649_v13  ;;  %v16412_v0 = vpack.c.bf16 %v18445_v10, %v18444_v50  ;;  %v22350_v50 = vld [vmem:[%s27485_s1] sm:$0xff] }
 0x1e7   : > { %18822 = vrot.lane.b32.xlu0 %v22237_v21, %s19979_s17  ;;  %v22274_v62 = vpop.permute.xlu1 %18517  ;;  %v22276_v30 = vpop.permute.xlu0 %18512  ;;  %v1296_v55 = vmax.f32 %v1272_v53, 0.0 }
 0x1e8   : > { %v1277_v42 = vpop.f32.mrb[10].mxu1  ;;  %v1297_v61 = vmax.f32 %v1274_v37, 0.0  ;;  %v5411_v37 = vld [vmem:[%s20071_s16 + $0x378] sm:$0xff] }
 0x1e9   : > { %v1278_v29 = vadd.f32 %v1277_v42, %v27672_v59  ;;  %v1279_v58 = vpop.f32.mrb[11].mxu1  ;;  %v16409_v42 = vpack.c.bf16 %v18435_v47, %v18434_v16 }
 0x1ea   : > { %18837 = vrot.lane.b32.xlu1 %v22265_v44, %s19979_s17  ;;  %v1280_v28 = vadd.f32 %v1279_v58, %v27672_v59 }
 0x1eb   : > { %18832 = vrot.lane.b32.xlu0 %v22269_v3, %s19979_s17  ;;  %v1300_v52 = vmax.f32 %v1278_v29, 0.0  ;;  %v22301_v1 = vpop.permute.xlu1 %18527  ;;  %v22303_v32 = vpop.permute.xlu0 %18522 }
 0x1ec   : > { %16381 = vmatpush3.bf16.xpose.msk.msra.mxu0 %vm20075_vm1, %v16379_v4  ;;  %16405 = vmatpush3.bf16.xpose.msk.msra.mxu1 %vm20075_vm1, %v16403_v54  ;;  %v1301_v19 = vmax.f32 %v1280_v28, 0.0  ;;  %v1283_v7 = vpop.f32.mrb[12].mxu1  ;;  %v18504_v54 = vunpack.i.l.bf16 %v22249_v39  ;;  %v16433_v39 = vpack.c.bf16 %v18495_v35, %v18494_v23  ;;  %v5378_v28 = vld [vmem:[%s20071_s16 + $0x168] sm:$0xff]  ;;  %v18450_v35 = vunpack.i.h.bf16 %v22104_v33 }
 0x1ed   : > { %16408 = vmatprep.subr.msk.bf16.mxu1 %vm20075_vm1, %v16406_v18  ;;  %16432 = vmatprep.subr.msk.bf16.mxu0 %vm20075_vm1, %v16430_v12  ;;  %v22315_v53 = vpack.c.bf16 %v1300_v52, %v1296_v55  ;;  %v1285_v22 = vpop.f32.mrb[13].mxu1  ;;  %v22325_v18 = vpack.i.bf16 %v5361_v63, %v5360_v5  ;;  %v5410_v12 = vld [vmem:[%s20071_s16 + $0x368] sm:$0xff]  ;;  %v1284_v4 = vadd.f32 %v1283_v7, %v27675_v25  ;;  %v18449_v23 = vunpack.i.l.bf16 %v22104_v33  ;;  %v5395_v7 = vld [vmem:[%s20071_s16 + $0x278] sm:$0xff] }
 0x1ee   : > { %18847 = vrot.lane.b32.xlu1 %v22284_v46, %s19979_s17  ;;  %v22321_v60 = vpack.c.bf16 %v1301_v19, %v1297_v61  ;;  %v1286_v55 = vadd.f32 %v1285_v22, %v27675_v25  ;;  %v16436_v5 = vpack.c.bf16 %v18505_v15, %v18504_v54  ;;  %v22340_v16 = vpack.i.bf16 %v5411_v37, %v5410_v12  ;;  %v5394_v19 = vld [vmem:[%s20071_s16 + $0x268] sm:$0xff] }
 0x1ef   : > { %27679 = vst [vmem:[#allocation11_spill] sm:$0xff] %v22315_v53  ;;  %18842 = vrot.lane.b32.xlu0 %v22291_v36, %s19979_s17  ;;  %v22330_v29 = vpop.permute.xlu1 %18537  ;;  %v22332_v58 = vpop.permute.xlu0 %18532  ;;  %v22354_v61 = vpack.i.bf16 %v5379_v51, %v5378_v28  ;;  %v18515_v33 = vunpack.i.h.bf16 %v22276_v30  ;;  %v18514_v15 = vunpack.i.l.bf16 %v22276_v30  ;;  %v1304_v54 = vmax.f32 %v1284_v4, 0.0  ;;  %v5362_v28 = vld [vmem:[%s20071_s16 + $0x68] sm:$0xff]  ;;  %v5363_v51 = vld [vmem:[%s20071_s16 + $0x78] sm:$0xff] }
 0x1f0   : > { %27680 = vst [vmem:[#allocation16_spill] sm:$0xff] %v22321_v60  ;;  %v1289_v52 = vpop.f32.mrb[14].mxu1  ;;  %v1305_v30 = vmax.f32 %v1286_v55, 0.0 }
 0x1f1   : > { %v1290_v63 = vadd.f32 %v1289_v52, %v27676_v11  ;;  %v1291_v47 = vpop.f32.mrb[15].mxu1  ;;  %v18460_v52 = vunpack.i.h.bf16 %v22124_v34 }
 0x1f2   : > { %18857 = vrot.lane.b32.xlu1 %v22319_v14, %s19979_s17  ;;  %v1292_v10 = vadd.f32 %v1291_v47, %v27676_v11  ;;  %v18459_v47 = vunpack.i.l.bf16 %v22124_v34  ;;  %v22382_v34 = vpack.i.bf16 %v5395_v7, %v5394_v19  ;;  %v16439_v19 = vpack.c.bf16 %v18515_v33, %v18514_v15  ;;  %v5397_v33 = vld [vmem:[%s20071_s16 + $0x298] sm:$0xff] }
 0x1f3   : > { %18852 = vrot.lane.b32.xlu0 %v22325_v18, %s19979_s17  ;;  %15007 = vmatmul.mubr.msk.f32.vlgmr.msra.gmra.mrb[40].mxu0 %vm317_vm0, %v22350_v50  ;;  %v1308_v22 = vmax.f32 %v1290_v63, 0.0  ;;  %v22364_v12 = vpop.permute.xlu1 %18547  ;;  %v22366_v37 = vpop.permute.xlu0 %18542  ;;  %v18465_v15 = vunpack.i.h.bf16 %v22144_v8 }
 0x1f4   : > { %16411 = vmatpush3.bf16.xpose.msk.msra.mxu1 %vm20075_vm1, %v16409_v42  ;;  %16435 = vmatpush3.bf16.xpose.msk.msra.mxu0 %vm20075_vm1, %v16433_v39  ;;  %v1309_v4 = vmax.f32 %v1292_v10, 0.0  ;;  %v18525_v42 = vunpack.i.h.bf16 %v22303_v32  ;;  %v18524_v39 = vunpack.i.l.bf16 %v22303_v32  ;;  %27682 = vst [vmem:[#allocation7_spill] sm:$0xff] %v22382_v34  ;;  %v22392_v32 = vpack.i.bf16 %v5363_v51, %v5362_v28  ;;  %v5413_v10 = vld [vmem:[%s20071_s16 + $0x398] sm:$0xff] }
 0x1f5   : > { %15008 = vmatprep.mubr.msk.f32.mxu0 %vm317_vm0, %v21991_v9  ;;  %16414 = vmatprep.subr.msk.bf16.mxu1 %vm20075_vm1, %v16412_v0  ;;  %v22378_v63 = vpack.c.bf16 %v1308_v22, %v1304_v54  ;;  %v5412_v0 = vld [vmem:[%s20071_s16 + $0x388] sm:$0xff]  ;;  %v16415_v54 = vpack.c.bf16 %v18450_v35, %v18449_v23  ;;  %v18464_v51 = vunpack.i.l.bf16 %v22144_v8  ;;  %v18475_v8 = vunpack.i.h.bf16 %v22169_v17 }
 0x1f6   : > { %18867 = vrot.lane.b32.xlu1 %v22340_v16, %s19979_s17  ;;  %16438 = vmatprep.subr.msk.bf16.mxu0 %vm20075_vm1, %v16436_v5  ;;  %v22386_v55 = vpack.c.bf16 %v1309_v4, %v1305_v30  ;;  %27684 = vst [vmem:[#allocation6_spill] sm:$0xff] %v22392_v32  ;;  %v5380_v5 = vld [vmem:[%s20071_s16 + $0x188] sm:$0xff]  ;;  %v5381_v30 = vld [vmem:[%s20071_s16 + $0x198] sm:$0xff]  ;;  %v16418_v4 = vpack.c.bf16 %v18460_v52, %v18459_v47  ;;  %v18535_v52 = vunpack.i.h.bf16 %v22332_v58  ;;  %v18534_v47 = vunpack.i.l.bf16 %v22332_v58 }
 0x1f7   : > { %27681 = vst [vmem:[#allocation15_spill] sm:$0xff] %v22378_v63  ;;  %18862 = vrot.lane.b32.xlu0 %v22354_v61, %s19979_s17  ;;  %15009 = vmatmul.mubr.msk.f32.gmra.mrb[42].mxu0 %vm317_vm0, %v21991_v9  ;;  %v22396_v7 = vpop.permute.xlu1 %18557  ;;  %v22398_v22 = vpop.permute.xlu0 %18552  ;;  %v16442_v63 = vpack.c.bf16 %v18525_v42, %v18524_v39  ;;  %v22406_v28 = vpack.i.bf16 %v5413_v10, %v5412_v0  ;;  %v5396_v23 = vld [vmem:[%s20071_s16 + $0x288] sm:$0xff]  ;;  %v5365_v10 = vld [vmem:[%s20071_s16 + $0x98] sm:$0xff]  ;;  %v18545_v58 = vunpack.i.h.bf16 %v22366_v37 }
 0x1f8   : > { %27683 = vst [vmem:[#allocation4_spill] sm:$0xff] %v22386_v55  ;;  %15010 = vmatprep.mubr.msk.f32.mxu0 %vm317_vm0, %v22015_v24  ;;  %v22412_v35 = vpack.i.bf16 %v5381_v30, %v5380_v5  ;;  %v5364_v0 = vld [vmem:[%s20071_s16 + $0x88] sm:$0xff]  ;;  %v18474_v5 = vunpack.i.l.bf16 %v22169_v17  ;;  %v5415_v30 = vld [vmem:[%s20071_s16 + $0x3b8] sm:$0xff]  ;;  %v16445_v55 = vpack.c.bf16 %v18535_v52, %v18534_v47  ;;  %v18480_v47 = vunpack.i.h.bf16 %v22167_v56 }
 0x1f9   : > { %27685 = vst [vmem:[#allocation22_spill] sm:$0xff] %v22406_v28  ;;  %v22448_v17 = vpack.i.bf16 %v5365_v10, %v5364_v0  ;;  %v5399_v52 = vld [vmem:[%s20071_s16 + $0x2b8] sm:$0xff]  ;;  %v18479_v10 = vunpack.i.l.bf16 %v22167_v56  ;;  %v18490_v56 = vunpack.i.h.bf16 %v22193_v41 }
 0x1fa   : > { %18877 = vrot.lane.b32.xlu1 %v22382_v34, %s19979_s17  ;;  %27686 = vst [vmem:[#allocation23_spill] sm:$0xff] %v22412_v35  ;;  %v16424_v60 = vpack.c.bf16 %v18475_v8, %v18474_v5  ;;  %v18555_v8 = vunpack.i.h.bf16 %v22398_v22  ;;  %v18554_v5 = vunpack.i.l.bf16 %v22398_v22  ;;  %v5402_v34 = vld [vmem:[%s20071_s16 + $0x2e8] sm:$0xff] }
 0x1fb   : > { %18872 = vrot.lane.b32.xlu0 %v22392_v32, %s19979_s17  ;;  %15011 = vmatmul.mubr.msk.f32.gmra.mrb[44].mxu0 %vm317_vm0, %v22015_v24  ;;  %v22424_v42 = vpop.permute.xlu1 %18567  ;;  %v22426_v39 = vpop.permute.xlu0 %18562  ;;  %27688 = vst [vmem:[#allocation25_spill] sm:$0xff] %v22448_v17  ;;  %v16427_v27 = vpack.c.bf16 %v18480_v47, %v18479_v10 }
 0x1fc   : > { %16417 = vmatpush3.bf16.xpose.msk.msra.mxu1 %vm20075_vm1, %v16415_v54  ;;  %16441 = vmatpush3.bf16.xpose.msk.msra.mxu0 %vm20075_vm1, %v16439_v19  ;;  %v18544_v54 = vunpack.i.l.bf16 %v22366_v37  ;;  %v22440_v19 = vpack.i.bf16 %v5397_v33, %v5396_v23  ;;  %v5414_v37 = vld [vmem:[%s20071_s16 + $0x3a8] sm:$0xff]  ;;  %v18565_v22 = vunpack.i.h.bf16 %v22426_v39 }
 0x1fd   : > { %15012 = vmatprep.mubr.msk.f32.mxu0 %vm317_vm0, %v22040_v43  ;;  %16420 = vmatprep.subr.msk.bf16.mxu1 %vm20075_vm1, %v16418_v4  ;;  %v16421_v4 = vpack.c.bf16 %v18465_v15, %v18464_v51  ;;  %v5382_v33 = vld [vmem:[%s20071_s16 + $0x1a8] sm:$0xff]  ;;  %v22462_v0 = vpack.i.bf16 %v5415_v30, %v5414_v37  ;;  %v5367_v30 = vld [vmem:[%s20071_s16 + $0xb8] sm:$0xff] }
 0x1fe   : > { %18887 = vrot.lane.b32.xlu1 %v22406_v28, %s19979_s17  ;;  %27687 = vst [vmem:[#allocation24_spill] sm:$0xff] %v22440_v19  ;;  %16444 = vmatprep.subr.msk.bf16.mxu0 %vm20075_vm1, %v16442_v63  ;;  %v5383_v63 = vld [vmem:[%s20071_s16 + $0x1b8] sm:$0xff]  ;;  %v16448_v45 = vpack.c.bf16 %v18545_v58, %v18544_v54  ;;  %v5398_v51 = vld [vmem:[%s20071_s16 + $0x2a8] sm:$0xff] }
 0x1ff   : > { %18882 = vrot.lane.b32.xlu0 %v22412_v35, %s19979_s17  ;;  %15013 = vmatmul.mubr.msk.f32.gmra.mrb[46].mxu0 %vm317_vm0, %v22040_v43  ;;  %v22452_v53 = vpop.permute.xlu1 %18577  ;;  %v22454_v23 = vpop.permute.xlu0 %18572  ;;  %27689 = vst [vmem:[#allocation26_spill] sm:$0xff] %v22462_v0  ;;  %v22466_v15 = vpack.i.bf16 %v5383_v63, %v5382_v33  ;;  %v5366_v37 = vld [vmem:[%s20071_s16 + $0xa8] sm:$0xff]  ;;  %v18489_v33 = vunpack.i.l.bf16 %v22193_v41  ;;  %v18564_v63 = vunpack.i.l.bf16 %v22426_v39  ;;  %v22494_v2 = vpack.i.bf16 %v5399_v52, %v5398_v51  ;;  %v5385_v51 = vld [vmem:[%s20071_s16 + $0x1d8] sm:$0xff] }
 0x200   : > { %15086 = vmatprep.mubr.msk.f32.mxu0 %vm317_vm0, %v22350_v50  ;;  %v22498_v41 = vpack.i.bf16 %v5367_v30, %v5366_v37  ;;  %v5416_v39 = vld [vmem:[%s20071_s16 + $0x3c8] sm:$0xff]  ;;  %v5419_v28 = vld [vmem:[%s20071_s16 + $0x3f8] sm:$0xff] }
 0x201   : > { %27690 = vst [vmem:[#allocation27_spill] sm:$0xff] %v22466_v15  ;;  %27691 = vst [vmem:[#allocation28_spill] sm:$0xff] %v22494_v2  ;;  %v16478_v52 = vpack.c.bf16 %v18490_v56, %v18489_v33  ;;  %v16454_v35 = vpack.c.bf16 %v18565_v22, %v18564_v63  ;;  %v22513_v10 = vpack.i.bf16 %v5417_v57, %v5416_v39  ;;  %v5400_v22 = vld [vmem:[%s20071_s16 + $0x2c8] sm:$0xff]  ;;  %v5401_v63 = vld [vmem:[%s20071_s16 + $0x2d8] sm:$0xff]  ;;  %v18574_v57 = vunpack.i.l.bf16 %v22454_v23 }
 0x202   : > { %18897 = vrot.lane.b32.xlu1 %v22440_v19, %s19979_s17  ;;  %27692 = vst [vmem:[#allocation29_spill] sm:$0xff] %v22498_v41 }
 0x203   : > { %18892 = vrot.lane.b32.xlu0 %v22448_v17, %s19979_s17  ;;  %v22478_v58 = vpop.permute.xlu1 %18587  ;;  %v22480_v54 = vpop.permute.xlu0 %18582  ;;  %v16451_v17 = vpack.c.bf16 %v18555_v8, %v18554_v5  ;;  %27693 = vst [vmem:[#allocation30_spill] sm:$0xff] %v22513_v10  ;;  %v18500_v8 = vunpack.i.h.bf16 %v22223_v48  ;;  %v18499_v5 = vunpack.i.l.bf16 %v22223_v48 }
 0x204   : > { %16423 = vmatpush3.bf16.xpose.msk.msra.mxu1 %vm20075_vm1, %v16421_v4  ;;  %16447 = vmatpush3.bf16.xpose.msk.msra.mxu0 %vm20075_vm1, %v16445_v55  ;;  %v1776_v4 = vpop.f32.mrb[16].mxu0 }
 0x205   : > { %16426 = vmatprep.subr.msk.bf16.mxu1 %vm20075_vm1, %v16424_v60  ;;  %16450 = vmatprep.subr.msk.bf16.mxu0 %vm20075_vm1, %v16448_v45  ;;  %v1778_v55 = vpop.f32.mrb[17].mxu0  ;;  %v1777_v60 = vadd.f32 %v1776_v4, %v27649_v13  ;;  %v18575_v4 = vunpack.i.h.bf16 %v22454_v23  ;;  %v16481_v32 = vpack.c.bf16 %v18500_v8, %v18499_v5  ;;  %v18520_v8 = vunpack.i.h.bf16 %v22274_v62 }
 0x206   : > { %18907 = vrot.lane.b32.xlu1 %v22462_v0, %s19979_s17  ;;  %v5384_v0 = vld [vmem:[%s20071_s16 + $0x1c8] sm:$0xff] }
 0x207   : > { %18902 = vrot.lane.b32.xlu0 %v22466_v15, %s19979_s17  ;;  %v22503_v19 = vpop.permute.xlu1 %18597  ;;  %v22505_v45 = vpop.permute.xlu0 %18592  ;;  %v1779_v15 = vadd.f32 %v1778_v55, %v27649_v13  ;;  %v22520_v33 = vpack.i.bf16 %v5385_v51, %v5384_v0  ;;  %v1888_v55 = vmax.f32 %v1777_v60, 0.0  ;;  %v5368_v0 = vld [vmem:[%s20071_s16 + $0xc8] sm:$0xff]  ;;  %v5369_v51 = vld [vmem:[%s20071_s16 + $0xd8] sm:$0xff] }
 0x208   : > { %v1782_v37 = vpop.f32.mrb[18].mxu0 }
 0x209   : > { %v1783_v30 = vadd.f32 %v1782_v37, %v27672_v59  ;;  %v1784_v47 = vpop.f32.mrb[19].mxu0  ;;  %v1889_v23 = vmax.f32 %v1779_v15, 0.0  ;;  %v22548_v15 = vpack.i.bf16 %v5401_v63, %v5400_v22  ;;  %v5403_v22 = vld [vmem:[%s20071_s16 + $0x2f8] sm:$0xff] }
 0x20a   : > { %18917 = vrot.lane.b32.xlu1 %v22494_v2, %s19979_s17  ;;  %v1785_v56 = vadd.f32 %v1784_v47, %v27672_v59  ;;  %v18510_v47 = vunpack.i.h.bf16 %v22247_v40 }
 0x20b   : > { %18912 = vrot.lane.b32.xlu0 %v22498_v41, %s19979_s17  ;;  %v1892_v39 = vmax.f32 %v1783_v30, 0.0  ;;  %v22530_v48 = vpop.permute.xlu1 %18607  ;;  %v22532_v37 = vpop.permute.xlu0 %18602  ;;  %v18509_v41 = vunpack.i.l.bf16 %v22247_v40 }
 0x20c   : > { %16429 = vmatpush3.bf16.xpose.msk.msra.mxu1 %vm20075_vm1, %v16427_v27  ;;  %16453 = vmatpush3.bf16.xpose.msk.msra.mxu0 %vm20075_vm1, %v16451_v17  ;;  %v1893_v60 = vmax.f32 %v1785_v56, 0.0  ;;  %v1788_v30 = vpop.f32.mrb[20].mxu0  ;;  %v18585_v27 = vunpack.i.h.bf16 %v22480_v54  ;;  %v18584_v17 = vunpack.i.l.bf16 %v22480_v54  ;;  %v5386_v54 = vld [vmem:[%s20071_s16 + $0x1e8] sm:$0xff] }
 0x20d   : > { %16480 = vmatprep.subr.msk.bf16.mxu1 %vm20075_vm1, %v16478_v52  ;;  %16456 = vmatprep.subr.msk.bf16.mxu0 %vm20075_vm1, %v16454_v35  ;;  %v22544_v2 = vpack.c.bf16 %v1892_v39, %v1888_v55  ;;  %v1790_v40 = vpop.f32.mrb[21].mxu0  ;;  %v22554_v35 = vpack.i.bf16 %v5369_v51, %v5368_v0  ;;  %v5418_v52 = vld [vmem:[%s20071_s16 + $0x3e8] sm:$0xff]  ;;  %v16457_v55 = vpack.c.bf16 %v18575_v4, %v18574_v57 }
 0x20e   : > { %18927 = vrot.lane.b32.xlu1 %v22513_v10, %s19979_s17  ;;  %v22550_v56 = vpack.c.bf16 %v1893_v60, %v1889_v23  ;;  %v5387_v10 = vld [vmem:[%s20071_s16 + $0x1f8] sm:$0xff]  ;;  %v16484_v63 = vpack.c.bf16 %v18510_v47, %v18509_v41  ;;  %v1789_v23 = vadd.f32 %v1788_v30, %v27675_v25  ;;  %v16460_v60 = vpack.c.bf16 %v18585_v27, %v18584_v17 }
 0x20f   : > { %27694 = vst [vmem:[#allocation31_spill] sm:$0xff] %v22544_v2  ;;  %18922 = vrot.lane.b32.xlu0 %v22520_v33, %s19979_s17  ;;  %v22559_v39 = vpop.permute.xlu1 %18617  ;;  %v22561_v2 = vpop.permute.xlu0 %18612  ;;  %v22570_v51 = vpack.i.bf16 %v5419_v28, %v5418_v52  ;;  %v22578_v4 = vpack.i.bf16 %v5387_v10, %v5386_v54  ;;  %v22580_v57 = vpack.i.bf16 %v5403_v22, %v5402_v34  ;;  %v18519_v28 = vunpack.i.l.bf16 %v22274_v62  ;;  %v5371_v34 = vld [vmem:[%s20071_s16 + $0xf8] sm:$0xff] }
 0x210   : > { %27695 = vst [vmem:[#allocation32_spill] sm:$0xff] %v22550_v56  ;;  %v1791_v56 = vadd.f32 %v1790_v40, %v27675_v25  ;;  %v1794_v0 = vpop.f32.mrb[22].mxu0  ;;  %v18595_v47 = vunpack.i.h.bf16 %v22505_v45  ;;  %v18594_v30 = vunpack.i.l.bf16 %v22505_v45  ;;  %v5370_v40 = vld [vmem:[%s20071_s16 + $0xe8] sm:$0xff]  ;;  %v18530_v52 = vunpack.i.h.bf16 %v22301_v1 }
 0x211   : > { %v1795_v5 = vadd.f32 %v1794_v0, %v27676_v11  ;;  %v1796_v41 = vpop.f32.mrb[23].mxu0  ;;  %v18529_v62 = vunpack.i.l.bf16 %v22301_v1  ;;  %v1896_v54 = vmax.f32 %v1789_v23, 0.0  ;;  %v18605_v45 = vunpack.i.h.bf16 %v22532_v37 }
 0x212   : > { %18937 = vrot.lane.b32.xlu1 %v22548_v15, %s19979_s17  ;;  %v1797_v27 = vadd.f32 %v1796_v41, %v27676_v11  ;;  %v16487_v23 = vpack.c.bf16 %v18520_v8, %v18519_v28  ;;  %v18539_v8 = vunpack.i.l.bf16 %v22330_v29  ;;  %v18615_v28 = vunpack.i.h.bf16 %v22561_v2 }
 0x213   : > { %18932 = vrot.lane.b32.xlu0 %v22554_v35, %s19979_s17  ;;  %15047 = vmatmul.mubr.msk.f32.vlgmr.msra.gmra.mrb[40].mxu1 %vm317_vm0, %v22350_v50  ;;  %v22590_v17 = vpop.permute.xlu1 %18627  ;;  %v18623_v10 = vpop.permute.xlu0 %18622  ;;  %v1900_v22 = vmax.f32 %v1795_v5, 0.0 }
 0x214   : > { %16459 = vmatpush3.bf16.xpose.msk.msra.mxu0 %vm20075_vm1, %v16457_v55  ;;  %16483 = vmatpush3.bf16.xpose.msk.msra.mxu1 %vm20075_vm1, %v16481_v32  ;;  %v18604_v32 = vunpack.i.l.bf16 %v22532_v37  ;;  %v1897_v55 = vmax.f32 %v1791_v56, 0.0  ;;  %v1901_v0 = vmax.f32 %v1797_v27, 0.0  ;;  %v16463_v37 = vpack.c.bf16 %v18595_v47, %v18594_v30 }
 0x215   : > { %15048 = vmatprep.mubr.msk.f32.mxu1 %vm317_vm0, %v21991_v9  ;;  %16486 = vmatprep.subr.msk.bf16.mxu1 %vm20075_vm1, %v16484_v63  ;;  %v22606_v1 = vpack.c.bf16 %v1900_v22, %v1896_v54  ;;  %v22612_v63 = vpack.i.bf16 %v5371_v34, %v5370_v40  ;;  %v18614_v47 = vunpack.i.l.bf16 %v22561_v2  ;;  %v18550_v34 = vunpack.i.h.bf16 %v22364_v12 }
 0x216   : > { %18947 = vrot.lane.b32.xlu1 %v22570_v51, %s19979_s17  ;;  %16462 = vmatprep.subr.msk.bf16.mxu0 %vm20075_vm1, %v16460_v60  ;;  %v22614_v56 = vpack.c.bf16 %v1901_v0, %v1897_v55  ;;  %v16490_v60 = vpack.c.bf16 %v18530_v52, %v18529_v62  ;;  %v16466_v27 = vpack.c.bf16 %v18605_v45, %v18604_v32  ;;  %v18625_v52 = vunpack.i.h.bf16 %v18623_v10 }
 0x217   : > { %27696 = vst [vmem:[#allocation33_spill] sm:$0xff] %v22606_v1  ;;  %18942 = vrot.lane.b32.xlu0 %v22578_v4, %s19979_s17  ;;  %15049 = vmatmul.mubr.msk.f32.gmra.mrb[42].mxu1 %vm317_vm0, %v21991_v9  ;;  %v22616_v5 = vpop.permute.xlu1 %18637  ;;  %v18633_v41 = vpop.permute.xlu0 %18632  ;;  %v18540_v9 = vunpack.i.h.bf16 %v22330_v29  ;;  %v18624_v62 = vunpack.i.l.bf16 %v18623_v10  ;;  %v16469_v29 = vpack.c.bf16 %v18615_v28, %v18614_v47  ;;  %v18569_v0 = vunpack.i.l.bf16 %v22424_v42 }
 0x218   : > { %27697 = vst [vmem:[#allocation34_spill] sm:$0xff] %v22614_v56  ;;  %15050 = vmatprep.mubr.msk.f32.mxu1 %vm317_vm0, %v22015_v24  ;;  %v18635_v22 = vunpack.i.h.bf16 %v18633_v41  ;;  %v18634_v45 = vunpack.i.l.bf16 %v18633_v41 }
 0x219   : > { %v16493_v2 = vpack.c.bf16 %v18540_v9, %v18539_v8 }
 0x21a   : > { %18957 = vrot.lane.b32.xlu1 %v22580_v57, %s19979_s17 }
 0x21b   : > { %18952 = vrot.lane.b32.xlu0 %v22612_v63, %s19979_s17  ;;  %15051 = vmatmul.mubr.msk.f32.gmra.mrb[44].mxu1 %vm317_vm0, %v22015_v24  ;;  %v22634_v30 = vpop.permute.xlu1 %18647  ;;  %v18643_v40 = vpop.permute.xlu0 %18642  ;;  %v18549_v24 = vunpack.i.l.bf16 %v22364_v12 }
 0x21c   : > { %16465 = vmatpush3.bf16.xpose.msk.msra.mxu0 %vm20075_vm1, %v16463_v37  ;;  %16489 = vmatpush3.bf16.xpose.msk.msra.mxu1 %vm20075_vm1, %v16487_v23  ;;  %v18644_v23 = vunpack.i.l.bf16 %v18643_v40 }
 0x21d   : > { %15052 = vmatprep.mubr.msk.f32.mxu1 %vm317_vm0, %v22040_v43  ;;  %16492 = vmatprep.subr.msk.bf16.mxu1 %vm20075_vm1, %v16490_v60  ;;  %v16496_v54 = vpack.c.bf16 %v18550_v34, %v18549_v24  ;;  %v16475_v60 = vpack.c.bf16 %v18635_v22, %v18634_v45  ;;  %v18579_v24 = vunpack.i.l.bf16 %v22452_v53 }
 0x21e   : > { %18967 = vrot.lane.b32.xlu1 %v22177_v26, %s19980_s24  ;;  %16468 = vmatprep.subr.msk.bf16.mxu0 %vm20075_vm1, %v16466_v27  ;;  %v16472_v26 = vpack.c.bf16 %v18625_v52, %v18624_v62 }
 0x21f   : > { %18962 = vrot.lane.b32.xlu0 %v22183_v20, %s19980_s24  ;;  %15053 = vmatmul.mubr.msk.f32.gmra.mrb[46].mxu1 %vm317_vm0, %v22040_v43  ;;  %v22650_v12 = vpop.permute.xlu1 %18657  ;;  %v22652_v10 = vpop.permute.xlu0 %18652  ;;  %v18560_v20 = vunpack.i.h.bf16 %v22396_v7  ;;  %v18559_v43 = vunpack.i.l.bf16 %v22396_v7 }
 0x220   : > { %15126 = vmatprep.mubr.msk.f32.mxu1 %vm317_vm0, %v22350_v50  ;;  %v18655_v62 = vunpack.i.h.bf16 %v22652_v10 }
 0x221   : > { %v16499_v41 = vpack.c.bf16 %v18560_v20, %v18559_v43 }
 0x222   : > { %18977 = vrot.lane.b32.xlu1 %v22211_v38, %s19980_s24  ;;  %v18570_v38 = vunpack.i.h.bf16 %v22424_v42 }
 0x223   : > { %18972 = vrot.lane.b32.xlu0 %v22219_v49, %s19980_s24  ;;  %v22666_v32 = vpop.permute.xlu1 %18667  ;;  %v18663_v55 = vpop.permute.xlu0 %18662  ;;  %v18645_v49 = vunpack.i.h.bf16 %v18643_v40 }
 0x224   : > { %16471 = vmatpush3.bf16.xpose.msk.msra.mxu0 %vm20075_vm1, %v16469_v29  ;;  %16495 = vmatpush3.bf16.xpose.msk.msra.mxu1 %vm20075_vm1, %v16493_v2  ;;  %v1865_v37 = vpop.f32.mrb[16].mxu1  ;;  %v16502_v8 = vpack.c.bf16 %v18570_v38, %v18569_v0  ;;  %v18654_v2 = vunpack.i.l.bf16 %v22652_v10  ;;  %v18665_v10 = vunpack.i.h.bf16 %v18663_v55  ;;  %v18664_v45 = vunpack.i.l.bf16 %v18663_v55 }
 0x225   : > { %16498 = vmatprep.subr.msk.bf16.mxu1 %vm20075_vm1, %v16496_v54  ;;  %16474 = vmatprep.subr.msk.bf16.mxu0 %vm20075_vm1, %v16472_v26  ;;  %v1867_v7 = vpop.f32.mrb[17].mxu1  ;;  %v1866_v42 = vadd.f32 %v1865_v37, %v27649_v13  ;;  %v16526_v28 = vpack.c.bf16 %v18645_v49, %v18644_v23  ;;  %v18589_v26 = vunpack.i.l.bf16 %v22478_v58 }
 0x226   : > { %18987 = vrot.lane.b32.xlu1 %v22233_v31, %s19980_s24  ;;  %v1868_v47 = vadd.f32 %v1867_v7, %v27649_v13  ;;  %v16529_v23 = vpack.c.bf16 %v18655_v62, %v18654_v2 }
 0x227   : > { %18982 = vrot.lane.b32.xlu0 %v22237_v21, %s19980_s24  ;;  %v22679_v27 = vpop.permute.xlu1 %18677  ;;  %v22681_v9 = vpop.permute.xlu0 %18672  ;;  %v18580_v21 = vunpack.i.h.bf16 %v22452_v53  ;;  %v1890_v29 = vmax.f32 %v1866_v42, 0.0 }
 0x228   : > { %v1871_v40 = vpop.f32.mrb[18].mxu1  ;;  %v1891_v20 = vmax.f32 %v1868_v47, 0.0  ;;  %v18599_v47 = vunpack.i.l.bf16 %v22503_v19 }
 0x229   : > { %v1872_v34 = vadd.f32 %v1871_v40, %v27672_v59  ;;  %v1873_v31 = vpop.f32.mrb[19].mxu1 }
 0x22a   : > { %18997 = vrot.lane.b32.xlu1 %v22265_v44, %s19980_s24  ;;  %v1874_v52 = vadd.f32 %v1873_v31, %v27672_v59  ;;  %v18674_v31 = vunpack.i.l.bf16 %v22681_v9 }
 0x22b   : > { %18992 = vrot.lane.b32.xlu0 %v22269_v3, %s19980_s24  ;;  %v1894_v54 = vmax.f32 %v1872_v34, 0.0  ;;  %v22698_v44 = vpop.permute.xlu1 %18687  ;;  %v22700_v53 = vpop.permute.xlu0 %18682  ;;  %v18590_v3 = vunpack.i.h.bf16 %v22478_v58  ;;  %v16505_v58 = vpack.c.bf16 %v18580_v21, %v18579_v24  ;;  %v18675_v34 = vunpack.i.h.bf16 %v22681_v9  ;;  %v22745_v9 = vld [vmem:[%s27485_s1 + $0x8] sm:$0xff] }
 0x22c   : > { %16477 = vmatpush3.bf16.xpose.msk.msra.mxu0 %vm20075_vm1, %v16475_v60  ;;  %16501 = vmatpush3.bf16.xpose.msk.msra.mxu1 %vm20075_vm1, %v16499_v41  ;;  %v1895_v43 = vmax.f32 %v1874_v52, 0.0  ;;  %v1877_v22 = vpop.f32.mrb[20].mxu1  ;;  %v18609_v52 = vunpack.i.l.bf16 %v22530_v48 }
 0x22d   : > { %16504 = vmatprep.subr.msk.bf16.mxu1 %vm20075_vm1, %v16502_v8  ;;  %16528 = vmatprep.subr.msk.bf16.mxu0 %vm20075_vm1, %v16526_v28  ;;  %v22708_v38 = vpack.c.bf16 %v1894_v54, %v1890_v29  ;;  %v1879_v0 = vpop.f32.mrb[21].mxu1  ;;  %v1878_v37 = vadd.f32 %v1877_v22, %v27675_v25  ;;  %v16508_v55 = vpack.c.bf16 %v18590_v3, %v18589_v26  ;;  %v18685_v29 = vunpack.i.h.bf16 %v22700_v53 }
 0x22e   : > { %19007 = vrot.lane.b32.xlu1 %v22284_v46, %s19980_s24  ;;  %v22712_v49 = vpack.c.bf16 %v1895_v43, %v1891_v20  ;;  %v1880_v60 = vadd.f32 %v1879_v0, %v27675_v25  ;;  %v16532_v8 = vpack.c.bf16 %v18665_v10, %v18664_v45  ;;  %v18684_v54 = vunpack.i.l.bf16 %v22700_v53  ;;  %v27703_v45 = vld [vmem:[#allocation6_spill] sm:$0xff] }
 0x22f   : > { %27698 = vst [vmem:[#allocation35_spill] sm:$0xff] %v22708_v38  ;;  %19002 = vrot.lane.b32.xlu0 %v22291_v36, %s19980_s24  ;;  %v22717_v7 = vpop.permute.xlu1 %18697  ;;  %v22719_v41 = vpop.permute.xlu0 %18692  ;;  %v18600_v36 = vunpack.i.h.bf16 %v22503_v19  ;;  %v1898_v21 = vmax.f32 %v1878_v37, 0.0  ;;  %v18610_v19 = vunpack.i.h.bf16 %v22530_v48  ;;  %v16535_v20 = vpack.c.bf16 %v18675_v34, %v18674_v31  ;;  %v23082_v38 = vld [vmem:[%s20071_s16 + $0x358] sm:$0xff] }
 0x230   : > { %27699 = vst [vmem:[#allocation36_spill] sm:$0xff] %v22712_v49  ;;  %v1899_v62 = vmax.f32 %v1880_v60, 0.0  ;;  %v16538_v10 = vpack.c.bf16 %v18685_v29, %v18684_v54  ;;  %v18620_v0 = vunpack.i.h.bf16 %v22559_v39  ;;  %v18694_v37 = vunpack.i.l.bf16 %v22719_v41 }
 0x231   : > { %v1883_v42 = vpop.f32.mrb[22].mxu1  ;;  %v16511_v26 = vpack.c.bf16 %v18600_v36, %v18599_v47  ;;  %v16514_v22 = vpack.c.bf16 %v18610_v19, %v18609_v52  ;;  %v18640_v19 = vunpack.i.h.bf16 %v22616_v5  ;;  %v18639_v52 = vunpack.i.l.bf16 %v22616_v5 }
 0x232   : > { %v1884_v46 = vadd.f32 %v1883_v42, %v27676_v11  ;;  %19017 = vrot.lane.b32.xlu1 %v22319_v14, %s19980_s24  ;;  %v1885_v28 = vpop.f32.mrb[23].mxu1  ;;  %v18630_v42 = vunpack.i.h.bf16 %v22590_v17 }
 0x233   : > { %19012 = vrot.lane.b32.xlu0 %v22325_v18, %s19980_s24  ;;  %v1886_v40 = vadd.f32 %v1885_v28, %v27676_v11  ;;  %15087 = vmatmul.mubr.msk.f32.vlgmr.msra.gmra.mrb[48].mxu0 %vm317_vm0, %v22350_v50  ;;  %v22738_v14 = vpop.permute.xlu1 %18707  ;;  %v18703_v18 = vpop.permute.xlu0 %18702 }
 0x234   : > { %v1902_v24 = vmax.f32 %v1884_v46, 0.0  ;;  %16507 = vmatpush3.bf16.xpose.msk.msra.mxu1 %vm20075_vm1, %v16505_v58  ;;  %16531 = vmatpush3.bf16.xpose.msk.msra.mxu0 %vm20075_vm1, %v16529_v23  ;;  %v18619_v58 = vunpack.i.l.bf16 %v22559_v39  ;;  %v18695_v23 = vunpack.i.h.bf16 %v22719_v41  ;;  %v18705_v46 = vunpack.i.h.bf16 %v18703_v18  ;;  %v22795_v39 = vld [vmem:[%s27485_s1 + $0x18] sm:$0xff]  ;;  %v27704_v41 = vld [vmem:[#allocation22_spill] sm:$0xff] }
 0x235   : > { %v1903_v2 = vmax.f32 %v1886_v40, 0.0  ;;  %15088 = vmatprep.mubr.msk.f32.mxu0 %vm317_vm0, %v22745_v9  ;;  %16510 = vmatprep.subr.msk.bf16.mxu1 %vm20075_vm1, %v16508_v55  ;;  %v18704_v28 = vunpack.i.l.bf16 %v18703_v18  ;;  %v27707_v18 = vld [vmem:[#allocation25_spill] sm:$0xff] }
 0x236   : > { %v22753_v3 = vpack.c.bf16 %v1902_v24, %v1898_v21  ;;  %19027 = vrot.lane.b32.xlu1 %v22340_v16, %s19980_s24  ;;  %16534 = vmatprep.subr.msk.bf16.mxu0 %vm20075_vm1, %v16532_v8  ;;  %v22770_v16 = vld [vmem:[%s27485_s1 + $0x10] sm:$0xff]  ;;  %v18629_v8 = vunpack.i.l.bf16 %v22590_v17  ;;  %v27705_v17 = vld [vmem:[#allocation23_spill] sm:$0xff]  ;;  %v16517_v36 = vpack.c.bf16 %v18620_v0, %v18619_v58  ;;  %v16541_v47 = vpack.c.bf16 %v18695_v23, %v18694_v37  ;;  %v27706_v24 = vld [vmem:[#allocation24_spill] sm:$0xff] }
 0x237   : > { %v22759_v48 = vpack.c.bf16 %v1903_v2, %v1899_v62  ;;  %19022 = vrot.lane.b32.xlu0 %v22354_v61, %s19980_s24  ;;  %15089 = vmatmul.mubr.msk.f32.gmra.mrb[50].mxu0 %vm317_vm0, %v22745_v9  ;;  %v22765_v43 = vpop.permute.xlu1 %18717  ;;  %v18713_v53 = vpop.permute.xlu0 %18712  ;;  %v27702_v61 = vld [vmem:[#allocation7_spill] sm:$0xff]  ;;  %v16544_v21 = vpack.c.bf16 %v18705_v46, %v18704_v28  ;;  %v16523_v0 = vpack.c.bf16 %v18640_v19, %v18639_v52  ;;  %v27710_v28 = vld [vmem:[#allocation28_spill] sm:$0xff] }
 0x238   : > { %27700 = vst [vmem:[#allocation37_spill] sm:$0xff] %v22753_v3  ;;  %15090 = vmatprep.mubr.msk.f32.mxu0 %vm317_vm0, %v22770_v16  ;;  %v16520_v31 = vpack.c.bf16 %v18630_v42, %v18629_v8  ;;  %v18715_v62 = vunpack.i.h.bf16 %v18713_v53  ;;  %v18714_v2 = vunpack.i.l.bf16 %v18713_v53  ;;  %v27708_v53 = vld [vmem:[#allocation26_spill] sm:$0xff]  ;;  %v23058_v3 = vld [vmem:[%s20071_s16 + $0x38] sm:$0xff] }
 0x239   : > { %27701 = vst [vmem:[#allocation38_spill] sm:$0xff] %v22759_v48 }
 0x23a   : > { %19037 = vrot.lane.b32.xlu1 %v27702_v61, %s19980_s24  ;;  %v27709_v61 = vld [vmem:[#allocation27_spill] sm:$0xff]  ;;  %v16547_v58 = vpack.c.bf16 %v18715_v62, %v18714_v2  ;;  %v18670_v62 = vunpack.i.h.bf16 %v22666_v32 }
 0x23b   : > { %19032 = vrot.lane.b32.xlu0 %v27703_v45, %s19980_s24  ;;  %15091 = vmatmul.mubr.msk.f32.gmra.mrb[52].mxu0 %vm317_vm0, %v22770_v16  ;;  %v22788_v55 = vpop.permute.xlu1 %18727  ;;  %v18723_v60 = vpop.permute.xlu0 %18722 }
 0x23c   : > { %16513 = vmatpush3.bf16.xpose.msk.msra.mxu1 %vm20075_vm1, %v16511_v26  ;;  %16537 = vmatpush3.bf16.xpose.msk.msra.mxu0 %vm20075_vm1, %v16535_v20  ;;  %v18650_v26 = vunpack.i.h.bf16 %v22634_v30  ;;  %v18649_v20 = vunpack.i.l.bf16 %v22634_v30 }
 0x23d   : > { %15092 = vmatprep.mubr.msk.f32.mxu0 %vm317_vm0, %v22795_v39  ;;  %16516 = vmatprep.subr.msk.bf16.mxu1 %vm20075_vm1, %v16514_v22  ;;  %v18725_v22 = vunpack.i.h.bf16 %v18723_v60 }
 0x23e   : > { %19047 = vrot.lane.b32.xlu1 %v27704_v41, %s19980_s24  ;;  %16540 = vmatprep.subr.msk.bf16.mxu0 %vm20075_vm1, %v16538_v10  ;;  %v18724_v10 = vunpack.i.l.bf16 %v18723_v60  ;;  %v16574_v37 = vpack.c.bf16 %v18650_v26, %v18649_v20  ;;  %v18660_v41 = vunpack.i.h.bf16 %v22650_v12 }
 0x23f   : > { %19042 = vrot.lane.b32.xlu0 %v27705_v17, %s19980_s24  ;;  %15093 = vmatmul.mubr.msk.f32.gmra.mrb[54].mxu0 %vm317_vm0, %v22795_v39  ;;  %v22809_v40 = vpop.permute.xlu1 %18737  ;;  %v22811_v34 = vpop.permute.xlu0 %18732 }
 0x240   : > { %15166 = vmatprep.mubr.msk.f32.mxu0 %vm317_vm0, %v22350_v50  ;;  %v16550_v60 = vpack.c.bf16 %v18725_v22, %v18724_v10 }
 0x242   : > { %19057 = vrot.lane.b32.xlu1 %v27706_v24, %s19980_s24  ;;  %v18734_v24 = vunpack.i.l.bf16 %v22811_v34 }
 0x243   : > { %19052 = vrot.lane.b32.xlu0 %v27707_v18, %s19980_s24  ;;  %v22825_v29 = vpop.permute.xlu1 %18747  ;;  %v18743_v54 = vpop.permute.xlu0 %18742 }
 0x244   : > { %16519 = vmatpush3.bf16.xpose.msk.msra.mxu1 %vm20075_vm1, %v16517_v36  ;;  %16543 = vmatpush3.bf16.xpose.msk.msra.mxu0 %vm20075_vm1, %v16541_v47  ;;  %v27711_v36 = vld [vmem:[#allocation29_spill] sm:$0xff]  ;;  %v18744_v20 = vunpack.i.l.bf16 %v18743_v54 }
 0x245   : > { %16522 = vmatprep.subr.msk.bf16.mxu1 %vm20075_vm1, %v16520_v31  ;;  %16546 = vmatprep.subr.msk.bf16.mxu0 %vm20075_vm1, %v16544_v21  ;;  %v2370_v5 = vpop.f32.mrb[24].mxu0  ;;  %v18659_v31 = vunpack.i.l.bf16 %v22650_v12  ;;  %v18735_v21 = vunpack.i.h.bf16 %v22811_v34  ;;  %v18669_v12 = vunpack.i.l.bf16 %v22666_v32  ;;  %v18745_v34 = vunpack.i.h.bf16 %v18743_v54 }
 0x246   : > { %19067 = vrot.lane.b32.xlu1 %v27708_v53, %s19980_s24  ;;  %v2372_v45 = vpop.f32.mrb[25].mxu0  ;;  %v2371_v42 = vadd.f32 %v2370_v5, %v27649_v13  ;;  %v27712_v53 = vld [vmem:[#allocation30_spill] sm:$0xff] }
 0x247   : > { %19062 = vrot.lane.b32.xlu0 %v27709_v61, %s19980_s24  ;;  %v22837_v23 = vpop.permute.xlu1 %18757  ;;  %v22839_v30 = vpop.permute.xlu0 %18752  ;;  %v2373_v8 = vadd.f32 %v2372_v45, %v27649_v13  ;;  %v16577_v45 = vpack.c.bf16 %v18660_v41, %v18659_v31  ;;  %v16580_v54 = vpack.c.bf16 %v18670_v62, %v18669_v12 }
 0x248   : > { %v2482_v2 = vmax.f32 %v2371_v42, 0.0  ;;  %v18754_v31 = vunpack.i.l.bf16 %v22839_v30 }
 0x249   : > { %v2376_v46 = vpop.f32.mrb[26].mxu0  ;;  %v2483_v22 = vmax.f32 %v2373_v8, 0.0  ;;  %v16556_v8 = vpack.c.bf16 %v18745_v34, %v18744_v20 }
 0x24a   : > { %19077 = vrot.lane.b32.xlu1 %v27710_v28, %s19980_s24  ;;  %v2377_v17 = vadd.f32 %v2376_v46, %v27672_v59  ;;  %v2378_v47 = vpop.f32.mrb[27].mxu0 }
 0x24b   : > { %19072 = vrot.lane.b32.xlu0 %v27711_v36, %s19980_s24  ;;  %v2379_v18 = vadd.f32 %v2378_v47, %v27672_v59  ;;  %v22857_v19 = vpop.permute.xlu1 %18767  ;;  %v22859_v52 = vpop.permute.xlu0 %18762  ;;  %v18679_v36 = vunpack.i.l.bf16 %v22679_v27  ;;  %v18755_v47 = vunpack.i.h.bf16 %v22839_v30 }
 0x24c   : > { %16525 = vmatpush3.bf16.xpose.msk.msra.mxu1 %vm20075_vm1, %v16523_v0  ;;  %16549 = vmatpush3.bf16.xpose.msk.msra.mxu0 %vm20075_vm1, %v16547_v58  ;;  %v2486_v26 = vmax.f32 %v2377_v17, 0.0  ;;  %v16553_v0 = vpack.c.bf16 %v18735_v21, %v18734_v24  ;;  %v18764_v62 = vunpack.i.l.bf16 %v22859_v52 }
 0x24d   : > { %16576 = vmatprep.subr.msk.bf16.mxu1 %vm20075_vm1, %v16574_v37  ;;  %16552 = vmatprep.subr.msk.bf16.mxu0 %vm20075_vm1, %v16550_v60  ;;  %v2487_v10 = vmax.f32 %v2379_v18, 0.0  ;;  %v2382_v5 = vpop.f32.mrb[28].mxu0  ;;  %v18765_v18 = vunpack.i.h.bf16 %v22859_v52  ;;  %v22923_v52 = vld [vmem:[%s20071_s16 + $0x318] sm:$0xff]  ;;  %v16559_v20 = vpack.c.bf16 %v18755_v47, %v18754_v31 }
 0x24e   : > { %19087 = vrot.lane.b32.xlu1 %v27712_v53, %s19980_s24  ;;  %v22869_v61 = vpack.c.bf16 %v2486_v26, %v2482_v2  ;;  %v2384_v32 = vpop.f32.mrb[29].mxu0  ;;  %v2383_v42 = vadd.f32 %v2382_v5, %v27675_v25  ;;  %v22920_v26 = vld [vmem:[%s20071_s16 + $0x308] sm:$0xff]  ;;  %v22937_v5 = vld [vmem:[%s20071_s16 + $0x118] sm:$0xff] }
 0x24f   : > { %19082 = vrot.lane.b32.xlu0 %v22520_v33, %s19980_s24  ;;  %v22873_v58 = vpack.c.bf16 %v2487_v10, %v2483_v22  ;;  %v22875_v37 = vpop.permute.xlu1 %18777  ;;  %v22877_v60 = vpop.permute.xlu0 %18772  ;;  %v2385_v46 = vadd.f32 %v2384_v32, %v27675_v25  ;;  %v18680_v33 = vunpack.i.h.bf16 %v22679_v27  ;;  %v18689_v27 = vunpack.i.l.bf16 %v22698_v44 }
 0x250   : > { %27713 = vst [vmem:[#allocation7_spill] sm:$0xff] %v22869_v61  ;;  %v2490_v24 = vmax.f32 %v2383_v42, 0.0  ;;  %v16562_v32 = vpack.c.bf16 %v18765_v18, %v18764_v62  ;;  %v22957_v42 = vld [vmem:[%s20071_s16 + $0x218] sm:$0xff]  ;;  %v23012_v18 = vld [vmem:[%s20071_s16 + $0x128] sm:$0xff] }
 0x251   : > { %27714 = vst [vmem:[#allocation6_spill] sm:$0xff] %v22873_v58  ;;  %v2388_v28 = vpop.f32.mrb[30].mxu0  ;;  %v2491_v12 = vmax.f32 %v2385_v46, 0.0  ;;  %v16583_v34 = vpack.c.bf16 %v18680_v33, %v18679_v36  ;;  %v18775_v46 = vunpack.i.h.bf16 %v22877_v60  ;;  %v23015_v62 = vld [vmem:[%s20071_s16 + $0x138] sm:$0xff]  ;;  %v23089_v61 = vld [vmem:[%s20071_s16 + $0x148] sm:$0xff] }
 0x252   : > { %19097 = vrot.lane.b32.xlu1 %v22548_v15, %s19980_s24  ;;  %v2389_v41 = vadd.f32 %v2388_v28, %v27676_v11  ;;  %v2390_v17 = vpop.f32.mrb[31].mxu0  ;;  %v18774_v28 = vunpack.i.l.bf16 %v22877_v60  ;;  %v18709_v60 = vunpack.i.l.bf16 %v22738_v14  ;;  %v23092_v58 = vld [vmem:[%s20071_s16 + $0x158] sm:$0xff] }
 0x253   : > { %19092 = vrot.lane.b32.xlu0 %v22554_v35, %s19980_s24  ;;  %15127 = vmatmul.mubr.msk.f32.vlgmr.msra.gmra.mrb[48].mxu1 %vm317_vm0, %v22350_v50  ;;  %v2391_v21 = vadd.f32 %v2390_v17, %v27676_v11  ;;  %v22897_v15 = vpop.permute.xlu1 %18787  ;;  %v22899_v35 = vpop.permute.xlu0 %18782  ;;  %v18690_v50 = vunpack.i.h.bf16 %v22698_v44  ;;  %v22975_v17 = vld [vmem:[%s20071_s16 + $0x18] sm:$0xff] }
 0x254   : > { %16555 = vmatpush3.bf16.xpose.msk.msra.mxu0 %vm20075_vm1, %v16553_v0  ;;  %16579 = vmatpush3.bf16.xpose.msk.msra.mxu1 %vm20075_vm1, %v16577_v45  ;;  %v2494_v30 = vmax.f32 %v2389_v41, 0.0  ;;  %v22943_v45 = vpack.i.bf16 %v22923_v52, %v22920_v26  ;;  %v22972_v41 = vld [vmem:[%s20071_s16 + $0x8] sm:$0xff]  ;;  %v18785_v36 = vunpack.i.h.bf16 %v22899_v35  ;;  %v18784_v47 = vunpack.i.l.bf16 %v22899_v35  ;;  %v23005_v35 = vld [vmem:[%s20071_s16 + $0x338] sm:$0xff] }
 0x255   : > { %15128 = vmatprep.mubr.msk.f32.mxu1 %vm317_vm0, %v22745_v9  ;;  %16582 = vmatprep.subr.msk.bf16.mxu1 %vm20075_vm1, %v16580_v54  ;;  %v2495_v2 = vmax.f32 %v2391_v21, 0.0  ;;  %v16586_v53 = vpack.c.bf16 %v18690_v50, %v18689_v27  ;;  %v22954_v54 = vld [vmem:[%s20071_s16 + $0x208] sm:$0xff]  ;;  %v16565_v27 = vpack.c.bf16 %v18775_v46, %v18774_v28  ;;  %v18719_v46 = vunpack.i.l.bf16 %v22765_v43 }
 0x256   : > { %19107 = vrot.lane.b32.xlu1 %v22570_v51, %s19980_s24  ;;  %16558 = vmatprep.subr.msk.bf16.mxu0 %vm20075_vm1, %v16556_v8  ;;  %v22913_v44 = vpack.c.bf16 %v2494_v30, %v2490_v24  ;;  %v18699_v8 = vunpack.i.l.bf16 %v22717_v7  ;;  %v22989_v31 = vpack.i.bf16 %v22957_v42, %v22954_v54  ;;  %v23002_v21 = vld [vmem:[%s20071_s16 + $0x328] sm:$0xff] }
 0x257   : > { %19102 = vrot.lane.b32.xlu0 %v22578_v4, %s19980_s24  ;;  %15129 = vmatmul.mubr.msk.f32.gmra.mrb[50].mxu1 %vm317_vm0, %v22745_v9  ;;  %v22925_v51 = vpack.c.bf16 %v2495_v2, %v2491_v12  ;;  %v22927_v22 = vpop.permute.xlu1 %18797  ;;  %v22929_v10 = vpop.permute.xlu0 %18792  ;;  %v22934_v4 = vld [vmem:[%s20071_s16 + $0x108] sm:$0xff]  ;;  %v23020_v12 = vld [vmem:[%s27485_s1] sm:$0xff] }
 0x258   : > { %27715 = vst [vmem:[#allocation22_spill] sm:$0xff] %v22913_v44  ;;  %15130 = vmatprep.mubr.msk.f32.mxu1 %vm317_vm0, %v22770_v16  ;;  %v22951_v0 = vpack.i.bf16 %v22937_v5, %v22934_v4  ;;  %v18795_v28 = vunpack.i.h.bf16 %v22929_v10 }
 0x259   : > { %27716 = vst [vmem:[#allocation23_spill] sm:$0xff] %v22925_v51 }
 0x25a   : > { %19117 = vrot.lane.b32.xlu1 %v22580_v57, %s19980_s24  ;;  %v18700_v57 = vunpack.i.h.bf16 %v22717_v7  ;;  %v18710_v7 = vunpack.i.h.bf16 %v22738_v14  ;;  %v22999_v14 = vpack.i.bf16 %v22975_v17, %v22972_v41 }
 0x25b   : > { %19112 = vrot.lane.b32.xlu0 %v22612_v63, %s19980_s24  ;;  %15131 = vmatmul.mubr.msk.f32.gmra.mrb[52].mxu1 %vm317_vm0, %v22770_v16  ;;  %v22967_v63 = vpop.permute.xlu1 %18807  ;;  %v22969_v33 = vpop.permute.xlu0 %18802 }
 0x25c   : > { %16561 = vmatpush3.bf16.xpose.msk.msra.mxu0 %vm20075_vm1, %v16559_v20  ;;  %16585 = vmatpush3.bf16.xpose.msk.msra.mxu1 %vm20075_vm1, %v16583_v34  ;;  %27717 = vst [vmem:[#allocation24_spill] sm:$0xff] %v22967_v63  ;;  %v16589_v50 = vpack.c.bf16 %v18700_v57, %v18699_v8  ;;  %v16592_v2 = vpack.c.bf16 %v18710_v7, %v18709_v60  ;;  %v23040_v57 = vld [vmem:[%s20071_s16 + $0x238] sm:$0xff]  ;;  %v18720_v8 = vunpack.i.h.bf16 %v22765_v43  ;;  %v18794_v7 = vunpack.i.l.bf16 %v22929_v10  ;;  %v23129_v63 = vld [vmem:[%s20071_s16 + $0x48] sm:$0xff] }
 0x25d   : > { %15132 = vmatprep.mubr.msk.f32.mxu1 %vm317_vm0, %v22795_v39  ;;  %16588 = vmatprep.subr.msk.bf16.mxu1 %vm20075_vm1, %v16586_v53  ;;  %v16568_v34 = vpack.c.bf16 %v18785_v36, %v18784_v47  ;;  %v23028_v20 = vpack.i.bf16 %v23005_v35, %v23002_v21  ;;  %v23034_v53 = vpack.i.bf16 %v23015_v62, %v23012_v18  ;;  %v23055_v47 = vld [vmem:[%s20071_s16 + $0x28] sm:$0xff]  ;;  %v18730_v43 = vunpack.i.h.bf16 %v22788_v55 }
 0x25e   : > { %19127 = vrot.lane.b32.xlu1 %v22943_v45, %s19981_s6  ;;  %16564 = vmatprep.subr.msk.bf16.mxu0 %vm20075_vm1, %v16562_v32  ;;  %v23037_v32 = vld [vmem:[%s20071_s16 + $0x228] sm:$0xff]  ;;  %v18729_v10 = vunpack.i.l.bf16 %v22788_v55  ;;  %v23076_v55 = vpack.i.bf16 %v23058_v3, %v23055_v47  ;;  %v16571_v49 = vpack.c.bf16 %v18795_v28, %v18794_v7 }
 0x25f   : > { %19122 = vrot.lane.b32.xlu0 %v22951_v0, %s19981_s6  ;;  %15133 = vmatmul.mubr.msk.f32.gmra.mrb[54].mxu1 %vm317_vm0, %v22795_v39  ;;  %v23007_v24 = vpop.permute.xlu1 %18817  ;;  %v23009_v30 = vpop.permute.xlu0 %18812 }
 0x260   : > { %27718 = vst [vmem:[#allocation25_spill] sm:$0xff] %v23007_v24  ;;  %27719 = vst [vmem:[#allocation26_spill] sm:$0xff] %v23009_v30  ;;  %15206 = vmatprep.mubr.msk.f32.mxu1 %vm317_vm0, %v23020_v12  ;;  %v16598_v1 = vpack.c.bf16 %v18730_v43, %v18729_v10  ;;  %v18740_v43 = vunpack.i.h.bf16 %v22809_v40  ;;  %v18739_v10 = vunpack.i.l.bf16 %v22809_v40  ;;  %v18749_v40 = vunpack.i.l.bf16 %v22825_v29 }
 0x261   : > { %27723 = vst [vmem:[#allocation30_spill] sm:$0xff] %v23076_v55 }
 0x262   : > { %19137 = vrot.lane.b32.xlu1 %v22989_v31, %s19981_s6 }
 0x263   : > { %19132 = vrot.lane.b32.xlu0 %v22999_v14, %s19981_s6  ;;  %v23050_v60 = vpop.permute.xlu1 %18827  ;;  %v23052_v36 = vpop.permute.xlu0 %18822 }
 0x264   : > { %16567 = vmatpush3.bf16.xpose.msk.msra.mxu0 %vm20075_vm1, %v16565_v27  ;;  %16591 = vmatpush3.bf16.xpose.msk.msra.mxu1 %vm20075_vm1, %v16589_v50  ;;  %27720 = vst [vmem:[#allocation27_spill] sm:$0xff] %v23050_v60  ;;  %27721 = vst [vmem:[#allocation28_spill] sm:$0xff] %v23052_v36  ;;  %v23070_v27 = vpack.i.bf16 %v23040_v57, %v23037_v32  ;;  %v16622_v60 = vpack.c.bf16 %v22937_v5, %v22934_v4  ;;  %v23115_v5 = vld [vmem:[%s20071_s16 + $0x258] sm:$0xff]  ;;  %v18750_v36 = vunpack.i.h.bf16 %v22825_v29 }
 0x265   : > { %16594 = vmatprep.subr.msk.bf16.mxu1 %vm20075_vm1, %v16592_v2  ;;  %16570 = vmatprep.subr.msk.bf16.mxu0 %vm20075_vm1, %v16568_v34  ;;  %v2459_v50 = vpop.f32.mrb[24].mxu1  ;;  %v23079_v2 = vld [vmem:[%s20071_s16 + $0x348] sm:$0xff]  ;;  %v16595_v34 = vpack.c.bf16 %v18720_v8, %v18719_v46  ;;  %v23109_v4 = vpack.i.bf16 %v23092_v58, %v23089_v61 }
 0x266   : > { %19147 = vrot.lane.b32.xlu1 %v23028_v20, %s19981_s6  ;;  %27722 = vst [vmem:[#allocation29_spill] sm:$0xff] %v23070_v27  ;;  %v2461_v48 = vpop.f32.mrb[25].mxu1  ;;  %v2460_v56 = vadd.f32 %v2459_v50, %v27649_v13  ;;  %v23102_v46 = vpack.i.bf16 %v23082_v38, %v23079_v2 }
 0x267   : > { %19142 = vrot.lane.b32.xlu0 %v23034_v53, %s19981_s6  ;;  %v23084_v44 = vpop.permute.xlu1 %18837  ;;  %v23086_v51 = vpop.permute.xlu0 %18832  ;;  %v2462_v24 = vadd.f32 %v2461_v48, %v27649_v13  ;;  %27727 = vst [vmem:[#allocation42_spill] sm:$0xff] %v23109_v4  ;;  %v23112_v48 = vld [vmem:[%s20071_s16 + $0x248] sm:$0xff] }
 0x268   : > { %27724 = vst [vmem:[#allocation39_spill] sm:$0xff] %v23084_v44  ;;  %27725 = vst [vmem:[#allocation40_spill] sm:$0xff] %v23086_v51  ;;  %v23132_v51 = vld [vmem:[%s20071_s16 + $0x58] sm:$0xff] }
 0x269   : > { %v2465_v8 = vpop.f32.mrb[26].mxu1  ;;  %27726 = vst [vmem:[#allocation41_spill] sm:$0xff] %v23102_v46  ;;  %v23152_v29 = vpack.i.bf16 %v23132_v51, %v23129_v63 }
 0x26a   : > { %19157 = vrot.lane.b32.xlu1 %v23070_v27, %s19981_s6  ;;  %v2466_v28 = vadd.f32 %v2465_v8, %v27672_v59  ;;  %v2467_v7 = vpop.f32.mrb[27].mxu1 }
 0x26b   : > { %19152 = vrot.lane.b32.xlu0 %v23076_v55, %s19981_s6  ;;  %v2468_v50 = vadd.f32 %v2467_v7, %v27672_v59  ;;  %v23124_v8 = vpop.permute.xlu1 %18847  ;;  %v23126_v44 = vpop.permute.xlu0 %18842  ;;  %v2484_v7 = vmax.f32 %v2460_v56, 0.0  ;;  %27732 = vst [vmem:[#allocation47_spill] sm:$0xff] %v23152_v29 }
 0x26c   : > { %16573 = vmatpush3.bf16.xpose.msk.msra.mxu0 %vm20075_vm1, %v16571_v49  ;;  %16597 = vmatpush3.bf16.xpose.msk.msra.mxu1 %vm20075_vm1, %v16595_v34  ;;  %27728 = vst [vmem:[#allocation43_spill] sm:$0xff] %v23124_v8  ;;  %27729 = vst [vmem:[#allocation44_spill] sm:$0xff] %v23126_v44  ;;  %v2488_v30 = vmax.f32 %v2466_v28, 0.0  ;;  %v2485_v49 = vmax.f32 %v2462_v24, 0.0  ;;  %v23144_v44 = vpack.i.bf16 %v23115_v5, %v23112_v48  ;;  %v23155_v24 = vld [vmem:[%s20071_s16 + $0x368] sm:$0xff] }
 0x26d   : > { %16600 = vmatprep.subr.msk.bf16.mxu1 %vm20075_vm1, %v16598_v1  ;;  %16624 = vmatprep.subr.msk.bf16.mxu0 %vm20075_vm1, %v16622_v60  ;;  %v2489_v34 = vmax.f32 %v2468_v50, 0.0  ;;  %v2471_v8 = vpop.f32.mrb[28].mxu1  ;;  %v23158_v60 = vld [vmem:[%s20071_s16 + $0x378] sm:$0xff]  ;;  %v16601_v28 = vpack.c.bf16 %v18740_v43, %v18739_v10 }
 0x26e   : > { %19167 = vrot.lane.b32.xlu1 %v23102_v46, %s19981_s6  ;;  %27730 = vst [vmem:[#allocation45_spill] sm:$0xff] %v23144_v44  ;;  %v23146_v56 = vpack.c.bf16 %v2488_v30, %v2484_v7  ;;  %v2473_v1 = vpop.f32.mrb[29].mxu1  ;;  %v16625_v30 = vpack.c.bf16 %v22975_v17, %v22972_v41  ;;  %v23169_v7 = vld [vmem:[%s20071_s16 + $0x168] sm:$0xff]  ;;  %v2472_v27 = vadd.f32 %v2471_v8, %v27675_v25 }
 0x26f   : > { %19162 = vrot.lane.b32.xlu0 %v23109_v4, %s19981_s6  ;;  %v23160_v50 = vpack.c.bf16 %v2489_v34, %v2485_v49  ;;  %v23162_v46 = vpop.permute.xlu1 %18857  ;;  %v23164_v55 = vpop.permute.xlu0 %18852  ;;  %v16604_v4 = vpack.c.bf16 %v18750_v36, %v18749_v40  ;;  %v2474_v43 = vadd.f32 %v2473_v1, %v27675_v25  ;;  %v23180_v49 = vpack.i.bf16 %v23158_v60, %v23155_v24  ;;  %v23194_v40 = vld [vmem:[%s20071_s16 + $0x268] sm:$0xff]  ;;  %v23197_v34 = vld [vmem:[%s20071_s16 + $0x278] sm:$0xff] }
 0x270   : > { %27731 = vst [vmem:[#allocation46_spill] sm:$0xff] %v23146_v56  ;;  %27734 = vst [vmem:[#allocation49_spill] sm:$0xff] %v23162_v46  ;;  %v23172_v56 = vld [vmem:[%s20071_s16 + $0x178] sm:$0xff]  ;;  %v16628_v41 = vpack.c.bf16 %v23015_v62, %v23012_v18  ;;  %v18760_v18 = vunpack.i.h.bf16 %v22837_v23  ;;  %v18759_v62 = vunpack.i.l.bf16 %v22837_v23  ;;  %v23211_v46 = vld [vmem:[%s20071_s16 + $0x68] sm:$0xff]  ;;  %v18769_v23 = vunpack.i.l.bf16 %v22857_v19 }
 0x271   : > { %27733 = vst [vmem:[#allocation48_spill] sm:$0xff] %v23160_v50  ;;  %27735 = vst [vmem:[#allocation50_spill] sm:$0xff] %v23164_v55  ;;  %v2477_v10 = vpop.f32.mrb[30].mxu1  ;;  %v23191_v8 = vpack.i.bf16 %v23172_v56, %v23169_v7  ;;  %v23214_v55 = vld [vmem:[%s20071_s16 + $0x78] sm:$0xff] }
 0x272   : > { %19177 = vrot.lane.b32.xlu1 %v23144_v44, %s19981_s6  ;;  %27736 = vst [vmem:[#allocation51_spill] sm:$0xff] %v23180_v49  ;;  %v2478_v17 = vadd.f32 %v2477_v10, %v27676_v11  ;;  %v2479_v36 = vpop.f32.mrb[31].mxu1 }
 0x273   : > { %19172 = vrot.lane.b32.xlu0 %v23152_v29, %s19981_s6  ;;  %15167 = vmatmul.mubr.msk.f32.vlgmr.msra.gmra.mrb[56].mxu0 %vm317_vm0, %v23020_v12  ;;  %27737 = vst [vmem:[#allocation52_spill] sm:$0xff] %v23191_v8  ;;  %v2480_v1 = vadd.f32 %v2479_v36, %v27676_v11  ;;  %v23206_v10 = vpop.permute.xlu1 %18867  ;;  %v23208_v50 = vpop.permute.xlu0 %18862  ;;  %v18770_v29 = vunpack.i.h.bf16 %v22857_v19  ;;  %v2492_v36 = vmax.f32 %v2472_v27, 0.0  ;;  %v23238_v27 = vpack.i.bf16 %v23214_v55, %v23211_v46 }
 0x274   : > { %16603 = vmatpush3.bf16.xpose.msk.msra.mxu1 %vm20075_vm1, %v16601_v28  ;;  %16627 = vmatpush3.bf16.xpose.msk.msra.mxu0 %vm20075_vm1, %v16625_v30  ;;  %27738 = vst [vmem:[#allocation53_spill] sm:$0xff] %v23206_v10  ;;  %27739 = vst [vmem:[#allocation54_spill] sm:$0xff] %v23208_v50  ;;  %v2496_v44 = vmax.f32 %v2478_v17, 0.0  ;;  %v2493_v28 = vmax.f32 %v2474_v43, 0.0  ;;  %v23226_v10 = vpack.i.bf16 %v23197_v34, %v23194_v40  ;;  %v23244_v43 = vld [vmem:[%s20071_s16 + $0x398] sm:$0xff] }
 0x275   : > { %15168 = vmatprep.mubr.msk.f32.mxu0 %vm317_vm0, %v22745_v9  ;;  %16606 = vmatprep.subr.msk.bf16.mxu1 %vm20075_vm1, %v16604_v4  ;;  %v2497_v30 = vmax.f32 %v2480_v1, 0.0  ;;  %27742 = vst [vmem:[#allocation57_spill] sm:$0xff] %v23238_v27  ;;  %v23241_v4 = vld [vmem:[%s20071_s16 + $0x388] sm:$0xff]  ;;  %v16607_v17 = vpack.c.bf16 %v18760_v18, %v18759_v62  ;;  %v23260_v50 = vld [vmem:[%s20071_s16 + $0x198] sm:$0xff]  ;;  %v16634_v62 = vpack.c.bf16 %v23092_v58, %v23089_v61 }
 0x276   : > { %19187 = vrot.lane.b32.xlu1 %v23180_v49, %s19981_s6  ;;  %27740 = vst [vmem:[#allocation55_spill] sm:$0xff] %v23226_v10  ;;  %16630 = vmatprep.subr.msk.bf16.mxu0 %vm20075_vm1, %v16628_v41  ;;  %v23230_v19 = vpack.c.bf16 %v2496_v44, %v2492_v36  ;;  %v16631_v36 = vpack.c.bf16 %v23058_v3, %v23055_v47  ;;  %v23279_v47 = vld [vmem:[%s20071_s16 + $0x288] sm:$0xff] }
 0x277   : > { %19182 = vrot.lane.b32.xlu0 %v23191_v8, %s19981_s6  ;;  %15169 = vmatmul.mubr.msk.f32.gmra.mrb[58].mxu0 %vm317_vm0, %v22745_v9  ;;  %v23246_v41 = vpack.c.bf16 %v2497_v30, %v2493_v28  ;;  %v23248_v44 = vpop.permute.xlu1 %18877  ;;  %v23250_v1 = vpop.permute.xlu0 %18872  ;;  %v16610_v8 = vpack.c.bf16 %v18770_v29, %v18769_v23  ;;  %v23266_v18 = vpack.i.bf16 %v23244_v43, %v23241_v4  ;;  %v23282_v29 = vld [vmem:[%s20071_s16 + $0x298] sm:$0xff]  ;;  %v18780_v23 = vunpack.i.h.bf16 %v22875_v37  ;;  %v23295_v30 = vld [vmem:[%s20071_s16 + $0x88] sm:$0xff] }
 0x278   : > { %27741 = vst [vmem:[#allocation56_spill] sm:$0xff] %v23230_v19  ;;  %27744 = vst [vmem:[#allocation59_spill] sm:$0xff] %v23248_v44  ;;  %15170 = vmatprep.mubr.msk.f32.mxu0 %vm317_vm0, %v22770_v16  ;;  %v23257_v19 = vld [vmem:[%s20071_s16 + $0x188] sm:$0xff]  ;;  %v18779_v28 = vunpack.i.l.bf16 %v22875_v37  ;;  %v18790_v44 = vunpack.i.h.bf16 %v22897_v15  ;;  %v18789_v37 = vunpack.i.l.bf16 %v22897_v15 }
 0x279   : > { %27743 = vst [vmem:[#allocation58_spill] sm:$0xff] %v23246_v41  ;;  %27745 = vst [vmem:[#allocation60_spill] sm:$0xff] %v23250_v1  ;;  %v23276_v3 = vpack.i.bf16 %v23260_v50, %v23257_v19  ;;  %v23298_v41 = vld [vmem:[%s20071_s16 + $0x98] sm:$0xff]  ;;  %v16637_v1 = vpack.c.bf16 %v23132_v51, %v23129_v63  ;;  %v23357_v63 = vld [vmem:[%s20071_s16 + $0x2a8] sm:$0xff]  ;;  %v16646_v49 = vpack.c.bf16 %v23260_v50, %v23257_v19 }
 0x27a   : > { %19197 = vrot.lane.b32.xlu1 %v23226_v10, %s19981_s6  ;;  %27746 = vst [vmem:[#allocation61_spill] sm:$0xff] %v23266_v18  ;;  %v23320_v15 = vpack.i.bf16 %v23298_v41, %v23295_v30  ;;  %27756 = vst [vmem:[#allocation71_spill] sm:$0xff] %v23357_v63  ;;  %v16643_v10 = vpack.c.bf16 %v23214_v55, %v23211_v46  ;;  %v23435_v19 = vld [vmem:[%s20071_s16 + $0x2d8] sm:$0xff] }
 0x27b   : > { %19192 = vrot.lane.b32.xlu0 %v23238_v27, %s19981_s6  ;;  %15171 = vmatmul.mubr.msk.f32.gmra.mrb[60].mxu0 %vm317_vm0, %v22770_v16  ;;  %27747 = vst [vmem:[#allocation62_spill] sm:$0xff] %v23276_v3  ;;  %v23290_v61 = vpop.permute.xlu1 %18887  ;;  %v23292_v58 = vpop.permute.xlu0 %18882  ;;  %v16616_v27 = vpack.c.bf16 %v18790_v44, %v18789_v37  ;;  %v23360_v44 = vld [vmem:[%s20071_s16 + $0x2b8] sm:$0xff]  ;;  %27767 = vst [vmem:[#allocation82_spill] sm:$0xff] %v23435_v19 }
 0x27c   : > { %16609 = vmatpush3.bf16.xpose.msk.msra.mxu1 %vm20075_vm1, %v16607_v17  ;;  %16633 = vmatpush3.bf16.xpose.msk.msra.mxu0 %vm20075_vm1, %v16631_v36  ;;  %27748 = vst [vmem:[#allocation63_spill] sm:$0xff] %v23290_v61  ;;  %27749 = vst [vmem:[#allocation64_spill] sm:$0xff] %v23292_v58  ;;  %v23310_v17 = vpack.i.bf16 %v23282_v29, %v23279_v47  ;;  %v23326_v36 = vld [vmem:[%s20071_s16 + $0x3b8] sm:$0xff]  ;;  %v16613_v61 = vpack.c.bf16 %v18780_v23, %v18779_v28 }
 0x27d   : > { %15172 = vmatprep.mubr.msk.f32.mxu0 %vm317_vm0, %v22795_v39  ;;  %16612 = vmatprep.subr.msk.bf16.mxu1 %vm20075_vm1, %v16610_v8  ;;  %27751 = vst [vmem:[#allocation66_spill] sm:$0xff] %v23320_v15  ;;  %v23323_v8 = vld [vmem:[%s20071_s16 + $0x3a8] sm:$0xff]  ;;  %v16640_v23 = vpack.c.bf16 %v23172_v56, %v23169_v7  ;;  %27757 = vst [vmem:[#allocation72_spill] sm:$0xff] %v23360_v44  ;;  %v18800_v56 = vunpack.i.h.bf16 %v22927_v22  ;;  %v18799_v7 = vunpack.i.l.bf16 %v22927_v22 }
 0x27e   : > { %19207 = vrot.lane.b32.xlu1 %v23266_v18, %s19981_s6  ;;  %27750 = vst [vmem:[#allocation65_spill] sm:$0xff] %v23310_v17  ;;  %16636 = vmatprep.subr.msk.bf16.mxu0 %vm20075_vm1, %v16634_v62  ;;  %v23338_v18 = vld [vmem:[%s20071_s16 + $0x1b8] sm:$0xff]  ;;  %v23348_v28 = vpack.i.bf16 %v23326_v36, %v23323_v8 }
 0x27f   : > { %19202 = vrot.lane.b32.xlu0 %v23276_v3, %s19981_s6  ;;  %15173 = vmatmul.mubr.msk.f32.gmra.mrb[62].mxu0 %vm317_vm0, %v22795_v39  ;;  %v23328_v58 = vpop.permute.xlu1 %18897  ;;  %v23330_v62 = vpop.permute.xlu0 %18892  ;;  %v23335_v3 = vld [vmem:[%s20071_s16 + $0x1a8] sm:$0xff] }
 0x280   : > { %27752 = vst [vmem:[#allocation67_spill] sm:$0xff] %v23328_v58  ;;  %27753 = vst [vmem:[#allocation68_spill] sm:$0xff] %v23330_v62  ;;  %15246 = vmatprep.mubr.msk.f32.mxu0 %vm317_vm0, %v23020_v12  ;;  %v23354_v51 = vpack.i.bf16 %v23338_v18, %v23335_v3  ;;  %v23373_v62 = vld [vmem:[%s20071_s16 + $0xa8] sm:$0xff] }
 0x281   : > { %27754 = vst [vmem:[#allocation69_spill] sm:$0xff] %v23348_v28 }
 0x282   : > { %19217 = vrot.lane.b32.xlu1 %v23310_v17, %s19981_s6  ;;  %27755 = vst [vmem:[#allocation70_spill] sm:$0xff] %v23354_v51 }
 0x283   : > { %19212 = vrot.lane.b32.xlu0 %v23320_v15, %s19981_s6  ;;  %v23368_v37 = vpop.permute.xlu1 %18907  ;;  %v23370_v58 = vpop.permute.xlu0 %18902  ;;  %v23376_v15 = vld [vmem:[%s20071_s16 + $0xb8] sm:$0xff] }
 0x284   : > { %16615 = vmatpush3.bf16.xpose.msk.msra.mxu1 %vm20075_vm1, %v16613_v61  ;;  %16639 = vmatpush3.bf16.xpose.msk.msra.mxu0 %vm20075_vm1, %v16637_v1  ;;  %27758 = vst [vmem:[#allocation73_spill] sm:$0xff] %v23368_v37  ;;  %27759 = vst [vmem:[#allocation74_spill] sm:$0xff] %v23370_v58  ;;  %v23386_v1 = vpack.i.bf16 %v23360_v44, %v23357_v63  ;;  %v23392_v37 = vpack.i.bf16 %v23376_v15, %v23373_v62  ;;  %v23398_v58 = vld [vmem:[%s20071_s16 + $0x3d8] sm:$0xff] }
 0x285   : > { %16618 = vmatprep.subr.msk.bf16.mxu1 %vm20075_vm1, %v16616_v27  ;;  %16642 = vmatprep.subr.msk.bf16.mxu0 %vm20075_vm1, %v16640_v23  ;;  %v23395_v27 = vld [vmem:[%s20071_s16 + $0x3c8] sm:$0xff]  ;;  %27762 = vst [vmem:[#allocation77_spill] sm:$0xff] %v23398_v58  ;;  %v16619_v23 = vpack.c.bf16 %v18800_v56, %v18799_v7  ;;  %v23410_v44 = vld [vmem:[%s20071_s16 + $0x1d8] sm:$0xff]  ;;  %v16670_v56 = vpack.c.bf16 %v22923_v52, %v22920_v26 }
 0x286   : > { %v2964_v22 = vpop.f32.mrb[32].mxu0  ;;  %19227 = vrot.lane.b32.xlu1 %v23348_v28, %s19981_s6  ;;  %27760 = vst [vmem:[#allocation75_spill] sm:$0xff] %v23386_v1  ;;  %27761 = vst [vmem:[#allocation76_spill] sm:$0xff] %v23392_v37  ;;  %v23422_v55 = vpack.i.bf16 %v23398_v58, %v23395_v27  ;;  %v23432_v52 = vld [vmem:[%s20071_s16 + $0x2c8] sm:$0xff] }
 0x287   : > { %19222 = vrot.lane.b32.xlu0 %v23354_v51, %s19981_s6  ;;  %v2966_v61 = vpop.f32.mrb[33].mxu0  ;;  %v23400_v17 = vpop.permute.xlu1 %18917  ;;  %v23407_v51 = vld [vmem:[%s20071_s16 + $0x1c8] sm:$0xff]  ;;  %v2965_v63 = vadd.f32 %v2964_v22, %v27649_v13 }
 0x288   : > { %27763 = vst [vmem:[#allocation78_spill] sm:$0xff] %v23400_v17  ;;  %v23402_v28 = vpop.permute.xlu0 %18912  ;;  %v2967_v7 = vadd.f32 %v2966_v61, %v27649_v13  ;;  %27765 = vst [vmem:[#allocation80_spill] sm:$0xff] %v23422_v55  ;;  %v23429_v26 = vpack.i.bf16 %v23410_v44, %v23407_v51 }
 0x289   : > { %27764 = vst [vmem:[#allocation79_spill] sm:$0xff] %v23402_v28  ;;  %v23447_v28 = vld [vmem:[%s20071_s16 + $0xc8] sm:$0xff] }
 0x28a   : > { %v2970_v17 = vpop.f32.mrb[34].mxu0  ;;  %19237 = vrot.lane.b32.xlu1 %v23386_v1, %s19981_s6  ;;  %27766 = vst [vmem:[#allocation81_spill] sm:$0xff] %v23429_v26  ;;  %v3076_v1 = vmax.f32 %v2965_v63, 0.0 }
 0x28b   : > { %v2971_v46 = vadd.f32 %v2970_v17, %v27672_v59  ;;  %19232 = vrot.lane.b32.xlu0 %v23392_v37, %s19981_s6  ;;  %v2972_v50 = vpop.f32.mrb[35].mxu0  ;;  %v23442_v17 = vpop.permute.xlu1 %18927  ;;  %v23450_v37 = vld [vmem:[%s20071_s16 + $0xd8] sm:$0xff] }
 0x28c   : > { %v2973_v22 = vadd.f32 %v2972_v50, %v27672_v59  ;;  %16621 = vmatpush3.bf16.xpose.msk.msra.mxu1 %vm20075_vm1, %v16619_v23  ;;  %16645 = vmatpush3.bf16.xpose.msk.msra.mxu0 %vm20075_vm1, %v16643_v10  ;;  %27768 = vst [vmem:[#allocation83_spill] sm:$0xff] %v23442_v17  ;;  %v23444_v61 = vpop.permute.xlu0 %18922  ;;  %v3077_v23 = vmax.f32 %v2967_v7, 0.0  ;;  %v23460_v17 = vpack.i.bf16 %v23435_v19, %v23432_v52  ;;  %v23471_v7 = vld [vmem:[%s20071_s16 + $0x3e8] sm:$0xff] }
 0x28d   : > { %27769 = vst [vmem:[#allocation84_spill] sm:$0xff] %v23444_v61  ;;  %v3080_v58 = vmax.f32 %v2971_v46, 0.0  ;;  %16648 = vmatprep.subr.msk.bf16.mxu0 %vm20075_vm1, %v16646_v49  ;;  %16672 = vmatprep.subr.msk.bf16.mxu1 %vm20075_vm1, %v16670_v56  ;;  %v23468_v56 = vpack.i.bf16 %v23450_v37, %v23447_v28  ;;  %v23474_v46 = vld [vmem:[%s20071_s16 + $0x3f8] sm:$0xff] }
 0x28e   : > { %v3081_v10 = vmax.f32 %v2973_v22, 0.0  ;;  %v2976_v50 = vpop.f32.mrb[36].mxu0  ;;  %19247 = vrot.lane.b32.xlu1 %v23422_v55, %s19981_s6 }
 0x28f   : > { %v23462_v63 = vpack.c.bf16 %v3080_v58, %v3076_v1  ;;  %19242 = vrot.lane.b32.xlu0 %v23429_v26, %s19981_s6  ;;  %v2978_v49 = vpop.f32.mrb[37].mxu0  ;;  %27771 = vst [vmem:[#allocation86_spill] sm:$0xff] %v23468_v56  ;;  %v23478_v61 = vpop.permute.xlu1 %18937  ;;  %v16649_v58 = vpack.c.bf16 %v23298_v41, %v23295_v30  ;;  %v16673_v1 = vpack.c.bf16 %v22957_v42, %v22954_v54  ;;  %v23490_v26 = vld [vmem:[%s20071_s16 + $0x1f8] sm:$0xff]  ;;  %v23514_v30 = vld [vmem:[%s20071_s16 + $0x2e8] sm:$0xff] }
 0x290   : > { %v23476_v22 = vpack.c.bf16 %v3081_v10, %v3077_v23  ;;  %27773 = vst [vmem:[#allocation88_spill] sm:$0xff] %v23478_v61  ;;  %v23480_v55 = vpop.permute.xlu0 %18932  ;;  %v2977_v19 = vadd.f32 %v2976_v50, %v27675_v25  ;;  %v16652_v23 = vpack.c.bf16 %v23338_v18, %v23335_v3  ;;  %v2979_v10 = vadd.f32 %v2978_v49, %v27675_v25  ;;  %v23517_v50 = vld [vmem:[%s20071_s16 + $0x2f8] sm:$0xff] }
 0x291   : > { %27770 = vst [vmem:[#allocation85_spill] sm:$0xff] %v23462_v63  ;;  %27774 = vst [vmem:[#allocation89_spill] sm:$0xff] %v23480_v55  ;;  %v23487_v63 = vld [vmem:[%s20071_s16 + $0x1e8] sm:$0xff]  ;;  %v23500_v54 = vpack.i.bf16 %v23474_v46, %v23471_v7  ;;  %v16676_v42 = vpack.c.bf16 %v23005_v35, %v23002_v21  ;;  %v23532_v61 = vld [vmem:[%s20071_s16 + $0xf8] sm:$0xff] }
 0x292   : > { %27772 = vst [vmem:[#allocation87_spill] sm:$0xff] %v23476_v22  ;;  %v2982_v22 = vpop.f32.mrb[38].mxu0  ;;  %19257 = vrot.lane.b32.xlu1 %v23460_v17, %s19981_s6  ;;  %v23511_v3 = vpack.i.bf16 %v23490_v26, %v23487_v63  ;;  %v3084_v55 = vmax.f32 %v2977_v19, 0.0 }
 0x293   : > { %v2983_v41 = vadd.f32 %v2982_v22, %v27676_v11  ;;  %19252 = vrot.lane.b32.xlu0 %v23468_v56, %s19981_s6  ;;  %v2984_v18 = vpop.f32.mrb[39].mxu0  ;;  %15207 = vmatmul.mubr.msk.f32.vlgmr.msra.gmra.mrb[56].mxu1 %vm317_vm0, %v23020_v12  ;;  %v23524_v21 = vpop.permute.xlu1 %18947  ;;  %v23529_v22 = vld [vmem:[%s20071_s16 + $0xe8] sm:$0xff] }
 0x294   : > { %v2985_v49 = vadd.f32 %v2984_v18, %v27676_v11  ;;  %16651 = vmatpush3.bf16.xpose.msk.msra.mxu0 %vm20075_vm1, %v16649_v58  ;;  %16675 = vmatpush3.bf16.xpose.msk.msra.mxu1 %vm20075_vm1, %v16673_v1  ;;  %v23526_v35 = vpop.permute.xlu0 %18942  ;;  %v3085_v58 = vmax.f32 %v2979_v10, 0.0  ;;  %v23542_v1 = vpack.i.bf16 %v23517_v50, %v23514_v30 }
 0x295   : > { %v3088_v56 = vmax.f32 %v2983_v41, 0.0  ;;  %15208 = vmatprep.mubr.msk.f32.mxu1 %vm317_vm0, %v22745_v9  ;;  %16654 = vmatprep.subr.msk.bf16.mxu0 %vm20075_vm1, %v16652_v23  ;;  %v23554_v23 = vpack.i.bf16 %v23532_v61, %v23529_v22 }
 0x296   : > { %v3089_v18 = vmax.f32 %v2985_v49, 0.0  ;;  %19267 = vrot.lane.b32.xlu1 %v23500_v54, %s19981_s6  ;;  %16678 = vmatprep.subr.msk.bf16.mxu1 %vm20075_vm1, %v16676_v42  ;;  %v16682_v42 = vpack.c.bf16 %v23082_v38, %v23079_v2  ;;  %v16661_v2 = vpack.c.bf16 %v23450_v37, %v23447_v28  ;;  %v16691_v28 = vpack.c.bf16 %v23197_v34, %v23194_v40 }
 0x297   : > { %v23546_v19 = vpack.c.bf16 %v3088_v56, %v3084_v55  ;;  %19262 = vrot.lane.b32.xlu0 %v23511_v3, %s19981_s6  ;;  %15209 = vmatmul.mubr.msk.f32.gmra.mrb[58].mxu1 %vm317_vm0, %v22745_v9  ;;  %v23558_v41 = vpop.permute.xlu1 %18957  ;;  %v16655_v55 = vpack.c.bf16 %v23376_v15, %v23373_v62  ;;  %v16679_v56 = vpack.c.bf16 %v23040_v57, %v23037_v32 }
 0x298   : > { %v23556_v10 = vpack.c.bf16 %v3089_v18, %v3085_v58  ;;  %v23560_v49 = vpop.permute.xlu0 %18952  ;;  %15210 = vmatprep.mubr.msk.f32.mxu1 %vm317_vm0, %v22770_v16  ;;  %v16658_v9 = vpack.c.bf16 %v23410_v44, %v23407_v51  ;;  %v16685_v15 = vpack.c.bf16 %v23115_v5, %v23112_v48  ;;  %v18805_v5 = vunpack.i.h.bf16 %v22969_v33  ;;  %v27778_v58 = vld [vmem:[#allocation30_spill] sm:$0xff] }
 0x299   : > { %27775 = vst [vmem:[#allocation90_spill] sm:$0xff] %v23546_v19 }
 0x29a   : > { %27776 = vst [vmem:[#allocation91_spill] sm:$0xff] %v23556_v10  ;;  %19277 = vrot.lane.b32.xlu1 %v23542_v1, %s19981_s6 }
 0x29b   : > { %19272 = vrot.lane.b32.xlu0 %v23554_v23, %s19981_s6  ;;  %15211 = vmatmul.mubr.msk.f32.gmra.mrb[60].mxu1 %vm317_vm0, %v22770_v16  ;;  %v23582_v32 = vpop.permute.xlu1 %18967 }
 0x29c   : > { %16657 = vmatpush3.bf16.xpose.msk.msra.mxu0 %vm20075_vm1, %v16655_v55  ;;  %16681 = vmatpush3.bf16.xpose.msk.msra.mxu1 %vm20075_vm1, %v16679_v56  ;;  %v23584_v57 = vpop.permute.xlu0 %18962 }
 0x29d   : > { %15212 = vmatprep.mubr.msk.f32.mxu1 %vm317_vm0, %v22795_v39  ;;  %16660 = vmatprep.subr.msk.bf16.mxu0 %vm20075_vm1, %v16658_v9  ;;  %v27780_v9 = vld [vmem:[#allocation28_spill] sm:$0xff] }
 0x29e   : > { %19287 = vrot.lane.b32.xlu1 %v22943_v45, %s19982_s7  ;;  %16684 = vmatprep.subr.msk.bf16.mxu1 %vm20075_vm1, %v16682_v42  ;;  %v16664_v45 = vpack.c.bf16 %v23490_v26, %v23487_v63  ;;  %v27777_v26 = vld [vmem:[#allocation29_spill] sm:$0xff]  ;;  %v18825_v42 = vunpack.i.h.bf16 %v27780_v9 }
 0x29f   : > { %19282 = vrot.lane.b32.xlu0 %v22951_v0, %s19982_s7  ;;  %15213 = vmatmul.mubr.msk.f32.gmra.mrb[62].mxu1 %vm317_vm0, %v22795_v39  ;;  %v23598_v38 = vpop.permute.xlu1 %18977  ;;  %v16688_v0 = vpack.c.bf16 %v23158_v60, %v23155_v24  ;;  %v18804_v24 = vunpack.i.l.bf16 %v22969_v33  ;;  %v16667_v33 = vpack.c.bf16 %v23532_v61, %v23529_v22  ;;  %v27779_v22 = vld [vmem:[#allocation26_spill] sm:$0xff] }
 0x2a0   : > { %v23600_v16 = vpop.permute.xlu0 %18972  ;;  %15286 = vmatprep.mubr.msk.f32.mxu1 %vm317_vm0, %v23020_v12  ;;  %v18815_v40 = vunpack.i.h.bf16 %v27779_v22  ;;  %v18814_v34 = vunpack.i.l.bf16 %v27779_v22 }
 0x2a1   : > { %v16718_v51 = vpack.c.bf16 %v18805_v5, %v18804_v24  ;;  %v27781_v5 = vld [vmem:[#allocation41_spill] sm:$0xff] }
 0x2a2   : > { %19297 = vrot.lane.b32.xlu1 %v22989_v31, %s19982_s7 }
 0x2a3   : > { %19292 = vrot.lane.b32.xlu0 %v22999_v14, %s19982_s7  ;;  %v23620_v39 = vpop.permute.xlu1 %18987 }
 0x2a4   : > { %16663 = vmatpush3.bf16.xpose.msk.msra.mxu0 %vm20075_vm1, %v16661_v2  ;;  %16687 = vmatpush3.bf16.xpose.msk.msra.mxu1 %vm20075_vm1, %v16685_v15  ;;  %v23622_v48 = vpop.permute.xlu0 %18982  ;;  %v18824_v2 = vunpack.i.l.bf16 %v27780_v9 }
 0x2a5   : > { %16666 = vmatprep.subr.msk.bf16.mxu0 %vm20075_vm1, %v16664_v45  ;;  %16690 = vmatprep.subr.msk.bf16.mxu1 %vm20075_vm1, %v16688_v0 }
 0x2a6   : > { %v3053_v31 = vpop.f32.mrb[32].mxu1  ;;  %19307 = vrot.lane.b32.xlu1 %v23028_v20, %s19982_s7  ;;  %v16694_v20 = vpack.c.bf16 %v23244_v43, %v23241_v4 }
 0x2a7   : > { %19302 = vrot.lane.b32.xlu0 %v23034_v53, %s19982_s7  ;;  %v3055_v14 = vpop.f32.mrb[33].mxu1  ;;  %v23634_v60 = vpop.permute.xlu1 %18997  ;;  %v3054_v44 = vadd.f32 %v3053_v31, %v27649_v13  ;;  %v27783_v31 = vld [vmem:[#allocation42_spill] sm:$0xff] }
 0x2a8   : > { %v23636_v62 = vpop.permute.xlu0 %18992  ;;  %v3056_v37 = vadd.f32 %v3055_v14, %v27649_v13 }
 0x2a9   : > { %v3078_v55 = vmax.f32 %v3054_v44, 0.0 }
 0x2aa   : > { %v3059_v53 = vpop.f32.mrb[34].mxu1  ;;  %19317 = vrot.lane.b32.xlu1 %v27777_v26, %s19982_s7  ;;  %v3079_v15 = vmax.f32 %v3056_v37, 0.0  ;;  %v16724_v26 = vpack.c.bf16 %v18825_v42, %v18824_v2  ;;  %v23707_v42 = vld [vmem:[%s27485_s1 + $0x8] sm:$0xff]  ;;  %v27788_v2 = vld [vmem:[#allocation44_spill] sm:$0xff] }
 0x2ab   : > { %v3060_v63 = vadd.f32 %v3059_v53, %v27672_v59  ;;  %19312 = vrot.lane.b32.xlu0 %v27778_v58, %s19982_s7  ;;  %v3061_v61 = vpop.f32.mrb[35].mxu1  ;;  %v23658_v4 = vpop.permute.xlu1 %19007  ;;  %v16700_v53 = vpack.c.bf16 %v23326_v36, %v23323_v8 }
 0x2ac   : > { %v3062_v18 = vadd.f32 %v3061_v61, %v27672_v59  ;;  %16669 = vmatpush3.bf16.xpose.msk.msra.mxu0 %vm20075_vm1, %v16667_v33  ;;  %16693 = vmatpush3.bf16.xpose.msk.msra.mxu1 %vm20075_vm1, %v16691_v28  ;;  %v23660_v43 = vpop.permute.xlu0 %19002  ;;  %v16721_v33 = vpack.c.bf16 %v18815_v40, %v18814_v34  ;;  %v27785_v61 = vld [vmem:[#allocation45_spill] sm:$0xff]  ;;  %v27786_v40 = vld [vmem:[#allocation47_spill] sm:$0xff] }
 0x2ad   : > { %v3082_v56 = vmax.f32 %v3060_v63, 0.0  ;;  %16696 = vmatprep.subr.msk.bf16.mxu1 %vm20075_vm1, %v16694_v20  ;;  %16720 = vmatprep.subr.msk.bf16.mxu0 %vm20075_vm1, %v16718_v51  ;;  %v16697_v20 = vpack.c.bf16 %v23282_v29, %v23279_v47  ;;  %v27787_v47 = vld [vmem:[#allocation40_spill] sm:$0xff] }
 0x2ae   : > { %v3083_v45 = vmax.f32 %v3062_v18, 0.0  ;;  %v3065_v0 = vpop.f32.mrb[36].mxu1  ;;  %19327 = vrot.lane.b32.xlu1 %v27781_v5, %s19982_s7  ;;  %v18835_v29 = vunpack.i.h.bf16 %v27787_v47  ;;  %v18834_v8 = vunpack.i.l.bf16 %v27787_v47 }
 0x2af   : > { %v23670_v24 = vpack.c.bf16 %v3082_v56, %v3078_v55  ;;  %19322 = vrot.lane.b32.xlu0 %v27783_v31, %s19982_s7  ;;  %v3067_v14 = vpop.f32.mrb[37].mxu1  ;;  %v23676_v51 = vpop.permute.xlu1 %19017  ;;  %v3066_v37 = vadd.f32 %v3065_v0, %v27675_v25  ;;  %v27789_v31 = vld [vmem:[#allocation51_spill] sm:$0xff] }
 0x2b0   : > { %v23674_v28 = vpack.c.bf16 %v3083_v45, %v3079_v15  ;;  %v23678_v44 = vpop.permute.xlu0 %19012  ;;  %v3068_v63 = vadd.f32 %v3067_v14, %v27675_v25  ;;  %v18845_v15 = vunpack.i.h.bf16 %v27788_v2  ;;  %v18844_v45 = vunpack.i.l.bf16 %v27788_v2 }
 0x2b1   : > { %27782 = vst [vmem:[#allocation29_spill] sm:$0xff] %v23670_v24  ;;  %v3086_v56 = vmax.f32 %v3066_v37, 0.0 }
 0x2b2   : > { %27784 = vst [vmem:[#allocation30_spill] sm:$0xff] %v23674_v28  ;;  %v3071_v58 = vpop.f32.mrb[38].mxu1  ;;  %19337 = vrot.lane.b32.xlu1 %v27785_v61, %s19982_s7  ;;  %v3087_v0 = vmax.f32 %v3068_v63, 0.0  ;;  %v27795_v61 = vld [vmem:[#allocation72_spill] sm:$0xff]  ;;  %v16730_v47 = vpack.c.bf16 %v18845_v15, %v18844_v45  ;;  %v27801_v15 = vld [vmem:[#allocation54_spill] sm:$0xff] }
 0x2b3   : > { %v3072_v22 = vadd.f32 %v3071_v58, %v27676_v11  ;;  %19332 = vrot.lane.b32.xlu0 %v27786_v40, %s19982_s7  ;;  %v3073_v34 = vpop.f32.mrb[39].mxu1  ;;  %15247 = vmatmul.mubr.msk.f32.vlgmr.msra.gmra.mrb[64].mxu0 %vm317_vm0, %v23020_v12  ;;  %v23700_v18 = vpop.permute.xlu1 %19027  ;;  %v23734_v58 = vld [vmem:[%s27485_s1 + $0x10] sm:$0xff]  ;;  %v27796_v40 = vld [vmem:[#allocation77_spill] sm:$0xff]  ;;  %v18865_v45 = vunpack.i.h.bf16 %v27801_v15 }
 0x2b4   : > { %v3074_v36 = vadd.f32 %v3073_v34, %v27676_v11  ;;  %16699 = vmatpush3.bf16.xpose.msk.msra.mxu1 %vm20075_vm1, %v16697_v20  ;;  %16723 = vmatpush3.bf16.xpose.msk.msra.mxu0 %vm20075_vm1, %v16721_v33  ;;  %v23702_v55 = vpop.permute.xlu0 %19022  ;;  %v27791_v33 = vld [vmem:[#allocation52_spill] sm:$0xff]  ;;  %v16727_v20 = vpack.c.bf16 %v18835_v29, %v18834_v8  ;;  %v16706_v34 = vpack.c.bf16 %v27796_v40, %v23395_v27  ;;  %v27797_v29 = vld [vmem:[#allocation55_spill] sm:$0xff]  ;;  %v27798_v8 = vld [vmem:[#allocation57_spill] sm:$0xff] }
 0x2b5   : > { %v3090_v9 = vmax.f32 %v3072_v22, 0.0  ;;  %15248 = vmatprep.mubr.msk.f32.mxu0 %vm317_vm0, %v23707_v42  ;;  %16702 = vmatprep.subr.msk.bf16.mxu1 %vm20075_vm1, %v16700_v53 }
 0x2b6   : > { %v3091_v5 = vmax.f32 %v3074_v36, 0.0  ;;  %19347 = vrot.lane.b32.xlu1 %v27789_v31, %s19982_s7  ;;  %16726 = vmatprep.subr.msk.bf16.mxu0 %vm20075_vm1, %v16724_v26  ;;  %v27794_v26 = vld [vmem:[#allocation71_spill] sm:$0xff]  ;;  %v27799_v36 = vld [vmem:[#allocation50_spill] sm:$0xff]  ;;  %v27802_v31 = vld [vmem:[#allocation61_spill] sm:$0xff] }
 0x2b7   : > { %v23719_v14 = vpack.c.bf16 %v3090_v9, %v3086_v56  ;;  %19342 = vrot.lane.b32.xlu0 %v27791_v33, %s19982_s7  ;;  %15249 = vmatmul.mubr.msk.f32.gmra.mrb[66].mxu0 %vm317_vm0, %v23707_v42  ;;  %v23727_v53 = vpop.permute.xlu1 %19037  ;;  %v16703_v22 = vpack.c.bf16 %v27795_v61, %v27794_v26  ;;  %v18855_v56 = vunpack.i.h.bf16 %v27799_v36  ;;  %v18854_v9 = vunpack.i.l.bf16 %v27799_v36  ;;  %v27803_v33 = vld [vmem:[#allocation62_spill] sm:$0xff]  ;;  %v27808_v36 = vld [vmem:[#allocation60_spill] sm:$0xff] }
 0x2b8   : > { %v23725_v37 = vpack.c.bf16 %v3091_v5, %v3087_v0  ;;  %27793 = vst [vmem:[#allocation41_spill] sm:$0xff] %v23727_v53  ;;  %v23729_v63 = vpop.permute.xlu0 %19032  ;;  %15250 = vmatprep.mubr.msk.f32.mxu0 %vm317_vm0, %v23734_v58  ;;  %v18864_v0 = vunpack.i.l.bf16 %v27801_v15  ;;  %v23763_v5 = vld [vmem:[%s27485_s1 + $0x18] sm:$0xff] }
 0x2b9   : > { %27790 = vst [vmem:[#allocation26_spill] sm:$0xff] %v23719_v14 }
 0x2ba   : > { %27792 = vst [vmem:[#allocation28_spill] sm:$0xff] %v23725_v37  ;;  %19357 = vrot.lane.b32.xlu1 %v27797_v29, %s19982_s7  ;;  %v27806_v29 = vld [vmem:[#allocation65_spill] sm:$0xff] }
 0x2bb   : > { %19352 = vrot.lane.b32.xlu0 %v27798_v8, %s19982_s7  ;;  %15251 = vmatmul.mubr.msk.f32.gmra.mrb[68].mxu0 %vm317_vm0, %v23734_v58  ;;  %v23754_v27 = vpop.permute.xlu1 %19047  ;;  %v27807_v8 = vld [vmem:[#allocation66_spill] sm:$0xff] }
 0x2bc   : > { %16705 = vmatpush3.bf16.xpose.msk.msra.mxu1 %vm20075_vm1, %v16703_v22  ;;  %16729 = vmatpush3.bf16.xpose.msk.msra.mxu0 %vm20075_vm1, %v16727_v20  ;;  %27800 = vst [vmem:[#allocation42_spill] sm:$0xff] %v23754_v27  ;;  %v23756_v2 = vpop.permute.xlu0 %19042  ;;  %v16733_v20 = vpack.c.bf16 %v18855_v56, %v18854_v9  ;;  %v27805_v22 = vld [vmem:[#allocation82_spill] sm:$0xff]  ;;  %v18875_v56 = vunpack.i.h.bf16 %v27808_v36  ;;  %v18874_v9 = vunpack.i.l.bf16 %v27808_v36 }
 0x2bd   : > { %15252 = vmatprep.mubr.msk.f32.mxu0 %vm317_vm0, %v23763_v5  ;;  %16708 = vmatprep.subr.msk.bf16.mxu1 %vm20075_vm1, %v16706_v34  ;;  %v16709_v40 = vpack.c.bf16 %v27805_v22, %v23432_v52  ;;  %v16736_v34 = vpack.c.bf16 %v18865_v45, %v18864_v0  ;;  %v27811_v0 = vld [vmem:[#allocation64_spill] sm:$0xff] }
 0x2be   : > { %19367 = vrot.lane.b32.xlu1 %v27802_v31, %s19982_s7  ;;  %16732 = vmatprep.subr.msk.bf16.mxu0 %vm20075_vm1, %v16730_v47  ;;  %v16712_v47 = vpack.c.bf16 %v23474_v46, %v23471_v7  ;;  %v27810_v7 = vld [vmem:[#allocation24_spill] sm:$0xff]  ;;  %v18885_v31 = vunpack.i.h.bf16 %v27811_v0 }
 0x2bf   : > { %19362 = vrot.lane.b32.xlu0 %v27803_v33, %s19982_s7  ;;  %15253 = vmatmul.mubr.msk.f32.gmra.mrb[70].mxu0 %vm317_vm0, %v23763_v5  ;;  %v23777_v26 = vpop.permute.xlu1 %19057  ;;  %v18810_v46 = vunpack.i.h.bf16 %v27810_v7  ;;  %v18809_v45 = vunpack.i.l.bf16 %v27810_v7  ;;  %v18884_v33 = vunpack.i.l.bf16 %v27811_v0  ;;  %v16715_v0 = vpack.c.bf16 %v23517_v50, %v23514_v30  ;;  %v27818_v50 = vld [vmem:[#allocation68_spill] sm:$0xff] }
 0x2c0   : > { %27804 = vst [vmem:[#allocation45_spill] sm:$0xff] %v23777_v26  ;;  %v23779_v61 = vpop.permute.xlu0 %19052  ;;  %15326 = vmatprep.mubr.msk.f32.mxu0 %vm317_vm0, %v23020_v12 }
 0x2c1   : > { %v16742_v14 = vpack.c.bf16 %v18885_v31, %v18884_v33 }
 0x2c2   : > { %19377 = vrot.lane.b32.xlu1 %v27806_v29, %s19982_s7 }
 0x2c3   : > { %19372 = vrot.lane.b32.xlu0 %v27807_v8, %s19982_s7  ;;  %v23797_v52 = vpop.permute.xlu1 %19067  ;;  %v16739_v8 = vpack.c.bf16 %v18875_v56, %v18874_v9  ;;  %v27817_v9 = vld [vmem:[#allocation76_spill] sm:$0xff] }
 0x2c4   : > { %16711 = vmatpush3.bf16.xpose.msk.msra.mxu1 %vm20075_vm1, %v16709_v40  ;;  %16735 = vmatpush3.bf16.xpose.msk.msra.mxu0 %vm20075_vm1, %v16733_v20  ;;  %27809 = vst [vmem:[#allocation47_spill] sm:$0xff] %v23797_v52  ;;  %v23799_v15 = vpop.permute.xlu0 %19062  ;;  %v27812_v20 = vld [vmem:[#allocation69_spill] sm:$0xff]  ;;  %v27813_v40 = vld [vmem:[#allocation70_spill] sm:$0xff] }
 0x2c5   : > { %16714 = vmatprep.subr.msk.bf16.mxu1 %vm20075_vm1, %v16712_v47  ;;  %16738 = vmatprep.subr.msk.bf16.mxu0 %vm20075_vm1, %v16736_v34  ;;  %v16766_v47 = vpack.c.bf16 %v18810_v46, %v18809_v45  ;;  %v18895_v46 = vunpack.i.h.bf16 %v27818_v50  ;;  %v18894_v45 = vunpack.i.l.bf16 %v27818_v50 }
 0x2c6   : > { %v3558_v22 = vpop.f32.mrb[40].mxu0  ;;  %19387 = vrot.lane.b32.xlu1 %v27812_v20, %s19982_s7  ;;  %v27815_v20 = vld [vmem:[#allocation75_spill] sm:$0xff] }
 0x2c7   : > { %19382 = vrot.lane.b32.xlu0 %v27813_v40, %s19982_s7  ;;  %v3560_v29 = vpop.f32.mrb[41].mxu0  ;;  %v23813_v36 = vpop.permute.xlu1 %19077  ;;  %v3559_v34 = vadd.f32 %v3558_v22, %v27649_v13  ;;  %v27816_v40 = vld [vmem:[#allocation25_spill] sm:$0xff]  ;;  %v27820_v22 = vld [vmem:[#allocation27_spill] sm:$0xff] }
 0x2c8   : > { %27814 = vst [vmem:[#allocation40_spill] sm:$0xff] %v23813_v36  ;;  %v23815_v7 = vpop.permute.xlu0 %19072  ;;  %v3561_v37 = vadd.f32 %v3560_v29, %v27649_v13  ;;  %v18820_v28 = vunpack.i.h.bf16 %v27816_v40  ;;  %v18819_v30 = vunpack.i.l.bf16 %v27816_v40  ;;  %v18830_v29 = vunpack.i.h.bf16 %v27820_v22  ;;  %v27822_v36 = vld [vmem:[#allocation80_spill] sm:$0xff] }
 0x2c9   : > { %v3670_v40 = vmax.f32 %v3559_v34, 0.0  ;;  %v27824_v34 = vld [vmem:[#allocation81_spill] sm:$0xff] }
 0x2ca   : > { %v3564_v24 = vpop.f32.mrb[42].mxu0  ;;  %19397 = vrot.lane.b32.xlu1 %v27815_v20, %s19982_s7  ;;  %v18829_v20 = vunpack.i.l.bf16 %v27820_v22  ;;  %v3671_v50 = vmax.f32 %v3561_v37, 0.0  ;;  %v16745_v22 = vpack.c.bf16 %v18895_v46, %v18894_v45  ;;  %v27829_v45 = vld [vmem:[#allocation79_spill] sm:$0xff] }
 0x2cb   : > { %v3565_v56 = vadd.f32 %v3564_v24, %v27672_v59  ;;  %19392 = vrot.lane.b32.xlu0 %v27817_v9, %s19982_s7  ;;  %v3566_v19 = vpop.f32.mrb[43].mxu0  ;;  %v23835_v33 = vpop.permute.xlu1 %19087 }
 0x2cc   : > { %v3567_v31 = vadd.f32 %v3566_v19, %v27672_v59  ;;  %16717 = vmatpush3.bf16.xpose.msk.msra.mxu1 %vm20075_vm1, %v16715_v0  ;;  %16741 = vmatpush3.bf16.xpose.msk.msra.mxu0 %vm20075_vm1, %v16739_v8  ;;  %27819 = vst [vmem:[#allocation44_spill] sm:$0xff] %v23835_v33  ;;  %v23837_v24 = vpop.permute.xlu0 %19082  ;;  %v27821_v19 = vld [vmem:[#allocation74_spill] sm:$0xff]  ;;  %v16772_v37 = vpack.c.bf16 %v18830_v29, %v18829_v20  ;;  %v18914_v29 = vunpack.i.l.bf16 %v27829_v45 }
 0x2cd   : > { %v3674_v9 = vmax.f32 %v3565_v56, 0.0  ;;  %16768 = vmatprep.subr.msk.bf16.mxu1 %vm20075_vm1, %v16766_v47  ;;  %16744 = vmatprep.subr.msk.bf16.mxu0 %vm20075_vm1, %v16742_v14  ;;  %v18905_v0 = vunpack.i.h.bf16 %v27821_v19  ;;  %v18904_v8 = vunpack.i.l.bf16 %v27821_v19  ;;  %v16769_v47 = vpack.c.bf16 %v18820_v28, %v18819_v30 }
 0x2ce   : > { %v3675_v10 = vmax.f32 %v3567_v31, 0.0  ;;  %v3570_v33 = vpop.f32.mrb[44].mxu0  ;;  %19407 = vrot.lane.b32.xlu1 %v27822_v36, %s19982_s7 }
 0x2cf   : > { %v23849_v52 = vpack.c.bf16 %v3674_v9, %v3670_v40  ;;  %19402 = vrot.lane.b32.xlu0 %v27824_v34, %s19982_s7  ;;  %v3572_v56 = vpop.f32.mrb[45].mxu0  ;;  %v23855_v14 = vpop.permute.xlu1 %19097  ;;  %v3571_v31 = vadd.f32 %v3570_v33, %v27675_v25  ;;  %v16748_v19 = vpack.c.bf16 %v18905_v0, %v18904_v8  ;;  %v27827_v9 = vld [vmem:[#allocation39_spill] sm:$0xff]  ;;  %v18915_v33 = vunpack.i.h.bf16 %v27829_v45 }
 0x2d0   : > { %v23853_v26 = vpack.c.bf16 %v3675_v10, %v3671_v50  ;;  %27826 = vst [vmem:[#allocation71_spill] sm:$0xff] %v23855_v14  ;;  %v23857_v27 = vpop.permute.xlu0 %19092  ;;  %v3573_v36 = vadd.f32 %v3572_v56, %v27675_v25  ;;  %v18840_v34 = vunpack.i.h.bf16 %v27827_v9  ;;  %v27828_v10 = vld [vmem:[#allocation86_spill] sm:$0xff]  ;;  %v18839_v46 = vunpack.i.l.bf16 %v27827_v9  ;;  %v27831_v8 = vld [vmem:[#allocation43_spill] sm:$0xff] }
 0x2d1   : > { %27823 = vst [vmem:[#allocation51_spill] sm:$0xff] %v23849_v52  ;;  %v18849_v50 = vunpack.i.l.bf16 %v27831_v8  ;;  %v3678_v56 = vmax.f32 %v3571_v31, 0.0  ;;  %v16751_v45 = vpack.c.bf16 %v18915_v33, %v18914_v29  ;;  %v7764_v33 = vld [vmem:[%s20071_s16 + $0x208] sm:$0xff]  ;;  %v7765_v29 = vld [vmem:[%s20071_s16 + $0x218] sm:$0xff]  ;;  %v23968_v52 = vld [vmem:[%s27485_s1] sm:$0xff] }
 0x2d2   : > { %27825 = vst [vmem:[#allocation52_spill] sm:$0xff] %v23853_v26  ;;  %v3576_v40 = vpop.f32.mrb[46].mxu0  ;;  %19417 = vrot.lane.b32.xlu1 %v23460_v17, %s19982_s7  ;;  %v27846_v26 = vld [vmem:[#allocation59_spill] sm:$0xff] }
 0x2d3   : > { %v3577_v28 = vadd.f32 %v3576_v40, %v27676_v11  ;;  %19412 = vrot.lane.b32.xlu0 %v27828_v10, %s19982_s7  ;;  %v3578_v30 = vpop.f32.mrb[47].mxu0  ;;  %15287 = vmatmul.mubr.msk.f32.vlgmr.msra.gmra.mrb[64].mxu1 %vm317_vm0, %v23020_v12  ;;  %v23877_v17 = vpop.permute.xlu1 %19107  ;;  %v18850_v12 = vunpack.i.h.bf16 %v27831_v8  ;;  %v3679_v10 = vmax.f32 %v3573_v36, 0.0  ;;  %v16775_v36 = vpack.c.bf16 %v18840_v34, %v18839_v46 }
 0x2d4   : > { %v3579_v20 = vadd.f32 %v3578_v30, %v27676_v11  ;;  %16747 = vmatpush3.bf16.xpose.msk.msra.mxu0 %vm20075_vm1, %v16745_v22  ;;  %16771 = vmatpush3.bf16.xpose.msk.msra.mxu1 %vm20075_vm1, %v16769_v47  ;;  %27830 = vst [vmem:[#allocation72_spill] sm:$0xff] %v23877_v17  ;;  %v23879_v0 = vpop.permute.xlu0 %19102  ;;  %v27832_v22 = vld [vmem:[#allocation84_spill] sm:$0xff]  ;;  %v7785_v17 = vld [vmem:[%s20071_s16 + $0x358] sm:$0xff] }
 0x2d5   : > { %v3682_v40 = vmax.f32 %v3577_v28, 0.0  ;;  %15288 = vmatprep.mubr.msk.f32.mxu1 %vm317_vm0, %v23707_v42  ;;  %16774 = vmatprep.subr.msk.bf16.mxu1 %vm20075_vm1, %v16772_v37  ;;  %v18925_v47 = vunpack.i.h.bf16 %v27832_v22  ;;  %v18924_v9 = vunpack.i.l.bf16 %v27832_v22  ;;  %v7780_v37 = vld [vmem:[%s20071_s16 + $0x308] sm:$0xff]  ;;  %v7781_v28 = vld [vmem:[%s20071_s16 + $0x318] sm:$0xff] }
 0x2d6   : > { %v3683_v30 = vmax.f32 %v3579_v20, 0.0  ;;  %19427 = vrot.lane.b32.xlu1 %v23500_v54, %s19982_s7  ;;  %16750 = vmatprep.subr.msk.bf16.mxu0 %vm20075_vm1, %v16748_v19  ;;  %v7748_v19 = vld [vmem:[%s20071_s16 + $0x108] sm:$0xff]  ;;  %v23913_v34 = vpack.i.bf16 %v7781_v28, %v7780_v37  ;;  %v7733_v37 = vld [vmem:[%s20071_s16 + $0x18] sm:$0xff] }
 0x2d7   : > { %v23893_v31 = vpack.c.bf16 %v3682_v40, %v3678_v56  ;;  %19422 = vrot.lane.b32.xlu0 %v23511_v3, %s19982_s7  ;;  %15289 = vmatmul.mubr.msk.f32.gmra.mrb[66].mxu1 %vm317_vm0, %v23707_v42  ;;  %v23903_v54 = vpop.permute.xlu1 %19117  ;;  %v7749_v3 = vld [vmem:[%s20071_s16 + $0x118] sm:$0xff]  ;;  %v16778_v56 = vpack.c.bf16 %v18850_v12, %v18849_v50  ;;  %v16754_v40 = vpack.c.bf16 %v18925_v47, %v18924_v9  ;;  %v27837_v22 = vld [vmem:[#allocation49_spill] sm:$0xff] }
 0x2d8   : > { %v23901_v20 = vpack.c.bf16 %v3683_v30, %v3679_v10  ;;  %27835 = vst [vmem:[#allocation57_spill] sm:$0xff] %v23903_v54  ;;  %v23905_v8 = vpop.permute.xlu0 %19112  ;;  %15290 = vmatprep.mubr.msk.f32.mxu1 %vm317_vm0, %v23734_v58  ;;  %v23919_v46 = vpack.i.bf16 %v7749_v3, %v7748_v19  ;;  %v18860_v12 = vunpack.i.h.bf16 %v27837_v22  ;;  %v18859_v50 = vunpack.i.l.bf16 %v27837_v22  ;;  %v27838_v47 = vld [vmem:[#allocation89_spill] sm:$0xff] }
 0x2d9   : > { %27833 = vst [vmem:[#allocation77_spill] sm:$0xff] %v23893_v31  ;;  %27836 = vst [vmem:[#allocation50_spill] sm:$0xff] %v23905_v8  ;;  %v18935_v9 = vunpack.i.h.bf16 %v27838_v47  ;;  %v7732_v30 = vld [vmem:[%s20071_s16 + $0x8] sm:$0xff]  ;;  %v18945_v22 = vunpack.i.h.bf16 %v23526_v35 }
 0x2da   : > { %27834 = vst [vmem:[#allocation55_spill] sm:$0xff] %v23901_v20  ;;  %19437 = vrot.lane.b32.xlu1 %v23542_v1, %s19982_s7  ;;  %v18934_v1 = vunpack.i.l.bf16 %v27838_v47  ;;  %v27841_v28 = vld [vmem:[#allocation53_spill] sm:$0xff] }
 0x2db   : > { %19432 = vrot.lane.b32.xlu0 %v23554_v23, %s19982_s7  ;;  %15291 = vmatmul.mubr.msk.f32.gmra.mrb[68].mxu1 %vm317_vm0, %v23734_v58  ;;  %v23931_v23 = vpop.permute.xlu1 %19127  ;;  %v18870_v19 = vunpack.i.h.bf16 %v27841_v28  ;;  %v18869_v3 = vunpack.i.l.bf16 %v27841_v28  ;;  %v7782_v47 = vld [vmem:[%s20071_s16 + $0x328] sm:$0xff]  ;;  %v7783_v28 = vld [vmem:[%s20071_s16 + $0x338] sm:$0xff] }
 0x2dc   : > { %16753 = vmatpush3.bf16.xpose.msk.msra.mxu0 %vm20075_vm1, %v16751_v45  ;;  %16777 = vmatpush3.bf16.xpose.msk.msra.mxu1 %vm20075_vm1, %v16775_v36  ;;  %27839 = vst [vmem:[#allocation54_spill] sm:$0xff] %v23931_v23  ;;  %v23933_v10 = vpop.permute.xlu0 %19122  ;;  %v18944_v45 = vunpack.i.l.bf16 %v23526_v35  ;;  %v23947_v36 = vpack.i.bf16 %v7765_v29, %v7764_v33  ;;  %v23955_v35 = vpack.i.bf16 %v7733_v37, %v7732_v30  ;;  %v7750_v29 = vld [vmem:[%s20071_s16 + $0x128] sm:$0xff]  ;;  %v18879_v23 = vunpack.i.l.bf16 %v27846_v26 }
 0x2dd   : > { %27840 = vst [vmem:[#allocation61_spill] sm:$0xff] %v23933_v10  ;;  %15292 = vmatprep.mubr.msk.f32.mxu1 %vm317_vm0, %v23763_v5  ;;  %16780 = vmatprep.subr.msk.bf16.mxu1 %vm20075_vm1, %v16778_v56  ;;  %v16781_v56 = vpack.c.bf16 %v18860_v12, %v18859_v50  ;;  %v16757_v31 = vpack.c.bf16 %v18935_v9, %v18934_v1  ;;  %v7766_v9 = vld [vmem:[%s20071_s16 + $0x228] sm:$0xff]  ;;  %v7767_v1 = vld [vmem:[%s20071_s16 + $0x238] sm:$0xff] }
 0x2de   : > { %19447 = vrot.lane.b32.xlu1 %v23913_v34, %s19983_s10  ;;  %16756 = vmatprep.subr.msk.bf16.mxu0 %vm20075_vm1, %v16754_v40  ;;  %v7751_v40 = vld [vmem:[%s20071_s16 + $0x138] sm:$0xff]  ;;  %v16784_v30 = vpack.c.bf16 %v18870_v19, %v18869_v3  ;;  %v16760_v37 = vpack.c.bf16 %v18945_v22, %v18944_v45  ;;  %v23974_v12 = vpack.i.bf16 %v7783_v28, %v7782_v47  ;;  %v18955_v19 = vunpack.i.h.bf16 %v23560_v49  ;;  %v7734_v47 = vld [vmem:[%s20071_s16 + $0x28] sm:$0xff] }
 0x2df   : > { %19442 = vrot.lane.b32.xlu0 %v23919_v46, %s19983_s10  ;;  %15293 = vmatmul.mubr.msk.f32.gmra.mrb[70].mxu1 %vm317_vm0, %v23763_v5  ;;  %v23959_v20 = vpop.permute.xlu1 %19137  ;;  %v23978_v50 = vpack.i.bf16 %v7751_v40, %v7750_v29  ;;  %v18954_v3 = vunpack.i.l.bf16 %v23560_v49  ;;  %v7735_v28 = vld [vmem:[%s20071_s16 + $0x38] sm:$0xff]  ;;  %v18965_v49 = vunpack.i.h.bf16 %v23584_v57  ;;  %v7784_v54 = vld [vmem:[%s20071_s16 + $0x348] sm:$0xff] }
 0x2e0   : > { %27842 = vst [vmem:[#allocation62_spill] sm:$0xff] %v23959_v20  ;;  %v23961_v33 = vpop.permute.xlu0 %19132  ;;  %15366 = vmatprep.mubr.msk.f32.mxu1 %vm317_vm0, %v23968_v52  ;;  %27844 = vst [vmem:[#allocation65_spill] sm:$0xff] %v23974_v12  ;;  %v18880_v20 = vunpack.i.h.bf16 %v27846_v26  ;;  %v27849_v26 = vld [vmem:[#allocation63_spill] sm:$0xff]  ;;  %v7768_v8 = vld [vmem:[%s20071_s16 + $0x248] sm:$0xff] }
 0x2e1   : > { %27843 = vst [vmem:[#allocation82_spill] sm:$0xff] %v23961_v33  ;;  %27845 = vst [vmem:[#allocation66_spill] sm:$0xff] %v23978_v50  ;;  %v18890_v29 = vunpack.i.h.bf16 %v27849_v26  ;;  %v18889_v40 = vunpack.i.l.bf16 %v27849_v26  ;;  %v7753_v10 = vld [vmem:[%s20071_s16 + $0x158] sm:$0xff] }
 0x2e2   : > { %19457 = vrot.lane.b32.xlu1 %v23947_v36, %s19983_s10  ;;  %v16787_v14 = vpack.c.bf16 %v18880_v20, %v18879_v23  ;;  %v24026_v20 = vpack.i.bf16 %v7785_v17, %v7784_v54  ;;  %v27855_v23 = vld [vmem:[#allocation67_spill] sm:$0xff]  ;;  %v18974_v17 = vunpack.i.l.bf16 %v23600_v16 }
 0x2e3   : > { %19452 = vrot.lane.b32.xlu0 %v23955_v35, %s19983_s10  ;;  %v23990_v22 = vpop.permute.xlu1 %19147 }
 0x2e4   : > { %16759 = vmatpush3.bf16.xpose.msk.msra.mxu0 %vm20075_vm1, %v16757_v31  ;;  %16783 = vmatpush3.bf16.xpose.msk.msra.mxu1 %vm20075_vm1, %v16781_v56  ;;  %27847 = vst [vmem:[#allocation60_spill] sm:$0xff] %v23990_v22  ;;  %v23992_v45 = vpop.permute.xlu0 %19142  ;;  %v18964_v31 = vunpack.i.l.bf16 %v23584_v57  ;;  %v24006_v22 = vpack.i.bf16 %v7767_v1, %v7766_v9  ;;  %v24010_v57 = vpack.i.bf16 %v7735_v28, %v7734_v47  ;;  %27854 = vst [vmem:[#allocation25_spill] sm:$0xff] %v24026_v20 }
 0x2e5   : > { %27848 = vst [vmem:[#allocation24_spill] sm:$0xff] %v23992_v45  ;;  %16786 = vmatprep.subr.msk.bf16.mxu1 %vm20075_vm1, %v16784_v30  ;;  %16762 = vmatprep.subr.msk.bf16.mxu0 %vm20075_vm1, %v16760_v37  ;;  %v7752_v30 = vld [vmem:[%s20071_s16 + $0x148] sm:$0xff]  ;;  %v16763_v45 = vpack.c.bf16 %v18955_v19, %v18954_v3  ;;  %v16790_v9 = vpack.c.bf16 %v18890_v29, %v18889_v40  ;;  %v18900_v19 = vunpack.i.h.bf16 %v27855_v23 }
 0x2e6   : > { %v3647_v56 = vpop.f32.mrb[40].mxu1  ;;  %19467 = vrot.lane.b32.xlu1 %v23974_v12, %s19983_s10  ;;  %27850 = vst [vmem:[#allocation64_spill] sm:$0xff] %v24006_v22  ;;  %27851 = vst [vmem:[#allocation69_spill] sm:$0xff] %v24010_v57  ;;  %v7769_v12 = vld [vmem:[%s20071_s16 + $0x258] sm:$0xff]  ;;  %v16814_v1 = vpack.c.bf16 %v18965_v49, %v18964_v31  ;;  %v24032_v29 = vpack.i.bf16 %v7753_v10, %v7752_v30  ;;  %v18899_v49 = vunpack.i.l.bf16 %v27855_v23  ;;  %v18975_v31 = vunpack.i.h.bf16 %v23600_v16 }
 0x2e7   : > { %19462 = vrot.lane.b32.xlu0 %v23978_v50, %s19983_s10  ;;  %v3649_v26 = vpop.f32.mrb[41].mxu1  ;;  %v24015_v33 = vpop.permute.xlu1 %19157  ;;  %v3648_v53 = vadd.f32 %v3647_v56, %v27649_v13  ;;  %v24034_v40 = vpack.i.bf16 %v7769_v12, %v7768_v8  ;;  %v7736_v8 = vld [vmem:[%s20071_s16 + $0x48] sm:$0xff]  ;;  %v7737_v12 = vld [vmem:[%s20071_s16 + $0x58] sm:$0xff] }
 0x2e8   : > { %27852 = vst [vmem:[#allocation70_spill] sm:$0xff] %v24015_v33  ;;  %v24017_v37 = vpop.permute.xlu0 %19152  ;;  %v3650_v50 = vadd.f32 %v3649_v26, %v27649_v13  ;;  %27856 = vst [vmem:[#allocation76_spill] sm:$0xff] %v24032_v29  ;;  %v27859_v26 = vld [vmem:[#allocation73_spill] sm:$0xff] }
 0x2e9   : > { %27853 = vst [vmem:[#allocation75_spill] sm:$0xff] %v24017_v37  ;;  %v18910_v30 = vunpack.i.h.bf16 %v27859_v26  ;;  %v3672_v16 = vmax.f32 %v3648_v53, 0.0 }
 0x2ea   : > { %v3653_v47 = vpop.f32.mrb[42].mxu1  ;;  %19477 = vrot.lane.b32.xlu1 %v24006_v22, %s19983_s10 }
 0x2eb   : > { %v3654_v3 = vadd.f32 %v3653_v47, %v27672_v59  ;;  %19472 = vrot.lane.b32.xlu0 %v24010_v57, %s19983_s10  ;;  %v3655_v28 = vpop.f32.mrb[43].mxu1  ;;  %v24044_v56 = vpop.permute.xlu1 %19167  ;;  %v18909_v47 = vunpack.i.l.bf16 %v27859_v26  ;;  %v7787_v26 = vld [vmem:[%s20071_s16 + $0x378] sm:$0xff] }
 0x2ec   : > { %v3656_v54 = vadd.f32 %v3655_v28, %v27672_v59  ;;  %16765 = vmatpush3.bf16.xpose.msk.msra.mxu0 %vm20075_vm1, %v16763_v45  ;;  %16789 = vmatpush3.bf16.xpose.msk.msra.mxu1 %vm20075_vm1, %v16787_v14  ;;  %27857 = vst [vmem:[#allocation68_spill] sm:$0xff] %v24044_v56  ;;  %v24046_v10 = vpop.permute.xlu0 %19162  ;;  %v18985_v14 = vunpack.i.h.bf16 %v23622_v48  ;;  %v18984_v45 = vunpack.i.l.bf16 %v23622_v48  ;;  %v3673_v28 = vmax.f32 %v3650_v50, 0.0  ;;  %v7754_v48 = vld [vmem:[%s20071_s16 + $0x168] sm:$0xff] }
 0x2ed   : > { %27858 = vst [vmem:[#allocation27_spill] sm:$0xff] %v24046_v10  ;;  %v3676_v23 = vmax.f32 %v3654_v3, 0.0  ;;  %16792 = vmatprep.subr.msk.bf16.mxu1 %vm20075_vm1, %v16790_v9  ;;  %16816 = vmatprep.subr.msk.bf16.mxu0 %vm20075_vm1, %v16814_v1  ;;  %v24064_v1 = vpack.i.bf16 %v7737_v12, %v7736_v8  ;;  %v7786_v3 = vld [vmem:[%s20071_s16 + $0x368] sm:$0xff]  ;;  %v16793_v50 = vpack.c.bf16 %v18900_v19, %v18899_v49  ;;  %v27863_v49 = vld [vmem:[#allocation78_spill] sm:$0xff] }
 0x2ee   : > { %v3677_v56 = vmax.f32 %v3656_v54, 0.0  ;;  %v3659_v33 = vpop.f32.mrb[44].mxu1  ;;  %19487 = vrot.lane.b32.xlu1 %v24026_v20, %s19983_s10  ;;  %v16817_v10 = vpack.c.bf16 %v18975_v31, %v18974_v17  ;;  %v7755_v20 = vld [vmem:[%s20071_s16 + $0x178] sm:$0xff]  ;;  %v16820_v22 = vpack.c.bf16 %v18985_v14, %v18984_v45  ;;  %v24082_v19 = vpack.i.bf16 %v7787_v26, %v7786_v3  ;;  %v7738_v3 = vld [vmem:[%s20071_s16 + $0x68] sm:$0xff] }
 0x2ef   : > { %v24060_v53 = vpack.c.bf16 %v3676_v23, %v3672_v16  ;;  %19482 = vrot.lane.b32.xlu0 %v24032_v29, %s19983_s10  ;;  %v3661_v9 = vpop.f32.mrb[45].mxu1  ;;  %v24071_v37 = vpop.permute.xlu1 %19177  ;;  %v7770_v16 = vld [vmem:[%s20071_s16 + $0x268] sm:$0xff]  ;;  %v7771_v23 = vld [vmem:[%s20071_s16 + $0x278] sm:$0xff]  ;;  %v3660_v29 = vadd.f32 %v3659_v33, %v27675_v25  ;;  %v18920_v31 = vunpack.i.h.bf16 %v27863_v49  ;;  %v24090_v33 = vpack.i.bf16 %v7755_v20, %v7754_v48 }
 0x2f0   : > { %v24069_v54 = vpack.c.bf16 %v3677_v56, %v3673_v28  ;;  %27862 = vst [vmem:[#allocation81_spill] sm:$0xff] %v24071_v37  ;;  %v24073_v57 = vpop.permute.xlu0 %19172  ;;  %v3662_v8 = vadd.f32 %v3661_v9, %v27675_v25  ;;  %v18995_v14 = vunpack.i.h.bf16 %v23636_v62  ;;  %v18994_v45 = vunpack.i.l.bf16 %v23636_v62  ;;  %v7739_v26 = vld [vmem:[%s20071_s16 + $0x78] sm:$0xff] }
 0x2f1   : > { %27860 = vst [vmem:[#allocation74_spill] sm:$0xff] %v24060_v53  ;;  %v16796_v53 = vpack.c.bf16 %v18910_v30, %v18909_v47  ;;  %v24092_v30 = vpack.i.bf16 %v7771_v23, %v7770_v16  ;;  %v18919_v47 = vunpack.i.l.bf16 %v27863_v49  ;;  %v27865_v48 = vld [vmem:[#allocation83_spill] sm:$0xff]  ;;  %v3680_v62 = vmax.f32 %v3660_v29, 0.0 }
 0x2f2   : > { %27861 = vst [vmem:[#allocation80_spill] sm:$0xff] %v24069_v54  ;;  %v3665_v12 = vpop.f32.mrb[46].mxu1  ;;  %19497 = vrot.lane.b32.xlu1 %v24034_v40, %s19983_s10  ;;  %v18930_v16 = vunpack.i.h.bf16 %v27865_v48  ;;  %v18929_v23 = vunpack.i.l.bf16 %v27865_v48  ;;  %v3681_v49 = vmax.f32 %v3662_v8, 0.0  ;;  %v7789_v8 = vld [vmem:[%s20071_s16 + $0x398] sm:$0xff] }
 0x2f3   : > { %v3666_v17 = vadd.f32 %v3665_v12, %v27676_v11  ;;  %19492 = vrot.lane.b32.xlu0 %v24064_v1, %s19983_s10  ;;  %v3667_v56 = vpop.f32.mrb[47].mxu1  ;;  %15327 = vmatmul.mubr.msk.f32.vlgmr.msra.gmra.mrb[72].mxu0 %vm317_vm0, %v23968_v52  ;;  %v24102_v9 = vpop.permute.xlu1 %19187 }
 0x2f4   : > { %v3668_v28 = vadd.f32 %v3667_v56, %v27676_v11  ;;  %16795 = vmatpush3.bf16.xpose.msk.msra.mxu1 %vm20075_vm1, %v16793_v50  ;;  %16819 = vmatpush3.bf16.xpose.msk.msra.mxu0 %vm20075_vm1, %v16817_v10  ;;  %27864 = vst [vmem:[#allocation39_spill] sm:$0xff] %v24102_v9  ;;  %v24104_v20 = vpop.permute.xlu0 %19182  ;;  %v19005_v10 = vunpack.i.h.bf16 %v23660_v43  ;;  %v19004_v50 = vunpack.i.l.bf16 %v23660_v43  ;;  %v7788_v43 = vld [vmem:[%s20071_s16 + $0x388] sm:$0xff] }
 0x2f5   : > { %v3684_v12 = vmax.f32 %v3666_v17, 0.0  ;;  %15328 = vmatprep.mubr.msk.f32.mxu0 %vm317_vm0, %v23707_v42  ;;  %16798 = vmatprep.subr.msk.bf16.mxu1 %vm20075_vm1, %v16796_v53  ;;  %v24126_v53 = vpack.i.bf16 %v7739_v26, %v7738_v3  ;;  %v16799_v17 = vpack.c.bf16 %v18920_v31, %v18919_v47  ;;  %v24142_v31 = vpack.i.bf16 %v7789_v8, %v7788_v43  ;;  %v27870_v26 = vld [vmem:[#allocation88_spill] sm:$0xff]  ;;  %v7740_v43 = vld [vmem:[%s20071_s16 + $0x88] sm:$0xff]  ;;  %v7741_v8 = vld [vmem:[%s20071_s16 + $0x98] sm:$0xff] }
 0x2f6   : > { %v3685_v56 = vmax.f32 %v3668_v28, 0.0  ;;  %19507 = vrot.lane.b32.xlu1 %v24082_v19, %s19983_s10  ;;  %16822 = vmatprep.subr.msk.bf16.mxu0 %vm20075_vm1, %v16820_v22  ;;  %v16823_v28 = vpack.c.bf16 %v18995_v14, %v18994_v45  ;;  %v16826_v3 = vpack.c.bf16 %v19005_v10, %v19004_v50  ;;  %v7772_v14 = vld [vmem:[%s20071_s16 + $0x288] sm:$0xff]  ;;  %v7773_v45 = vld [vmem:[%s20071_s16 + $0x298] sm:$0xff]  ;;  %v19015_v10 = vunpack.i.h.bf16 %v23678_v44 }
 0x2f7   : > { %v24120_v29 = vpack.c.bf16 %v3684_v12, %v3680_v62  ;;  %19502 = vrot.lane.b32.xlu0 %v24090_v33, %s19983_s10  ;;  %15329 = vmatmul.mubr.msk.f32.gmra.mrb[74].mxu0 %vm317_vm0, %v23707_v42  ;;  %v24132_v54 = vpop.permute.xlu1 %19197  ;;  %v7756_v62 = vld [vmem:[%s20071_s16 + $0x188] sm:$0xff]  ;;  %v7757_v12 = vld [vmem:[%s20071_s16 + $0x198] sm:$0xff]  ;;  %v19014_v50 = vunpack.i.l.bf16 %v23678_v44  ;;  %v19025_v44 = vunpack.i.h.bf16 %v23702_v55 }
 0x2f8   : > { %v24130_v48 = vpack.c.bf16 %v3685_v56, %v3681_v49  ;;  %27868 = vst [vmem:[#allocation43_spill] sm:$0xff] %v24132_v54  ;;  %v24134_v22 = vpop.permute.xlu0 %19192  ;;  %15330 = vmatprep.mubr.msk.f32.mxu0 %vm317_vm0, %v23734_v58  ;;  %v24148_v47 = vpack.i.bf16 %v7757_v12, %v7756_v62  ;;  %v18950_v62 = vunpack.i.h.bf16 %v23524_v21  ;;  %v18949_v12 = vunpack.i.l.bf16 %v23524_v21 }
 0x2f9   : > { %27866 = vst [vmem:[#allocation86_spill] sm:$0xff] %v24120_v29  ;;  %27869 = vst [vmem:[#allocation84_spill] sm:$0xff] %v24134_v22  ;;  %v16802_v29 = vpack.c.bf16 %v18930_v16, %v18929_v23  ;;  %v18940_v16 = vunpack.i.h.bf16 %v27870_v26  ;;  %v18939_v23 = vunpack.i.l.bf16 %v27870_v26  ;;  %v24184_v21 = vpack.i.bf16 %v7741_v8, %v7740_v43  ;;  %v7776_v22 = vld [vmem:[%s20071_s16 + $0x2c8] sm:$0xff] }
 0x2fa   : > { %27867 = vst [vmem:[#allocation79_spill] sm:$0xff] %v24130_v48  ;;  %19517 = vrot.lane.b32.xlu1 %v24092_v30, %s19983_s10  ;;  %v16829_v48 = vpack.c.bf16 %v19015_v10, %v19014_v50  ;;  %v16808_v54 = vpack.c.bf16 %v18950_v62, %v18949_v12  ;;  %v7775_v10 = vld [vmem:[%s20071_s16 + $0x2b8] sm:$0xff]  ;;  %v18960_v50 = vunpack.i.h.bf16 %v23558_v41  ;;  %v18959_v8 = vunpack.i.l.bf16 %v23558_v41 }
 0x2fb   : > { %19512 = vrot.lane.b32.xlu0 %v24126_v53, %s19983_s10  ;;  %15331 = vmatmul.mubr.msk.f32.gmra.mrb[76].mxu0 %vm317_vm0, %v23734_v58  ;;  %v24160_v49 = vpop.permute.xlu1 %19207  ;;  %27873 = vst [vmem:[#allocation53_spill] sm:$0xff] %v24184_v21  ;;  %v16805_v26 = vpack.c.bf16 %v18940_v16, %v18939_v23  ;;  %v7774_v23 = vld [vmem:[%s20071_s16 + $0x2a8] sm:$0xff]  ;;  %v19035_v62 = vunpack.i.h.bf16 %v23729_v63  ;;  %v19034_v12 = vunpack.i.l.bf16 %v23729_v63  ;;  %v18970_v41 = vunpack.i.h.bf16 %v23582_v32 }
 0x2fc   : > { %16801 = vmatpush3.bf16.xpose.msk.msra.mxu1 %vm20075_vm1, %v16799_v17  ;;  %16825 = vmatpush3.bf16.xpose.msk.msra.mxu0 %vm20075_vm1, %v16823_v28  ;;  %27871 = vst [vmem:[#allocation49_spill] sm:$0xff] %v24160_v49  ;;  %v24162_v56 = vpop.permute.xlu0 %19202  ;;  %v19024_v17 = vunpack.i.l.bf16 %v23702_v55  ;;  %v24176_v28 = vpack.i.bf16 %v7773_v45, %v7772_v14  ;;  %v7790_v55 = vld [vmem:[%s20071_s16 + $0x3a8] sm:$0xff]  ;;  %v19045_v63 = vunpack.i.h.bf16 %v23756_v2  ;;  %v16811_v37 = vpack.c.bf16 %v18960_v50, %v18959_v8 }
 0x2fd   : > { %27872 = vst [vmem:[#allocation89_spill] sm:$0xff] %v24162_v56  ;;  %15332 = vmatprep.mubr.msk.f32.mxu0 %vm317_vm0, %v23763_v5  ;;  %16804 = vmatprep.subr.msk.bf16.mxu1 %vm20075_vm1, %v16802_v29  ;;  %v7791_v29 = vld [vmem:[%s20071_s16 + $0x3b8] sm:$0xff]  ;;  %v7758_v45 = vld [vmem:[%s20071_s16 + $0x1a8] sm:$0xff]  ;;  %v18980_v8 = vunpack.i.h.bf16 %v23598_v38 }
 0x2fe   : > { %19527 = vrot.lane.b32.xlu1 %v24142_v31, %s19983_s10  ;;  %16828 = vmatprep.subr.msk.bf16.mxu0 %vm20075_vm1, %v16826_v3  ;;  %v7759_v3 = vld [vmem:[%s20071_s16 + $0x1b8] sm:$0xff]  ;;  %v16832_v9 = vpack.c.bf16 %v19025_v44, %v19024_v17  ;;  %v24198_v43 = vpack.i.bf16 %v7791_v29, %v7790_v55  ;;  %v7742_v55 = vld [vmem:[%s20071_s16 + $0xa8] sm:$0xff] }
 0x2ff   : > { %19522 = vrot.lane.b32.xlu0 %v24148_v47, %s19983_s10  ;;  %15333 = vmatmul.mubr.msk.f32.gmra.mrb[78].mxu0 %vm317_vm0, %v23763_v5  ;;  %v24188_v49 = vpop.permute.xlu1 %19217  ;;  %v24202_v16 = vpack.i.bf16 %v7759_v3, %v7758_v45  ;;  %v7743_v29 = vld [vmem:[%s20071_s16 + $0xb8] sm:$0xff]  ;;  %v18969_v45 = vunpack.i.l.bf16 %v23582_v32  ;;  %v24230_v3 = vpack.i.bf16 %v7775_v10, %v7774_v23 }
 0x300   : > { %27874 = vst [vmem:[#allocation59_spill] sm:$0xff] %v24188_v49  ;;  %v24190_v14 = vpop.permute.xlu0 %19212  ;;  %15406 = vmatprep.mubr.msk.f32.mxu0 %vm317_vm0, %v23968_v52  ;;  %27876 = vst [vmem:[#allocation67_spill] sm:$0xff] %v24198_v43  ;;  %v7793_v49 = vld [vmem:[%s20071_s16 + $0x3d8] sm:$0xff] }
 0x301   : > { %27875 = vst [vmem:[#allocation63_spill] sm:$0xff] %v24190_v14  ;;  %27877 = vst [vmem:[#allocation73_spill] sm:$0xff] %v24202_v16  ;;  %v7761_v56 = vld [vmem:[%s20071_s16 + $0x1d8] sm:$0xff]  ;;  %v16862_v23 = vpack.c.bf16 %v18970_v41, %v18969_v45  ;;  %v18979_v45 = vunpack.i.l.bf16 %v23598_v38  ;;  %v18990_v38 = vunpack.i.h.bf16 %v23620_v39 }
 0x302   : > { %19537 = vrot.lane.b32.xlu1 %v24176_v28, %s19983_s10 }
 0x303   : > { %19532 = vrot.lane.b32.xlu0 %v24184_v21, %s19983_s10  ;;  %v24214_v44 = vpop.permute.xlu1 %19227 }
 0x304   : > { %16807 = vmatpush3.bf16.xpose.msk.msra.mxu1 %vm20075_vm1, %v16805_v26  ;;  %16831 = vmatpush3.bf16.xpose.msk.msra.mxu0 %vm20075_vm1, %v16829_v48  ;;  %27878 = vst [vmem:[#allocation78_spill] sm:$0xff] %v24214_v44  ;;  %v24216_v17 = vpop.permute.xlu0 %19222  ;;  %v19044_v26 = vunpack.i.l.bf16 %v23756_v2  ;;  %v24234_v2 = vpack.i.bf16 %v7743_v29, %v7742_v55  ;;  %v7792_v44 = vld [vmem:[%s20071_s16 + $0x3c8] sm:$0xff] }
 0x305   : > { %27879 = vst [vmem:[#allocation83_spill] sm:$0xff] %v24216_v17  ;;  %16810 = vmatprep.subr.msk.bf16.mxu1 %vm20075_vm1, %v16808_v54  ;;  %16834 = vmatprep.subr.msk.bf16.mxu0 %vm20075_vm1, %v16832_v9  ;;  %v7760_v54 = vld [vmem:[%s20071_s16 + $0x1c8] sm:$0xff]  ;;  %v16835_v17 = vpack.c.bf16 %v19035_v62, %v19034_v12  ;;  %v24250_v50 = vpack.i.bf16 %v7793_v49, %v7792_v44  ;;  %v19054_v49 = vunpack.i.l.bf16 %v23779_v61 }
 0x306   : > { %v4152_v48 = vpop.f32.mrb[48].mxu0  ;;  %19547 = vrot.lane.b32.xlu1 %v24198_v43, %s19983_s10  ;;  %v7777_v43 = vld [vmem:[%s20071_s16 + $0x2d8] sm:$0xff]  ;;  %v16838_v10 = vpack.c.bf16 %v19045_v63, %v19044_v26  ;;  %v24256_v29 = vpack.i.bf16 %v7761_v56, %v7760_v54  ;;  %v19055_v63 = vunpack.i.h.bf16 %v23779_v61 }
 0x307   : > { %19542 = vrot.lane.b32.xlu0 %v24202_v16, %s19983_s10  ;;  %v4154_v32 = vpop.f32.mrb[49].mxu0  ;;  %v24239_v14 = vpop.permute.xlu1 %19237  ;;  %v4153_v21 = vadd.f32 %v4152_v48, %v27649_v13  ;;  %27882 = vst [vmem:[#allocation93_spill] sm:$0xff] %v24250_v50  ;;  %v24258_v41 = vpack.i.bf16 %v7777_v43, %v7776_v22  ;;  %v7744_v22 = vld [vmem:[%s20071_s16 + $0xc8] sm:$0xff]  ;;  %v7745_v43 = vld [vmem:[%s20071_s16 + $0xd8] sm:$0xff]  ;;  %v18989_v48 = vunpack.i.l.bf16 %v23620_v39 }
 0x308   : > { %27880 = vst [vmem:[#allocation88_spill] sm:$0xff] %v24239_v14  ;;  %v24241_v9 = vpop.permute.xlu0 %19232  ;;  %v4155_v16 = vadd.f32 %v4154_v32, %v27649_v13  ;;  %27883 = vst [vmem:[#allocation94_spill] sm:$0xff] %v24256_v29 }
 0x309   : > { %27881 = vst [vmem:[#allocation92_spill] sm:$0xff] %v24241_v9  ;;  %v4264_v61 = vmax.f32 %v4153_v21, 0.0  ;;  %v7763_v9 = vld [vmem:[%s20071_s16 + $0x1f8] sm:$0xff] }
 0x30a   : > { %v4158_v55 = vpop.f32.mrb[50].mxu0  ;;  %19557 = vrot.lane.b32.xlu1 %v24230_v3, %s19983_s10  ;;  %v4265_v54 = vmax.f32 %v4155_v16, 0.0  ;;  %v16865_v16 = vpack.c.bf16 %v18980_v8, %v18979_v45  ;;  %v19000_v45 = vunpack.i.h.bf16 %v23634_v60 }
 0x30b   : > { %v4159_v62 = vadd.f32 %v4158_v55, %v27672_v59  ;;  %19552 = vrot.lane.b32.xlu0 %v24234_v2, %s19983_s10  ;;  %v4160_v12 = vpop.f32.mrb[51].mxu0  ;;  %v24268_v26 = vpop.permute.xlu1 %19247 }
 0x30c   : > { %v4161_v44 = vadd.f32 %v4160_v12, %v27672_v59  ;;  %16813 = vmatpush3.bf16.xpose.msk.msra.mxu1 %vm20075_vm1, %v16811_v37  ;;  %16837 = vmatpush3.bf16.xpose.msk.msra.mxu0 %vm20075_vm1, %v16835_v17  ;;  %27884 = vst [vmem:[#allocation95_spill] sm:$0xff] %v24268_v26  ;;  %v24270_v56 = vpop.permute.xlu0 %19242  ;;  %v19065_v37 = vunpack.i.h.bf16 %v23799_v15  ;;  %v19064_v17 = vunpack.i.l.bf16 %v23799_v15  ;;  %v7762_v15 = vld [vmem:[%s20071_s16 + $0x1e8] sm:$0xff]  ;;  %v16841_v26 = vpack.c.bf16 %v19055_v63, %v19054_v49 }
 0x30d   : > { %27885 = vst [vmem:[#allocation96_spill] sm:$0xff] %v24270_v56  ;;  %v4268_v32 = vmax.f32 %v4159_v62, 0.0  ;;  %16864 = vmatprep.subr.msk.bf16.mxu1 %vm20075_vm1, %v16862_v23  ;;  %16840 = vmatprep.subr.msk.bf16.mxu0 %vm20075_vm1, %v16838_v10  ;;  %v24288_v23 = vpack.i.bf16 %v7745_v43, %v7744_v22  ;;  %v7794_v10 = vld [vmem:[%s20071_s16 + $0x3e8] sm:$0xff]  ;;  %v7795_v62 = vld [vmem:[%s20071_s16 + $0x3f8] sm:$0xff] }
 0x30e   : > { %v4269_v55 = vmax.f32 %v4161_v44, 0.0  ;;  %v4164_v12 = vpop.f32.mrb[52].mxu0  ;;  %19567 = vrot.lane.b32.xlu1 %v24250_v50, %s19983_s10  ;;  %v16844_v50 = vpack.c.bf16 %v19065_v37, %v19064_v17  ;;  %v24306_v8 = vpack.i.bf16 %v7795_v62, %v7794_v10  ;;  %v18999_v37 = vunpack.i.l.bf16 %v23634_v60  ;;  %v7747_v10 = vld [vmem:[%s20071_s16 + $0xf8] sm:$0xff] }
 0x30f   : > { %v24284_v39 = vpack.c.bf16 %v4268_v32, %v4264_v61  ;;  %19562 = vrot.lane.b32.xlu0 %v24256_v29, %s19983_s10  ;;  %v4166_v21 = vpop.f32.mrb[53].mxu0  ;;  %v24295_v14 = vpop.permute.xlu1 %19257  ;;  %v7778_v61 = vld [vmem:[%s20071_s16 + $0x2e8] sm:$0xff]  ;;  %v7779_v32 = vld [vmem:[%s20071_s16 + $0x2f8] sm:$0xff]  ;;  %v4165_v29 = vadd.f32 %v4164_v12, %v27675_v25  ;;  %v19075_v17 = vunpack.i.h.bf16 %v23815_v7  ;;  %v19010_v60 = vunpack.i.h.bf16 %v23658_v4 }
 0x310   : > { %v24293_v44 = vpack.c.bf16 %v4269_v55, %v4265_v54  ;;  %v24297_v56 = vpop.permute.xlu0 %19252  ;;  %v4167_v22 = vadd.f32 %v4166_v21, %v27675_v25  ;;  %v19074_v54 = vunpack.i.l.bf16 %v23815_v7  ;;  %v7746_v21 = vld [vmem:[%s20071_s16 + $0xe8] sm:$0xff]  ;;  %v19009_v62 = vunpack.i.l.bf16 %v23658_v4 }
 0x311   : > { %27886 = vst [vmem:[#allocation97_spill] sm:$0xff] %v24284_v39  ;;  %v16868_v39 = vpack.c.bf16 %v18990_v38, %v18989_v48  ;;  %v24314_v38 = vpack.i.bf16 %v7763_v9, %v7762_v15  ;;  %v24316_v48 = vpack.i.bf16 %v7779_v32, %v7778_v61  ;;  %v4272_v15 = vmax.f32 %v4165_v29, 0.0 }
 0x312   : > { %27887 = vst [vmem:[#allocation98_spill] sm:$0xff] %v24293_v44  ;;  %v4170_v43 = vpop.f32.mrb[54].mxu0  ;;  %19577 = vrot.lane.b32.xlu1 %v24258_v41, %s19983_s10  ;;  %v4273_v61 = vmax.f32 %v4167_v22, 0.0  ;;  %v24350_v29 = vpack.i.bf16 %v7747_v10, %v7746_v21  ;;  %v19029_v21 = vunpack.i.l.bf16 %v23700_v18  ;;  %v19104_v10 = vunpack.i.l.bf16 %v23879_v0 }
 0x313   : > { %v4171_v63 = vadd.f32 %v4170_v43, %v27676_v11  ;;  %19572 = vrot.lane.b32.xlu0 %v24288_v23, %s19983_s10  ;;  %v4172_v49 = vpop.f32.mrb[55].mxu0  ;;  %15367 = vmatmul.mubr.msk.f32.vlgmr.msra.gmra.mrb[72].mxu1 %vm317_vm0, %v23968_v52  ;;  %v24326_v12 = vpop.permute.xlu1 %19267 }
 0x314   : > { %v4173_v55 = vadd.f32 %v4172_v49, %v27676_v11  ;;  %16843 = vmatpush3.bf16.xpose.msk.msra.mxu0 %vm20075_vm1, %v16841_v26  ;;  %16867 = vmatpush3.bf16.xpose.msk.msra.mxu1 %vm20075_vm1, %v16865_v16  ;;  %v24328_v9 = vpop.permute.xlu0 %19262  ;;  %v19085_v26 = vunpack.i.h.bf16 %v23837_v24  ;;  %v19084_v16 = vunpack.i.l.bf16 %v23837_v24  ;;  %v16847_v24 = vpack.c.bf16 %v19075_v17, %v19074_v54 }
 0x315   : > { %v4276_v7 = vmax.f32 %v4171_v63, 0.0  ;;  %15368 = vmatprep.mubr.msk.f32.mxu1 %vm317_vm0, %v23707_v42  ;;  %16870 = vmatprep.subr.msk.bf16.mxu1 %vm20075_vm1, %v16868_v39  ;;  %v16871_v39 = vpack.c.bf16 %v19000_v45, %v18999_v37  ;;  %v19019_v45 = vunpack.i.l.bf16 %v23676_v51  ;;  %v19095_v37 = vunpack.i.h.bf16 %v23857_v27 }
 0x316   : > { %v4277_v32 = vmax.f32 %v4173_v55, 0.0  ;;  %19587 = vrot.lane.b32.xlu1 %v24306_v8, %s19983_s10  ;;  %16846 = vmatprep.subr.msk.bf16.mxu0 %vm20075_vm1, %v16844_v50  ;;  %v16874_v50 = vpack.c.bf16 %v19010_v60, %v19009_v62  ;;  %v16850_v49 = vpack.c.bf16 %v19085_v26, %v19084_v16  ;;  %v19094_v17 = vunpack.i.l.bf16 %v23857_v27 }
 0x317   : > { %v24344_v4 = vpack.c.bf16 %v4276_v7, %v4272_v15  ;;  %19582 = vrot.lane.b32.xlu0 %v24314_v38, %s19983_s10  ;;  %15369 = vmatmul.mubr.msk.f32.gmra.mrb[74].mxu1 %vm317_vm0, %v23707_v42  ;;  %v24354_v43 = vpop.permute.xlu1 %19277  ;;  %v19020_v42 = vunpack.i.h.bf16 %v23676_v51  ;;  %v19105_v51 = vunpack.i.h.bf16 %v23879_v0  ;;  %v27891_v7 = vld [vmem:[#allocation50_spill] sm:$0xff] }
 0x318   : > { %v24352_v22 = vpack.c.bf16 %v4277_v32, %v4273_v61  ;;  %v24356_v63 = vpop.permute.xlu0 %19272  ;;  %15370 = vmatprep.mubr.msk.f32.mxu1 %vm317_vm0, %v23734_v58  ;;  %v16853_v27 = vpack.c.bf16 %v19095_v37, %v19094_v17  ;;  %v19115_v26 = vunpack.i.h.bf16 %v27891_v7  ;;  %v19114_v16 = vunpack.i.l.bf16 %v27891_v7  ;;  %v27892_v32 = vld [vmem:[#allocation42_spill] sm:$0xff]  ;;  %v27897_v7 = vld [vmem:[#allocation64_spill] sm:$0xff] }
 0x319   : > { %27888 = vst [vmem:[#allocation99_spill] sm:$0xff] %v24344_v4  ;;  %v27895_v37 = vld [vmem:[#allocation66_spill] sm:$0xff] }
 0x31a   : > { %27889 = vst [vmem:[#allocation100_spill] sm:$0xff] %v24352_v22  ;;  %19597 = vrot.lane.b32.xlu1 %v24316_v48, %s19983_s10  ;;  %v27904_v22 = vld [vmem:[#allocation25_spill] sm:$0xff] }
 0x31b   : > { %19592 = vrot.lane.b32.xlu0 %v24350_v29, %s19983_s10  ;;  %15371 = vmatmul.mubr.msk.f32.gmra.mrb[76].mxu1 %vm317_vm0, %v23734_v58  ;;  %v24374_v54 = vpop.permute.xlu1 %19287  ;;  %v19030_v58 = vunpack.i.h.bf16 %v23700_v18  ;;  %v16877_v18 = vpack.c.bf16 %v19020_v42, %v19019_v45  ;;  %v27894_v45 = vld [vmem:[#allocation65_spill] sm:$0xff] }
 0x31c   : > { %16849 = vmatpush3.bf16.xpose.msk.msra.mxu0 %vm20075_vm1, %v16847_v24  ;;  %16873 = vmatpush3.bf16.xpose.msk.msra.mxu1 %vm20075_vm1, %v16871_v39  ;;  %v24376_v55 = vpop.permute.xlu0 %19282  ;;  %v19049_v39 = vunpack.i.l.bf16 %v27892_v32  ;;  %v27893_v24 = vld [vmem:[#allocation61_spill] sm:$0xff] }
 0x31d   : > { %15372 = vmatprep.mubr.msk.f32.mxu1 %vm317_vm0, %v23763_v5  ;;  %16876 = vmatprep.subr.msk.bf16.mxu1 %vm20075_vm1, %v16874_v50  ;;  %v16880_v62 = vpack.c.bf16 %v19030_v58, %v19029_v21  ;;  %v19125_v50 = vunpack.i.h.bf16 %v27893_v24  ;;  %v16859_v21 = vpack.c.bf16 %v19115_v26, %v19114_v16  ;;  %v27900_v16 = vld [vmem:[#allocation82_spill] sm:$0xff] }
 0x31e   : > { %19607 = vrot.lane.b32.xlu1 %v23913_v34, %s19984_s23  ;;  %16852 = vmatprep.subr.msk.bf16.mxu0 %vm20075_vm1, %v16850_v49  ;;  %v16856_v34 = vpack.c.bf16 %v19105_v51, %v19104_v10  ;;  %v19124_v49 = vunpack.i.l.bf16 %v27893_v24 }
 0x31f   : > { %19602 = vrot.lane.b32.xlu0 %v23919_v46, %s19984_s23  ;;  %15373 = vmatmul.mubr.msk.f32.gmra.mrb[78].mxu1 %vm317_vm0, %v23763_v5  ;;  %v24394_v0 = vpop.permute.xlu1 %19297  ;;  %v27890_v46 = vld [vmem:[#allocation41_spill] sm:$0xff] }
 0x320   : > { %v24396_v60 = vpop.permute.xlu0 %19292  ;;  %15446 = vmatprep.mubr.msk.f32.mxu1 %vm317_vm0, %v23968_v52  ;;  %v19040_v15 = vunpack.i.h.bf16 %v27890_v46  ;;  %v19039_v5 = vunpack.i.l.bf16 %v27890_v46 }
 0x322   : > { %19617 = vrot.lane.b32.xlu1 %v23947_v36, %s19984_s23  ;;  %v16883_v58 = vpack.c.bf16 %v19040_v15, %v19039_v5  ;;  %v27899_v15 = vld [vmem:[#allocation69_spill] sm:$0xff] }
 0x323   : > { %19612 = vrot.lane.b32.xlu0 %v23955_v35, %s19984_s23  ;;  %v24412_v61 = vpop.permute.xlu1 %19307  ;;  %v19050_v35 = vunpack.i.h.bf16 %v27892_v32  ;;  %v27898_v32 = vld [vmem:[#allocation45_spill] sm:$0xff] }
 0x324   : > { %16855 = vmatpush3.bf16.xpose.msk.msra.mxu0 %vm20075_vm1, %v16853_v27  ;;  %16879 = vmatpush3.bf16.xpose.msk.msra.mxu1 %vm20075_vm1, %v16877_v18  ;;  %v24414_v36 = vpop.permute.xlu0 %19302  ;;  %v16910_v27 = vpack.c.bf16 %v19125_v50, %v19124_v49  ;;  %v19060_v24 = vunpack.i.h.bf16 %v27898_v32  ;;  %v19059_v26 = vunpack.i.l.bf16 %v27898_v32 }
 0x325   : > { %16882 = vmatprep.subr.msk.bf16.mxu1 %vm20075_vm1, %v16880_v62  ;;  %16858 = vmatprep.subr.msk.bf16.mxu0 %vm20075_vm1, %v16856_v34  ;;  %v16886_v18 = vpack.c.bf16 %v19050_v35, %v19049_v39  ;;  %v19135_v35 = vunpack.i.h.bf16 %v27900_v16  ;;  %v19134_v39 = vunpack.i.l.bf16 %v27900_v16 }
 0x326   : > { %v4241_v42 = vpop.f32.mrb[48].mxu1  ;;  %19627 = vrot.lane.b32.xlu1 %v27894_v45, %s19984_s23 }
 0x327   : > { %19622 = vrot.lane.b32.xlu0 %v27895_v37, %s19984_s23  ;;  %v4243_v17 = vpop.f32.mrb[49].mxu1  ;;  %v24428_v51 = vpop.permute.xlu1 %19317  ;;  %v4242_v62 = vadd.f32 %v4241_v42, %v27649_v13  ;;  %v27902_v37 = vld [vmem:[#allocation47_spill] sm:$0xff] }
 0x328   : > { %27896 = vst [vmem:[#allocation41_spill] sm:$0xff] %v24428_v51  ;;  %v24430_v10 = vpop.permute.xlu0 %19312  ;;  %v4244_v34 = vadd.f32 %v4243_v17, %v27649_v13  ;;  %v19070_v17 = vunpack.i.h.bf16 %v27902_v37 }
 0x32a   : > { %v4247_v46 = vpop.f32.mrb[50].mxu1  ;;  %19637 = vrot.lane.b32.xlu1 %v27897_v7, %s19984_s23  ;;  %v4266_v7 = vmax.f32 %v4242_v62, 0.0  ;;  %v27906_v62 = vld [vmem:[#allocation76_spill] sm:$0xff] }
 0x32b   : > { %v4248_v45 = vadd.f32 %v4247_v46, %v27672_v59  ;;  %19632 = vrot.lane.b32.xlu0 %v27899_v15, %s19984_s23  ;;  %v4249_v5 = vpop.f32.mrb[51].mxu1  ;;  %v24448_v49 = vpop.permute.xlu1 %19327  ;;  %v19069_v46 = vunpack.i.l.bf16 %v27902_v37  ;;  %v16913_v37 = vpack.c.bf16 %v19135_v35, %v19134_v39  ;;  %v27909_v35 = vld [vmem:[#allocation75_spill] sm:$0xff] }
 0x32c   : > { %v4250_v50 = vadd.f32 %v4249_v5, %v27672_v59  ;;  %16861 = vmatpush3.bf16.xpose.msk.msra.mxu0 %vm20075_vm1, %v16859_v21  ;;  %16885 = vmatpush3.bf16.xpose.msk.msra.mxu1 %vm20075_vm1, %v16883_v58  ;;  %27901 = vst [vmem:[#allocation50_spill] sm:$0xff] %v24448_v49  ;;  %v24450_v42 = vpop.permute.xlu0 %19322  ;;  %v27903_v21 = vld [vmem:[#allocation24_spill] sm:$0xff]  ;;  %v4267_v5 = vmax.f32 %v4244_v34, 0.0  ;;  %v19155_v39 = vunpack.i.h.bf16 %v27909_v35 }
 0x32d   : > { %v4270_v32 = vmax.f32 %v4248_v45, 0.0  ;;  %16888 = vmatprep.subr.msk.bf16.mxu1 %vm20075_vm1, %v16886_v18  ;;  %16912 = vmatprep.subr.msk.bf16.mxu0 %vm20075_vm1, %v16910_v27  ;;  %v19145_v15 = vunpack.i.h.bf16 %v27903_v21  ;;  %v19144_v58 = vunpack.i.l.bf16 %v27903_v21  ;;  %v16889_v18 = vpack.c.bf16 %v19060_v24, %v19059_v26 }
 0x32e   : > { %v4271_v16 = vmax.f32 %v4250_v50, 0.0  ;;  %v4253_v4 = vpop.f32.mrb[52].mxu1  ;;  %19647 = vrot.lane.b32.xlu1 %v27904_v22, %s19984_s23  ;;  %v16892_v34 = vpack.c.bf16 %v19070_v17, %v19069_v46  ;;  %v19154_v17 = vunpack.i.l.bf16 %v27909_v35 }
 0x32f   : > { %v24462_v44 = vpack.c.bf16 %v4270_v32, %v4266_v7  ;;  %19642 = vrot.lane.b32.xlu0 %v27906_v62, %s19984_s23  ;;  %v4255_v45 = vpop.f32.mrb[53].mxu1  ;;  %v24468_v27 = vpop.permute.xlu1 %19337  ;;  %v4254_v50 = vadd.f32 %v4253_v4, %v27675_v25  ;;  %v16916_v21 = vpack.c.bf16 %v19145_v15, %v19144_v58  ;;  %v27908_v32 = vld [vmem:[#allocation40_spill] sm:$0xff] }
 0x330   : > { %v24466_v49 = vpack.c.bf16 %v4271_v16, %v4267_v5  ;;  %v24470_v51 = vpop.permute.xlu0 %19332  ;;  %v4256_v22 = vadd.f32 %v4255_v45, %v27675_v25  ;;  %v19080_v62 = vunpack.i.h.bf16 %v27908_v32  ;;  %v19079_v4 = vunpack.i.l.bf16 %v27908_v32  ;;  %v27910_v15 = vld [vmem:[#allocation44_spill] sm:$0xff] }
 0x331   : > { %27905 = vst [vmem:[#allocation42_spill] sm:$0xff] %v24462_v44  ;;  %v19090_v58 = vunpack.i.h.bf16 %v27910_v15  ;;  %v19089_v5 = vunpack.i.l.bf16 %v27910_v15  ;;  %v4274_v16 = vmax.f32 %v4254_v50, 0.0 }
 0x332   : > { %27907 = vst [vmem:[#allocation61_spill] sm:$0xff] %v24466_v49  ;;  %v4259_v7 = vpop.f32.mrb[54].mxu1  ;;  %19657 = vrot.lane.b32.xlu1 %v24034_v40, %s19984_s23 }
 0x333   : > { %v4260_v24 = vadd.f32 %v4259_v7, %v27676_v11  ;;  %19652 = vrot.lane.b32.xlu0 %v24064_v1, %s19984_s23  ;;  %v4261_v26 = vpop.f32.mrb[55].mxu1  ;;  %15407 = vmatmul.mubr.msk.f32.vlgmr.msra.gmra.mrb[80].mxu0 %vm317_vm0, %v23968_v52  ;;  %v24490_v40 = vpop.permute.xlu1 %19347  ;;  %v24499_v7 = vld [vmem:[%s27485_s1 + $0x8] sm:$0xff] }
 0x334   : > { %v4262_v46 = vadd.f32 %v4261_v26, %v27676_v11  ;;  %16891 = vmatpush3.bf16.xpose.msk.msra.mxu1 %vm20075_vm1, %v16889_v18  ;;  %16915 = vmatpush3.bf16.xpose.msk.msra.mxu0 %vm20075_vm1, %v16913_v37  ;;  %v24492_v1 = vpop.permute.xlu0 %19342  ;;  %v27911_v18 = vld [vmem:[#allocation27_spill] sm:$0xff]  ;;  %v4275_v26 = vmax.f32 %v4256_v22, 0.0 }
 0x335   : > { %v4278_v45 = vmax.f32 %v4260_v24, 0.0  ;;  %15408 = vmatprep.mubr.msk.f32.mxu0 %vm317_vm0, %v24499_v7  ;;  %16894 = vmatprep.subr.msk.bf16.mxu1 %vm20075_vm1, %v16892_v34  ;;  %v19165_v37 = vunpack.i.h.bf16 %v27911_v18  ;;  %v19164_v32 = vunpack.i.l.bf16 %v27911_v18  ;;  %v16895_v34 = vpack.c.bf16 %v19080_v62, %v19079_v4  ;;  %v27914_v62 = vld [vmem:[#allocation71_spill] sm:$0xff] }
 0x336   : > { %v4279_v35 = vmax.f32 %v4262_v46, 0.0  ;;  %19667 = vrot.lane.b32.xlu1 %v24082_v19, %s19984_s23  ;;  %16918 = vmatprep.subr.msk.bf16.mxu0 %vm20075_vm1, %v16916_v21  ;;  %v16919_v24 = vpack.c.bf16 %v19155_v39, %v19154_v17  ;;  %v24526_v19 = vld [vmem:[%s27485_s1 + $0x10] sm:$0xff]  ;;  %v19100_v4 = vunpack.i.h.bf16 %v27914_v62  ;;  %v19099_v39 = vunpack.i.l.bf16 %v27914_v62  ;;  %v27920_v62 = vld [vmem:[#allocation84_spill] sm:$0xff] }
 0x337   : > { %v24511_v50 = vpack.c.bf16 %v4278_v45, %v4274_v16  ;;  %19662 = vrot.lane.b32.xlu0 %v24090_v33, %s19984_s23  ;;  %15409 = vmatmul.mubr.msk.f32.gmra.mrb[82].mxu0 %vm317_vm0, %v24499_v7  ;;  %v24519_v22 = vpop.permute.xlu1 %19357  ;;  %v16898_v33 = vpack.c.bf16 %v19090_v58, %v19089_v5  ;;  %v16922_v21 = vpack.c.bf16 %v19165_v37, %v19164_v32  ;;  %v19175_v17 = vunpack.i.h.bf16 %v24073_v57  ;;  %v27916_v58 = vld [vmem:[#allocation72_spill] sm:$0xff] }
 0x338   : > { %v24517_v15 = vpack.c.bf16 %v4279_v35, %v4275_v26  ;;  %v24521_v46 = vpop.permute.xlu0 %19352  ;;  %15410 = vmatprep.mubr.msk.f32.mxu0 %vm317_vm0, %v24526_v19  ;;  %v19174_v16 = vunpack.i.l.bf16 %v24073_v57  ;;  %v19110_v5 = vunpack.i.h.bf16 %v27916_v58  ;;  %v19109_v45 = vunpack.i.l.bf16 %v27916_v58  ;;  %v24555_v57 = vld [vmem:[%s27485_s1 + $0x18] sm:$0xff]  ;;  %v27922_v58 = vld [vmem:[#allocation89_spill] sm:$0xff] }
 0x339   : > { %27912 = vst [vmem:[#allocation65_spill] sm:$0xff] %v24511_v50  ;;  %v19185_v18 = vunpack.i.h.bf16 %v24104_v20  ;;  %v19184_v37 = vunpack.i.l.bf16 %v24104_v20  ;;  %v16901_v20 = vpack.c.bf16 %v19100_v4, %v19099_v39  ;;  %v19195_v4 = vunpack.i.h.bf16 %v27920_v62 }
 0x33a   : > { %27913 = vst [vmem:[#allocation66_spill] sm:$0xff] %v24517_v15  ;;  %19677 = vrot.lane.b32.xlu1 %v24092_v30, %s19984_s23  ;;  %v16925_v32 = vpack.c.bf16 %v19175_v17, %v19174_v16  ;;  %v19194_v39 = vunpack.i.l.bf16 %v27920_v62 }
 0x33b   : > { %19672 = vrot.lane.b32.xlu0 %v24126_v53, %s19984_s23  ;;  %15411 = vmatmul.mubr.msk.f32.gmra.mrb[84].mxu0 %vm317_vm0, %v24526_v19  ;;  %v24544_v30 = vpop.permute.xlu1 %19367 }
 0x33c   : > { %16897 = vmatpush3.bf16.xpose.msk.msra.mxu1 %vm20075_vm1, %v16895_v34  ;;  %16921 = vmatpush3.bf16.xpose.msk.msra.mxu0 %vm20075_vm1, %v16919_v24  ;;  %27915 = vst [vmem:[#allocation64_spill] sm:$0xff] %v24544_v30  ;;  %v24546_v53 = vpop.permute.xlu0 %19362  ;;  %v16904_v34 = vpack.c.bf16 %v19110_v5, %v19109_v45  ;;  %v27918_v24 = vld [vmem:[#allocation53_spill] sm:$0xff]  ;;  %v19205_v5 = vunpack.i.h.bf16 %v27922_v58  ;;  %v19204_v45 = vunpack.i.l.bf16 %v27922_v58  ;;  %v16931_v62 = vpack.c.bf16 %v19195_v4, %v19194_v39  ;;  %v27928_v4 = vld [vmem:[#allocation63_spill] sm:$0xff] }
 0x33d   : > { %15412 = vmatprep.mubr.msk.f32.mxu0 %vm317_vm0, %v24555_v57  ;;  %16900 = vmatprep.subr.msk.bf16.mxu1 %vm20075_vm1, %v16898_v33  ;;  %v19215_v39 = vunpack.i.h.bf16 %v27928_v4 }
 0x33e   : > { %19687 = vrot.lane.b32.xlu1 %v24142_v31, %s19984_s23  ;;  %16924 = vmatprep.subr.msk.bf16.mxu0 %vm20075_vm1, %v16922_v21  ;;  %v16928_v31 = vpack.c.bf16 %v19185_v18, %v19184_v37  ;;  %v16934_v50 = vpack.c.bf16 %v19205_v5, %v19204_v45 }
 0x33f   : > { %19682 = vrot.lane.b32.xlu0 %v24148_v47, %s19984_s23  ;;  %15413 = vmatmul.mubr.msk.f32.gmra.mrb[86].mxu0 %vm317_vm0, %v24555_v57  ;;  %v24569_v26 = vpop.permute.xlu1 %19377  ;;  %v27919_v47 = vld [vmem:[#allocation57_spill] sm:$0xff] }
 0x340   : > { %27917 = vst [vmem:[#allocation45_spill] sm:$0xff] %v24569_v26  ;;  %v24571_v35 = vpop.permute.xlu0 %19372  ;;  %15486 = vmatprep.mubr.msk.f32.mxu0 %vm317_vm0, %v23968_v52  ;;  %v19120_v33 = vunpack.i.h.bf16 %v27919_v47  ;;  %v19119_v21 = vunpack.i.l.bf16 %v27919_v47 }
 0x342   : > { %19697 = vrot.lane.b32.xlu1 %v24176_v28, %s19984_s23  ;;  %v27921_v28 = vld [vmem:[#allocation54_spill] sm:$0xff]  ;;  %v16907_v47 = vpack.c.bf16 %v19120_v33, %v19119_v21 }
 0x343   : > { %19692 = vrot.lane.b32.xlu0 %v27918_v24, %s19984_s23  ;;  %v19130_v17 = vunpack.i.h.bf16 %v27921_v28  ;;  %v19129_v16 = vunpack.i.l.bf16 %v27921_v28  ;;  %v24593_v18 = vpop.permute.xlu1 %19387 }
 0x344   : > { %16903 = vmatpush3.bf16.xpose.msk.msra.mxu1 %vm20075_vm1, %v16901_v20  ;;  %16927 = vmatpush3.bf16.xpose.msk.msra.mxu0 %vm20075_vm1, %v16925_v32  ;;  %v24587_v52 = vpop.permute.xlu0 %19382  ;;  %27923 = vst [vmem:[#allocation69_spill] sm:$0xff] %v24593_v18  ;;  %v27924_v20 = vld [vmem:[#allocation67_spill] sm:$0xff]  ;;  %v27925_v32 = vld [vmem:[#allocation73_spill] sm:$0xff] }
 0x345   : > { %16906 = vmatprep.subr.msk.bf16.mxu1 %vm20075_vm1, %v16904_v34  ;;  %16930 = vmatprep.subr.msk.bf16.mxu0 %vm20075_vm1, %v16928_v31  ;;  %v16958_v58 = vpack.c.bf16 %v19130_v17, %v19129_v16  ;;  %v27926_v31 = vld [vmem:[#allocation62_spill] sm:$0xff]  ;;  %v19214_v17 = vunpack.i.l.bf16 %v27928_v4 }
 0x346   : > { %v4746_v37 = vpop.f32.mrb[56].mxu0  ;;  %19707 = vrot.lane.b32.xlu1 %v27924_v20, %s19984_s23  ;;  %v19140_v20 = vunpack.i.h.bf16 %v27926_v31  ;;  %v19139_v21 = vunpack.i.l.bf16 %v27926_v31 }
 0x347   : > { %19702 = vrot.lane.b32.xlu0 %v27925_v32, %s19984_s23  ;;  %v4748_v24 = vpop.f32.mrb[57].mxu0  ;;  %v4747_v15 = vadd.f32 %v4746_v37, %v27649_v13  ;;  %v24610_v49 = vpop.permute.xlu1 %19397 }
 0x348   : > { %v24603_v28 = vpop.permute.xlu0 %19392  ;;  %v4749_v34 = vadd.f32 %v4748_v24, %v27649_v13  ;;  %27927 = vst [vmem:[#allocation82_spill] sm:$0xff] %v24610_v49  ;;  %v27930_v24 = vld [vmem:[#allocation83_spill] sm:$0xff]  ;;  %v27931_v49 = vld [vmem:[#allocation93_spill] sm:$0xff] }
 0x349   : > { %v4858_v45 = vmax.f32 %v4747_v15, 0.0  ;;  %v19225_v31 = vunpack.i.h.bf16 %v27930_v24  ;;  %v27933_v15 = vld [vmem:[#allocation94_spill] sm:$0xff] }
 0x34a   : > { %v4752_v44 = vpop.f32.mrb[58].mxu0  ;;  %19717 = vrot.lane.b32.xlu1 %v24230_v3, %s19984_s23 }
 0x34b   : > { %v4753_v32 = vadd.f32 %v4752_v44, %v27672_v59  ;;  %19712 = vrot.lane.b32.xlu0 %v24234_v2, %s19984_s23  ;;  %v4754_v33 = vpop.f32.mrb[59].mxu0  ;;  %v27929_v44 = vld [vmem:[#allocation60_spill] sm:$0xff] }
 0x34c   : > { %v4755_v16 = vadd.f32 %v4754_v33, %v27672_v59  ;;  %16909 = vmatpush3.bf16.xpose.msk.msra.mxu1 %vm20075_vm1, %v16907_v47  ;;  %16933 = vmatpush3.bf16.xpose.msk.msra.mxu0 %vm20075_vm1, %v16931_v62  ;;  %v24623_v3 = vpop.permute.xlu0 %19402  ;;  %v19150_v5 = vunpack.i.h.bf16 %v27929_v44  ;;  %v19149_v2 = vunpack.i.l.bf16 %v27929_v44  ;;  %v19224_v47 = vunpack.i.l.bf16 %v27930_v24  ;;  %v24643_v24 = vpop.permute.xlu1 %19407 }
 0x34d   : > { %v4862_v37 = vmax.f32 %v4753_v32, 0.0  ;;  %16960 = vmatprep.subr.msk.bf16.mxu1 %vm20075_vm1, %v16958_v58  ;;  %16936 = vmatprep.subr.msk.bf16.mxu0 %vm20075_vm1, %v16934_v50  ;;  %v4859_v33 = vmax.f32 %v4749_v34, 0.0  ;;  %v16961_v58 = vpack.c.bf16 %v19140_v20, %v19139_v21  ;;  %v16937_v44 = vpack.c.bf16 %v19215_v39, %v19214_v17  ;;  %27935 = vst [vmem:[#allocation25_spill] sm:$0xff] %v24643_v24  ;;  %v24656_v39 = vld [vmem:[%s27485_s1] sm:$0xff]  ;;  %v8957_v24 = vld [vmem:[%s20071_s16 + $0x258] sm:$0xff] }
 0x34e   : > { %v4863_v62 = vmax.f32 %v4755_v16, 0.0  ;;  %v4758_v4 = vpop.f32.mrb[60].mxu0  ;;  %19727 = vrot.lane.b32.xlu1 %v27931_v49, %s19984_s23  ;;  %v16964_v30 = vpack.c.bf16 %v19150_v5, %v19149_v2  ;;  %v16940_v16 = vpack.c.bf16 %v19225_v31, %v19224_v47  ;;  %v27937_v5 = vld [vmem:[#allocation92_spill] sm:$0xff] }
 0x34f   : > { %v24635_v18 = vpack.c.bf16 %v4862_v37, %v4858_v45  ;;  %19722 = vrot.lane.b32.xlu0 %v27933_v15, %s19984_s23  ;;  %v4760_v32 = vpop.f32.mrb[61].mxu0  ;;  %v4759_v34 = vadd.f32 %v4758_v4, %v27675_v25  ;;  %v27936_v37 = vld [vmem:[#allocation70_spill] sm:$0xff]  ;;  %v19234_v2 = vunpack.i.l.bf16 %v27937_v5  ;;  %v27938_v47 = vld [vmem:[#allocation68_spill] sm:$0xff] }
 0x350   : > { %v24639_v26 = vpack.c.bf16 %v4863_v62, %v4859_v33  ;;  %v24641_v50 = vpop.permute.xlu0 %19412  ;;  %v4761_v49 = vadd.f32 %v4760_v32, %v27675_v25  ;;  %v19160_v15 = vunpack.i.h.bf16 %v27936_v37  ;;  %v19159_v17 = vunpack.i.l.bf16 %v27936_v37 }
 0x351   : > { %27932 = vst [vmem:[#allocation47_spill] sm:$0xff] %v24635_v18  ;;  %v19170_v33 = vunpack.i.h.bf16 %v27938_v47  ;;  %v19169_v62 = vunpack.i.l.bf16 %v27938_v47  ;;  %v4866_v4 = vmax.f32 %v4759_v34, 0.0  ;;  %v24682_v34 = vpop.permute.xlu1 %19417  ;;  %v19275_v18 = vunpack.i.h.bf16 %v24356_v63 }
 0x352   : > { %27934 = vst [vmem:[#allocation24_spill] sm:$0xff] %v24639_v26  ;;  %v4764_v45 = vpop.f32.mrb[62].mxu0  ;;  %19737 = vrot.lane.b32.xlu1 %v24258_v41, %s19984_s23  ;;  %v19235_v41 = vunpack.i.h.bf16 %v27937_v5  ;;  %v4867_v37 = vmax.f32 %v4761_v49, 0.0  ;;  %27940 = vst [vmem:[#allocation76_spill] sm:$0xff] %v24682_v34  ;;  %v8969_v49 = vld [vmem:[%s20071_s16 + $0x318] sm:$0xff]  ;;  %v16967_v5 = vpack.c.bf16 %v19160_v15, %v19159_v17  ;;  %v8952_v17 = vld [vmem:[%s20071_s16 + $0x208] sm:$0xff] }
 0x353   : > { %v4765_v20 = vadd.f32 %v4764_v45, %v27676_v11  ;;  %19732 = vrot.lane.b32.xlu0 %v24288_v23, %s19984_s23  ;;  %v4766_v21 = vpop.f32.mrb[63].mxu0  ;;  %15447 = vmatmul.mubr.msk.f32.vlgmr.msra.gmra.mrb[80].mxu1 %vm317_vm0, %v24656_v39  ;;  %v8940_v26 = vld [vmem:[%s20071_s16 + $0x148] sm:$0xff] }
 0x354   : > { %v4767_v31 = vadd.f32 %v4766_v21, %v27676_v11  ;;  %16939 = vmatpush3.bf16.xpose.msk.msra.mxu0 %vm20075_vm1, %v16937_v44  ;;  %16963 = vmatpush3.bf16.xpose.msk.msra.mxu1 %vm20075_vm1, %v16961_v58  ;;  %v24668_v23 = vpop.permute.xlu0 %19422  ;;  %v27939_v44 = vld [vmem:[#allocation96_spill] sm:$0xff]  ;;  %v8956_v34 = vld [vmem:[%s20071_s16 + $0x248] sm:$0xff] }
 0x355   : > { %v4870_v32 = vmax.f32 %v4765_v20, 0.0  ;;  %15448 = vmatprep.mubr.msk.f32.mxu1 %vm317_vm0, %v24499_v7  ;;  %16966 = vmatprep.subr.msk.bf16.mxu1 %vm20075_vm1, %v16964_v30  ;;  %v19245_v45 = vunpack.i.h.bf16 %v27939_v44  ;;  %v19244_v58 = vunpack.i.l.bf16 %v27939_v44  ;;  %v8968_v30 = vld [vmem:[%s20071_s16 + $0x308] sm:$0xff] }
 0x356   : > { %v4871_v21 = vmax.f32 %v4767_v31, 0.0  ;;  %19747 = vrot.lane.b32.xlu1 %v24306_v8, %s19984_s23  ;;  %16942 = vmatprep.subr.msk.bf16.mxu0 %vm20075_vm1, %v16940_v16  ;;  %v16943_v31 = vpack.c.bf16 %v19235_v41, %v19234_v2  ;;  %v8936_v16 = vld [vmem:[%s20071_s16 + $0x108] sm:$0xff]  ;;  %v19766_v44 = vpack.i.bf16 %v8969_v49, %v8968_v30  ;;  %v8953_v41 = vld [vmem:[%s20071_s16 + $0x218] sm:$0xff] }
 0x357   : > { %v24684_v20 = vpack.c.bf16 %v4870_v32, %v4866_v4  ;;  %19742 = vrot.lane.b32.xlu0 %v24314_v38, %s19984_s23  ;;  %15449 = vmatmul.mubr.msk.f32.gmra.mrb[82].mxu1 %vm317_vm0, %v24499_v7  ;;  %v8937_v4 = vld [vmem:[%s20071_s16 + $0x118] sm:$0xff]  ;;  %v16970_v32 = vpack.c.bf16 %v19170_v33, %v19169_v62  ;;  %v16946_v38 = vpack.c.bf16 %v19245_v45, %v19244_v58  ;;  %v27943_v2 = vld [vmem:[#allocation81_spill] sm:$0xff]  ;;  %v19255_v62 = vunpack.i.h.bf16 %v24297_v56 }
 0x358   : > { %v24692_v8 = vpack.c.bf16 %v4871_v21, %v4867_v37  ;;  %v24694_v47 = vpop.permute.xlu0 %19432  ;;  %15450 = vmatprep.mubr.msk.f32.mxu1 %vm317_vm0, %v24526_v19  ;;  %v19761_v15 = vpack.i.bf16 %v8937_v4, %v8936_v16  ;;  %v19180_v37 = vunpack.i.h.bf16 %v27943_v2  ;;  %v19179_v33 = vunpack.i.l.bf16 %v27943_v2  ;;  %v8921_v58 = vld [vmem:[%s20071_s16 + $0x18] sm:$0xff]  ;;  %v8970_v4 = vld [vmem:[%s20071_s16 + $0x328] sm:$0xff] }
 0x359   : > { %27941 = vst [vmem:[#allocation40_spill] sm:$0xff] %v24684_v20  ;;  %v19254_v45 = vunpack.i.l.bf16 %v24297_v56  ;;  %v27944_v21 = vld [vmem:[#allocation39_spill] sm:$0xff]  ;;  %v19265_v16 = vunpack.i.h.bf16 %v24328_v9  ;;  %v19264_v56 = vunpack.i.l.bf16 %v24328_v9 }
 0x35a   : > { %27942 = vst [vmem:[#allocation75_spill] sm:$0xff] %v24692_v8  ;;  %19757 = vrot.lane.b32.xlu1 %v24316_v48, %s19984_s23  ;;  %v19190_v30 = vunpack.i.h.bf16 %v27944_v21  ;;  %v19189_v49 = vunpack.i.l.bf16 %v27944_v21  ;;  %v8971_v2 = vld [vmem:[%s20071_s16 + $0x338] sm:$0xff]  ;;  %v16973_v21 = vpack.c.bf16 %v19180_v37, %v19179_v33  ;;  %v8954_v33 = vld [vmem:[%s20071_s16 + $0x228] sm:$0xff] }
 0x35b   : > { %19752 = vrot.lane.b32.xlu0 %v24350_v29, %s19984_s23  ;;  %15451 = vmatmul.mubr.msk.f32.gmra.mrb[84].mxu1 %vm317_vm0, %v24526_v19  ;;  %v8920_v29 = vld [vmem:[%s20071_s16 + $0x8] sm:$0xff]  ;;  %v16949_v20 = vpack.c.bf16 %v19255_v62, %v19254_v45  ;;  %v8955_v62 = vld [vmem:[%s20071_s16 + $0x238] sm:$0xff] }
 0x35c   : > { %16945 = vmatpush3.bf16.xpose.msk.msra.mxu0 %vm20075_vm1, %v16943_v31  ;;  %16969 = vmatpush3.bf16.xpose.msk.msra.mxu1 %vm20075_vm1, %v16967_v5  ;;  %v24716_v48 = vpop.permute.xlu0 %19442  ;;  %v24724_v31 = vpop.permute.xlu1 %19427  ;;  %v19776_v5 = vpack.i.bf16 %v8953_v41, %v8952_v17  ;;  %v19771_v9 = vpack.i.bf16 %v8921_v58, %v8920_v29  ;;  %v19786_v17 = vpack.i.bf16 %v8971_v2, %v8970_v4  ;;  %v27948_v45 = vld [vmem:[#allocation43_spill] sm:$0xff]  ;;  %v19285_v2 = vunpack.i.h.bf16 %v24376_v55 }
 0x35d   : > { %27945 = vst [vmem:[#allocation44_spill] sm:$0xff] %v24724_v31  ;;  %15452 = vmatprep.mubr.msk.f32.mxu1 %vm317_vm0, %v24555_v57  ;;  %16972 = vmatprep.subr.msk.bf16.mxu1 %vm20075_vm1, %v16970_v32  ;;  %v8938_v32 = vld [vmem:[%s20071_s16 + $0x128] sm:$0xff]  ;;  %v19200_v29 = vunpack.i.h.bf16 %v27948_v45  ;;  %v19199_v58 = vunpack.i.l.bf16 %v27948_v45 }
 0x35e   : > { %19767 = vrot.lane.b32.xlu1 %v19766_v44, %s19985_s29  ;;  %16948 = vmatprep.subr.msk.bf16.mxu0 %vm20075_vm1, %v16946_v38  ;;  %v8939_v44 = vld [vmem:[%s20071_s16 + $0x138] sm:$0xff]  ;;  %v16976_v38 = vpack.c.bf16 %v19190_v30, %v19189_v49  ;;  %v19274_v30 = vunpack.i.l.bf16 %v24356_v63  ;;  %v19284_v63 = vunpack.i.l.bf16 %v24376_v55  ;;  %v8972_v45 = vld [vmem:[%s20071_s16 + $0x348] sm:$0xff] }
 0x35f   : > { %19762 = vrot.lane.b32.xlu0 %v19761_v15, %s19985_s29  ;;  %15453 = vmatmul.mubr.msk.f32.gmra.mrb[86].mxu1 %vm317_vm0, %v24555_v57  ;;  %v16952_v15 = vpack.c.bf16 %v19265_v16, %v19264_v56  ;;  %v19781_v37 = vpack.i.bf16 %v8939_v44, %v8938_v32  ;;  %v8922_v16 = vld [vmem:[%s20071_s16 + $0x28] sm:$0xff]  ;;  %v8923_v56 = vld [vmem:[%s20071_s16 + $0x38] sm:$0xff]  ;;  %v16979_v55 = vpack.c.bf16 %v19200_v29, %v19199_v58 }
 0x360   : > { %v24738_v8 = vpop.permute.xlu0 %19452  ;;  %15526 = vmatprep.mubr.msk.f32.mxu1 %vm317_vm0, %v24656_v39  ;;  %v24745_v41 = vpop.permute.xlu1 %19437  ;;  %v19791_v44 = vpack.i.bf16 %v8923_v56, %v8922_v16  ;;  %v19816_v56 = vpack.i.bf16 %v8957_v24, %v8956_v34 }
 0x361   : > { %27946 = vst [vmem:[#allocation27_spill] sm:$0xff] %v24738_v8  ;;  %27947 = vst [vmem:[#allocation71_spill] sm:$0xff] %v24745_v41  ;;  %v16955_v41 = vpack.c.bf16 %v19275_v18, %v19274_v30  ;;  %v27953_v18 = vld [vmem:[#allocation59_spill] sm:$0xff] }
 0x362   : > { %19777 = vrot.lane.b32.xlu1 %v19776_v5, %s19985_s29  ;;  %v27950_v5 = vld [vmem:[#allocation49_spill] sm:$0xff]  ;;  %v19220_v29 = vunpack.i.h.bf16 %v27953_v18 }
 0x363   : > { %19772 = vrot.lane.b32.xlu0 %v19771_v9, %s19985_s29  ;;  %v19210_v9 = vunpack.i.h.bf16 %v27950_v5  ;;  %v19209_v4 = vunpack.i.l.bf16 %v27950_v5  ;;  %v8973_v5 = vld [vmem:[%s20071_s16 + $0x358] sm:$0xff] }
 0x364   : > { %16951 = vmatpush3.bf16.xpose.msk.msra.mxu0 %vm20075_vm1, %v16949_v20  ;;  %16975 = vmatpush3.bf16.xpose.msk.msra.mxu1 %vm20075_vm1, %v16973_v21  ;;  %v24758_v49 = vpop.permute.xlu0 %19462  ;;  %v19796_v21 = vpack.i.bf16 %v8955_v62, %v8954_v33  ;;  %v24780_v8 = vpop.permute.xlu1 %19447  ;;  %v19806_v62 = vpack.i.bf16 %v8973_v5, %v8972_v45  ;;  %v19304_v45 = vunpack.i.l.bf16 %v24414_v36 }
 0x365   : > { %27949 = vst [vmem:[#allocation72_spill] sm:$0xff] %v24758_v49  ;;  %16978 = vmatprep.subr.msk.bf16.mxu1 %vm20075_vm1, %v16976_v38  ;;  %16954 = vmatprep.subr.msk.bf16.mxu0 %vm20075_vm1, %v16952_v15  ;;  %v8941_v38 = vld [vmem:[%s20071_s16 + $0x158] sm:$0xff]  ;;  %v16982_v49 = vpack.c.bf16 %v19210_v9, %v19209_v4  ;;  %v17006_v15 = vpack.c.bf16 %v19285_v2, %v19284_v63  ;;  %27952 = vst [vmem:[#allocation57_spill] sm:$0xff] %v24780_v8  ;;  %v19219_v9 = vunpack.i.l.bf16 %v27953_v18  ;;  %v8974_v18 = vld [vmem:[%s20071_s16 + $0x368] sm:$0xff] }
 0x366   : > { %v4835_v20 = vpop.f32.mrb[56].mxu1  ;;  %19787 = vrot.lane.b32.xlu1 %v19786_v17, %s19985_s29  ;;  %v19801_v16 = vpack.i.bf16 %v8941_v38, %v8940_v26  ;;  %v19295_v4 = vunpack.i.h.bf16 %v24396_v60  ;;  %v19294_v2 = vunpack.i.l.bf16 %v24396_v60  ;;  %v27955_v26 = vld [vmem:[#allocation78_spill] sm:$0xff]  ;;  %v8943_v8 = vld [vmem:[%s20071_s16 + $0x178] sm:$0xff] }
 0x367   : > { %19782 = vrot.lane.b32.xlu0 %v19781_v37, %s19985_s29  ;;  %v4837_v32 = vpop.f32.mrb[57].mxu1  ;;  %v4836_v17 = vadd.f32 %v4835_v20, %v27649_v13  ;;  %v19230_v24 = vunpack.i.h.bf16 %v27955_v26  ;;  %v19229_v34 = vunpack.i.l.bf16 %v27955_v26 }
 0x368   : > { %v24775_v31 = vpop.permute.xlu0 %19472  ;;  %v4838_v37 = vadd.f32 %v4837_v32, %v27649_v13  ;;  %v8925_v32 = vld [vmem:[%s20071_s16 + $0x58] sm:$0xff] }
 0x369   : > { %27951 = vst [vmem:[#allocation53_spill] sm:$0xff] %v24775_v31  ;;  %v16988_v31 = vpack.c.bf16 %v19230_v24, %v19229_v34 }
 0x36a   : > { %v4841_v33 = vpop.f32.mrb[58].mxu1  ;;  %19797 = vrot.lane.b32.xlu1 %v19796_v21, %s19985_s29  ;;  %v8924_v21 = vld [vmem:[%s20071_s16 + $0x48] sm:$0xff]  ;;  %v4861_v5 = vmax.f32 %v4838_v37, 0.0  ;;  %v17009_v37 = vpack.c.bf16 %v19295_v4, %v19294_v2 }
 0x36b   : > { %v4842_v58 = vadd.f32 %v4841_v33, %v27672_v59  ;;  %19792 = vrot.lane.b32.xlu0 %v19791_v44, %s19985_s29  ;;  %v4843_v30 = vpop.f32.mrb[59].mxu1  ;;  %v4860_v44 = vmax.f32 %v4836_v17, 0.0  ;;  %v24809_v17 = vpop.permute.xlu1 %19457 }
 0x36c   : > { %v4844_v63 = vadd.f32 %v4843_v30, %v27672_v59  ;;  %16957 = vmatpush3.bf16.xpose.msk.msra.mxu0 %vm20075_vm1, %v16955_v41  ;;  %16981 = vmatpush3.bf16.xpose.msk.msra.mxu1 %vm20075_vm1, %v16979_v55  ;;  %v24796_v20 = vpop.permute.xlu0 %19482  ;;  %v19305_v41 = vunpack.i.h.bf16 %v24414_v36  ;;  %v8942_v30 = vld [vmem:[%s20071_s16 + $0x168] sm:$0xff]  ;;  %v16985_v36 = vpack.c.bf16 %v19220_v29, %v19219_v9  ;;  %v27958_v29 = vld [vmem:[#allocation88_spill] sm:$0xff] }
 0x36d   : > { %27954 = vst [vmem:[#allocation84_spill] sm:$0xff] %v24796_v20  ;;  %v4864_v60 = vmax.f32 %v4842_v58, 0.0  ;;  %16984 = vmatprep.subr.msk.bf16.mxu1 %vm20075_vm1, %v16982_v49  ;;  %17008 = vmatprep.subr.msk.bf16.mxu0 %vm20075_vm1, %v17006_v15  ;;  %v19811_v15 = vpack.i.bf16 %v8925_v32, %v8924_v21  ;;  %v8975_v58 = vld [vmem:[%s20071_s16 + $0x378] sm:$0xff]  ;;  %v8958_v20 = vld [vmem:[%s20071_s16 + $0x268] sm:$0xff]  ;;  %v19240_v9 = vunpack.i.h.bf16 %v27958_v29  ;;  %v19821_v32 = vpack.i.bf16 %v8943_v8, %v8942_v30 }
 0x36e   : > { %v4865_v55 = vmax.f32 %v4844_v63, 0.0  ;;  %v4847_v38 = vpop.f32.mrb[60].mxu1  ;;  %19807 = vrot.lane.b32.xlu1 %v19806_v62, %s19985_s29  ;;  %v8959_v62 = vld [vmem:[%s20071_s16 + $0x278] sm:$0xff]  ;;  %v19826_v21 = vpack.i.bf16 %v8975_v58, %v8974_v18  ;;  %v19239_v34 = vunpack.i.l.bf16 %v27958_v29  ;;  %v19325_v18 = vunpack.i.h.bf16 %v24450_v42 }
 0x36f   : > { %v24811_v33 = vpack.c.bf16 %v4864_v60, %v4860_v44  ;;  %19802 = vrot.lane.b32.xlu0 %v19801_v16, %s19985_s29  ;;  %v4849_v49 = vpop.f32.mrb[61].mxu1  ;;  %v4848_v44 = vadd.f32 %v4847_v38, %v27675_v25  ;;  %v17012_v60 = vpack.c.bf16 %v19305_v41, %v19304_v45  ;;  %v19836_v24 = vpack.i.bf16 %v8959_v62, %v8958_v20  ;;  %v8927_v38 = vld [vmem:[%s20071_s16 + $0x78] sm:$0xff]  ;;  %v8976_v62 = vld [vmem:[%s20071_s16 + $0x388] sm:$0xff] }
 0x370   : > { %v24817_v26 = vpack.c.bf16 %v4865_v55, %v4861_v5  ;;  %v24819_v63 = vpop.permute.xlu0 %19492  ;;  %v4850_v16 = vadd.f32 %v4849_v49, %v27675_v25  ;;  %v19315_v41 = vunpack.i.h.bf16 %v24430_v10  ;;  %v8926_v55 = vld [vmem:[%s20071_s16 + $0x68] sm:$0xff]  ;;  %v27959_v8 = vld [vmem:[#allocation95_spill] sm:$0xff]  ;;  %v24846_v49 = vpop.permute.xlu1 %19467  ;;  %v19324_v58 = vunpack.i.l.bf16 %v24450_v42 }
 0x371   : > { %27956 = vst [vmem:[#allocation54_spill] sm:$0xff] %v24811_v33  ;;  %v19250_v20 = vunpack.i.h.bf16 %v27959_v8  ;;  %v16991_v42 = vpack.c.bf16 %v19240_v9, %v19239_v34  ;;  %v8960_v34 = vld [vmem:[%s20071_s16 + $0x288] sm:$0xff] }
 0x372   : > { %27957 = vst [vmem:[#allocation89_spill] sm:$0xff] %v24817_v26  ;;  %v4853_v33 = vpop.f32.mrb[62].mxu1  ;;  %19817 = vrot.lane.b32.xlu1 %v19816_v56, %s19985_s29  ;;  %v19314_v56 = vunpack.i.l.bf16 %v24430_v10  ;;  %v4868_v10 = vmax.f32 %v4848_v44, 0.0  ;;  %v4869_v30 = vmax.f32 %v4850_v16, 0.0  ;;  %v8977_v44 = vld [vmem:[%s20071_s16 + $0x398] sm:$0xff] }
 0x373   : > { %v4854_v4 = vadd.f32 %v4853_v33, %v27676_v11  ;;  %19812 = vrot.lane.b32.xlu0 %v19811_v15, %s19985_s29  ;;  %v4855_v2 = vpop.f32.mrb[63].mxu1  ;;  %15487 = vmatmul.mubr.msk.f32.vlgmr.msra.gmra.mrb[88].mxu0 %vm317_vm0, %v24656_v39  ;;  %v19249_v33 = vunpack.i.l.bf16 %v27959_v8  ;;  %v19335_v8 = vunpack.i.h.bf16 %v24470_v51 }
 0x374   : > { %v4856_v45 = vadd.f32 %v4855_v2, %v27676_v11  ;;  %16987 = vmatpush3.bf16.xpose.msk.msra.mxu1 %vm20075_vm1, %v16985_v36  ;;  %17011 = vmatpush3.bf16.xpose.msk.msra.mxu0 %vm20075_vm1, %v17009_v37  ;;  %v24840_v5 = vpop.permute.xlu0 %19502  ;;  %v17015_v16 = vpack.c.bf16 %v19315_v41, %v19314_v56  ;;  %v8961_v41 = vld [vmem:[%s20071_s16 + $0x298] sm:$0xff]  ;;  %v19260_v56 = vunpack.i.h.bf16 %v24295_v14 }
 0x375   : > { %v4872_v15 = vmax.f32 %v4854_v4, 0.0  ;;  %15488 = vmatprep.mubr.msk.f32.mxu0 %vm317_vm0, %v24499_v7  ;;  %16990 = vmatprep.subr.msk.bf16.mxu1 %vm20075_vm1, %v16988_v31  ;;  %v19831_v31 = vpack.i.bf16 %v8927_v38, %v8926_v55  ;;  %v8945_v4 = vld [vmem:[%s20071_s16 + $0x198] sm:$0xff]  ;;  %v16994_v2 = vpack.c.bf16 %v19250_v20, %v19249_v33  ;;  %v24873_v55 = vpop.permute.xlu1 %19477  ;;  %v19259_v38 = vunpack.i.l.bf16 %v24295_v14  ;;  %v8928_v33 = vld [vmem:[%s20071_s16 + $0x88] sm:$0xff] }
 0x376   : > { %v4873_v36 = vmax.f32 %v4856_v45, 0.0  ;;  %19827 = vrot.lane.b32.xlu1 %v19826_v21, %s19985_s29  ;;  %17014 = vmatprep.subr.msk.bf16.mxu0 %vm20075_vm1, %v17012_v60  ;;  %v8944_v60 = vld [vmem:[%s20071_s16 + $0x188] sm:$0xff]  ;;  %v19846_v45 = vpack.i.bf16 %v8977_v44, %v8976_v62  ;;  %v19269_v14 = vunpack.i.l.bf16 %v24326_v12 }
 0x377   : > { %v24857_v37 = vpack.c.bf16 %v4872_v15, %v4868_v10  ;;  %19822 = vrot.lane.b32.xlu0 %v19821_v32, %s19985_s29  ;;  %15489 = vmatmul.mubr.msk.f32.gmra.mrb[90].mxu0 %vm317_vm0, %v24499_v7  ;;  %v17018_v32 = vpack.c.bf16 %v19325_v18, %v19324_v58  ;;  %v19841_v9 = vpack.i.bf16 %v8945_v4, %v8944_v60  ;;  %v8929_v10 = vld [vmem:[%s20071_s16 + $0x98] sm:$0xff]  ;;  %v19270_v15 = vunpack.i.h.bf16 %v24326_v12  ;;  %v8946_v44 = vld [vmem:[%s20071_s16 + $0x1a8] sm:$0xff] }
 0x378   : > { %v24864_v29 = vpack.c.bf16 %v4873_v36, %v4869_v30  ;;  %v24866_v21 = vpop.permute.xlu0 %19512  ;;  %15490 = vmatprep.mubr.msk.f32.mxu0 %vm317_vm0, %v24526_v19  ;;  %v19345_v18 = vunpack.i.h.bf16 %v24492_v1  ;;  %v19856_v58 = vpack.i.bf16 %v8961_v41, %v8960_v34  ;;  %v19851_v12 = vpack.i.bf16 %v8929_v10, %v8928_v33  ;;  %v8979_v30 = vld [vmem:[%s20071_s16 + $0x3b8] sm:$0xff] }
 0x379   : > { %27960 = vst [vmem:[#allocation67_spill] sm:$0xff] %v24857_v37  ;;  %v16997_v36 = vpack.c.bf16 %v19260_v56, %v19259_v38  ;;  %v24914_v4 = vpop.permute.xlu1 %19487  ;;  %v19280_v34 = vunpack.i.h.bf16 %v24354_v43  ;;  %v19279_v41 = vunpack.i.l.bf16 %v24354_v43  ;;  %v19355_v56 = vunpack.i.h.bf16 %v24521_v46  ;;  %v8931_v33 = vld [vmem:[%s20071_s16 + $0xb8] sm:$0xff] }
 0x37a   : > { %27961 = vst [vmem:[#allocation73_spill] sm:$0xff] %v24864_v29  ;;  %19837 = vrot.lane.b32.xlu1 %v19836_v24, %s19985_s29  ;;  %v19334_v24 = vunpack.i.l.bf16 %v24470_v51  ;;  %v19344_v51 = vunpack.i.l.bf16 %v24492_v1  ;;  %v8978_v1 = vld [vmem:[%s20071_s16 + $0x3a8] sm:$0xff]  ;;  %v19354_v38 = vunpack.i.l.bf16 %v24521_v46  ;;  %v19290_v10 = vunpack.i.h.bf16 %v24374_v54 }
 0x37b   : > { %19832 = vrot.lane.b32.xlu0 %v19831_v31, %s19985_s29  ;;  %15491 = vmatmul.mubr.msk.f32.gmra.mrb[92].mxu0 %vm317_vm0, %v24526_v19  ;;  %v19289_v43 = vunpack.i.l.bf16 %v24374_v54  ;;  %v19364_v46 = vunpack.i.l.bf16 %v24546_v53 }
 0x37c   : > { %16993 = vmatpush3.bf16.xpose.msk.msra.mxu1 %vm20075_vm1, %v16991_v42  ;;  %17017 = vmatpush3.bf16.xpose.msk.msra.mxu0 %vm20075_vm1, %v17015_v16  ;;  %v24888_v20 = vpop.permute.xlu0 %19522  ;;  %v17021_v31 = vpack.c.bf16 %v19335_v8, %v19334_v24  ;;  %v8947_v42 = vld [vmem:[%s20071_s16 + $0x1b8] sm:$0xff]  ;;  %v17000_v16 = vpack.c.bf16 %v19270_v15, %v19269_v14  ;;  %v17024_v60 = vpack.c.bf16 %v19345_v18, %v19344_v51  ;;  %v8930_v24 = vld [vmem:[%s20071_s16 + $0xa8] sm:$0xff]  ;;  %v19365_v15 = vunpack.i.h.bf16 %v24546_v53 }
 0x37d   : > { %15492 = vmatprep.mubr.msk.f32.mxu0 %vm317_vm0, %v24555_v57  ;;  %16996 = vmatprep.subr.msk.bf16.mxu1 %vm20075_vm1, %v16994_v2  ;;  %v19866_v2 = vpack.i.bf16 %v8979_v30, %v8978_v1  ;;  %v24941_v51 = vpop.permute.xlu1 %19497  ;;  %v8981_v53 = vld [vmem:[%s20071_s16 + $0x3d8] sm:$0xff]  ;;  %v8948_v1 = vld [vmem:[%s20071_s16 + $0x1c8] sm:$0xff]  ;;  %v17003_v30 = vpack.c.bf16 %v19280_v34, %v19279_v41  ;;  %v19300_v34 = vunpack.i.h.bf16 %v24394_v0 }
 0x37e   : > { %19847 = vrot.lane.b32.xlu1 %v19846_v45, %s19985_s29  ;;  %17020 = vmatprep.subr.msk.bf16.mxu0 %vm20075_vm1, %v17018_v32  ;;  %v19861_v32 = vpack.i.bf16 %v8947_v42, %v8946_v44  ;;  %v8962_v45 = vld [vmem:[%s20071_s16 + $0x2a8] sm:$0xff]  ;;  %v8965_v42 = vld [vmem:[%s20071_s16 + $0x2d8] sm:$0xff] }
 0x37f   : > { %19842 = vrot.lane.b32.xlu0 %v19841_v9, %s19985_s29  ;;  %15493 = vmatmul.mubr.msk.f32.gmra.mrb[94].mxu0 %vm317_vm0, %v24555_v57  ;;  %v8963_v9 = vld [vmem:[%s20071_s16 + $0x2b8] sm:$0xff]  ;;  %v8964_v44 = vld [vmem:[%s20071_s16 + $0x2c8] sm:$0xff] }
 0x380   : > { %v24908_v62 = vpop.permute.xlu0 %19532  ;;  %15566 = vmatprep.mubr.msk.f32.mxu0 %vm317_vm0, %v24656_v39  ;;  %v19876_v18 = vpack.i.bf16 %v8963_v9, %v8962_v45 }
 0x381   : > { %v19535_v26 = vunpack.i.h.bf16 %v24908_v62 }
 0x382   : > { %19857 = vrot.lane.b32.xlu1 %v19856_v58, %s19985_s29  ;;  %v19871_v58 = vpack.i.bf16 %v8931_v33, %v8930_v24  ;;  %v19896_v24 = vpack.i.bf16 %v8965_v42, %v8964_v44  ;;  %v19299_v33 = vunpack.i.l.bf16 %v24394_v0  ;;  %v24970_v0 = vpop.permute.xlu1 %19507  ;;  %v8982_v44 = vld [vmem:[%s20071_s16 + $0x3e8] sm:$0xff]  ;;  %v8983_v42 = vld [vmem:[%s20071_s16 + $0x3f8] sm:$0xff] }
 0x383   : > { %19852 = vrot.lane.b32.xlu0 %v19851_v12, %s19985_s29  ;;  %v8980_v12 = vld [vmem:[%s20071_s16 + $0x3c8] sm:$0xff] }
 0x384   : > { %16999 = vmatpush3.bf16.xpose.msk.msra.mxu1 %vm20075_vm1, %v16997_v36  ;;  %17023 = vmatpush3.bf16.xpose.msk.msra.mxu0 %vm20075_vm1, %v17021_v31  ;;  %v24928_v8 = vpop.permute.xlu0 %19542  ;;  %v17027_v36 = vpack.c.bf16 %v19355_v56, %v19354_v38  ;;  %v8949_v31 = vld [vmem:[%s20071_s16 + $0x1d8] sm:$0xff]  ;;  %v19886_v9 = vpack.i.bf16 %v8981_v53, %v8980_v12  ;;  %v19385_v12 = vunpack.i.h.bf16 %v24587_v52  ;;  %v19384_v53 = vunpack.i.l.bf16 %v24587_v52 }
 0x385   : > { %17002 = vmatprep.subr.msk.bf16.mxu1 %vm20075_vm1, %v17000_v16  ;;  %17026 = vmatprep.subr.msk.bf16.mxu0 %vm20075_vm1, %v17024_v60  ;;  %v17054_v16 = vpack.c.bf16 %v19290_v10, %v19289_v43  ;;  %v17030_v60 = vpack.c.bf16 %v19365_v15, %v19364_v46  ;;  %v19881_v38 = vpack.i.bf16 %v8949_v31, %v8948_v1  ;;  %v19375_v10 = vunpack.i.h.bf16 %v24571_v35  ;;  %v8932_v46 = vld [vmem:[%s20071_s16 + $0xc8] sm:$0xff] }
 0x386   : > { %v5212_v14 = vpop.f32.mrb[64].mxu0  ;;  %19867 = vrot.lane.b32.xlu1 %v19866_v2, %s19985_s29  ;;  %v19374_v43 = vunpack.i.l.bf16 %v24571_v35 }
 0x387   : > { %19862 = vrot.lane.b32.xlu0 %v19861_v32, %s19985_s29  ;;  %v5214_v54 = vpop.f32.mrb[65].mxu0  ;;  %v5213_v37 = vadd.f32 %v5212_v14, %v27649_v13  ;;  %v8933_v14 = vld [vmem:[%s20071_s16 + $0xd8] sm:$0xff] }
 0x388   : > { %v5215_v2 = vadd.f32 %v5214_v54, %v27649_v13  ;;  %v24952_v45 = vpop.permute.xlu0 %19552  ;;  %v19309_v54 = vunpack.i.l.bf16 %v24412_v61  ;;  %v19891_v31 = vpack.i.bf16 %v8933_v14, %v8932_v46  ;;  %v19906_v46 = vpack.i.bf16 %v8983_v42, %v8982_v44 }
 0x38a   : > { %v5218_v32 = vpop.f32.mrb[66].mxu0  ;;  %19877 = vrot.lane.b32.xlu1 %v19876_v18, %s19985_s29  ;;  %v19310_v18 = vunpack.i.h.bf16 %v24412_v61  ;;  %v5325_v1 = vmax.f32 %v5215_v2, 0.0 }
 0x38b   : > { %v5219_v41 = vadd.f32 %v5218_v32, %v27672_v59  ;;  %19872 = vrot.lane.b32.xlu0 %v19871_v58, %s19985_s29  ;;  %v5220_v56 = vpop.f32.mrb[67].mxu0  ;;  %v5324_v58 = vmax.f32 %v5213_v37, 0.0  ;;  %v17033_v32 = vpack.c.bf16 %v19375_v10, %v19374_v43  ;;  %v24996_v10 = vpop.permute.xlu1 %19517 }
 0x38c   : > { %v5221_v15 = vadd.f32 %v5220_v56, %v27672_v59  ;;  %17005 = vmatpush3.bf16.xpose.msk.msra.mxu1 %vm20075_vm1, %v17003_v30  ;;  %17029 = vmatpush3.bf16.xpose.msk.msra.mxu0 %vm20075_vm1, %v17027_v36  ;;  %v24987_v2 = vpop.permute.xlu0 %19562  ;;  %v8966_v56 = vld [vmem:[%s20071_s16 + $0x2e8] sm:$0xff]  ;;  %v17060_v29 = vpack.c.bf16 %v19310_v18, %v19309_v54 }
 0x38d   : > { %v5328_v35 = vmax.f32 %v5219_v41, 0.0  ;;  %17056 = vmatprep.subr.msk.bf16.mxu1 %vm20075_vm1, %v17054_v16  ;;  %17032 = vmatprep.subr.msk.bf16.mxu0 %vm20075_vm1, %v17030_v60  ;;  %v8950_v16 = vld [vmem:[%s20071_s16 + $0x1e8] sm:$0xff]  ;;  %v17057_v60 = vpack.c.bf16 %v19300_v34, %v19299_v33  ;;  %v8951_v41 = vld [vmem:[%s20071_s16 + $0x1f8] sm:$0xff] }
 0x38e   : > { %v5329_v61 = vmax.f32 %v5221_v15, 0.0  ;;  %v5224_v30 = vpop.f32.mrb[68].mxu0  ;;  %19887 = vrot.lane.b32.xlu1 %v19886_v9, %s19985_s29  ;;  %v8967_v15 = vld [vmem:[%s20071_s16 + $0x2f8] sm:$0xff]  ;;  %v27962_v34 = vld [vmem:[#allocation41_spill] sm:$0xff]  ;;  %v19901_v18 = vpack.i.bf16 %v8951_v41, %v8950_v16 }
 0x38f   : > { %v24979_v37 = vpack.c.bf16 %v5328_v35, %v5324_v58  ;;  %19882 = vrot.lane.b32.xlu0 %v19881_v38, %s19985_s29  ;;  %v5226_v36 = vpop.f32.mrb[69].mxu0  ;;  %v5225_v9 = vadd.f32 %v5224_v30, %v27675_v25  ;;  %v17036_v58 = vpack.c.bf16 %v19385_v12, %v19384_v53  ;;  %v19320_v33 = vunpack.i.h.bf16 %v27962_v34  ;;  %v8935_v30 = vld [vmem:[%s20071_s16 + $0xf8] sm:$0xff] }
 0x390   : > { %v24985_v52 = vpack.c.bf16 %v5329_v61, %v5325_v1  ;;  %v5227_v38 = vadd.f32 %v5226_v36, %v27675_v25  ;;  %v19916_v54 = vpack.i.bf16 %v8967_v15, %v8966_v56  ;;  %v19319_v12 = vunpack.i.l.bf16 %v27962_v34  ;;  %v8934_v61 = vld [vmem:[%s20071_s16 + $0xe8] sm:$0xff]  ;;  %v27963_v36 = vld [vmem:[#allocation50_spill] sm:$0xff] }
 0x391   : > { %v19394_v53 = vunpack.i.l.bf16 %v24603_v28  ;;  %v19329_v44 = vunpack.i.l.bf16 %v27963_v36  ;;  %v5332_v42 = vmax.f32 %v5225_v9, 0.0 }
 0x392   : > { %v5230_v35 = vpop.f32.mrb[70].mxu0  ;;  %19897 = vrot.lane.b32.xlu1 %v19896_v24, %s19985_s29  ;;  %v19395_v24 = vunpack.i.h.bf16 %v24603_v28  ;;  %v19405_v28 = vunpack.i.h.bf16 %v24623_v3  ;;  %v5333_v41 = vmax.f32 %v5227_v38, 0.0  ;;  %v17063_v9 = vpack.c.bf16 %v19320_v33, %v19319_v12 }
 0x393   : > { %v5231_v43 = vadd.f32 %v5230_v35, %v27676_v11  ;;  %19892 = vrot.lane.b32.xlu0 %v19891_v31, %s19985_s29  ;;  %v5232_v14 = vpop.f32.mrb[71].mxu0  ;;  %15527 = vmatmul.mubr.msk.f32.vlgmr.msra.gmra.mrb[88].mxu1 %vm317_vm0, %v24656_v39  ;;  %v19330_v31 = vunpack.i.h.bf16 %v27963_v36  ;;  %v19339_v33 = vunpack.i.l.bf16 %v24468_v27  ;;  %v19425_v12 = vunpack.i.h.bf16 %v24668_v23 }
 0x394   : > { %v5233_v1 = vadd.f32 %v5232_v14, %v27676_v11  ;;  %17035 = vmatpush3.bf16.xpose.msk.msra.mxu0 %vm20075_vm1, %v17033_v32  ;;  %17059 = vmatpush3.bf16.xpose.msk.msra.mxu1 %vm20075_vm1, %v17057_v60  ;;  %v19404_v32 = vunpack.i.l.bf16 %v24623_v3  ;;  %v25020_v60 = vpop.permute.xlu0 %19572  ;;  %v17039_v35 = vpack.c.bf16 %v19395_v24, %v19394_v53  ;;  %v19414_v14 = vunpack.i.l.bf16 %v24641_v50 }
 0x395   : > { %v5336_v16 = vmax.f32 %v5231_v43, 0.0  ;;  %15528 = vmatprep.mubr.msk.f32.mxu1 %vm317_vm0, %v24499_v7  ;;  %17062 = vmatprep.subr.msk.bf16.mxu1 %vm20075_vm1, %v17060_v29  ;;  %v19911_v29 = vpack.i.bf16 %v8935_v30, %v8934_v61  ;;  %v17066_v38 = vpack.c.bf16 %v19330_v31, %v19329_v44  ;;  %v19415_v43 = vunpack.i.h.bf16 %v24641_v50 }
 0x396   : > { %v5337_v56 = vmax.f32 %v5233_v1, 0.0  ;;  %19907 = vrot.lane.b32.xlu1 %v19906_v46, %s19985_s29  ;;  %17038 = vmatprep.subr.msk.bf16.mxu0 %vm20075_vm1, %v17036_v58  ;;  %v25034_v46 = vpop.permute.xlu1 %19527  ;;  %v17042_v34 = vpack.c.bf16 %v19405_v28, %v19404_v32  ;;  %v19340_v58 = vunpack.i.h.bf16 %v24468_v27  ;;  %v19349_v27 = vunpack.i.l.bf16 %v24490_v40  ;;  %v9520_v1 = vld [vmem:[%s27488_s4 + $0x10] sm:$0xff] }
 0x397   : > { %v25025_v15 = vpack.c.bf16 %v5336_v16, %v5332_v42  ;;  %19902 = vrot.lane.b32.xlu0 %v19901_v18, %s19985_s29  ;;  %15529 = vmatmul.mubr.msk.f32.gmra.mrb[90].mxu1 %vm317_vm0, %v24499_v7  ;;  %v9519_v7 = vld [vmem:[%s27488_s4 + $0x8] sm:$0xff]  ;;  %v19424_v50 = vunpack.i.l.bf16 %v24668_v23  ;;  %v17045_v53 = vpack.c.bf16 %v19415_v43, %v19414_v14  ;;  %v19359_v31 = vunpack.i.l.bf16 %v24519_v22  ;;  %v27966_v16 = vld [vmem:[#allocation64_spill] sm:$0xff] }
 0x398   : > { %v25030_v3 = vpack.c.bf16 %v5337_v56, %v5333_v41  ;;  %15530 = vmatprep.mubr.msk.f32.mxu1 %vm317_vm0, %v24526_v19  ;;  %v25047_v18 = vpop.permute.xlu0 %19582  ;;  %v17069_v23 = vpack.c.bf16 %v19340_v58, %v19339_v33  ;;  %v19435_v44 = vunpack.i.h.bf16 %v24694_v47  ;;  %v19434_v42 = vunpack.i.l.bf16 %v24694_v47  ;;  %v27967_v43 = vld [vmem:[#allocation45_spill] sm:$0xff] }
 0x399   : > { %27964 = vst [vmem:[#allocation62_spill] sm:$0xff] %v25025_v15  ;;  %v17048_v30 = vpack.c.bf16 %v19425_v12, %v19424_v50  ;;  %v19370_v28 = vunpack.i.h.bf16 %v27966_v16  ;;  %v19369_v32 = vunpack.i.l.bf16 %v27966_v16  ;;  %v19445_v41 = vunpack.i.h.bf16 %v24716_v48  ;;  %v27968_v50 = vld [vmem:[#allocation27_spill] sm:$0xff] }
 0x39a   : > { %27965 = vst [vmem:[#allocation63_spill] sm:$0xff] %v25030_v3  ;;  %19917 = vrot.lane.b32.xlu1 %v19916_v54, %s19985_s29  ;;  %v19350_v54 = vunpack.i.h.bf16 %v24490_v40  ;;  %v25066_v24 = vpop.permute.xlu1 %19537  ;;  %v9521_v40 = vld [vmem:[%s27488_s4 + $0x18] sm:$0xff]  ;;  %v19444_v56 = vunpack.i.l.bf16 %v24716_v48  ;;  %v19380_v14 = vunpack.i.h.bf16 %v27967_v43  ;;  %v19379_v12 = vunpack.i.l.bf16 %v27967_v43 }
 0x39b   : > { %19912 = vrot.lane.b32.xlu0 %v19911_v29, %s19985_s29  ;;  %15531 = vmatmul.mubr.msk.f32.gmra.mrb[92].mxu1 %vm317_vm0, %v24526_v19  ;;  %v9518_v19 = vld [vmem:[%s27488_s4] sm:$0xff]  ;;  %s214_s29 = sand.u32 1, %s19968_s18  }
 0x39c   : > { %17041 = vmatpush3.bf16.xpose.msk.msra.mxu0 %vm20075_vm1, %v17039_v35  ;;  %17065 = vmatpush3.bf16.xpose.msk.msra.mxu1 %vm20075_vm1, %v17063_v9  ;;  %v17072_v61 = vpack.c.bf16 %v19350_v54, %v19349_v27  ;;  %v25078_v36 = vpop.permute.xlu0 %19592  ;;  %v17051_v35 = vpack.c.bf16 %v19435_v44, %v19434_v42  ;;  %v27970_v44 = vld [vmem:[#allocation72_spill] sm:$0xff]  ;;  %s13283_s6 = sshll.u32 %s214_s29, 7 }
 0x39d   : > { %15532 = vmatprep.mubr.msk.f32.mxu1 %vm317_vm0, %v24555_v57  ;;  %17068 = vmatprep.subr.msk.bf16.mxu1 %vm20075_vm1, %v17066_v38  ;;  %v19465_v42 = vunpack.i.h.bf16 %v27970_v44  ;;  %v19464_v16 = vunpack.i.l.bf16 %v27970_v44  ;;  %s27395_s18 = scalar_lea.vmem [#allocation3], %s13283_s6 }
 0x39e   : > { %9529 = vperm.xlu1 %17680, %v9519_v7   ;;  %17044 = vmatprep.subr.msk.bf16.mxu0 %vm20075_vm1, %v17042_v34  ;;  %v25092_v29 = vpop.permute.xlu1 %19547  ;;  %v17078_v34 = vpack.c.bf16 %v19370_v28, %v19369_v32  ;;  %v17102_v7 = vpack.c.bf16 %v19445_v41, %v19444_v56 }
 0x39f   : > { %9524 = vperm.xlu0 %17679, %v9518_v19   ;;  %15533 = vmatmul.mubr.msk.f32.gmra.mrb[94].mxu1 %vm317_vm0, %v24555_v57  ;;  %v19360_v57 = vunpack.i.h.bf16 %v24519_v22  ;;  %v17108_v43 = vpack.c.bf16 %v19465_v42, %v19464_v16  ;;  %v25151_v16 = vld [vmem:[%s27485_s1 + $0x8] sm:$0xff] }
 0x3a0   : > { %15606 = vmatprep.mubr.msk.f32.mxu1 %vm317_vm0, %v24656_v39  ;;  %v25098_v38 = vpop.permute.xlu0 %19602 }
 0x3a1   : > { %v17075_v9 = vpack.c.bf16 %v19360_v57, %v19359_v31 }
 0x3a2   : > { %9539 = vperm.xlu1 %17680, %v9521_v40   ;;  %v25103_v19 = vpop.permute.xlu1 %19557  ;;  %v19455_v40 = vunpack.i.h.bf16 %v27968_v50 }
 0x3a3   : > { %9534 = vperm.xlu0 %17679, %v9520_v1   ;;  %v27969_v1 = vld [vmem:[#allocation69_spill] sm:$0xff] }
 0x3a4   : > { %17047 = vmatpush3.bf16.xpose.msk.msra.mxu0 %vm20075_vm1, %v17045_v53  ;;  %17071 = vmatpush3.bf16.xpose.msk.msra.mxu1 %vm20075_vm1, %v17069_v23  ;;  %v19454_v23 = vunpack.i.l.bf16 %v27968_v50  ;;  %v25122_v28 = vpop.permute.xlu0 %19612  ;;  %v27973_v50 = vld [vmem:[#allocation82_spill] sm:$0xff] }
 0x3a5   : > { %17074 = vmatprep.subr.msk.bf16.mxu1 %vm20075_vm1, %v17072_v61  ;;  %17050 = vmatprep.subr.msk.bf16.mxu0 %vm20075_vm1, %v17048_v30  ;;  %v19390_v61 = vunpack.i.h.bf16 %v27969_v1  ;;  %v19389_v30 = vunpack.i.l.bf16 %v27969_v1 }
 0x3a6   : > { %v5301_v22 = vpop.f32.mrb[64].mxu1 }
 0x3a7   : > { %v5303_v47 = vpop.f32.mrb[65].mxu1  ;;  %v5302_v58 = vadd.f32 %v5301_v22, %v27649_v13 }
 0x3a8   : > { %v5304_v48 = vadd.f32 %v5303_v47, %v27649_v13 }
 0x3a9   : > { %v5326_v57 = vmax.f32 %v5302_v58, 0.0 }
 0x3aa   : > { %v5307_v33 = vpop.f32.mrb[66].mxu1  ;;  %v5327_v32 = vmax.f32 %v5304_v48, 0.0  ;;  %v19400_v48 = vunpack.i.h.bf16 %v27973_v50 }
 0x3ab   : > { %v5308_v54 = vadd.f32 %v5307_v33, %v27672_v59  ;;  %v5309_v27 = vpop.f32.mrb[67].mxu1  ;;  %v25128_v33 = vpop.permute.xlu1 %19567 }
 0x3ac   : > { %v5310_v53 = vadd.f32 %v5309_v27, %v27672_v59  ;;  %17053 = vmatpush3.bf16.xpose.msk.msra.mxu0 %vm20075_vm1, %v17051_v35  ;;  %17077 = vmatpush3.bf16.xpose.msk.msra.mxu1 %vm20075_vm1, %v17075_v9  ;;  %v17081_v9 = vpack.c.bf16 %v19380_v14, %v19379_v12  ;;  %v17105_v35 = vpack.c.bf16 %v19455_v40, %v19454_v23  ;;  %v19399_v14 = vunpack.i.l.bf16 %v27973_v50  ;;  %v27974_v12 = vld [vmem:[#allocation53_spill] sm:$0xff] }
 0x3ad   : > { %v5330_v31 = vmax.f32 %v5308_v54, 0.0  ;;  %17080 = vmatprep.subr.msk.bf16.mxu1 %vm20075_vm1, %v17078_v34  ;;  %17104 = vmatprep.subr.msk.bf16.mxu0 %vm20075_vm1, %v17102_v7  ;;  %v17084_v34 = vpack.c.bf16 %v19390_v61, %v19389_v30  ;;  %v19475_v40 = vunpack.i.h.bf16 %v27974_v12  ;;  %v19474_v23 = vunpack.i.l.bf16 %v27974_v12  ;;  %v25139_v61 = vpop.permute.xlu0 %19622  ;;  %v27979_v12 = vld [vmem:[#allocation76_spill] sm:$0xff] }
 0x3ae   : > { %v5331_v41 = vmax.f32 %v5310_v53, 0.0  ;;  %v5313_v56 = vpop.f32.mrb[68].mxu1 }
 0x3af   : > { %v25124_v22 = vpack.c.bf16 %v5330_v31, %v5326_v57  ;;  %v5315_v47 = vpop.f32.mrb[69].mxu1  ;;  %v5314_v7 = vadd.f32 %v5313_v56, %v27675_v25  ;;  %v27975_v57 = vld [vmem:[#allocation25_spill] sm:$0xff]  ;;  %v17111_v50 = vpack.c.bf16 %v19475_v40, %v19474_v23  ;;  %v19495_v40 = vunpack.i.h.bf16 %v24819_v63 }
 0x3b0   : > { %v25126_v58 = vpack.c.bf16 %v5331_v41, %v5327_v32  ;;  %v5316_v54 = vadd.f32 %v5315_v47, %v27675_v25  ;;  %v19410_v31 = vunpack.i.h.bf16 %v27975_v57  ;;  %v27976_v32 = vld [vmem:[#allocation84_spill] sm:$0xff]  ;;  %v19494_v23 = vunpack.i.l.bf16 %v24819_v63  ;;  %v25197_v63 = vld [vmem:[%s27485_s1 + $0x18] sm:$0xff] }
 0x3b1   : > { %27971 = vst [vmem:[#allocation60_spill] sm:$0xff] %v25124_v22  ;;  %v5334_v44 = vmax.f32 %v5314_v7, 0.0  ;;  %v19485_v41 = vunpack.i.h.bf16 %v27976_v32  ;;  %v19484_v56 = vunpack.i.l.bf16 %v27976_v32 }
 0x3b2   : > { %27972 = vst [vmem:[#allocation83_spill] sm:$0xff] %v25126_v58  ;;  %v5319_v27 = vpop.f32.mrb[70].mxu1  ;;  %v5335_v47 = vmax.f32 %v5316_v54, 0.0  ;;  %v17117_v32 = vpack.c.bf16 %v19495_v40, %v19494_v23  ;;  %v19459_v58 = vunpack.i.l.bf16 %v24809_v17 }
 0x3b3   : > { %v5320_v53 = vadd.f32 %v5319_v27, %v27676_v11  ;;  %v5321_v1 = vpop.f32.mrb[71].mxu1  ;;  %15567 = vmatmul.mubr.msk.f32.vlgmr.msra.gmra.mrb[96].mxu0 %vm317_vm0, %v24656_v39  ;;  %v19409_v39 = vunpack.i.l.bf16 %v27975_v57  ;;  %v17087_v27 = vpack.c.bf16 %v19400_v48, %v19399_v14  ;;  %v17114_v54 = vpack.c.bf16 %v19485_v41, %v19484_v56  ;;  %v25212_v56 = vld [vmem:[%s27485_s1] sm:$0xff] }
 0x3b4   : > { %v5322_v30 = vadd.f32 %v5321_v1, %v27676_v11  ;;  %17083 = vmatpush3.bf16.xpose.msk.msra.mxu1 %vm20075_vm1, %v17081_v9  ;;  %17107 = vmatpush3.bf16.xpose.msk.msra.mxu0 %vm20075_vm1, %v17105_v35  ;;  %v25161_v35 = vpop.permute.xlu1 %19577  ;;  %v25176_v1 = vpop.permute.xlu0 %19632  ;;  %v19420_v48 = vunpack.i.h.bf16 %v27979_v12  ;;  %v19419_v14 = vunpack.i.l.bf16 %v27979_v12  ;;  %v19515_v12 = vunpack.i.h.bf16 %v24866_v21 }
 0x3b5   : > { %v5338_v42 = vmax.f32 %v5320_v53, 0.0  ;;  %15568 = vmatprep.mubr.msk.f32.mxu0 %vm317_vm0, %v25151_v16  ;;  %17086 = vmatprep.subr.msk.bf16.mxu1 %vm20075_vm1, %v17084_v34  ;;  %v25172_v34 = vld [vmem:[%s27485_s1 + $0x10] sm:$0xff] }
 0x3b6   : > { %v5339_v9 = vmax.f32 %v5322_v30, 0.0  ;;  %17110 = vmatprep.subr.msk.bf16.mxu0 %vm20075_vm1, %v17108_v43  ;;  %v17090_v43 = vpack.c.bf16 %v19410_v31, %v19409_v39  ;;  %v27980_v30 = vld [vmem:[#allocation44_spill] sm:$0xff]  ;;  %v19505_v39 = vunpack.i.h.bf16 %v24840_v5 }
 0x3b7   : > { %v25163_v7 = vpack.c.bf16 %v5338_v42, %v5334_v44  ;;  %15569 = vmatmul.mubr.msk.f32.gmra.mrb[98].mxu0 %vm317_vm0, %v25151_v16  ;;  %v19430_v57 = vunpack.i.h.bf16 %v27980_v30  ;;  %v19429_v31 = vunpack.i.l.bf16 %v27980_v30  ;;  %v19504_v44 = vunpack.i.l.bf16 %v24840_v5 }
 0x3b8   : > { %v25167_v53 = vpack.c.bf16 %v5339_v9, %v5335_v47  ;;  %15570 = vmatprep.mubr.msk.f32.mxu0 %vm317_vm0, %v25172_v34  ;;  %v25192_v42 = vpop.permute.xlu1 %19587  ;;  %v17093_v5 = vpack.c.bf16 %v19420_v48, %v19419_v14  ;;  %v25207_v41 = vpop.permute.xlu0 %19642  ;;  %v19514_v48 = vunpack.i.l.bf16 %v24866_v21  ;;  %v27982_v14 = vld [vmem:[#allocation57_spill] sm:$0xff]  ;;  %v19525_v30 = vunpack.i.h.bf16 %v24888_v20 }
 0x3b9   : > { %27977 = vst [vmem:[#allocation93_spill] sm:$0xff] %v25163_v7  ;;  %v17096_v47 = vpack.c.bf16 %v19430_v57, %v19429_v31  ;;  %v17120_v9 = vpack.c.bf16 %v19505_v39, %v19504_v44  ;;  %v19450_v40 = vunpack.i.h.bf16 %v27982_v14  ;;  %v19449_v23 = vunpack.i.l.bf16 %v27982_v14 }
 0x3ba   : > { %27978 = vst [vmem:[#allocation94_spill] sm:$0xff] %v25167_v53  ;;  %v19524_v57 = vunpack.i.l.bf16 %v24888_v20 }
 0x3bb   : > { %15571 = vmatmul.mubr.msk.f32.gmra.mrb[100].mxu0 %vm317_vm0, %v25172_v34 }
 0x3bc   : > { %17089 = vmatpush3.bf16.xpose.msk.msra.mxu1 %vm20075_vm1, %v17087_v27  ;;  %17113 = vmatpush3.bf16.xpose.msk.msra.mxu0 %vm20075_vm1, %v17111_v50  ;;  %v25216_v27 = vpop.permute.xlu1 %19597  ;;  %v27981_v50 = vld [vmem:[#allocation71_spill] sm:$0xff]  ;;  %v25234_v21 = vpop.permute.xlu0 %19652 }
 0x3bd   : > { %15572 = vmatprep.mubr.msk.f32.mxu0 %vm317_vm0, %v25197_v63  ;;  %17092 = vmatprep.subr.msk.bf16.mxu1 %vm20075_vm1, %v17090_v43  ;;  %v19440_v43 = vunpack.i.h.bf16 %v27981_v50 }
 0x3be   : > { %17116 = vmatprep.subr.msk.bf16.mxu0 %vm20075_vm1, %v17114_v54  ;;  %v19439_v54 = vunpack.i.l.bf16 %v27981_v50  ;;  %v17126_v50 = vpack.c.bf16 %v19525_v30, %v19524_v57 }
 0x3bf   : > { %15573 = vmatmul.mubr.msk.f32.gmra.mrb[102].mxu0 %vm317_vm0, %v25197_v63 }
 0x3c0   : > { %15646 = vmatprep.mubr.msk.f32.mxu0 %vm317_vm0, %v25212_v56  ;;  %v17099_v44 = vpack.c.bf16 %v19440_v43, %v19439_v54  ;;  %v25236_v7 = vpop.permute.xlu1 %19607  ;;  %v19534_v43 = vunpack.i.l.bf16 %v24908_v62  ;;  %v25245_v54 = vpop.permute.xlu0 %19662  ;;  %v19545_v62 = vunpack.i.h.bf16 %v24928_v8 }
 0x3c4   : > { %17095 = vmatpush3.bf16.xpose.msk.msra.mxu1 %vm20075_vm1, %v17093_v5  ;;  %17119 = vmatpush3.bf16.xpose.msk.msra.mxu0 %vm20075_vm1, %v17117_v32  ;;  %v17123_v5 = vpack.c.bf16 %v19515_v12, %v19514_v48  ;;  %v17150_v32 = vpack.c.bf16 %v19450_v40, %v19449_v23  ;;  %v19470_v48 = vunpack.i.h.bf16 %v24846_v49  ;;  %v19544_v23 = vunpack.i.l.bf16 %v24928_v8  ;;  %v25267_v15 = vpop.permute.xlu0 %19672 }
 0x3c5   : > { %17098 = vmatprep.subr.msk.bf16.mxu1 %vm20075_vm1, %v17096_v47  ;;  %17122 = vmatprep.subr.msk.bf16.mxu0 %vm20075_vm1, %v17120_v9  ;;  %v19460_v47 = vunpack.i.h.bf16 %v24809_v17 }
 0x3c6   : > { %v5806_v31 = vpop.f32.mrb[72].mxu0 }
 0x3c7   : > { %v5808_v39 = vpop.f32.mrb[73].mxu0  ;;  %v5807_v14 = vadd.f32 %v5806_v31, %v27649_v13 }
 0x3c8   : > { %v5809_v20 = vadd.f32 %v5808_v39, %v27649_v13  ;;  %v25260_v39 = vpop.permute.xlu1 %19617 }
 0x3c9   : > { %v5918_v40 = vmax.f32 %v5807_v14, 0.0 }
 0x3ca   : > { %v5812_v53 = vpop.f32.mrb[74].mxu0  ;;  %v5919_v30 = vmax.f32 %v5809_v20, 0.0 }
 0x3cb   : > { %v5813_v22 = vadd.f32 %v5812_v53, %v27672_v59  ;;  %v5814_v9 = vpop.f32.mrb[75].mxu0  ;;  %v19469_v53 = vunpack.i.l.bf16 %v24846_v49 }
 0x3cc   : > { %v5815_v12 = vadd.f32 %v5814_v9, %v27672_v59  ;;  %17101 = vmatpush3.bf16.xpose.msk.msra.mxu1 %vm20075_vm1, %v17099_v44  ;;  %17125 = vmatpush3.bf16.xpose.msk.msra.mxu0 %vm20075_vm1, %v17123_v5  ;;  %v17153_v5 = vpack.c.bf16 %v19460_v47, %v19459_v58  ;;  %v19555_v58 = vunpack.i.h.bf16 %v24952_v45  ;;  %v19554_v47 = vunpack.i.l.bf16 %v24952_v45 }
 0x3cd   : > { %v5922_v17 = vmax.f32 %v5813_v22, 0.0  ;;  %17152 = vmatprep.subr.msk.bf16.mxu1 %vm20075_vm1, %v17150_v32  ;;  %17128 = vmatprep.subr.msk.bf16.mxu0 %vm20075_vm1, %v17126_v50  ;;  %v17129_v22 = vpack.c.bf16 %v19535_v26, %v19534_v43  ;;  %v17156_v32 = vpack.c.bf16 %v19470_v48, %v19469_v53  ;;  %v17132_v50 = vpack.c.bf16 %v19545_v62, %v19544_v23 }
 0x3ce   : > { %v5923_v57 = vmax.f32 %v5815_v12, 0.0  ;;  %v5818_v31 = vpop.f32.mrb[76].mxu0  ;;  %v19480_v12 = vunpack.i.h.bf16 %v24873_v55  ;;  %v19479_v26 = vunpack.i.l.bf16 %v24873_v55  ;;  %v19490_v48 = vunpack.i.h.bf16 %v24914_v4 }
 0x3cf   : > { %v25262_v44 = vpack.c.bf16 %v5922_v17, %v5918_v40  ;;  %v5820_v49 = vpop.f32.mrb[77].mxu0  ;;  %v5819_v9 = vadd.f32 %v5818_v31, %v27675_v25  ;;  %v19489_v53 = vunpack.i.l.bf16 %v24914_v4  ;;  %v25284_v17 = vpop.permute.xlu1 %19627  ;;  %v19565_v45 = vunpack.i.h.bf16 %v24987_v2 }
 0x3d0   : > { %v25264_v14 = vpack.c.bf16 %v5923_v57, %v5919_v30  ;;  %v5821_v8 = vadd.f32 %v5820_v49, %v27675_v25  ;;  %v19564_v23 = vunpack.i.l.bf16 %v24987_v2  ;;  %v17135_v31 = vpack.c.bf16 %v19555_v58, %v19554_v47  ;;  %v25298_v49 = vpop.permute.xlu0 %19682 }
 0x3d1   : > { %v5926_v62 = vmax.f32 %v5819_v9, 0.0  ;;  %v17162_v2 = vpack.c.bf16 %v19490_v48, %v19489_v53  ;;  %v19500_v9 = vunpack.i.h.bf16 %v24941_v51  ;;  %v19584_v58 = vunpack.i.l.bf16 %v25047_v18 }
 0x3d2   : > { %v5824_v20 = vpop.f32.mrb[78].mxu0  ;;  %v5927_v30 = vmax.f32 %v5821_v8, 0.0  ;;  %v19575_v8 = vunpack.i.h.bf16 %v25020_v60  ;;  %v19520_v48 = vunpack.i.h.bf16 %v24996_v10  ;;  %v19519_v53 = vunpack.i.l.bf16 %v24996_v10 }
 0x3d3   : > { %v5825_v3 = vadd.f32 %v5824_v20, %v27676_v11  ;;  %v5826_v40 = vpop.f32.mrb[79].mxu0  ;;  %15607 = vmatmul.mubr.msk.f32.vlgmr.msra.gmra.mrb[96].mxu1 %vm317_vm0, %v25212_v56  ;;  %v19574_v20 = vunpack.i.l.bf16 %v25020_v60  ;;  %v19604_v10 = vunpack.i.l.bf16 %v25098_v38 }
 0x3d4   : > { %v5827_v43 = vadd.f32 %v5826_v40, %v27676_v11  ;;  %17131 = vmatpush3.bf16.xpose.msk.msra.mxu0 %vm20075_vm1, %v17129_v22  ;;  %17155 = vmatpush3.bf16.xpose.msk.msra.mxu1 %vm20075_vm1, %v17153_v5  ;;  %v17138_v22 = vpack.c.bf16 %v19565_v45, %v19564_v23  ;;  %v19509_v40 = vunpack.i.l.bf16 %v24970_v0  ;;  %v19530_v23 = vunpack.i.h.bf16 %v25034_v46 }
 0x3d5   : > { %v5930_v55 = vmax.f32 %v5825_v3, 0.0  ;;  %15608 = vmatprep.mubr.msk.f32.mxu1 %vm317_vm0, %v25151_v16  ;;  %17158 = vmatprep.subr.msk.bf16.mxu1 %vm20075_vm1, %v17156_v32  ;;  %v17159_v3 = vpack.c.bf16 %v19480_v12, %v19479_v26  ;;  %v25304_v32 = vpop.permute.xlu1 %19637  ;;  %v19510_v12 = vunpack.i.h.bf16 %v24970_v0  ;;  %v19585_v26 = vunpack.i.h.bf16 %v25047_v18 }
 0x3d6   : > { %v5931_v57 = vmax.f32 %v5827_v43, 0.0  ;;  %17134 = vmatprep.subr.msk.bf16.mxu0 %vm20075_vm1, %v17132_v50  ;;  %v19499_v50 = vunpack.i.l.bf16 %v24941_v51  ;;  %v25324_v51 = vpop.permute.xlu0 %19692  ;;  %v17141_v0 = vpack.c.bf16 %v19575_v8, %v19574_v20 }
 0x3d7   : > { %v25294_v4 = vpack.c.bf16 %v5930_v55, %v5926_v62  ;;  %15609 = vmatmul.mubr.msk.f32.gmra.mrb[98].mxu1 %vm317_vm0, %v25151_v16  ;;  %v17168_v18 = vpack.c.bf16 %v19510_v12, %v19509_v40  ;;  %v17144_v47 = vpack.c.bf16 %v19585_v26, %v19584_v58  ;;  %v19595_v62 = vunpack.i.h.bf16 %v25078_v36 }
 0x3d8   : > { %v25300_v5 = vpack.c.bf16 %v5931_v57, %v5927_v30  ;;  %15610 = vmatprep.mubr.msk.f32.mxu1 %vm317_vm0, %v25172_v34  ;;  %v17165_v60 = vpack.c.bf16 %v19500_v9, %v19499_v50  ;;  %v19594_v55 = vunpack.i.l.bf16 %v25078_v36  ;;  %v19529_v30 = vunpack.i.l.bf16 %v25034_v46 }
 0x3d9   : > { %v25332_v43 = vpop.permute.xlu1 %19647  ;;  %v19605_v57 = vunpack.i.h.bf16 %v25098_v38  ;;  %v19540_v12 = vunpack.i.h.bf16 %v25066_v24  ;;  %v19539_v58 = vunpack.i.l.bf16 %v25066_v24 }
 0x3da   : > { %v25338_v45 = vpop.permute.xlu0 %19702  ;;  %v17174_v9 = vpack.c.bf16 %v19530_v23, %v19529_v30 }
 0x3db   : > { %15611 = vmatmul.mubr.msk.f32.gmra.mrb[100].mxu1 %vm317_vm0, %v25172_v34  ;;  %v17198_v50 = vpack.c.bf16 %v19605_v57, %v19604_v10 }
 0x3dc   : > { %17137 = vmatpush3.bf16.xpose.msk.msra.mxu0 %vm20075_vm1, %v17135_v31  ;;  %17161 = vmatpush3.bf16.xpose.msk.msra.mxu1 %vm20075_vm1, %v17159_v3 }
 0x3dd   : > { %15612 = vmatprep.mubr.msk.f32.mxu1 %vm317_vm0, %v25197_v63  ;;  %17164 = vmatprep.subr.msk.bf16.mxu1 %vm20075_vm1, %v17162_v2  ;;  %v25352_v3 = vpop.permute.xlu1 %19657  ;;  %v17171_v2 = vpack.c.bf16 %v19520_v48, %v19519_v53  ;;  %v19549_v48 = vunpack.i.l.bf16 %v25092_v29 }
 0x3de   : > { %17140 = vmatprep.subr.msk.bf16.mxu0 %vm20075_vm1, %v17138_v22  ;;  %v17147_v22 = vpack.c.bf16 %v19595_v62, %v19594_v55  ;;  %v25355_v8 = vpop.permute.xlu0 %19712  ;;  %v19624_v55 = vunpack.i.l.bf16 %v25139_v61 }
 0x3df   : > { %15613 = vmatmul.mubr.msk.f32.gmra.mrb[102].mxu1 %vm317_vm0, %v25197_v63 }
 0x3e0   : > { %15686 = vmatprep.mubr.msk.f32.mxu1 %vm317_vm0, %v25212_v56 }
 0x3e1   : > { %v25370_v53 = vpop.permute.xlu1 %19667 }
 0x3e4   : > { %17143 = vmatpush3.bf16.xpose.msk.msra.mxu0 %vm20075_vm1, %v17141_v0  ;;  %17167 = vmatpush3.bf16.xpose.msk.msra.mxu1 %vm20075_vm1, %v17165_v60  ;;  %v19615_v60 = vunpack.i.h.bf16 %v25122_v28  ;;  %v19614_v0 = vunpack.i.l.bf16 %v25122_v28  ;;  %v19625_v28 = vunpack.i.h.bf16 %v25139_v61  ;;  %v19560_v61 = vunpack.i.h.bf16 %v25103_v19 }
 0x3e5   : > { %17170 = vmatprep.subr.msk.bf16.mxu1 %vm20075_vm1, %v17168_v18  ;;  %17146 = vmatprep.subr.msk.bf16.mxu0 %vm20075_vm1, %v17144_v47  ;;  %v19550_v47 = vunpack.i.h.bf16 %v25092_v29 }
 0x3e6   : > { %v5895_v36 = vpop.f32.mrb[72].mxu1 }
 0x3e7   : > { %v5897_v31 = vpop.f32.mrb[73].mxu1  ;;  %v5896_v46 = vadd.f32 %v5895_v36, %v27649_v13  ;;  %v17177_v36 = vpack.c.bf16 %v19540_v12, %v19539_v58  ;;  %v19559_v12 = vunpack.i.l.bf16 %v25103_v19  ;;  %v19635_v58 = vunpack.i.h.bf16 %v25176_v1 }
 0x3e8   : > { %v5898_v38 = vadd.f32 %v5897_v31, %v27649_v13  ;;  %v17201_v31 = vpack.c.bf16 %v19615_v60, %v19614_v0  ;;  %v19634_v60 = vunpack.i.l.bf16 %v25176_v1  ;;  %v19645_v19 = vunpack.i.h.bf16 %v25207_v41 }
 0x3e9   : > { %v5920_v62 = vmax.f32 %v5896_v46, 0.0  ;;  %v19644_v1 = vunpack.i.l.bf16 %v25207_v41 }
 0x3ea   : > { %v5901_v20 = vpop.f32.mrb[74].mxu1  ;;  %v5921_v23 = vmax.f32 %v5898_v38, 0.0  ;;  %v25387_v38 = vpop.permute.xlu1 %19677 }
 0x3eb   : > { %v5902_v40 = vadd.f32 %v5901_v20, %v27672_v59  ;;  %v5903_v26 = vpop.f32.mrb[75].mxu1 }
 0x3ec   : > { %v5904_v18 = vadd.f32 %v5903_v26, %v27672_v59  ;;  %17149 = vmatpush3.bf16.xpose.msk.msra.mxu0 %vm20075_vm1, %v17147_v22  ;;  %17173 = vmatpush3.bf16.xpose.msk.msra.mxu1 %vm20075_vm1, %v17171_v2  ;;  %v25380_v2 = vpop.permute.xlu0 %19722 }
 0x3ed   : > { %v5924_v24 = vmax.f32 %v5902_v40, 0.0  ;;  %17176 = vmatprep.subr.msk.bf16.mxu1 %vm20075_vm1, %v17174_v9  ;;  %17200 = vmatprep.subr.msk.bf16.mxu0 %vm20075_vm1, %v17198_v50  ;;  %v17180_v9 = vpack.c.bf16 %v19550_v47, %v19549_v48  ;;  %v17204_v50 = vpack.c.bf16 %v19625_v28, %v19624_v55  ;;  %v19570_v47 = vunpack.i.h.bf16 %v25128_v33 }
 0x3ee   : > { %v5925_v30 = vmax.f32 %v5904_v18, 0.0  ;;  %v5907_v57 = vpop.f32.mrb[76].mxu1  ;;  %v19569_v48 = vunpack.i.l.bf16 %v25128_v33 }
 0x3ef   : > { %v25378_v10 = vpack.c.bf16 %v5924_v24, %v5920_v62  ;;  %v5909_v29 = vpop.f32.mrb[77].mxu1  ;;  %v5908_v46 = vadd.f32 %v5907_v57, %v27675_v25  ;;  %v17207_v57 = vpack.c.bf16 %v19635_v58, %v19634_v60 }
 0x3f0   : > { %v25382_v22 = vpack.c.bf16 %v5925_v30, %v5921_v23  ;;  %v5910_v20 = vadd.f32 %v5909_v29, %v27675_v25  ;;  %v25408_v28 = vpop.permute.xlu0 %19732  ;;  %v17183_v30 = vpack.c.bf16 %v19560_v61, %v19559_v12  ;;  %v17186_v41 = vpack.c.bf16 %v19570_v47, %v19569_v48 }
 0x3f1   : > { %v5928_v62 = vmax.f32 %v5908_v46, 0.0  ;;  %v19579_v46 = vunpack.i.l.bf16 %v25161_v35  ;;  %v19590_v61 = vunpack.i.h.bf16 %v25192_v42  ;;  %v19599_v47 = vunpack.i.l.bf16 %v25216_v27 }
 0x3f2   : > { %v5913_v40 = vpop.f32.mrb[78].mxu1  ;;  %v5929_v55 = vmax.f32 %v5910_v20, 0.0  ;;  %v19654_v20 = vunpack.i.l.bf16 %v25234_v21  ;;  %v19675_v48 = vunpack.i.h.bf16 %v25267_v15 }
 0x3f3   : > { %v5914_v26 = vadd.f32 %v5913_v40, %v27676_v11  ;;  %v5915_v18 = vpop.f32.mrb[79].mxu1  ;;  %15647 = vmatmul.mubr.msk.f32.vlgmr.msra.gmra.mrb[104].mxu0 %vm317_vm0, %v25212_v56 }
 0x3f4   : > { %v5916_v0 = vadd.f32 %v5915_v18, %v27676_v11  ;;  %17179 = vmatpush3.bf16.xpose.msk.msra.mxu1 %vm20075_vm1, %v17177_v36  ;;  %17203 = vmatpush3.bf16.xpose.msk.msra.mxu0 %vm20075_vm1, %v17201_v31  ;;  %v25420_v36 = vpop.permute.xlu1 %19687  ;;  %v17210_v31 = vpack.c.bf16 %v19645_v19, %v19644_v1  ;;  %v25428_v40 = vpop.permute.xlu0 %19742  ;;  %v19665_v18 = vunpack.i.h.bf16 %v25245_v54  ;;  %v19609_v19 = vunpack.i.l.bf16 %v25236_v7 }
 0x3f5   : > { %v5932_v24 = vmax.f32 %v5914_v26, 0.0  ;;  %15648 = vmatprep.mubr.msk.f32.mxu0 %vm317_vm0, %v25151_v16  ;;  %17182 = vmatprep.subr.msk.bf16.mxu1 %vm20075_vm1, %v17180_v9  ;;  %v19580_v9 = vunpack.i.h.bf16 %v25161_v35  ;;  %v19589_v26 = vunpack.i.l.bf16 %v25192_v42  ;;  %v19664_v35 = vunpack.i.l.bf16 %v25245_v54 }
 0x3f6   : > { %v5933_v23 = vmax.f32 %v5916_v0, 0.0  ;;  %17206 = vmatprep.subr.msk.bf16.mxu0 %vm20075_vm1, %v17204_v50  ;;  %v19655_v50 = vunpack.i.h.bf16 %v25234_v21  ;;  %v19600_v0 = vunpack.i.h.bf16 %v25216_v27  ;;  %v19685_v1 = vunpack.i.h.bf16 %v25298_v49 }
 0x3f7   : > { %v25412_v33 = vpack.c.bf16 %v5932_v24, %v5928_v62  ;;  %15649 = vmatmul.mubr.msk.f32.gmra.mrb[106].mxu0 %vm317_vm0, %v25151_v16  ;;  %v17189_v12 = vpack.c.bf16 %v19580_v9, %v19579_v46  ;;  %v17192_v54 = vpack.c.bf16 %v19590_v61, %v19589_v26  ;;  %v17216_v58 = vpack.c.bf16 %v19665_v18, %v19664_v35 }
 0x3f8   : > { %v25416_v29 = vpack.c.bf16 %v5933_v23, %v5929_v55  ;;  %15650 = vmatprep.mubr.msk.f32.mxu0 %vm317_vm0, %v25172_v34  ;;  %v25444_v21 = vpop.permute.xlu1 %19697  ;;  %v17213_v42 = vpack.c.bf16 %v19655_v50, %v19654_v20  ;;  %v25450_v60 = vpop.permute.xlu0 %19752  ;;  %v19674_v62 = vunpack.i.l.bf16 %v25267_v15  ;;  %v19610_v24 = vunpack.i.h.bf16 %v25236_v7 }
 0x3f9   : > { %v19684_v55 = vunpack.i.l.bf16 %v25298_v49  ;;  %v19620_v50 = vunpack.i.h.bf16 %v25260_v39  ;;  %v19619_v18 = vunpack.i.l.bf16 %v25260_v39  ;;  %v19695_v35 = vunpack.i.h.bf16 %v25324_v51 }
 0x3fa   : > { %v19705_v39 = vunpack.i.h.bf16 %v25338_v45 }
 0x3fb   : > { %15651 = vmatmul.mubr.msk.f32.gmra.mrb[108].mxu0 %vm317_vm0, %v25172_v34  ;;  %v17222_v7 = vpack.c.bf16 %v19685_v1, %v19684_v55  ;;  %v17249_v55 = vpack.c.bf16 %v19620_v50, %v19619_v18  ;;  %v19639_v50 = vunpack.i.l.bf16 %v25304_v32  ;;  %v19714_v18 = vunpack.i.l.bf16 %v25355_v8 }
 0x3fc   : > { %17185 = vmatpush3.bf16.xpose.msk.msra.mxu1 %vm20075_vm1, %v17183_v30  ;;  %17209 = vmatpush3.bf16.xpose.msk.msra.mxu0 %vm20075_vm1, %v17207_v57  ;;  %v25464_v23 = vpop.permute.xlu1 %19707  ;;  %v17195_v30 = vpack.c.bf16 %v19600_v0, %v19599_v47  ;;  %v17219_v57 = vpack.c.bf16 %v19675_v48, %v19674_v62 }
 0x3fd   : > { %15652 = vmatprep.mubr.msk.f32.mxu0 %vm317_vm0, %v25197_v63  ;;  %17188 = vmatprep.subr.msk.bf16.mxu1 %vm20075_vm1, %v17186_v41  ;;  %v25470_v41 = vpop.permute.xlu0 %19762 }
 0x3fe   : > { %17212 = vmatprep.subr.msk.bf16.mxu0 %vm20075_vm1, %v17210_v31  ;;  %v17246_v31 = vpack.c.bf16 %v19610_v24, %v19609_v19 }
 0x3ff   : > { %15653 = vmatmul.mubr.msk.f32.gmra.mrb[110].mxu0 %vm317_vm0, %v25197_v63 }
 0x400   : > { %15726 = vmatprep.mubr.msk.f32.mxu0 %vm317_vm0, %v25212_v56  ;;  %v25475_v20 = vpop.permute.xlu1 %19717 }
 0x401   : > { %v25494_v48 = vpop.permute.xlu0 %19772 }
 0x404   : > { %17191 = vmatpush3.bf16.xpose.msk.msra.mxu1 %vm20075_vm1, %v17189_v12  ;;  %17215 = vmatpush3.bf16.xpose.msk.msra.mxu0 %vm20075_vm1, %v17213_v42  ;;  %v19694_v12 = vunpack.i.l.bf16 %v25324_v51  ;;  %v19704_v51 = vunpack.i.l.bf16 %v25338_v45 }
 0x405   : > { %17194 = vmatprep.subr.msk.bf16.mxu1 %vm20075_vm1, %v17192_v54  ;;  %17218 = vmatprep.subr.msk.bf16.mxu0 %vm20075_vm1, %v17216_v58  ;;  %v19630_v54 = vunpack.i.h.bf16 %v25284_v17  ;;  %v19629_v58 = vunpack.i.l.bf16 %v25284_v17 }
 0x406   : > { %v6400_v15 = vpop.f32.mrb[80].mxu0 }
 0x407   : > { %v6402_v27 = vpop.f32.mrb[81].mxu0  ;;  %v6401_v9 = vadd.f32 %v6400_v15, %v27649_v13  ;;  %v17225_v15 = vpack.c.bf16 %v19695_v35, %v19694_v12  ;;  %v25511_v35 = vpop.permute.xlu0 %19782 }
 0x408   : > { %v6403_v49 = vadd.f32 %v6402_v27, %v27649_v13 }
 0x409   : > { %v6512_v0 = vmax.f32 %v6401_v9, 0.0 }
 0x40a   : > { %v6406_v46 = vpop.f32.mrb[82].mxu0  ;;  %v6513_v62 = vmax.f32 %v6403_v49, 0.0  ;;  %v19640_v49 = vunpack.i.h.bf16 %v25304_v32 }
 0x40b   : > { %v6407_v61 = vadd.f32 %v6406_v46, %v27672_v59  ;;  %v6408_v26 = vpop.f32.mrb[83].mxu0 }
 0x40c   : > { %v6409_v42 = vadd.f32 %v6408_v26, %v27672_v59  ;;  %17197 = vmatpush3.bf16.xpose.msk.msra.mxu1 %vm20075_vm1, %v17195_v30  ;;  %17221 = vmatpush3.bf16.xpose.msk.msra.mxu0 %vm20075_vm1, %v17219_v57  ;;  %v17252_v30 = vpack.c.bf16 %v19630_v54, %v19629_v58  ;;  %v25500_v57 = vpop.permute.xlu1 %19727  ;;  %v19715_v26 = vunpack.i.h.bf16 %v25355_v8  ;;  %v19649_v54 = vunpack.i.l.bf16 %v25332_v43 }
 0x40d   : > { %v6516_v47 = vmax.f32 %v6407_v61, 0.0  ;;  %17248 = vmatprep.subr.msk.bf16.mxu1 %vm20075_vm1, %v17246_v31  ;;  %17224 = vmatprep.subr.msk.bf16.mxu0 %vm20075_vm1, %v17222_v7  ;;  %v17228_v7 = vpack.c.bf16 %v19705_v39, %v19704_v51  ;;  %v19725_v8 = vunpack.i.h.bf16 %v25380_v2 }
 0x40e   : > { %v6517_v24 = vmax.f32 %v6409_v42, 0.0  ;;  %v6412_v19 = vpop.f32.mrb[84].mxu0  ;;  %v19650_v42 = vunpack.i.h.bf16 %v25332_v43 }
 0x40f   : > { %v25496_v1 = vpack.c.bf16 %v6516_v47, %v6512_v0  ;;  %v6414_v17 = vpop.f32.mrb[85].mxu0  ;;  %v6413_v31 = vadd.f32 %v6412_v19, %v27675_v25  ;;  %v19724_v0 = vunpack.i.l.bf16 %v25380_v2 }
 0x410   : > { %v25498_v27 = vpack.c.bf16 %v6517_v24, %v6513_v62  ;;  %v6415_v45 = vadd.f32 %v6414_v17, %v27675_v25  ;;  %v25528_v51 = vpop.permute.xlu1 %19737  ;;  %v17255_v62 = vpack.c.bf16 %v19640_v49, %v19639_v50  ;;  %v17231_v24 = vpack.c.bf16 %v19715_v26, %v19714_v18 }
 0x411   : > { %v6520_v58 = vmax.f32 %v6413_v31, 0.0  ;;  %v17258_v2 = vpack.c.bf16 %v19650_v42, %v19649_v54  ;;  %v17234_v17 = vpack.c.bf16 %v19725_v8, %v19724_v0  ;;  %v19735_v31 = vunpack.i.h.bf16 %v25408_v28 }
 0x412   : > { %v6418_v9 = vpop.f32.mrb[86].mxu0  ;;  %v6521_v47 = vmax.f32 %v6415_v45, 0.0  ;;  %v19670_v45 = vunpack.i.h.bf16 %v25370_v53  ;;  %v19680_v18 = vunpack.i.h.bf16 %v25387_v38  ;;  %v19755_v42 = vunpack.i.h.bf16 %v25450_v60 }
 0x413   : > { %v6419_v46 = vadd.f32 %v6418_v9, %v27676_v11  ;;  %v6420_v61 = vpop.f32.mrb[87].mxu0  ;;  %15687 = vmatmul.mubr.msk.f32.vlgmr.msra.gmra.mrb[104].mxu1 %vm317_vm0, %v25212_v56  ;;  %v19669_v9 = vunpack.i.l.bf16 %v25370_v53  ;;  %v19754_v54 = vunpack.i.l.bf16 %v25450_v60  ;;  %v19765_v8 = vunpack.i.h.bf16 %v25470_v41 }
 0x414   : > { %v6421_v12 = vadd.f32 %v6420_v61, %v27676_v11  ;;  %17227 = vmatpush3.bf16.xpose.msk.msra.mxu0 %vm20075_vm1, %v17225_v15  ;;  %17251 = vmatpush3.bf16.xpose.msk.msra.mxu1 %vm20075_vm1, %v17249_v55  ;;  %v25538_v55 = vpop.permute.xlu0 %19792  ;;  %v19660_v15 = vunpack.i.h.bf16 %v25352_v3  ;;  %v25552_v49 = vpop.permute.xlu1 %19747  ;;  %v19764_v0 = vunpack.i.l.bf16 %v25470_v41 }
 0x415   : > { %v6524_v32 = vmax.f32 %v6419_v46, 0.0  ;;  %15688 = vmatprep.mubr.msk.f32.mxu1 %vm317_vm0, %v25151_v16  ;;  %17254 = vmatprep.subr.msk.bf16.mxu1 %vm20075_vm1, %v17252_v30  ;;  %v19659_v30 = vunpack.i.l.bf16 %v25352_v3  ;;  %v19745_v46 = vunpack.i.h.bf16 %v25428_v40  ;;  %v19744_v3 = vunpack.i.l.bf16 %v25428_v40 }
 0x416   : > { %v6525_v39 = vmax.f32 %v6421_v12, 0.0  ;;  %17230 = vmatprep.subr.msk.bf16.mxu0 %vm20075_vm1, %v17228_v7  ;;  %v19734_v7 = vunpack.i.l.bf16 %v25408_v28  ;;  %v17264_v40 = vpack.c.bf16 %v19670_v45, %v19669_v9  ;;  %v19679_v12 = vunpack.i.l.bf16 %v25387_v38 }
 0x417   : > { %v25530_v43 = vpack.c.bf16 %v6524_v32, %v6520_v58  ;;  %15689 = vmatmul.mubr.msk.f32.gmra.mrb[106].mxu1 %vm317_vm0, %v25151_v16  ;;  %v17261_v28 = vpack.c.bf16 %v19660_v15, %v19659_v30  ;;  %v17240_v50 = vpack.c.bf16 %v19745_v46, %v19744_v3  ;;  %v19690_v58 = vunpack.i.h.bf16 %v25420_v36 }
 0x418   : > { %v25534_v19 = vpack.c.bf16 %v6525_v39, %v6521_v47  ;;  %15690 = vmatprep.mubr.msk.f32.mxu1 %vm317_vm0, %v25172_v34  ;;  %v17237_v53 = vpack.c.bf16 %v19735_v31, %v19734_v7  ;;  %v25564_v61 = vpop.permute.xlu0 %19802  ;;  %v25568_v26 = vpop.permute.xlu1 %19757  ;;  %v19689_v32 = vunpack.i.l.bf16 %v25420_v36  ;;  %v17267_v39 = vpack.c.bf16 %v19680_v18, %v19679_v12 }
 0x419   : > { %v17294_v36 = vpack.c.bf16 %v19765_v8, %v19764_v0  ;;  %v19700_v30 = vunpack.i.h.bf16 %v25444_v21  ;;  %v19699_v45 = vunpack.i.l.bf16 %v25444_v21  ;;  %v19775_v9 = vunpack.i.h.bf16 %v25494_v48 }
 0x41a   : > { %v19774_v46 = vunpack.i.l.bf16 %v25494_v48  ;;  %v19785_v48 = vunpack.i.h.bf16 %v25511_v35  ;;  %v19784_v18 = vunpack.i.l.bf16 %v25511_v35 }
 0x41b   : > { %15691 = vmatmul.mubr.msk.f32.gmra.mrb[108].mxu1 %vm317_vm0, %v25172_v34  ;;  %v17273_v8 = vpack.c.bf16 %v19700_v30, %v19699_v45  ;;  %v19719_v30 = vunpack.i.l.bf16 %v25475_v20 }
 0x41c   : > { %17233 = vmatpush3.bf16.xpose.msk.msra.mxu0 %vm20075_vm1, %v17231_v24  ;;  %17257 = vmatpush3.bf16.xpose.msk.msra.mxu1 %vm20075_vm1, %v17255_v62  ;;  %v25586_v38 = vpop.permute.xlu0 %19812  ;;  %v17243_v62 = vpack.c.bf16 %v19755_v42, %v19754_v54  ;;  %v17270_v24 = vpack.c.bf16 %v19690_v58, %v19689_v32  ;;  %v17297_v0 = vpack.c.bf16 %v19775_v9, %v19774_v46  ;;  %v19730_v9 = vunpack.i.h.bf16 %v25500_v57 }
 0x41d   : > { %15692 = vmatprep.mubr.msk.f32.mxu1 %vm317_vm0, %v25197_v63  ;;  %17260 = vmatprep.subr.msk.bf16.mxu1 %vm20075_vm1, %v17258_v2  ;;  %v25588_v2 = vpop.permute.xlu1 %19767  ;;  %v19729_v46 = vunpack.i.l.bf16 %v25500_v57 }
 0x41e   : > { %17236 = vmatprep.subr.msk.bf16.mxu0 %vm20075_vm1, %v17234_v17 }
 0x41f   : > { %15693 = vmatmul.mubr.msk.f32.gmra.mrb[110].mxu1 %vm317_vm0, %v25197_v63 }
 0x420   : > { %15766 = vmatprep.mubr.msk.f32.mxu1 %vm317_vm0, %v25212_v56  ;;  %v25597_v3 = vpop.permute.xlu0 %19822 }
 0x421   : > { %v25612_v58 = vpop.permute.xlu1 %19777 }
 0x424   : > { %17239 = vmatpush3.bf16.xpose.msk.msra.mxu0 %vm20075_vm1, %v17237_v53  ;;  %17263 = vmatpush3.bf16.xpose.msk.msra.mxu1 %vm20075_vm1, %v17261_v28  ;;  %v19710_v53 = vunpack.i.h.bf16 %v25464_v23 }
 0x425   : > { %17266 = vmatprep.subr.msk.bf16.mxu1 %vm20075_vm1, %v17264_v40  ;;  %17242 = vmatprep.subr.msk.bf16.mxu0 %vm20075_vm1, %v17240_v50  ;;  %v19709_v40 = vunpack.i.l.bf16 %v25464_v23 }
 0x426   : > { %v6489_v60 = vpop.f32.mrb[80].mxu1 }
 0x427   : > { %v6491_v47 = vpop.f32.mrb[81].mxu1  ;;  %v6490_v17 = vadd.f32 %v6489_v60, %v27649_v13 }
 0x428   : > { %v6492_v41 = vadd.f32 %v6491_v47, %v27649_v13  ;;  %v17276_v47 = vpack.c.bf16 %v19710_v53, %v19709_v40  ;;  %v19804_v40 = vunpack.i.l.bf16 %v25564_v61 }
 0x429   : > { %v6514_v50 = vmax.f32 %v6490_v17, 0.0  ;;  %v19720_v17 = vunpack.i.h.bf16 %v25475_v20 }
 0x42a   : > { %v6495_v15 = vpop.f32.mrb[82].mxu1  ;;  %v6515_v12 = vmax.f32 %v6492_v41, 0.0 }
 0x42b   : > { %v6496_v31 = vadd.f32 %v6495_v15, %v27672_v59  ;;  %v6497_v7 = vpop.f32.mrb[83].mxu1 }
 0x42c   : > { %v6498_v28 = vadd.f32 %v6497_v7, %v27672_v59  ;;  %17245 = vmatpush3.bf16.xpose.msk.msra.mxu0 %vm20075_vm1, %v17243_v62  ;;  %17269 = vmatpush3.bf16.xpose.msk.msra.mxu1 %vm20075_vm1, %v17267_v39  ;;  %v17300_v62 = vpack.c.bf16 %v19785_v48, %v19784_v18  ;;  %v19794_v7 = vunpack.i.l.bf16 %v25538_v55  ;;  %v17279_v48 = vpack.c.bf16 %v19720_v17, %v19719_v30 }
 0x42d   : > { %v6518_v21 = vmax.f32 %v6496_v31, 0.0  ;;  %17272 = vmatprep.subr.msk.bf16.mxu1 %vm20075_vm1, %v17270_v24  ;;  %17296 = vmatprep.subr.msk.bf16.mxu0 %vm20075_vm1, %v17294_v36  ;;  %v25619_v24 = vpop.permute.xlu0 %19832  ;;  %v19795_v31 = vunpack.i.h.bf16 %v25538_v55  ;;  %v19805_v55 = vunpack.i.h.bf16 %v25564_v61 }
 0x42e   : > { %v6519_v42 = vmax.f32 %v6498_v28, 0.0  ;;  %v6501_v54 = vpop.f32.mrb[84].mxu1  ;;  %v25636_v28 = vpop.permute.xlu1 %19787  ;;  %v19835_v30 = vunpack.i.h.bf16 %v25619_v24 }
 0x42f   : > { %v25614_v32 = vpack.c.bf16 %v6518_v21, %v6514_v50  ;;  %v6503_v23 = vpop.f32.mrb[85].mxu1  ;;  %v6502_v39 = vadd.f32 %v6501_v54, %v27675_v25  ;;  %v17303_v18 = vpack.c.bf16 %v19795_v31, %v19794_v7  ;;  %v17282_v54 = vpack.c.bf16 %v19730_v9, %v19729_v46 }
 0x430   : > { %v25616_v60 = vpack.c.bf16 %v6519_v42, %v6515_v12  ;;  %v6504_v35 = vadd.f32 %v6503_v23, %v27675_v25  ;;  %v17306_v61 = vpack.c.bf16 %v19805_v55, %v19804_v40  ;;  %v19834_v31 = vunpack.i.l.bf16 %v25619_v24 }
 0x431   : > { %v6522_v53 = vmax.f32 %v6502_v39, 0.0  ;;  %v19843_v12 = vpop.permute.xlu0 %19842  ;;  %v19750_v39 = vunpack.i.h.bf16 %v25552_v49 }
 0x432   : > { %v6507_v36 = vpop.f32.mrb[86].mxu1  ;;  %v6523_v50 = vmax.f32 %v6504_v35, 0.0  ;;  %v25654_v23 = vpop.permute.xlu1 %19797  ;;  %v19824_v35 = vunpack.i.l.bf16 %v25597_v3  ;;  %v19845_v9 = vunpack.i.h.bf16 %v19843_v12  ;;  %v19844_v46 = vunpack.i.l.bf16 %v19843_v12 }
 0x433   : > { %v6508_v41 = vadd.f32 %v6507_v36, %v27676_v11  ;;  %v6509_v15 = vpop.f32.mrb[87].mxu1  ;;  %15727 = vmatmul.mubr.msk.f32.vlgmr.msra.gmra.mrb[112].mxu0 %vm317_vm0, %v25212_v56  ;;  %v17315_v55 = vpack.c.bf16 %v19835_v30, %v19834_v31  ;;  %v19780_v12 = vunpack.i.h.bf16 %v25612_v58 }
 0x434   : > { %v6510_v45 = vadd.f32 %v6509_v15, %v27676_v11  ;;  %17275 = vmatpush3.bf16.xpose.msk.msra.mxu1 %vm20075_vm1, %v17273_v8  ;;  %17299 = vmatpush3.bf16.xpose.msk.msra.mxu0 %vm20075_vm1, %v17297_v0  ;;  %v19740_v8 = vunpack.i.h.bf16 %v25528_v51  ;;  %v19739_v0 = vunpack.i.l.bf16 %v25528_v51  ;;  %v19759_v15 = vunpack.i.l.bf16 %v25568_v26 }
 0x435   : > { %v6526_v20 = vmax.f32 %v6508_v41, 0.0  ;;  %15728 = vmatprep.mubr.msk.f32.mxu0 %vm317_vm0, %v25151_v16  ;;  %17278 = vmatprep.subr.msk.bf16.mxu1 %vm20075_vm1, %v17276_v47  ;;  %v19814_v47 = vunpack.i.l.bf16 %v25586_v38  ;;  %v19853_v51 = vpop.permute.xlu0 %19852  ;;  %v19760_v41 = vunpack.i.h.bf16 %v25568_v26 }
 0x436   : > { %v6527_v21 = vmax.f32 %v6510_v45, 0.0  ;;  %17302 = vmatprep.subr.msk.bf16.mxu0 %vm20075_vm1, %v17300_v62  ;;  %v19749_v62 = vunpack.i.l.bf16 %v25552_v49  ;;  %v19769_v45 = vunpack.i.l.bf16 %v25588_v2 }
 0x437   : > { %v25646_v57 = vpack.c.bf16 %v6526_v20, %v6522_v53  ;;  %15729 = vmatmul.mubr.msk.f32.gmra.mrb[114].mxu0 %vm317_vm0, %v25151_v16  ;;  %v19815_v16 = vunpack.i.h.bf16 %v25586_v38  ;;  %v17285_v38 = vpack.c.bf16 %v19740_v8, %v19739_v0  ;;  %v17291_v20 = vpack.c.bf16 %v19760_v41, %v19759_v15 }
 0x438   : > { %v25650_v42 = vpack.c.bf16 %v6527_v21, %v6523_v50  ;;  %15730 = vmatprep.mubr.msk.f32.mxu0 %vm317_vm0, %v25172_v34  ;;  %v17288_v49 = vpack.c.bf16 %v19750_v39, %v19749_v62  ;;  %v17318_v50 = vpack.c.bf16 %v19845_v9, %v19844_v46  ;;  %v19779_v8 = vunpack.i.l.bf16 %v25612_v58 }
 0x439   : > { %v17309_v36 = vpack.c.bf16 %v19815_v16, %v19814_v47  ;;  %v19863_v7 = vpop.permute.xlu0 %19862  ;;  %v19855_v0 = vunpack.i.h.bf16 %v19853_v51  ;;  %v19854_v16 = vunpack.i.l.bf16 %v19853_v51  ;;  %v19790_v39 = vunpack.i.h.bf16 %v25636_v28 }
 0x43a   : > { %v19789_v62 = vunpack.i.l.bf16 %v25636_v28  ;;  %v19865_v58 = vunpack.i.h.bf16 %v19863_v7  ;;  %v19864_v51 = vunpack.i.l.bf16 %v19863_v7  ;;  %v17345_v30 = vpack.c.bf16 %v19780_v12, %v19779_v8 }
 0x43b   : > { %15731 = vmatmul.mubr.msk.f32.gmra.mrb[116].mxu0 %vm317_vm0, %v25172_v34  ;;  %v19825_v34 = vunpack.i.h.bf16 %v25597_v3  ;;  %v25680_v3 = vpop.permute.xlu1 %19807  ;;  %v17321_v28 = vpack.c.bf16 %v19855_v0, %v19854_v16  ;;  %v19800_v7 = vunpack.i.h.bf16 %v25654_v23 }
 0x43c   : > { %17281 = vmatpush3.bf16.xpose.msk.msra.mxu1 %vm20075_vm1, %v17279_v48  ;;  %17305 = vmatpush3.bf16.xpose.msk.msra.mxu0 %vm20075_vm1, %v17303_v18  ;;  %v17324_v46 = vpack.c.bf16 %v19865_v58, %v19864_v51  ;;  %v19810_v12 = vunpack.i.h.bf16 %v25680_v3 }
 0x43d   : > { %15732 = vmatprep.mubr.msk.f32.mxu0 %vm317_vm0, %v25197_v63  ;;  %17284 = vmatprep.subr.msk.bf16.mxu1 %vm20075_vm1, %v17282_v54  ;;  %v17312_v17 = vpack.c.bf16 %v19825_v34, %v19824_v35  ;;  %v25699_v48 = vpop.permute.xlu0 %19872 }
 0x43e   : > { %17308 = vmatprep.subr.msk.bf16.mxu0 %vm20075_vm1, %v17306_v61 }
 0x43f   : > { %15733 = vmatmul.mubr.msk.f32.gmra.mrb[118].mxu0 %vm317_vm0, %v25197_v63  ;;  %v19770_v63 = vunpack.i.h.bf16 %v25588_v2  ;;  %v25696_v24 = vpop.permute.xlu1 %19817 }
 0x440   : > { %15806 = vmatprep.mubr.msk.f32.mxu0 %vm317_vm0, %v25212_v56 }
 0x441   : > { %v17342_v40 = vpack.c.bf16 %v19770_v63, %v19769_v45  ;;  %v19883_v31 = vpop.permute.xlu0 %19882  ;;  %v17348_v45 = vpack.c.bf16 %v19790_v39, %v19789_v62 }
 0x442   : > { %v19884_v8 = vunpack.i.l.bf16 %v19883_v31 }
 0x443   : > { %v25712_v34 = vpop.permute.xlu1 %19827 }
 0x444   : > { %17287 = vmatpush3.bf16.xpose.msk.msra.mxu1 %vm20075_vm1, %v17285_v38  ;;  %17311 = vmatpush3.bf16.xpose.msk.msra.mxu0 %vm20075_vm1, %v17309_v36 }
 0x445   : > { %17290 = vmatprep.subr.msk.bf16.mxu1 %vm20075_vm1, %v17288_v49  ;;  %17314 = vmatprep.subr.msk.bf16.mxu0 %vm20075_vm1, %v17312_v17  ;;  %v19893_v0 = vpop.permute.xlu0 %19892 }
 0x446   : > { %v6994_v26 = vpop.f32.mrb[88].mxu0 }
 0x447   : > { %v6996_v53 = vpop.f32.mrb[89].mxu0  ;;  %v6995_v21 = vadd.f32 %v6994_v26, %v27649_v13 }
 0x448   : > { %v6997_v2 = vadd.f32 %v6996_v53, %v27649_v13 }
 0x449   : > { %v7106_v35 = vmax.f32 %v6995_v21, 0.0  ;;  %v19875_v21 = vunpack.i.h.bf16 %v25699_v48 }
 0x44a   : > { %v7000_v18 = vpop.f32.mrb[90].mxu0  ;;  %v7107_v36 = vmax.f32 %v6997_v2, 0.0  ;;  %v19874_v2 = vunpack.i.l.bf16 %v25699_v48  ;;  %v19885_v48 = vunpack.i.h.bf16 %v19883_v31  ;;  %v19830_v31 = vunpack.i.h.bf16 %v25712_v34 }
 0x44b   : > { %v7001_v54 = vadd.f32 %v7000_v18, %v27672_v59  ;;  %v7002_v61 = vpop.f32.mrb[91].mxu0 }
 0x44c   : > { %v7003_v47 = vadd.f32 %v7002_v61, %v27672_v59  ;;  %17293 = vmatpush3.bf16.xpose.msk.msra.mxu1 %vm20075_vm1, %v17291_v20  ;;  %17317 = vmatpush3.bf16.xpose.msk.msra.mxu0 %vm20075_vm1, %v17315_v55  ;;  %v25725_v20 = vpop.permute.xlu1 %19837  ;;  %v17327_v62 = vpack.c.bf16 %v19875_v21, %v19874_v2 }
 0x44d   : > { %v7110_v38 = vmax.f32 %v7001_v54, 0.0  ;;  %17344 = vmatprep.subr.msk.bf16.mxu1 %vm20075_vm1, %v17342_v40  ;;  %17320 = vmatprep.subr.msk.bf16.mxu0 %vm20075_vm1, %v17318_v50  ;;  %v19799_v50 = vunpack.i.l.bf16 %v25654_v23  ;;  %v19809_v54 = vunpack.i.l.bf16 %v25680_v3  ;;  %v25743_v23 = vld [vmem:[%s27485_s1 + $0x8] sm:$0xff]  ;;  %v19840_v21 = vunpack.i.h.bf16 %v25725_v20 }
 0x44e   : > { %v7111_v49 = vmax.f32 %v7003_v47, 0.0  ;;  %v7006_v17 = vpop.f32.mrb[92].mxu0  ;;  %v19839_v2 = vunpack.i.l.bf16 %v25725_v20 }
 0x44f   : > { %v25718_v41 = vpack.c.bf16 %v7110_v38, %v7106_v35  ;;  %v7008_v15 = vpop.f32.mrb[93].mxu0  ;;  %v7007_v9 = vadd.f32 %v7006_v17, %v27675_v25  ;;  %v17351_v39 = vpack.c.bf16 %v19800_v7, %v19799_v50  ;;  %v25760_v38 = vld [vmem:[%s27485_s1 + $0x10] sm:$0xff]  ;;  %v17354_v58 = vpack.c.bf16 %v19810_v12, %v19809_v54  ;;  %v25790_v7 = vld [vmem:[%s27485_s1] sm:$0xff] }
 0x450   : > { %v25720_v63 = vpack.c.bf16 %v7111_v49, %v7107_v36  ;;  %v7009_v26 = vadd.f32 %v7008_v15, %v27675_v25  ;;  %v19848_v51 = vpop.permute.xlu1 %19847  ;;  %v17330_v36 = vpack.c.bf16 %v19885_v48, %v19884_v8  ;;  %v19820_v49 = vunpack.i.h.bf16 %v25696_v24 }
 0x451   : > { %v7114_v61 = vmax.f32 %v7007_v9, 0.0  ;;  %v19819_v17 = vunpack.i.l.bf16 %v25696_v24  ;;  %v19895_v15 = vunpack.i.h.bf16 %v19893_v0  ;;  %v19850_v54 = vunpack.i.h.bf16 %v19848_v51 }
 0x452   : > { %v7012_v53 = vpop.f32.mrb[94].mxu0  ;;  %v7115_v16 = vmax.f32 %v7009_v26, 0.0  ;;  %v25777_v26 = vld [vmem:[%s27485_s1 + $0x18] sm:$0xff]  ;;  %v17363_v20 = vpack.c.bf16 %v19840_v21, %v19839_v2 }
 0x453   : > { %v7013_v55 = vadd.f32 %v7012_v53, %v27676_v11  ;;  %v7014_v40 = vpop.f32.mrb[95].mxu0  ;;  %15767 = vmatmul.mubr.msk.f32.vlgmr.msra.gmra.mrb[112].mxu1 %vm317_vm0, %v25212_v56 }
 0x454   : > { %v7015_v18 = vadd.f32 %v7014_v40, %v27676_v11  ;;  %17323 = vmatpush3.bf16.xpose.msk.msra.mxu0 %vm20075_vm1, %v17321_v28  ;;  %17347 = vmatpush3.bf16.xpose.msk.msra.mxu1 %vm20075_vm1, %v17345_v30  ;;  %v19894_v30 = vunpack.i.l.bf16 %v19893_v0  ;;  %v19903_v28 = vpop.permute.xlu0 %19902  ;;  %v19858_v24 = vpop.permute.xlu1 %19857 }
 0x455   : > { %v7118_v56 = vmax.f32 %v7013_v55, 0.0  ;;  %15768 = vmatprep.mubr.msk.f32.mxu1 %vm317_vm0, %v25743_v23  ;;  %17350 = vmatprep.subr.msk.bf16.mxu1 %vm20075_vm1, %v17348_v45  ;;  %v19829_v45 = vunpack.i.l.bf16 %v25712_v34  ;;  %v19905_v9 = vunpack.i.h.bf16 %v19903_v28  ;;  %v17357_v34 = vpack.c.bf16 %v19820_v49, %v19819_v17 }
 0x456   : > { %v7119_v47 = vmax.f32 %v7015_v18, 0.0  ;;  %17326 = vmatprep.subr.msk.bf16.mxu0 %vm20075_vm1, %v17324_v46  ;;  %v19904_v46 = vunpack.i.l.bf16 %v19903_v28  ;;  %v17333_v53 = vpack.c.bf16 %v19895_v15, %v19894_v30  ;;  %v19860_v49 = vunpack.i.h.bf16 %v19858_v24 }
 0x457   : > { %v25751_v3 = vpack.c.bf16 %v7118_v56, %v7114_v61  ;;  %15769 = vmatmul.mubr.msk.f32.gmra.mrb[114].mxu1 %vm317_vm0, %v25743_v23  ;;  %v17360_v55 = vpack.c.bf16 %v19830_v31, %v19829_v45  ;;  %v19849_v61 = vunpack.i.l.bf16 %v19848_v51  ;;  %v19859_v17 = vunpack.i.l.bf16 %v19858_v24  ;;  %v27983_v31 = vld [vmem:[#allocation5_spill] sm:$0xff] }
 0x458   : > { %v25755_v35 = vpack.c.bf16 %v7119_v47, %v7115_v16  ;;  %15770 = vmatprep.mubr.msk.f32.mxu1 %vm317_vm0, %v25760_v38  ;;  %v17336_v40 = vpack.c.bf16 %v19905_v9, %v19904_v46  ;;  %v19913_v50 = vpop.permute.xlu0 %19912  ;;  %v19868_v56 = vpop.permute.xlu1 %19867 }
 0x459   : > { %v19915_v18 = vunpack.i.h.bf16 %v19913_v50  ;;  %v19914_v12 = vunpack.i.l.bf16 %v19913_v50  ;;  %v17366_v16 = vpack.c.bf16 %v19850_v54, %v19849_v61  ;;  %v19870_v45 = vunpack.i.h.bf16 %v19868_v56 }
 0x45a   : > { %v19869_v9 = vunpack.i.l.bf16 %v19868_v56 }
 0x45b   : > { %15771 = vmatmul.mubr.msk.f32.gmra.mrb[116].mxu1 %vm317_vm0, %v25760_v38  ;;  %v17339_v0 = vpack.c.bf16 %v19915_v18, %v19914_v12 }
 0x45c   : > { %17329 = vmatpush3.bf16.xpose.msk.msra.mxu0 %vm20075_vm1, %v17327_v62  ;;  %17353 = vmatpush3.bf16.xpose.msk.msra.mxu1 %vm20075_vm1, %v17351_v39  ;;  %v17372_v18 = vpack.c.bf16 %v19870_v45, %v19869_v9  ;;  %v27987_v45 = vld [vmem:[#allocation9_spill] sm:$0xff] }
 0x45d   : > { %15772 = vmatprep.mubr.msk.f32.mxu1 %vm317_vm0, %v25777_v26  ;;  %17356 = vmatprep.subr.msk.bf16.mxu1 %vm20075_vm1, %v17354_v58  ;;  %v19878_v58 = vpop.permute.xlu1 %19877 }
 0x45e   : > { %17332 = vmatprep.subr.msk.bf16.mxu0 %vm20075_vm1, %v17330_v36  ;;  %v19880_v56 = vunpack.i.h.bf16 %v19878_v58 }
 0x45f   : > { %15773 = vmatmul.mubr.msk.f32.gmra.mrb[118].mxu1 %vm317_vm0, %v25777_v26 }
 0x460   : > { %15846 = vmatprep.mubr.msk.f32.mxu1 %vm317_vm0, %v25790_v7 }
 0x461   : > { %v19888_v21 = vpop.permute.xlu1 %19887 }
 0x464   : > { %17335 = vmatpush3.bf16.xpose.msk.msra.mxu0 %vm20075_vm1, %v17333_v53  ;;  %17359 = vmatpush3.bf16.xpose.msk.msra.mxu1 %vm20075_vm1, %v17357_v34 }
 0x465   : > { %17362 = vmatprep.subr.msk.bf16.mxu1 %vm20075_vm1, %v17360_v55  ;;  %17338 = vmatprep.subr.msk.bf16.mxu0 %vm20075_vm1, %v17336_v40  ;;  %v17369_v40 = vpack.c.bf16 %v19860_v49, %v19859_v17 }
 0x466   : > { %v7083_v48 = vpop.f32.mrb[88].mxu1 }
 0x467   : > { %v7085_v8 = vpop.f32.mrb[89].mxu1  ;;  %v7084_v47 = vadd.f32 %v7083_v48, %v27649_v13 }
 0x468   : > { %v7086_v39 = vadd.f32 %v7085_v8, %v27649_v13  ;;  %v19879_v8 = vunpack.i.l.bf16 %v19878_v58  ;;  %v19898_v58 = vpop.permute.xlu1 %19897 }
 0x469   : > { %v7108_v30 = vmax.f32 %v7084_v47, 0.0  ;;  %v19889_v47 = vunpack.i.l.bf16 %v19888_v21  ;;  %v19900_v9 = vunpack.i.h.bf16 %v19898_v58 }
 0x46a   : > { %v7089_v62 = vpop.f32.mrb[90].mxu1  ;;  %v7109_v46 = vmax.f32 %v7086_v39, 0.0 }
 0x46b   : > { %v7090_v51 = vadd.f32 %v7089_v62, %v27672_v59  ;;  %v7091_v36 = vpop.f32.mrb[91].mxu1 }
 0x46c   : > { %v7092_v15 = vadd.f32 %v7091_v36, %v27672_v59  ;;  %17341 = vmatpush3.bf16.xpose.msk.msra.mxu0 %vm20075_vm1, %v17339_v0  ;;  %17365 = vmatpush3.bf16.xpose.msk.msra.mxu1 %vm20075_vm1, %v17363_v20  ;;  %v27984_v0 = vld [vmem:[#allocation8_spill] sm:$0xff] }
 0x46d   : > { %v7112_v28 = vmax.f32 %v7090_v51, 0.0  ;;  %17391 = vmatprep.subr.bf16.mxu0 %v27983_v31  ;;  %17368 = vmatprep.subr.msk.bf16.mxu1 %vm20075_vm1, %v17366_v16  ;;  %v19890_v16 = vunpack.i.h.bf16 %v19888_v21  ;;  %v27985_v51 = vld [vmem:[#allocation20_spill] sm:$0xff]  ;;  %v19986_v21 = vmov 0.0  }
 0x46e   : > { %v7113_v34 = vmax.f32 %v7092_v15, 0.0  ;;  %v7095_v24 = vpop.f32.mrb[92].mxu1  ;;  %v17375_v15 = vpack.c.bf16 %v19880_v56, %v19879_v8  ;;  %v25867_v56 = vld [vmem:[%s27487_s3 + $0x8] sm:$0xff]  ;;  %v27989_v8 = vld [vmem:[#allocation12_spill] sm:$0xff] }
 0x46f   : > { %v25815_v53 = vpack.c.bf16 %v7112_v28, %v7108_v30  ;;  %v7097_v55 = vpop.f32.mrb[93].mxu1  ;;  %v7096_v2 = vadd.f32 %v7095_v24, %v27675_v25  ;;  %v27986_v28 = vld [vmem:[#allocation18_spill] sm:$0xff]  ;;  %v17378_v31 = vpack.c.bf16 %v19890_v16, %v19889_v47 }
 0x470   : > { %v25817_v50 = vpack.c.bf16 %v7113_v34, %v7109_v46  ;;  %v7098_v12 = vadd.f32 %v7097_v55, %v27675_v25  ;;  %v19899_v46 = vunpack.i.l.bf16 %v19898_v58  ;;  %v19908_v34 = vpop.permute.xlu1 %19907  ;;  %v27990_v47 = vld [vmem:[#allocation14_spill] sm:$0xff] }
 0x471   : > { %v7116_v39 = vmax.f32 %v7096_v2, 0.0  ;;  %v19910_v24 = vunpack.i.h.bf16 %v19908_v34  ;;  %v19909_v55 = vunpack.i.l.bf16 %v19908_v34  ;;  %v25857_v2 = vld [vmem:[%s27487_s3] sm:$0xff] }
 0x472   : > { %v7101_v54 = vpop.f32.mrb[94].mxu1  ;;  %v7117_v36 = vmax.f32 %v7098_v12, 0.0 }
 0x473   : > { %v7102_v61 = vadd.f32 %v7101_v54, %v27676_v11  ;;  %v7103_v48 = vpop.f32.mrb[95].mxu1  ;;  %15807 = vmatmul.mubr.msk.f32.vlgmr.msra.gmra.mrb[120].mxu0 %vm317_vm0, %v25790_v7 }
 0x474   : > { %v7104_v20 = vadd.f32 %v7103_v48, %v27676_v11  ;;  %17371 = vmatpush3.bf16.xpose.msk.msra.mxu1 %vm20075_vm1, %v17369_v40  ;;  %17393 = vmatpush1.bf16.msra.mxu0 %v27984_v0  ;;  %v17381_v40 = vpack.c.bf16 %v19900_v9, %v19899_v46  ;;  %v19918_v12 = vpop.permute.xlu1 %19917  ;;  %v27988_v48 = vld [vmem:[#allocation10_spill] sm:$0xff]  ;;  %v27992_v46 = vld [vmem:[#allocation17_spill] sm:$0xff] }
 0x475   : > { %v7120_v62 = vmax.f32 %v7102_v61, 0.0  ;;  %17395 = vmatprep.subr.bf16.mxu0 %v27985_v51  ;;  %15808 = vmatprep.mubr.msk.f32.mxu0 %vm317_vm0, %v25743_v23  ;;  %v19920_v54 = vunpack.i.h.bf16 %v19918_v12  ;;  %v19919_v61 = vunpack.i.l.bf16 %v19918_v12  ;;  %v27991_v51 = vld [vmem:[#allocation32_spill] sm:$0xff] }
 0x476   : > { %v7121_v49 = vmax.f32 %v7104_v20, 0.0  ;;  %17374 = vmatprep.subr.msk.bf16.mxu1 %vm20075_vm1, %v17372_v18  ;;  %v17384_v18 = vpack.c.bf16 %v19910_v24, %v19909_v55 }
 0x477   : > { %v25833_v17 = vpack.c.bf16 %v7120_v62, %v7116_v39  ;;  %15809 = vmatmul.mubr.msk.f32.gmra.mrb[122].mxu0 %vm317_vm0, %v25743_v23  ;;  %v17387_v16 = vpack.c.bf16 %v19920_v54, %v19919_v61  ;;  %v25880_v39 = vld [vmem:[%s27487_s3 + $0x10] sm:$0xff] }
 0x478   : > { %v25837_v30 = vpack.c.bf16 %v7121_v49, %v7117_v36  ;;  %17397 = vmatpush1.bf16.msra.mxu0 %v27986_v28  ;;  %15810 = vmatprep.mubr.msk.f32.mxu0 %vm317_vm0, %v25760_v38 }
 0x479   : > { %17407 = vmatprep.subr.bf16.mxu0 %v27987_v45 }
 0x47b   : > { %15811 = vmatmul.mubr.msk.f32.gmra.mrb[124].mxu0 %vm317_vm0, %v25760_v38 }
 0x47c   : > { %17377 = vmatpush3.bf16.xpose.msk.msra.mxu1 %vm20075_vm1, %v17375_v15  ;;  %15812 = vmatprep.mubr.msk.f32.mxu0 %vm317_vm0, %v25777_v26 }
 0x47d   : > { %17380 = vmatprep.subr.msk.bf16.mxu1 %vm20075_vm1, %v17378_v31  ;;  %v25895_v31 = vld [vmem:[%s27487_s3 + $0x18] sm:$0xff] }
 0x47f   : > { %15813 = vmatmul.mubr.msk.f32.gmra.mrb[126].mxu0 %vm317_vm0, %v25777_v26 }
 0x480   : > { %9635 = vmatprep.mubr.f32.mxu0 %v19986_v21 }
 0x483   : > { %14439 = vmatmul.mubr.msk.f32.vlgmr.msra.gmra.mrb[128].mxu0 %vm9558_vm2, %v25857_v2 }
 0x484   : > { %17409 = vmatpush1.bf16.msra.mxu0 %v27988_v48  ;;  %17383 = vmatpush3.bf16.xpose.msk.msra.mxu1 %vm20075_vm1, %v17381_v40 }
 0x485   : > { %17411 = vmatprep.subr.bf16.mxu0 %v27989_v8  ;;  %9641 = vmatprep.mubr.f32.mxu0 %v19986_v21 }
 0x486   : > { %v7588_v20 = vpop.f32.mrb[96].mxu0  ;;  %17386 = vmatprep.subr.msk.bf16.mxu1 %vm20075_vm1, %v17384_v18 }
 0x487   : > { %v7590_v0 = vpop.f32.mrb[97].mxu0  ;;  %14440 = vmatmul.mubr.msk.f32.gmra.mrb[130].mxu0 %vm9558_vm2, %v25867_v56  ;;  %v7589_v62 = vadd.f32 %v7588_v20, %v27649_v13 }
 0x488   : > { %17413 = vmatpush1.bf16.msra.mxu0 %v27990_v47  ;;  %9647 = vmatprep.mubr.f32.mxu0 %v19986_v21  ;;  %v7591_v36 = vadd.f32 %v7590_v0, %v27649_v13  ;;  %v27993_v0 = vld [vmem:[#allocation31_spill] sm:$0xff] }
 0x489   : > { %17423 = vmatprep.subr.bf16.mxu0 %v27991_v51  ;;  %v7700_v45 = vmax.f32 %v7589_v62, 0.0  ;;  %v27995_v51 = vld [vmem:[#allocation34_spill] sm:$0xff] }
 0x48a   : > { %v7594_v49 = vpop.f32.mrb[98].mxu0  ;;  %v7701_v34 = vmax.f32 %v7591_v36, 0.0  ;;  %v27996_v36 = vld [vmem:[#allocation21_spill] sm:$0xff] }
 0x48b   : > { %v7595_v58 = vadd.f32 %v7594_v49, %v27672_v59  ;;  %v7596_v15 = vpop.f32.mrb[99].mxu0  ;;  %14441 = vmatmul.mubr.msk.f32.gmra.mrb[132].mxu0 %vm9558_vm2, %v25880_v39 }
 0x48c   : > { %v7597_v28 = vadd.f32 %v7596_v15, %v27672_v59  ;;  %17389 = vmatpush3.bf16.xpose.msk.msra.mxu1 %vm20075_vm1, %v17387_v16  ;;  %9653 = vmatprep.mubr.f32.mxu0 %v19986_v21  ;;  %v27994_v16 = vld [vmem:[#allocation13_spill] sm:$0xff] }
 0x48d   : > { %v7704_v9 = vmax.f32 %v7595_v58, 0.0  ;;  %17399 = vmatprep.subr.bf16.mxu1 %v27992_v46  ;;  %v28000_v46 = vld [vmem:[#allocation16_spill] sm:$0xff] }
 0x48e   : > { %v7705_v24 = vmax.f32 %v7597_v28, 0.0  ;;  %v7600_v55 = vpop.f32.mrb[100].mxu0  ;;  %v27997_v28 = vld [vmem:[#allocation33_spill] sm:$0xff] }
 0x48f   : > { %v25898_v40 = vpack.c.bf16 %v7704_v9, %v7700_v45  ;;  %v7602_v18 = vpop.f32.mrb[101].mxu0  ;;  %14442 = vmatmul.mubr.msk.f32.gmra.mrb[134].mxu0 %vm9558_vm2, %v25895_v31  ;;  %v7601_v12 = vadd.f32 %v7600_v55, %v27675_v25  ;;  %v27998_v45 = vld [vmem:[#allocation19_spill] sm:$0xff]  ;;  %v27999_v9 = vld [vmem:[#allocation6_spill] sm:$0xff] }
 0x490   : > { %v25902_v6 = vpack.c.bf16 %v7705_v24, %v7701_v34  ;;  %9845 = vmatprep.mubr.f32.mxu0 %v19986_v21  ;;  %v7603_v54 = vadd.f32 %v7602_v18, %v27675_v25  ;;  %v28003_v34 = vld [vmem:[#allocation4_spill] sm:$0xff]  ;;  %v28005_v18 = vld [vmem:[#allocation15_spill] sm:$0xff] }
 0x491   : > { %v7708_v47 = vmax.f32 %v7601_v12, 0.0  ;;  %v28006_v12 = vld [vmem:[#allocation22_spill] sm:$0xff] }
 0x492   : > { %v7606_v61 = vpop.f32.mrb[102].mxu0  ;;  %v7709_v49 = vmax.f32 %v7603_v54, 0.0 }
 0x493   : > { %v7607_v48 = vadd.f32 %v7606_v61, %v27676_v11  ;;  %v7608_v8 = vpop.f32.mrb[103].mxu0  ;;  %15847 = vmatmul.mubr.msk.f32.vlgmr.msra.gmra.mrb[120].mxu1 %vm317_vm0, %v25790_v7  ;;  %14447 = vmatmul.mubr.msk.f32.vlgmr.msra.gmra.mrb[136].mxu0 %vm9558_vm2, %v25857_v2  ;;  %v28007_v61 = vld [vmem:[#allocation36_spill] sm:$0xff] }
 0x494   : > { %v7609_v20 = vadd.f32 %v7608_v8, %v27676_v11  ;;  %17425 = vmatpush1.bf16.msra.mxu0 %v27993_v0  ;;  %17401 = vmatpush1.bf16.msra.mxu1 %v27994_v16 }
 0x495   : > { %v7712_v62 = vmax.f32 %v7607_v48, 0.0  ;;  %17427 = vmatprep.subr.bf16.mxu0 %v27995_v51  ;;  %17403 = vmatprep.subr.bf16.mxu1 %v27996_v36  ;;  %v28008_v48 = vld [vmem:[#allocation87_spill] sm:$0xff] }
 0x496   : > { %v7713_v58 = vmax.f32 %v7609_v20, 0.0  ;;  %15848 = vmatprep.mubr.msk.f32.mxu1 %vm317_vm0, %v25743_v23  ;;  %9851 = vmatprep.mubr.f32.mxu0 %v19986_v21 }
 0x497   : > { %v25920_v7 = vpack.c.bf16 %v7712_v62, %v7708_v47  ;;  %15849 = vmatmul.mubr.msk.f32.gmra.mrb[122].mxu1 %vm317_vm0, %v25743_v23  ;;  %14448 = vmatmul.mubr.msk.f32.gmra.mrb[138].mxu0 %vm9558_vm2, %v25867_v56  ;;  %v28001_v23 = vld [vmem:[#allocation11_spill] sm:$0xff] }
 0x498   : > { %v25926_v15 = vpack.c.bf16 %v7713_v58, %v7709_v49  ;;  %17429 = vmatpush1.bf16.msra.mxu0 %v27997_v28  ;;  %17405 = vmatpush1.bf16.msra.mxu1 %v27998_v45 }
 0x499   : > { %17439 = vmatprep.subr.bf16.mxu0 %v27999_v9  ;;  %17415 = vmatprep.subr.bf16.mxu1 %v28000_v46 }
 0x49a   : > { %15850 = vmatprep.mubr.msk.f32.mxu1 %vm317_vm0, %v25760_v38  ;;  %9857 = vmatprep.mubr.f32.mxu0 %v19986_v21 }
 0x49b   : > { %15851 = vmatmul.mubr.msk.f32.gmra.mrb[124].mxu1 %vm317_vm0, %v25760_v38  ;;  %14449 = vmatmul.mubr.msk.f32.gmra.mrb[140].mxu0 %vm9558_vm2, %v25880_v39  ;;  %v28002_v38 = vld [vmem:[#allocation7_spill] sm:$0xff] }
 0x49c   : > { %15852 = vmatprep.mubr.msk.f32.mxu1 %vm317_vm0, %v25777_v26  ;;  %9863 = vmatprep.mubr.f32.mxu0 %v19986_v21 }
 0x49f   : > { %15853 = vmatmul.mubr.msk.f32.gmra.mrb[126].mxu1 %vm317_vm0, %v25777_v26  ;;  %14450 = vmatmul.mubr.msk.f32.gmra.mrb[142].mxu0 %vm9558_vm2, %v25895_v31  ;;  %v28004_v26 = vld [vmem:[#allocation23_spill] sm:$0xff] }
 0x4a0   : > { %9724 = vmatprep.mubr.f32.mxu1 %v19986_v21  ;;  %10071 = vmatprep.mubr.f32.mxu0 %v19986_v21 }
 0x4a3   : > { %14443 = vmatmul.mubr.msk.f32.vlgmr.msra.gmra.mrb[128].mxu1 %vm9558_vm2, %v25857_v2  ;;  %14455 = vmatmul.mubr.msk.f32.vlgmr.msra.gmra.mrb[144].mxu0 %vm9558_vm2, %v25857_v2 }
 0x4a4   : > { %17417 = vmatpush1.bf16.msra.mxu1 %v28001_v23  ;;  %17441 = vmatpush1.bf16.msra.mxu0 %v28002_v38 }
 0x4a5   : > { %17419 = vmatprep.subr.bf16.mxu1 %v28003_v34  ;;  %17443 = vmatprep.subr.bf16.mxu0 %v28004_v26 }
 0x4a6   : > { %v7677_v24 = vpop.f32.mrb[96].mxu1  ;;  %9730 = vmatprep.mubr.f32.mxu1 %v19986_v21  ;;  %10077 = vmatprep.mubr.f32.mxu0 %v19986_v21 }
 0x4a7   : > { %v7679_v55 = vpop.f32.mrb[97].mxu1  ;;  %14444 = vmatmul.mubr.msk.f32.gmra.mrb[130].mxu1 %vm9558_vm2, %v25867_v56  ;;  %14456 = vmatmul.mubr.msk.f32.gmra.mrb[146].mxu0 %vm9558_vm2, %v25867_v56  ;;  %v7678_v54 = vadd.f32 %v7677_v24, %v27649_v13 }
 0x4a8   : > { %17421 = vmatpush1.bf16.msra.mxu1 %v28005_v18  ;;  %17445 = vmatpush1.bf16.msra.mxu0 %v28006_v12  ;;  %v7680_v8 = vadd.f32 %v7679_v55, %v27649_v13  ;;  %v28009_v55 = vld [vmem:[#allocation35_spill] sm:$0xff]  ;;  %v28010_v18 = vld [vmem:[#allocation85_spill] sm:$0xff] }
 0x4a9   : > { %17431 = vmatprep.subr.bf16.mxu1 %v28007_v61  ;;  %17455 = vmatprep.subr.bf16.mxu0 %v28008_v48  ;;  %v7702_v62 = vmax.f32 %v7678_v54, 0.0  ;;  %v28011_v61 = vld [vmem:[#allocation38_spill] sm:$0xff]  ;;  %v28012_v48 = vld [vmem:[#allocation91_spill] sm:$0xff] }
 0x4aa   : > { %v7683_v20 = vpop.f32.mrb[98].mxu1  ;;  %9736 = vmatprep.mubr.f32.mxu1 %v19986_v21  ;;  %10083 = vmatprep.mubr.f32.mxu0 %v19986_v21  ;;  %v7703_v36 = vmax.f32 %v7680_v8, 0.0 }
 0x4ab   : > { %v7684_v0 = vadd.f32 %v7683_v20, %v27672_v59  ;;  %v7685_v16 = vpop.f32.mrb[99].mxu1  ;;  %14445 = vmatmul.mubr.msk.f32.gmra.mrb[132].mxu1 %vm9558_vm2, %v25880_v39  ;;  %14457 = vmatmul.mubr.msk.f32.gmra.mrb[148].mxu0 %vm9558_vm2, %v25880_v39 }
 0x4ac   : > { %v7686_v47 = vadd.f32 %v7685_v16, %v27672_v59  ;;  %9742 = vmatprep.mubr.f32.mxu1 %v19986_v21  ;;  %10089 = vmatprep.mubr.f32.mxu0 %v19986_v21 }
 0x4ad   : > { %v7706_v51 = vmax.f32 %v7684_v0, 0.0 }
 0x4ae   : > { %v7707_v49 = vmax.f32 %v7686_v47, 0.0  ;;  %v7689_v58 = vpop.f32.mrb[100].mxu1  ;;  %v28013_v47 = vld [vmem:[#allocation37_spill] sm:$0xff] }
 0x4af   : > { %v25978_v28 = vpack.c.bf16 %v7706_v51, %v7702_v62  ;;  %v7691_v45 = vpop.f32.mrb[101].mxu1  ;;  %14446 = vmatmul.mubr.msk.f32.gmra.mrb[134].mxu1 %vm9558_vm2, %v25895_v31  ;;  %14458 = vmatmul.mubr.msk.f32.gmra.mrb[150].mxu0 %vm9558_vm2, %v25895_v31  ;;  %v7690_v46 = vadd.f32 %v7689_v58, %v27675_v25  ;;  %v28014_v62 = vld [vmem:[#allocation90_spill] sm:$0xff]  ;;  %v28015_v51 = vld [vmem:[#allocation48_spill] sm:$0xff]  ;;  %v28018_v58 = vld [vmem:[#allocation51_spill] sm:$0xff] }
 0x4b0   : > { %v25984_v9 = vpack.c.bf16 %v7707_v49, %v7703_v36  ;;  %9934 = vmatprep.mubr.f32.mxu1 %v19986_v21  ;;  %10297 = vmatprep.mubr.f32.mxu0 %v19986_v21  ;;  %v7692_v23 = vadd.f32 %v7691_v45, %v27675_v25  ;;  %v28016_v36 = vld [vmem:[#allocation52_spill] sm:$0xff]  ;;  %v28017_v49 = vld [vmem:[#allocation46_spill] sm:$0xff] }
 0x4b1   : > { %v7710_v12 = vmax.f32 %v7690_v46, 0.0  ;;  %v28019_v45 = vld [vmem:[#allocation58_spill] sm:$0xff]  ;;  %v28020_v46 = vld [vmem:[#allocation55_spill] sm:$0xff] }
 0x4b2   : > { %v7695_v38 = vpop.f32.mrb[102].mxu1  ;;  %v7711_v8 = vmax.f32 %v7692_v23, 0.0 }
 0x4b3   : > { %v7696_v34 = vadd.f32 %v7695_v38, %v27676_v11  ;;  %v7697_v26 = vpop.f32.mrb[103].mxu1  ;;  %14451 = vmatmul.mubr.msk.f32.vlgmr.msra.gmra.mrb[136].mxu1 %vm9558_vm2, %v25857_v2  ;;  %14463 = vmatmul.mubr.msk.f32.vlgmr.msra.gmra.mrb[152].mxu0 %vm9558_vm2, %v25857_v2 }
 0x4b4   : > { %v7698_v24 = vadd.f32 %v7697_v26, %v27676_v11  ;;  %17433 = vmatpush1.bf16.msra.mxu1 %v28009_v55  ;;  %17457 = vmatpush1.bf16.msra.mxu0 %v28010_v18  ;;  %v28022_v26 = vld [vmem:[#allocation77_spill] sm:$0xff]  ;;  %v28023_v55 = vld [vmem:[#allocation30_spill] sm:$0xff] }
 0x4b5   : > { %v7714_v54 = vmax.f32 %v7696_v34, 0.0  ;;  %17435 = vmatprep.subr.bf16.mxu1 %v28011_v61  ;;  %17459 = vmatprep.subr.bf16.mxu0 %v28012_v48  ;;  %v28021_v34 = vld [vmem:[#allocation56_spill] sm:$0xff]  ;;  %v28024_v18 = vld [vmem:[#allocation98_spill] sm:$0xff] }
 0x4b6   : > { %v7715_v20 = vmax.f32 %v7698_v24, 0.0  ;;  %9940 = vmatprep.mubr.f32.mxu1 %v19986_v21  ;;  %10303 = vmatprep.mubr.f32.mxu0 %v19986_v21 }
 0x4b7   : > { %v26002_v0 = vpack.c.bf16 %v7714_v54, %v7710_v12  ;;  %14452 = vmatmul.mubr.msk.f32.gmra.mrb[138].mxu1 %vm9558_vm2, %v25867_v56  ;;  %14464 = vmatmul.mubr.msk.f32.gmra.mrb[154].mxu0 %vm9558_vm2, %v25867_v56 }
 0x4b8   : > { %v26008_v16 = vpack.c.bf16 %v7715_v20, %v7711_v8  ;;  %17437 = vmatpush1.bf16.msra.mxu1 %v28013_v47  ;;  %17461 = vmatpush1.bf16.msra.mxu0 %v28014_v62 }
 0x4b9   : > { %17447 = vmatprep.subr.bf16.mxu1 %v28015_v51  ;;  %17471 = vmatprep.subr.bf16.mxu0 %v28016_v36 }
 0x4ba   : > { %9946 = vmatprep.mubr.f32.mxu1 %v19986_v21  ;;  %10309 = vmatprep.mubr.f32.mxu0 %v19986_v21 }
 0x4bb   : > { %14453 = vmatmul.mubr.msk.f32.gmra.mrb[140].mxu1 %vm9558_vm2, %v25880_v39  ;;  %14465 = vmatmul.mubr.msk.f32.gmra.mrb[156].mxu0 %vm9558_vm2, %v25880_v39 }
 0x4bc   : > { %9952 = vmatprep.mubr.f32.mxu1 %v19986_v21  ;;  %10315 = vmatprep.mubr.f32.mxu0 %v19986_v21 }
 0x4bf   : > { %14454 = vmatmul.mubr.msk.f32.gmra.mrb[142].mxu1 %vm9558_vm2, %v25895_v31  ;;  %14466 = vmatmul.mubr.msk.f32.gmra.mrb[158].mxu0 %vm9558_vm2, %v25895_v31 }
 0x4c0   : > { %10160 = vmatprep.mubr.f32.mxu1 %v19986_v21  ;;  %10523 = vmatprep.mubr.f32.mxu0 %v19986_v21 }
 0x4c3   : > { %14459 = vmatmul.mubr.msk.f32.vlgmr.msra.gmra.mrb[144].mxu1 %vm9558_vm2, %v25857_v2  ;;  %14471 = vmatmul.mubr.msk.f32.vlgmr.msra.gmra.mrb[160].mxu0 %vm9558_vm2, %v25857_v2 }
 0x4c4   : > { %17449 = vmatpush1.bf16.msra.mxu1 %v28017_v49  ;;  %17473 = vmatpush1.bf16.msra.mxu0 %v28018_v58 }
 0x4c5   : > { %17451 = vmatprep.subr.bf16.mxu1 %v28019_v45  ;;  %17475 = vmatprep.subr.bf16.mxu0 %v28020_v46 }
 0x4c6   : > { %v8182_v23 = vpop.f32.mrb[104].mxu0  ;;  %10166 = vmatprep.mubr.f32.mxu1 %v19986_v21  ;;  %10529 = vmatprep.mubr.f32.mxu0 %v19986_v21 }
 0x4c7   : > { %v8184_v38 = vpop.f32.mrb[105].mxu0  ;;  %14460 = vmatmul.mubr.msk.f32.gmra.mrb[146].mxu1 %vm9558_vm2, %v25867_v56  ;;  %14472 = vmatmul.mubr.msk.f32.gmra.mrb[162].mxu0 %vm9558_vm2, %v25867_v56  ;;  %v8183_v24 = vadd.f32 %v8182_v23, %v27649_v13 }
 0x4c8   : > { %17453 = vmatpush1.bf16.msra.mxu1 %v28021_v34  ;;  %17477 = vmatpush1.bf16.msra.mxu0 %v28022_v26  ;;  %v8185_v12 = vadd.f32 %v8184_v38, %v27649_v13 }
 0x4c9   : > { %17463 = vmatprep.subr.bf16.mxu1 %v28023_v55  ;;  %17487 = vmatprep.subr.bf16.mxu0 %v28024_v18  ;;  %v8294_v20 = vmax.f32 %v8183_v24, 0.0  ;;  %v28025_v55 = vld [vmem:[#allocation29_spill] sm:$0xff] }
 0x4ca   : > { %v8188_v54 = vpop.f32.mrb[106].mxu0  ;;  %10172 = vmatprep.mubr.f32.mxu1 %v19986_v21  ;;  %10535 = vmatprep.mubr.f32.mxu0 %v19986_v21  ;;  %v8295_v62 = vmax.f32 %v8185_v12, 0.0  ;;  %v28026_v18 = vld [vmem:[#allocation97_spill] sm:$0xff] }
 0x4cb   : > { %v8189_v61 = vadd.f32 %v8188_v54, %v27672_v59  ;;  %v8190_v48 = vpop.f32.mrb[107].mxu0  ;;  %14461 = vmatmul.mubr.msk.f32.gmra.mrb[148].mxu1 %vm9558_vm2, %v25880_v39  ;;  %14473 = vmatmul.mubr.msk.f32.gmra.mrb[164].mxu0 %vm9558_vm2, %v25880_v39 }
 0x4cc   : > { %v8191_v8 = vadd.f32 %v8190_v48, %v27672_v59  ;;  %10178 = vmatprep.mubr.f32.mxu1 %v19986_v21  ;;  %10541 = vmatprep.mubr.f32.mxu0 %v19986_v21  ;;  %v28028_v48 = vld [vmem:[#allocation100_spill] sm:$0xff] }
 0x4cd   : > { %v8298_v47 = vmax.f32 %v8189_v61, 0.0  ;;  %v28027_v61 = vld [vmem:[#allocation28_spill] sm:$0xff] }
 0x4ce   : > { %v8299_v51 = vmax.f32 %v8191_v8, 0.0  ;;  %v8194_v36 = vpop.f32.mrb[108].mxu0 }
 0x4cf   : > { %v26058_v49 = vpack.c.bf16 %v8298_v47, %v8294_v20  ;;  %v8196_v58 = vpop.f32.mrb[109].mxu0  ;;  %14462 = vmatmul.mubr.msk.f32.gmra.mrb[150].mxu1 %vm9558_vm2, %v25895_v31  ;;  %14474 = vmatmul.mubr.msk.f32.gmra.mrb[166].mxu0 %vm9558_vm2, %v25895_v31  ;;  %v8195_v46 = vadd.f32 %v8194_v36, %v27675_v25  ;;  %v28030_v36 = vld [vmem:[#allocation99_spill] sm:$0xff] }
 0x4d0   : > { %v26064_v45 = vpack.c.bf16 %v8299_v51, %v8295_v62  ;;  %10386 = vmatprep.mubr.f32.mxu1 %v19986_v21  ;;  %10749 = vmatprep.mubr.f32.mxu0 %v19986_v21  ;;  %v8197_v23 = vadd.f32 %v8196_v58, %v27675_v25  ;;  %v28029_v51 = vld [vmem:[#allocation26_spill] sm:$0xff]  ;;  %v28031_v58 = vld [vmem:[#allocation80_spill] sm:$0xff] }
 0x4d1   : > { %v8302_v12 = vmax.f32 %v8195_v46, 0.0  ;;  %v28032_v46 = vld [vmem:[#allocation24_spill] sm:$0xff] }
 0x4d2   : > { %v8200_v38 = vpop.f32.mrb[110].mxu0  ;;  %v8303_v8 = vmax.f32 %v8197_v23, 0.0  ;;  %v28033_v23 = vld [vmem:[#allocation74_spill] sm:$0xff] }
 0x4d3   : > { %v8201_v34 = vadd.f32 %v8200_v38, %v27676_v11  ;;  %v8202_v26 = vpop.f32.mrb[111].mxu0  ;;  %14467 = vmatmul.mubr.msk.f32.vlgmr.msra.gmra.mrb[152].mxu1 %vm9558_vm2, %v25857_v2  ;;  %14479 = vmatmul.mubr.msk.f32.vlgmr.msra.gmra.mrb[168].mxu0 %vm9558_vm2, %v25857_v2  ;;  %v28034_v38 = vld [vmem:[#allocation47_spill] sm:$0xff] }
 0x4d4   : > { %v8203_v24 = vadd.f32 %v8202_v26, %v27676_v11  ;;  %17465 = vmatpush1.bf16.msra.mxu1 %v28025_v55  ;;  %17489 = vmatpush1.bf16.msra.mxu0 %v28026_v18  ;;  %v28036_v26 = vld [vmem:[#allocation75_spill] sm:$0xff]  ;;  %v28037_v18 = vld [vmem:[#allocation86_spill] sm:$0xff] }
 0x4d5   : > { %v8306_v54 = vmax.f32 %v8201_v34, 0.0  ;;  %17467 = vmatprep.subr.bf16.mxu1 %v28027_v61  ;;  %17491 = vmatprep.subr.bf16.mxu0 %v28028_v48  ;;  %v28035_v34 = vld [vmem:[#allocation79_spill] sm:$0xff]  ;;  %v28039_v61 = vld [vmem:[#allocation61_spill] sm:$0xff] }
 0x4d6   : > { %v8307_v20 = vmax.f32 %v8203_v24, 0.0  ;;  %10392 = vmatprep.mubr.f32.mxu1 %v19986_v21  ;;  %10755 = vmatprep.mubr.f32.mxu0 %v19986_v21 }
 0x4d7   : > { %v26082_v47 = vpack.c.bf16 %v8306_v54, %v8302_v12  ;;  %14468 = vmatmul.mubr.msk.f32.gmra.mrb[154].mxu1 %vm9558_vm2, %v25867_v56  ;;  %14480 = vmatmul.mubr.msk.f32.gmra.mrb[170].mxu0 %vm9558_vm2, %v25867_v56  ;;  %v28038_v12 = vld [vmem:[#allocation40_spill] sm:$0xff] }
 0x4d8   : > { %v26088_v62 = vpack.c.bf16 %v8307_v20, %v8303_v8  ;;  %17469 = vmatpush1.bf16.msra.mxu1 %v28029_v51  ;;  %17493 = vmatpush1.bf16.msra.mxu0 %v28030_v36 }
 0x4d9   : > { %17479 = vmatprep.subr.bf16.mxu1 %v28031_v58  ;;  %17503 = vmatprep.subr.bf16.mxu0 %v28032_v46 }
 0x4da   : > { %10398 = vmatprep.mubr.f32.mxu1 %v19986_v21  ;;  %10761 = vmatprep.mubr.f32.mxu0 %v19986_v21 }
 0x4db   : > { %14469 = vmatmul.mubr.msk.f32.gmra.mrb[156].mxu1 %vm9558_vm2, %v25880_v39  ;;  %14481 = vmatmul.mubr.msk.f32.gmra.mrb[172].mxu0 %vm9558_vm2, %v25880_v39 }
 0x4dc   : > { %10404 = vmatprep.mubr.f32.mxu1 %v19986_v21  ;;  %10767 = vmatprep.mubr.f32.mxu0 %v19986_v21 }
 0x4df   : > { %14470 = vmatmul.mubr.msk.f32.gmra.mrb[158].mxu1 %vm9558_vm2, %v25895_v31  ;;  %14482 = vmatmul.mubr.msk.f32.gmra.mrb[174].mxu0 %vm9558_vm2, %v25895_v31 }
 0x4e0   : > { %10612 = vmatprep.mubr.f32.mxu1 %v19986_v21  ;;  %10975 = vmatprep.mubr.f32.mxu0 %v19986_v21 }
 0x4e3   : > { %14475 = vmatmul.mubr.msk.f32.vlgmr.msra.gmra.mrb[160].mxu1 %vm9558_vm2, %v25857_v2  ;;  %14487 = vmatmul.mubr.msk.f32.vlgmr.msra.gmra.mrb[176].mxu0 %vm9558_vm2, %v25857_v2 }
 0x4e4   : > { %17481 = vmatpush1.bf16.msra.mxu1 %v28033_v23  ;;  %17505 = vmatpush1.bf16.msra.mxu0 %v28034_v38 }
 0x4e5   : > { %17483 = vmatprep.subr.bf16.mxu1 %v28035_v34  ;;  %17507 = vmatprep.subr.bf16.mxu0 %v28036_v26 }
 0x4e6   : > { %v8271_v24 = vpop.f32.mrb[104].mxu1  ;;  %10618 = vmatprep.mubr.f32.mxu1 %v19986_v21  ;;  %10981 = vmatprep.mubr.f32.mxu0 %v19986_v21 }
 0x4e7   : > { %v8273_v55 = vpop.f32.mrb[105].mxu1  ;;  %14476 = vmatmul.mubr.msk.f32.gmra.mrb[162].mxu1 %vm9558_vm2, %v25867_v56  ;;  %14488 = vmatmul.mubr.msk.f32.gmra.mrb[178].mxu0 %vm9558_vm2, %v25867_v56  ;;  %v8272_v54 = vadd.f32 %v8271_v24, %v27649_v13 }
 0x4e8   : > { %17485 = vmatpush1.bf16.msra.mxu1 %v28037_v18  ;;  %17509 = vmatpush1.bf16.msra.mxu0 %v28038_v12  ;;  %v8274_v48 = vadd.f32 %v8273_v55, %v27649_v13 }
 0x4e9   : > { %17495 = vmatprep.subr.bf16.mxu1 %v28039_v61  ;;  %17519 = vmatprep.subr.bf16.mxu0 %v24985_v52  ;;  %v8296_v52 = vmax.f32 %v8272_v54, 0.0 }
 0x4ea   : > { %v8277_v8 = vpop.f32.mrb[106].mxu1  ;;  %10624 = vmatprep.mubr.f32.mxu1 %v19986_v21  ;;  %10987 = vmatprep.mubr.f32.mxu0 %v19986_v21  ;;  %v8297_v46 = vmax.f32 %v8274_v48, 0.0 }
 0x4eb   : > { %v8278_v20 = vadd.f32 %v8277_v8, %v27672_v59  ;;  %v8279_v51 = vpop.f32.mrb[107].mxu1  ;;  %14477 = vmatmul.mubr.msk.f32.gmra.mrb[164].mxu1 %vm9558_vm2, %v25880_v39  ;;  %14489 = vmatmul.mubr.msk.f32.gmra.mrb[180].mxu0 %vm9558_vm2, %v25880_v39  ;;  %v28040_v8 = vld [vmem:[#allocation42_spill] sm:$0xff] }
 0x4ec   : > { %v8280_v36 = vadd.f32 %v8279_v51, %v27672_v59  ;;  %10630 = vmatprep.mubr.f32.mxu1 %v19986_v21  ;;  %10993 = vmatprep.mubr.f32.mxu0 %v19986_v21 }
 0x4ed   : > { %v8300_v58 = vmax.f32 %v8278_v20, 0.0 }
 0x4ee   : > { %v8301_v23 = vmax.f32 %v8280_v36, 0.0  ;;  %v8283_v38 = vpop.f32.mrb[108].mxu1  ;;  %v28041_v36 = vld [vmem:[#allocation66_spill] sm:$0xff] }
 0x4ef   : > { %v26138_v34 = vpack.c.bf16 %v8300_v58, %v8296_v52  ;;  %v8285_v26 = vpop.f32.mrb[109].mxu1  ;;  %14478 = vmatmul.mubr.msk.f32.gmra.mrb[166].mxu1 %vm9558_vm2, %v25895_v31  ;;  %14490 = vmatmul.mubr.msk.f32.gmra.mrb[182].mxu0 %vm9558_vm2, %v25895_v31  ;;  %v8284_v55 = vadd.f32 %v8283_v38, %v27675_v25  ;;  %v28042_v52 = vld [vmem:[#allocation63_spill] sm:$0xff]  ;;  %v28043_v38 = vld [vmem:[#allocation65_spill] sm:$0xff] }
 0x4f0   : > { %v26144_v24 = vpack.c.bf16 %v8301_v23, %v8297_v46  ;;  %10838 = vmatprep.mubr.f32.mxu1 %v19986_v21  ;;  %11201 = vmatprep.mubr.f32.mxu0 %v19986_v21  ;;  %v8286_v18 = vadd.f32 %v8285_v26, %v27675_v25  ;;  %v28044_v26 = vld [vmem:[#allocation62_spill] sm:$0xff] }
 0x4f1   : > { %v8304_v20 = vmax.f32 %v8284_v55, 0.0  ;;  %v28045_v55 = vld [vmem:[#allocation89_spill] sm:$0xff] }
 0x4f2   : > { %v8289_v12 = vpop.f32.mrb[110].mxu1  ;;  %v8305_v58 = vmax.f32 %v8286_v18, 0.0  ;;  %v28047_v18 = vld [vmem:[#allocation73_spill] sm:$0xff] }
 0x4f3   : > { %v8290_v54 = vadd.f32 %v8289_v12, %v27676_v11  ;;  %v8291_v61 = vpop.f32.mrb[111].mxu1  ;;  %14483 = vmatmul.mubr.msk.f32.vlgmr.msra.gmra.mrb[168].mxu1 %vm9558_vm2, %v25857_v2  ;;  %14495 = vmatmul.mubr.msk.f32.vlgmr.msra.gmra.mrb[184].mxu0 %vm9558_vm2, %v25857_v2 }
 0x4f4   : > { %v8292_v48 = vadd.f32 %v8291_v61, %v27676_v11  ;;  %17497 = vmatpush1.bf16.msra.mxu1 %v28040_v8  ;;  %17521 = vmatpush1.bf16.msra.mxu0 %v24979_v37  ;;  %v28048_v61 = vld [vmem:[#allocation67_spill] sm:$0xff] }
 0x4f5   : > { %v8308_v51 = vmax.f32 %v8290_v54, 0.0  ;;  %17499 = vmatprep.subr.bf16.mxu1 %v28041_v36  ;;  %17523 = vmatprep.subr.bf16.mxu0 %v28042_v52 }
 0x4f6   : > { %v8309_v46 = vmax.f32 %v8292_v48, 0.0  ;;  %10844 = vmatprep.mubr.f32.mxu1 %v19986_v21  ;;  %11207 = vmatprep.mubr.f32.mxu0 %v19986_v21  ;;  %v28049_v48 = vld [vmem:[#allocation83_spill] sm:$0xff] }
 0x4f7   : > { %v26162_v23 = vpack.c.bf16 %v8308_v51, %v8304_v20  ;;  %14484 = vmatmul.mubr.msk.f32.gmra.mrb[170].mxu1 %vm9558_vm2, %v25867_v56  ;;  %14496 = vmatmul.mubr.msk.f32.gmra.mrb[186].mxu0 %vm9558_vm2, %v25867_v56 }
 0x4f8   : > { %v26168_v37 = vpack.c.bf16 %v8309_v46, %v8305_v58  ;;  %17501 = vmatpush1.bf16.msra.mxu1 %v28043_v38  ;;  %17525 = vmatpush1.bf16.msra.mxu0 %v28044_v26 }
 0x4f9   : > { %17511 = vmatprep.subr.bf16.mxu1 %v28045_v55  ;;  %17535 = vmatprep.subr.bf16.mxu0 %v25264_v14  ;;  %v28046_v14 = vld [vmem:[#allocation54_spill] sm:$0xff] }
 0x4fa   : > { %10850 = vmatprep.mubr.f32.mxu1 %v19986_v21  ;;  %11213 = vmatprep.mubr.f32.mxu0 %v19986_v21 }
 0x4fb   : > { %14485 = vmatmul.mubr.msk.f32.gmra.mrb[172].mxu1 %vm9558_vm2, %v25880_v39  ;;  %14497 = vmatmul.mubr.msk.f32.gmra.mrb[188].mxu0 %vm9558_vm2, %v25880_v39 }
 0x4fc   : > { %10856 = vmatprep.mubr.f32.mxu1 %v19986_v21  ;;  %11219 = vmatprep.mubr.f32.mxu0 %v19986_v21 }
 0x4ff   : > { %14486 = vmatmul.mubr.msk.f32.gmra.mrb[174].mxu1 %vm9558_vm2, %v25895_v31  ;;  %14498 = vmatmul.mubr.msk.f32.gmra.mrb[190].mxu0 %vm9558_vm2, %v25895_v31 }
 0x500   : > { %11064 = vmatprep.mubr.f32.mxu1 %v19986_v21  ;;  %11427 = vmatprep.mubr.f32.mxu0 %v19986_v21 }
 0x503   : > { %14491 = vmatmul.mubr.msk.f32.vlgmr.msra.gmra.mrb[176].mxu1 %vm9558_vm2, %v25857_v2  ;;  %14503 = vmatmul.mubr.msk.f32.vlgmr.msra.gmra.mrb[192].mxu0 %vm9558_vm2, %v25857_v2 }
 0x504   : > { %17513 = vmatpush1.bf16.msra.mxu1 %v28046_v14  ;;  %17537 = vmatpush1.bf16.msra.mxu0 %v25262_v44 }
 0x505   : > { %17515 = vmatprep.subr.bf16.mxu1 %v28047_v18  ;;  %17539 = vmatprep.subr.bf16.mxu0 %v25300_v5 }
 0x506   : > { %v8776_v12 = vpop.f32.mrb[112].mxu0  ;;  %11070 = vmatprep.mubr.f32.mxu1 %v19986_v21  ;;  %11433 = vmatprep.mubr.f32.mxu0 %v19986_v21 }
 0x507   : > { %v8778_v54 = vpop.f32.mrb[113].mxu0  ;;  %14492 = vmatmul.mubr.msk.f32.gmra.mrb[178].mxu1 %vm9558_vm2, %v25867_v56  ;;  %14504 = vmatmul.mubr.msk.f32.gmra.mrb[194].mxu0 %vm9558_vm2, %v25867_v56  ;;  %v8777_v44 = vadd.f32 %v8776_v12, %v27649_v13 }
 0x508   : > { %17517 = vmatpush1.bf16.msra.mxu1 %v28048_v61  ;;  %17541 = vmatpush1.bf16.msra.mxu0 %v25294_v4  ;;  %v8779_v5 = vadd.f32 %v8778_v54, %v27649_v13 }
 0x509   : > { %17527 = vmatprep.subr.bf16.mxu1 %v28049_v48  ;;  %17551 = vmatprep.subr.bf16.mxu0 %v25498_v27  ;;  %v8888_v27 = vmax.f32 %v8777_v44, 0.0  ;;  %v28050_v48 = vld [vmem:[#allocation60_spill] sm:$0xff] }
 0x50a   : > { %v8782_v8 = vpop.f32.mrb[114].mxu0  ;;  %11076 = vmatprep.mubr.f32.mxu1 %v19986_v21  ;;  %11439 = vmatprep.mubr.f32.mxu0 %v19986_v21  ;;  %v8889_v52 = vmax.f32 %v8779_v5, 0.0 }
 0x50b   : > { %v8783_v20 = vadd.f32 %v8782_v8, %v27672_v59  ;;  %v8784_v51 = vpop.f32.mrb[115].mxu0  ;;  %14493 = vmatmul.mubr.msk.f32.gmra.mrb[180].mxu1 %vm9558_vm2, %v25880_v39  ;;  %14505 = vmatmul.mubr.msk.f32.gmra.mrb[196].mxu0 %vm9558_vm2, %v25880_v39 }
 0x50c   : > { %v8785_v4 = vadd.f32 %v8784_v51, %v27672_v59  ;;  %11082 = vmatprep.mubr.f32.mxu1 %v19986_v21  ;;  %11445 = vmatprep.mubr.f32.mxu0 %v19986_v21 }
 0x50d   : > { %v8892_v36 = vmax.f32 %v8783_v20, 0.0  ;;  %v28051_v20 = vld [vmem:[#allocation94_spill] sm:$0xff] }
 0x50e   : > { %v8893_v58 = vmax.f32 %v8785_v4, 0.0  ;;  %v8788_v46 = vpop.f32.mrb[116].mxu0 }
 0x50f   : > { %v26218_v38 = vpack.c.bf16 %v8892_v36, %v8888_v27  ;;  %v8790_v26 = vpop.f32.mrb[117].mxu0  ;;  %14494 = vmatmul.mubr.msk.f32.gmra.mrb[182].mxu1 %vm9558_vm2, %v25895_v31  ;;  %14506 = vmatmul.mubr.msk.f32.gmra.mrb[198].mxu0 %vm9558_vm2, %v25895_v31  ;;  %v8789_v14 = vadd.f32 %v8788_v46, %v27675_v25  ;;  %v28052_v36 = vld [vmem:[#allocation93_spill] sm:$0xff] }
 0x510   : > { %v26224_v55 = vpack.c.bf16 %v8893_v58, %v8889_v52  ;;  %11290 = vmatprep.mubr.f32.mxu1 %v19986_v21  ;;  %11653 = vmatprep.mubr.f32.mxu0 %v19986_v21  ;;  %v8791_v18 = vadd.f32 %v8790_v26, %v27675_v25 }
 0x511   : > { %v8896_v5 = vmax.f32 %v8789_v14, 0.0 }
 0x512   : > { %v8794_v12 = vpop.f32.mrb[118].mxu0  ;;  %v8897_v51 = vmax.f32 %v8791_v18, 0.0 }
 0x513   : > { %v8795_v54 = vadd.f32 %v8794_v12, %v27676_v11  ;;  %v8796_v61 = vpop.f32.mrb[119].mxu0  ;;  %14499 = vmatmul.mubr.msk.f32.vlgmr.msra.gmra.mrb[184].mxu1 %vm9558_vm2, %v25857_v2  ;;  %14511 = vmatmul.mubr.msk.f32.vlgmr.msra.gmra.mrb[200].mxu0 %vm9558_vm2, %v25857_v2 }
 0x514   : > { %v8797_v44 = vadd.f32 %v8796_v61, %v27676_v11  ;;  %17529 = vmatpush1.bf16.msra.mxu1 %v28050_v48  ;;  %17553 = vmatpush1.bf16.msra.mxu0 %v25496_v1 }
 0x515   : > { %v8900_v8 = vmax.f32 %v8795_v54, 0.0  ;;  %17531 = vmatprep.subr.bf16.mxu1 %v28051_v20  ;;  %17555 = vmatprep.subr.bf16.mxu0 %v25534_v19 }
 0x516   : > { %v8901_v4 = vmax.f32 %v8797_v44, 0.0  ;;  %11296 = vmatprep.mubr.f32.mxu1 %v19986_v21  ;;  %11659 = vmatprep.mubr.f32.mxu0 %v19986_v21 }
 0x517   : > { %v26242_v27 = vpack.c.bf16 %v8900_v8, %v8896_v5  ;;  %14500 = vmatmul.mubr.msk.f32.gmra.mrb[186].mxu1 %vm9558_vm2, %v25867_v56  ;;  %14512 = vmatmul.mubr.msk.f32.gmra.mrb[202].mxu0 %vm9558_vm2, %v25867_v56 }
 0x518   : > { %v26248_v1 = vpack.c.bf16 %v8901_v4, %v8897_v51  ;;  %17533 = vmatpush1.bf16.msra.mxu1 %v28052_v36  ;;  %17557 = vmatpush1.bf16.msra.mxu0 %v25530_v43 }
 0x519   : > { %17543 = vmatprep.subr.bf16.mxu1 %v25382_v22  ;;  %17567 = vmatprep.subr.bf16.mxu0 %v25720_v63 }
 0x51a   : > { %11302 = vmatprep.mubr.f32.mxu1 %v19986_v21  ;;  %11665 = vmatprep.mubr.f32.mxu0 %v19986_v21 }
 0x51b   : > { %14501 = vmatmul.mubr.msk.f32.gmra.mrb[188].mxu1 %vm9558_vm2, %v25880_v39  ;;  %14513 = vmatmul.mubr.msk.f32.gmra.mrb[204].mxu0 %vm9558_vm2, %v25880_v39 }
 0x51c   : > { %11308 = vmatprep.mubr.f32.mxu1 %v19986_v21  ;;  %11671 = vmatprep.mubr.f32.mxu0 %v19986_v21 }
 0x51f   : > { %14502 = vmatmul.mubr.msk.f32.gmra.mrb[190].mxu1 %vm9558_vm2, %v25895_v31  ;;  %14514 = vmatmul.mubr.msk.f32.gmra.mrb[206].mxu0 %vm9558_vm2, %v25895_v31 }
 0x520   : > { %11516 = vmatprep.mubr.f32.mxu1 %v19986_v21  ;;  %11879 = vmatprep.mubr.f32.mxu0 %v19986_v21 }
 0x523   : > { %14507 = vmatmul.mubr.msk.f32.vlgmr.msra.gmra.mrb[192].mxu1 %vm9558_vm2, %v25857_v2  ;;  %14519 = vmatmul.mubr.msk.f32.vlgmr.msra.gmra.mrb[208].mxu0 %vm9558_vm2, %v25857_v2 }
 0x524   : > { %17545 = vmatpush1.bf16.msra.mxu1 %v25378_v10  ;;  %17569 = vmatpush1.bf16.msra.mxu0 %v25718_v41 }
 0x525   : > { %17547 = vmatprep.subr.bf16.mxu1 %v25416_v29  ;;  %17571 = vmatprep.subr.bf16.mxu0 %v25755_v35 }
 0x526   : > { %v8865_v22 = vpop.f32.mrb[112].mxu1  ;;  %11522 = vmatprep.mubr.f32.mxu1 %v19986_v21  ;;  %11885 = vmatprep.mubr.f32.mxu0 %v19986_v21 }
 0x527   : > { %v8867_v43 = vpop.f32.mrb[113].mxu1  ;;  %14508 = vmatmul.mubr.msk.f32.gmra.mrb[194].mxu1 %vm9558_vm2, %v25867_v56  ;;  %14520 = vmatmul.mubr.msk.f32.gmra.mrb[210].mxu0 %vm9558_vm2, %v25867_v56  ;;  %v8866_v10 = vadd.f32 %v8865_v22, %v27649_v13 }
 0x528   : > { %17549 = vmatpush1.bf16.msra.mxu1 %v25412_v33  ;;  %17573 = vmatpush1.bf16.msra.mxu0 %v25751_v3  ;;  %v8868_v29 = vadd.f32 %v8867_v43, %v27649_v13 }
 0x529   : > { %17559 = vmatprep.subr.bf16.mxu1 %v25616_v60  ;;  %17583 = vmatprep.subr.bf16.mxu0 %v25902_v6  ;;  %v8890_v60 = vmax.f32 %v8866_v10, 0.0 }
 0x52a   : > { %v8871_v19 = vpop.f32.mrb[114].mxu1  ;;  %11528 = vmatprep.mubr.f32.mxu1 %v19986_v21  ;;  %11891 = vmatprep.mubr.f32.mxu0 %v19986_v21  ;;  %v8891_v35 = vmax.f32 %v8868_v29, 0.0 }
 0x52b   : > { %v8872_v41 = vadd.f32 %v8871_v19, %v27672_v59  ;;  %v8873_v63 = vpop.f32.mrb[115].mxu1  ;;  %14509 = vmatmul.mubr.msk.f32.gmra.mrb[196].mxu1 %vm9558_vm2, %v25880_v39  ;;  %14521 = vmatmul.mubr.msk.f32.gmra.mrb[212].mxu0 %vm9558_vm2, %v25880_v39 }
 0x52c   : > { %v8874_v33 = vadd.f32 %v8873_v63, %v27672_v59  ;;  %11534 = vmatprep.mubr.f32.mxu1 %v19986_v21  ;;  %11897 = vmatprep.mubr.f32.mxu0 %v19986_v21 }
 0x52d   : > { %v8894_v3 = vmax.f32 %v8872_v41, 0.0 }
 0x52e   : > { %v8895_v6 = vmax.f32 %v8874_v33, 0.0  ;;  %v8877_v52 = vpop.f32.mrb[116].mxu1 }
 0x52f   : > { %v26298_v58 = vpack.c.bf16 %v8894_v3, %v8890_v60  ;;  %v8879_v46 = vpop.f32.mrb[117].mxu1  ;;  %14510 = vmatmul.mubr.msk.f32.gmra.mrb[198].mxu1 %vm9558_vm2, %v25895_v31  ;;  %14522 = vmatmul.mubr.msk.f32.gmra.mrb[214].mxu0 %vm9558_vm2, %v25895_v31  ;;  %v8878_v14 = vadd.f32 %v8877_v52, %v27675_v25 }
 0x530   : > { %v26304_v26 = vpack.c.bf16 %v8895_v6, %v8891_v35  ;;  %11742 = vmatprep.mubr.f32.mxu1 %v19986_v21  ;;  %12105 = vmatprep.mubr.f32.mxu0 %v19986_v21  ;;  %v8880_v18 = vadd.f32 %v8879_v46, %v27675_v25  ;;  %v26442_v6 = vpop.permute.xlu1 %9529 }
 0x531   : > { %v8898_v48 = vmax.f32 %v8878_v14, 0.0 }
 0x532   : > { %v8883_v12 = vpop.f32.mrb[118].mxu1  ;;  %v8899_v8 = vmax.f32 %v8880_v18, 0.0 }
 0x533   : > { %v8884_v54 = vadd.f32 %v8883_v12, %v27676_v11  ;;  %v8885_v61 = vpop.f32.mrb[119].mxu1  ;;  %14515 = vmatmul.mubr.msk.f32.vlgmr.msra.gmra.mrb[200].mxu1 %vm9558_vm2, %v25857_v2  ;;  %14527 = vmatmul.mubr.msk.f32.vlgmr.msra.gmra.mrb[216].mxu0 %vm9558_vm2, %v25857_v2 }
 0x534   : > { %v8886_v44 = vadd.f32 %v8885_v61, %v27676_v11  ;;  %17561 = vmatpush1.bf16.msra.mxu1 %v25614_v32  ;;  %17585 = vmatpush1.bf16.msra.mxu0 %v25898_v40 }
 0x535   : > { %v8902_v5 = vmax.f32 %v8884_v54, 0.0  ;;  %17563 = vmatprep.subr.bf16.mxu1 %v25650_v42  ;;  %17587 = vmatprep.subr.bf16.mxu0 %v25926_v15 }
 0x536   : > { %v8903_v20 = vmax.f32 %v8886_v44, 0.0  ;;  %11748 = vmatprep.mubr.f32.mxu1 %v19986_v21  ;;  %12111 = vmatprep.mubr.f32.mxu0 %v19986_v21  ;;  %v26454_v44 = vld [vmem:[%s27487_s3 + $0x8] sm:$0xff] }
 0x537   : > { %v26322_v51 = vpack.c.bf16 %v8902_v5, %v8898_v48  ;;  %14516 = vmatmul.mubr.msk.f32.gmra.mrb[202].mxu1 %vm9558_vm2, %v25867_v56  ;;  %14528 = vmatmul.mubr.msk.f32.gmra.mrb[218].mxu0 %vm9558_vm2, %v25867_v56 }
 0x538   : > { %v26328_v32 = vpack.c.bf16 %v8903_v20, %v8899_v8  ;;  %17565 = vmatpush1.bf16.msra.mxu1 %v25646_v57  ;;  %17589 = vmatpush1.bf16.msra.mxu0 %v25920_v7 }
 0x539   : > { %17575 = vmatprep.subr.bf16.mxu1 %v25817_v50  ;;  %17599 = vmatprep.subr.bf16.mxu0 %v26064_v45 }
 0x53a   : > { %11754 = vmatprep.mubr.f32.mxu1 %v19986_v21  ;;  %12117 = vmatprep.mubr.f32.mxu0 %v19986_v21 }
 0x53b   : > { %14517 = vmatmul.mubr.msk.f32.gmra.mrb[204].mxu1 %vm9558_vm2, %v25880_v39  ;;  %14529 = vmatmul.mubr.msk.f32.gmra.mrb[220].mxu0 %vm9558_vm2, %v25880_v39 }
 0x53c   : > { %11760 = vmatprep.mubr.f32.mxu1 %v19986_v21  ;;  %12123 = vmatprep.mubr.f32.mxu0 %v19986_v21 }
 0x53f   : > { %14518 = vmatmul.mubr.msk.f32.gmra.mrb[206].mxu1 %vm9558_vm2, %v25895_v31  ;;  %14530 = vmatmul.mubr.msk.f32.gmra.mrb[222].mxu0 %vm9558_vm2, %v25895_v31 }
 0x540   : > { %11968 = vmatprep.mubr.f32.mxu1 %v19986_v21  ;;  %12331 = vmatprep.mubr.f32.mxu0 %v19986_v21 }
 0x543   : > { %14523 = vmatmul.mubr.msk.f32.vlgmr.msra.gmra.mrb[208].mxu1 %vm9558_vm2, %v25857_v2  ;;  %14535 = vmatmul.mubr.msk.f32.vlgmr.msra.gmra.mrb[224].mxu0 %vm9558_vm2, %v25857_v2 }
 0x544   : > { %17577 = vmatpush1.bf16.msra.mxu1 %v25815_v53  ;;  %17601 = vmatpush1.bf16.msra.mxu0 %v26058_v49 }
 0x545   : > { %17579 = vmatprep.subr.bf16.mxu1 %v25837_v30  ;;  %17603 = vmatprep.subr.bf16.mxu0 %v26088_v62 }
 0x546   : > { %v9370_v57 = vpop.f32.mrb[120].mxu0  ;;  %11974 = vmatprep.mubr.f32.mxu1 %v19986_v21  ;;  %12337 = vmatprep.mubr.f32.mxu0 %v19986_v21 }
 0x547   : > { %v9372_v42 = vpop.f32.mrb[121].mxu0  ;;  %14524 = vmatmul.mubr.msk.f32.gmra.mrb[210].mxu1 %vm9558_vm2, %v25867_v56  ;;  %14536 = vmatmul.mubr.msk.f32.gmra.mrb[226].mxu0 %vm9558_vm2, %v25867_v56  ;;  %v9371_v53 = vadd.f32 %v9370_v57, %v27649_v13 }
 0x548   : > { %17581 = vmatpush1.bf16.msra.mxu1 %v25833_v17  ;;  %17605 = vmatpush1.bf16.msra.mxu0 %v26082_v47  ;;  %v9373_v50 = vadd.f32 %v9372_v42, %v27649_v13 }
 0x549   : > { %17591 = vmatprep.subr.bf16.mxu1 %v25984_v9  ;;  %17615 = vmatprep.subr.bf16.mxu0 %v26224_v55  ;;  %v9482_v15 = vmax.f32 %v9371_v53, 0.0 }
 0x54a   : > { %v9376_v30 = vpop.f32.mrb[122].mxu0  ;;  %11980 = vmatprep.mubr.f32.mxu1 %v19986_v21  ;;  %12343 = vmatprep.mubr.f32.mxu0 %v19986_v21  ;;  %v9483_v49 = vmax.f32 %v9373_v50, 0.0 }
 0x54b   : > { %v9377_v40 = vadd.f32 %v9376_v30, %v27672_v59  ;;  %v9378_v7 = vpop.f32.mrb[123].mxu0  ;;  %14525 = vmatmul.mubr.msk.f32.gmra.mrb[212].mxu1 %vm9558_vm2, %v25880_v39  ;;  %14537 = vmatmul.mubr.msk.f32.gmra.mrb[228].mxu0 %vm9558_vm2, %v25880_v39 }
 0x54c   : > { %v9379_v17 = vadd.f32 %v9378_v7, %v27672_v59  ;;  %11986 = vmatprep.mubr.f32.mxu1 %v19986_v21  ;;  %12349 = vmatprep.mubr.f32.mxu0 %v19986_v21 }
 0x54d   : > { %v9486_v9 = vmax.f32 %v9377_v40, 0.0 }
 0x54e   : > { %v9487_v45 = vmax.f32 %v9379_v17, 0.0  ;;  %v9382_v47 = vpop.f32.mrb[124].mxu0 }
 0x54f   : > { %v17632_v62 = vpack.c.bf16 %v9486_v9, %v9482_v15  ;;  %v9384_v55 = vpop.f32.mrb[125].mxu0  ;;  %14526 = vmatmul.mubr.msk.f32.gmra.mrb[214].mxu1 %vm9558_vm2, %v25895_v31  ;;  %14538 = vmatmul.mubr.msk.f32.gmra.mrb[230].mxu0 %vm9558_vm2, %v25895_v31  ;;  %v9383_v36 = vadd.f32 %v9382_v47, %v27675_v25 }
 0x550   : > { %v17630_v4 = vpack.c.bf16 %v9487_v45, %v9483_v49  ;;  %12194 = vmatprep.mubr.f32.mxu1 %v19986_v21  ;;  %12557 = vmatprep.mubr.f32.mxu0 %v19986_v21  ;;  %v9385_v22 = vadd.f32 %v9384_v55, %v27675_v25 }
 0x551   : > { %v9490_v41 = vmax.f32 %v9383_v36, 0.0 }
 0x552   : > { %v9388_v43 = vpop.f32.mrb[126].mxu0  ;;  %v9491_v33 = vmax.f32 %v9385_v22, 0.0 }
 0x553   : > { %v9389_v10 = vadd.f32 %v9388_v43, %v27676_v11  ;;  %v9390_v29 = vpop.f32.mrb[127].mxu0  ;;  %14531 = vmatmul.mubr.msk.f32.vlgmr.msra.gmra.mrb[216].mxu1 %vm9558_vm2, %v25857_v2  ;;  %14543 = vmatmul.mubr.msk.f32.vlgmr.msra.gmra.mrb[232].mxu0 %vm9558_vm2, %v25857_v2 }
 0x554   : > { %v9391_v19 = vadd.f32 %v9390_v29, %v27676_v11  ;;  %17593 = vmatpush1.bf16.msra.mxu1 %v25978_v28  ;;  %17617 = vmatpush1.bf16.msra.mxu0 %v26218_v38 }
 0x555   : > { %v9494_v63 = vmax.f32 %v9389_v10, 0.0  ;;  %17595 = vmatprep.subr.bf16.mxu1 %v26008_v16  ;;  %17619 = vmatprep.subr.bf16.mxu0 %v26248_v1  ;;  %v26433_v1 = vld [vmem:[%s27487_s3] sm:$0xff] }
 0x556   : > { %v9495_v60 = vmax.f32 %v9391_v19, 0.0  ;;  %v9637_v3 = vpop.f32.mrb[128].mxu0  ;;  %12200 = vmatprep.mubr.f32.mxu1 %v19986_v21  ;;  %12563 = vmatprep.mubr.f32.mxu0 %v19986_v21 }
 0x557   : > { %v17636_v2 = vpack.c.bf16 %v9494_v63, %v9490_v41  ;;  %v9639_v35 = vpop.f32.mrb[129].mxu0  ;;  %14532 = vmatmul.mubr.msk.f32.gmra.mrb[218].mxu1 %vm9558_vm2, %v25867_v56  ;;  %14544 = vmatmul.mubr.msk.f32.gmra.mrb[234].mxu0 %vm9558_vm2, %v25867_v56  ;;  %v26412_v56 = vld [vmem:[%s27487_s3 + $0x10] sm:$0xff] }
 0x558   : > { %v17634_v28 = vpack.c.bf16 %v9495_v60, %v9491_v33  ;;  %17597 = vmatpush1.bf16.msra.mxu1 %v26002_v0  ;;  %17621 = vmatpush1.bf16.msra.mxu0 %v26242_v27 }
 0x559   : > { %17607 = vmatprep.subr.bf16.mxu1 %v26144_v24  ;;  %17631 = vmatprep.subr.bf16.mxu0 %v17630_v4 }
 0x55a   : > { %v9643_v16 = vpop.f32.mrb[130].mxu0  ;;  %12206 = vmatprep.mubr.f32.mxu1 %v19986_v21  ;;  %12569 = vmatprep.mubr.f32.mxu0 %v19986_v21 }
 0x55b   : > { %v9645_v38 = vpop.f32.mrb[131].mxu0  ;;  %14533 = vmatmul.mubr.msk.f32.gmra.mrb[220].mxu1 %vm9558_vm2, %v25880_v39  ;;  %14545 = vmatmul.mubr.msk.f32.gmra.mrb[236].mxu0 %vm9558_vm2, %v26412_v56  ;;  %v9644_v12 = vadd.f32 %v9643_v16, %v26442_v6 }
 0x55c   : > { %12212 = vmatprep.mubr.f32.mxu1 %v19986_v21  ;;  %12575 = vmatprep.mubr.f32.mxu0 %v19986_v21 }
 0x55d   : > { %v9753_v40 = vmax.f32 %v9644_v12, 0.0 }
 0x55e   : > { %v9649_v0 = vpop.f32.mrb[132].mxu0 }
 0x55f   : > { %v26418_v24 = vpop.f32.mrb[133].mxu0  ;;  %14534 = vmatmul.mubr.msk.f32.gmra.mrb[222].mxu1 %vm9558_vm2, %v25895_v31  ;;  %14546 = vmatmul.mubr.msk.f32.gmra.mrb[238].mxu0 %vm9558_vm2, %v25895_v31  ;;  %v26439_v31 = vpop.permute.xlu0 %9524 }
 0x560   : > { %12420 = vmatprep.mubr.f32.mxu1 %v19986_v21  ;;  %12783 = vmatprep.mubr.f32.mxu0 %v19986_v21  ;;  %v9638_v52 = vadd.f32 %v9637_v3, %v26439_v31  ;;  %v9640_v46 = vadd.f32 %v9639_v35, %v26439_v31  ;;  %v26499_v35 = vpop.permute.xlu1 %9539 }
 0x562   : > { %v26426_v39 = vpop.f32.mrb[134].mxu0  ;;  %v9749_v5 = vmax.f32 %v9638_v52, 0.0  ;;  %v9750_v57 = vmax.f32 %v9640_v46, 0.0 }
 0x563   : > { %v26428_v27 = vpop.f32.mrb[135].mxu0  ;;  %14539 = vmatmul.mubr.msk.f32.vlgmr.msra.gmra.mrb[224].mxu1 %vm9558_vm2, %v26433_v1  ;;  %14551 = vmatmul.mubr.msk.f32.vlgmr.msra.gmra.mrb[240].mxu0 %vm9558_vm2, %v26433_v1 }
 0x564   : > { %17609 = vmatpush1.bf16.msra.mxu1 %v26138_v34  ;;  %17633 = vmatpush1.bf16.msra.mxu0 %v17632_v62 }
 0x565   : > { %17611 = vmatprep.subr.bf16.mxu1 %v26168_v37  ;;  %17635 = vmatprep.subr.bf16.mxu0 %v17634_v28  ;;  %v9646_v37 = vadd.f32 %v9645_v38, %v26442_v6 }
 0x566   : > { %v9459_v14 = vpop.f32.mrb[120].mxu1  ;;  %v9847_v18 = vpop.f32.mrb[136].mxu0  ;;  %12426 = vmatprep.mubr.f32.mxu1 %v19986_v21  ;;  %12789 = vmatprep.mubr.f32.mxu0 %v19986_v21 }
 0x567   : > { %v9848_v34 = vadd.f32 %v9847_v18, %v26439_v31  ;;  %v9461_v54 = vpop.f32.mrb[121].mxu1  ;;  %v9849_v61 = vpop.f32.mrb[137].mxu0  ;;  %14540 = vmatmul.mubr.msk.f32.gmra.mrb[226].mxu1 %vm9558_vm2, %v26454_v44  ;;  %14552 = vmatmul.mubr.msk.f32.gmra.mrb[242].mxu0 %vm9558_vm2, %v26454_v44  ;;  %v9460_v8 = vadd.f32 %v9459_v14, %v27649_v13  ;;  %v9658_v18 = vadd.f32 %v26428_v27, %v26499_v35 }
 0x568   : > { %v9850_v48 = vadd.f32 %v9849_v61, %v26439_v31  ;;  %17613 = vmatpush1.bf16.msra.mxu1 %v26162_v23  ;;  %17637 = vmatpush1.bf16.msra.mxu0 %v17636_v2  ;;  %v9462_v42 = vadd.f32 %v9461_v54, %v27649_v13  ;;  %v26476_v13 = vpop.permute.xlu0 %9534  ;;  %v26495_v2 = vld [vmem:[%s27487_s3 + $0x18] sm:$0xff] }
 0x569   : > { %v9959_v20 = vmax.f32 %v9848_v34, 0.0  ;;  %17623 = vmatprep.subr.bf16.mxu1 %v26304_v26  ;;  %12432 = vmatprep.mubr.f32.mxu1 %v19986_v21  ;;  %v9754_v26 = vmax.f32 %v9646_v37, 0.0  ;;  %v9650_v62 = vadd.f32 %v9649_v0, %v26476_v13  ;;  %v9484_v55 = vmax.f32 %v9460_v8, 0.0 }
 0x56a   : > { %v9960_v53 = vmax.f32 %v9850_v48, 0.0  ;;  %v9465_v50 = vpop.f32.mrb[122].mxu1  ;;  %v9853_v30 = vpop.f32.mrb[138].mxu0  ;;  %12795 = vmatprep.mubr.f32.mxu0 %v19986_v21  ;;  %v9652_v22 = vadd.f32 %v26418_v24, %v26476_v13  ;;  %v9485_v43 = vmax.f32 %v9462_v42, 0.0  ;;  %v9656_v24 = vadd.f32 %v26426_v39, %v26499_v35 }
 0x56b   : > { %v26468_v7 = vmax.f32 %v9749_v5, %v9959_v20  ;;  %v9466_v23 = vadd.f32 %v9465_v50, %v27672_v59  ;;  %v9854_v17 = vadd.f32 %v9853_v30, %v26442_v6  ;;  %v9467_v15 = vpop.f32.mrb[123].mxu1  ;;  %v9855_v9 = vpop.f32.mrb[139].mxu0  ;;  %14541 = vmatmul.mubr.msk.f32.gmra.mrb[228].mxu1 %vm9558_vm2, %v26412_v56  ;;  %14553 = vmatmul.mubr.msk.f32.gmra.mrb[244].mxu0 %vm9558_vm2, %v26412_v56  ;;  %v9757_v0 = vmax.f32 %v9650_v62, 0.0 }
 0x56c   : > { %v26478_v49 = vmax.f32 %v9750_v57, %v9960_v53  ;;  %v9468_v45 = vadd.f32 %v9467_v15, %v27672_v59  ;;  %v9856_v47 = vadd.f32 %v9855_v9, %v26442_v6  ;;  %12438 = vmatprep.mubr.f32.mxu1 %v19986_v21  ;;  %12801 = vmatprep.mubr.f32.mxu0 %v19986_v21  ;;  %v9758_v14 = vmax.f32 %v9652_v22, 0.0 }
 0x56d   : > { %v9488_v4 = vmax.f32 %v9466_v23, 0.0  ;;  %v9963_v36 = vmax.f32 %v9854_v17, 0.0  ;;  %v9761_v57 = vmax.f32 %v9656_v24, 0.0  ;;  %v9762_v30 = vmax.f32 %v9658_v18, 0.0 }
 0x56e   : > { %v9489_v10 = vmax.f32 %v9468_v45, 0.0  ;;  %v9964_v29 = vmax.f32 %v9856_v47, 0.0  ;;  %v9471_v19 = vpop.f32.mrb[124].mxu1  ;;  %v9859_v41 = vpop.f32.mrb[140].mxu0 }
 0x56f   : > { %v26487_v59 = vpack.c.bf16 %v9488_v4, %v9484_v55  ;;  %v26489_v63 = vmax.f32 %v9753_v40, %v9963_v36  ;;  %v9860_v33 = vadd.f32 %v9859_v41, %v26476_v13  ;;  %v9473_v60 = vpop.f32.mrb[125].mxu1  ;;  %v9861_v3 = vpop.f32.mrb[141].mxu0  ;;  %14542 = vmatmul.mubr.msk.f32.gmra.mrb[230].mxu1 %vm9558_vm2, %v26495_v2  ;;  %14554 = vmatmul.mubr.msk.f32.gmra.mrb[246].mxu0 %vm9558_vm2, %v26495_v2 }
 0x570   : > { %v17638_v28 = vpack.c.bf16 %v9489_v10, %v9485_v43  ;;  %v26501_v16 = vmax.f32 %v9754_v26, %v9964_v29  ;;  %v9862_v38 = vadd.f32 %v9861_v3, %v26476_v13  ;;  %v9472_v52 = vadd.f32 %v9471_v19, %v27675_v25  ;;  %12646 = vmatprep.mubr.f32.mxu1 %v19986_v21 }
 0x571   : > { %v9967_v46 = vmax.f32 %v9860_v33, 0.0  ;;  %13009 = vmatprep.mubr.f32.mxu0 %v19986_v21  ;;  %v9474_v12 = vadd.f32 %v9473_v60, %v27675_v25 }
 0x572   : > { %v9968_v34 = vmax.f32 %v9862_v38, 0.0  ;;  %v9477_v54 = vpop.f32.mrb[126].mxu1  ;;  %v9865_v61 = vpop.f32.mrb[142].mxu0  ;;  %v9492_v42 = vmax.f32 %v9472_v52, 0.0 }
 0x573   : > { %v26514_v37 = vmax.f32 %v9757_v0, %v9967_v46  ;;  %v9478_v39 = vadd.f32 %v9477_v54, %v27676_v11  ;;  %v9866_v48 = vadd.f32 %v9865_v61, %v26499_v35  ;;  %v9479_v5 = vpop.f32.mrb[127].mxu1  ;;  %v9867_v8 = vpop.f32.mrb[143].mxu0  ;;  %14547 = vmatmul.mubr.msk.f32.vlgmr.msra.gmra.mrb[232].mxu1 %vm9558_vm2, %v26433_v1  ;;  %14559 = vmatmul.mubr.msk.f32.vlgmr.msra.gmra.mrb[248].mxu0 %vm9558_vm2, %v26433_v1  ;;  %v9493_v40 = vmax.f32 %v9474_v12, 0.0 }
 0x574   : > { %v26520_v20 = vmax.f32 %v9758_v14, %v9968_v34  ;;  %v9480_v27 = vadd.f32 %v9479_v5, %v27676_v11  ;;  %v9868_v25 = vadd.f32 %v9867_v8, %v26499_v35  ;;  %17625 = vmatpush1.bf16.msra.mxu1 %v26298_v58  ;;  %12652 = vmatprep.mubr.f32.mxu1 %v19986_v21 }
 0x575   : > { %v9496_v53 = vmax.f32 %v9478_v39, 0.0  ;;  %v9971_v50 = vmax.f32 %v9866_v48, 0.0  ;;  %17627 = vmatprep.subr.bf16.mxu1 %v26328_v32  ;;  %13015 = vmatprep.mubr.f32.mxu0 %v19986_v21 }
 0x576   : > { %v9497_v23 = vmax.f32 %v9480_v27, 0.0  ;;  %v9972_v17 = vmax.f32 %v9868_v25, 0.0  ;;  %v9726_v11 = vpop.f32.mrb[128].mxu1  ;;  %v10073_v15 = vpop.f32.mrb[144].mxu0 }
 0x577   : > { %v26530_v58 = vpack.c.bf16 %v9496_v53, %v9492_v42  ;;  %v9987_v9 = vmax.f32 %v9761_v57, %v9971_v50  ;;  %v10074_v26 = vadd.f32 %v10073_v15, %v26439_v31  ;;  %v9728_v45 = vpop.f32.mrb[129].mxu1  ;;  %v10075_v47 = vpop.f32.mrb[145].mxu0  ;;  %14548 = vmatmul.mubr.msk.f32.gmra.mrb[234].mxu1 %vm9558_vm2, %v26454_v44  ;;  %14560 = vmatmul.mubr.msk.f32.gmra.mrb[250].mxu0 %vm9558_vm2, %v26454_v44 }
 0x578   : > { %v17642_v32 = vpack.c.bf16 %v9497_v23, %v9493_v40  ;;  %v9988_v62 = vmax.f32 %v9762_v30, %v9972_v17  ;;  %v10076_v55 = vadd.f32 %v10075_v47, %v26439_v31  ;;  %17629 = vmatpush1.bf16.msra.mxu1 %v26322_v51  ;;  %12658 = vmatprep.mubr.f32.mxu1 %v19986_v21 }
 0x579   : > { %v10185_v4 = vmax.f32 %v10074_v26, 0.0  ;;  %17639 = vmatprep.subr.bf16.mxu1 %v17638_v28  ;;  %13021 = vmatprep.mubr.f32.mxu0 %v19986_v21  ;;  %v9729_v8 = vadd.f32 %v9728_v45, %v26439_v31 }
 0x57a   : > { %v10186_v36 = vmax.f32 %v10076_v55, 0.0  ;;  %v9732_v22 = vpop.f32.mrb[130].mxu1  ;;  %v10079_v43 = vpop.f32.mrb[146].mxu0 }
 0x57b   : > { %v26542_v10 = vmax.f32 %v26468_v7, %v10185_v4  ;;  %v10080_v29 = vadd.f32 %v10079_v43, %v26442_v6  ;;  %v9734_v19 = vpop.f32.mrb[131].mxu1  ;;  %v10081_v41 = vpop.f32.mrb[147].mxu0  ;;  %14549 = vmatmul.mubr.msk.f32.gmra.mrb[236].mxu1 %vm9558_vm2, %v26412_v56  ;;  %14561 = vmatmul.mubr.msk.f32.gmra.mrb[252].mxu0 %vm9558_vm2, %v26412_v56  ;;  %v9752_v26 = vmax.f32 %v9729_v8, 0.0 }
 0x57c   : > { %v26548_v51 = vmax.f32 %v26478_v49, %v10186_v36  ;;  %v10082_v33 = vadd.f32 %v10081_v41, %v26442_v6  ;;  %12664 = vmatprep.mubr.f32.mxu1 %v19986_v21  ;;  %13027 = vmatprep.mubr.f32.mxu0 %v19986_v21  ;;  %v9735_v45 = vadd.f32 %v9734_v19, %v26442_v6 }
 0x57d   : > { %v10189_v60 = vmax.f32 %v10080_v29, 0.0 }
 0x57e   : > { %v10190_v7 = vmax.f32 %v10082_v33, 0.0  ;;  %v26554_v3 = vpop.f32.mrb[132].mxu1  ;;  %v10085_v28 = vpop.f32.mrb[148].mxu0 }
 0x57f   : > { %v26558_v38 = vmax.f32 %v26489_v63, %v10189_v60  ;;  %v10086_v49 = vadd.f32 %v10085_v28, %v26476_v13  ;;  %v26561_v0 = vpop.f32.mrb[133].mxu1  ;;  %v10087_v24 = vpop.f32.mrb[149].mxu0  ;;  %14550 = vmatmul.mubr.msk.f32.gmra.mrb[238].mxu1 %vm9558_vm2, %v26495_v2  ;;  %14562 = vmatmul.mubr.msk.f32.gmra.mrb[254].mxu0 %vm9558_vm2, %v26495_v2 }
 0x580   : > { %v26566_v52 = vmax.f32 %v26501_v16, %v10190_v7  ;;  %v10088_v46 = vadd.f32 %v10087_v24, %v26476_v13  ;;  %12872 = vmatprep.mubr.f32.mxu1 %v19986_v21  ;;  %v9739_v7 = vadd.f32 %v26554_v3, %v26476_v13  ;;  %v9756_v24 = vmax.f32 %v9735_v45, 0.0 }
 0x581   : > { %v10193_v14 = vmax.f32 %v10086_v49, 0.0 }
 0x582   : > { %v10194_v63 = vmax.f32 %v10088_v46, 0.0  ;;  %v26572_v18 = vpop.f32.mrb[134].mxu1  ;;  %v10091_v12 = vpop.f32.mrb[150].mxu0  ;;  %v9741_v46 = vadd.f32 %v26561_v0, %v26476_v13 }
 0x583   : > { %v26575_v34 = vmax.f32 %v26514_v37, %v10193_v14  ;;  %v10092_v54 = vadd.f32 %v10091_v12, %v26499_v35  ;;  %v26578_v61 = vpop.f32.mrb[135].mxu1  ;;  %v10093_v16 = vpop.f32.mrb[151].mxu0  ;;  %14555 = vmatmul.mubr.msk.f32.vlgmr.msra.gmra.mrb[240].mxu1 %vm9558_vm2, %v26433_v1  ;;  %v9727_v37 = vadd.f32 %v9726_v11, %v26439_v31  ;;  %v9733_v11 = vadd.f32 %v9732_v22, %v26442_v6 }
 0x584   : > { %v26583_v39 = vmax.f32 %v26520_v20, %v10194_v63  ;;  %v10094_v48 = vadd.f32 %v10093_v16, %v26499_v35  ;;  %17641 = vmatpush1.bf16.msra.mxu1 %v26487_v59  ;;  %12878 = vmatprep.mubr.f32.mxu1 %v19986_v21 }
 0x585   : > { %v10197_v5 = vmax.f32 %v10092_v54, 0.0  ;;  %17643 = vmatprep.subr.bf16.mxu1 %v17642_v32  ;;  %v9751_v17 = vmax.f32 %v9727_v37, 0.0 }
 0x586   : > { %v10198_v27 = vmax.f32 %v10094_v48, 0.0  ;;  %v9936_v25 = vpop.f32.mrb[136].mxu1  ;;  %v10299_v57 = vpop.f32.mrb[152].mxu0 }
 0x587   : > { %v26590_v42 = vmax.f32 %v9987_v9, %v10197_v5  ;;  %v9937_v20 = vadd.f32 %v9936_v25, %v26439_v31  ;;  %v10300_v53 = vadd.f32 %v10299_v57, %v26439_v31  ;;  %v9938_v50 = vpop.f32.mrb[137].mxu1  ;;  %v10301_v30 = vpop.f32.mrb[153].mxu0  ;;  %14556 = vmatmul.mubr.msk.f32.gmra.mrb[242].mxu1 %vm9558_vm2, %v26454_v44  ;;  %v9745_v57 = vadd.f32 %v26572_v18, %v26499_v35 }
 0x588   : > { %v26596_v59 = vmax.f32 %v9988_v62, %v10198_v27  ;;  %v9939_v40 = vadd.f32 %v9938_v50, %v26439_v31  ;;  %v10302_v23 = vadd.f32 %v10301_v30, %v26439_v31  ;;  %17645 = vmatpush1.bf16.msra.mxu1 %v26530_v58  ;;  %12884 = vmatprep.mubr.f32.mxu1 %v19986_v21  ;;  %v9760_v50 = vmax.f32 %v9741_v46, 0.0 }
 0x589   : > { %v9961_v15 = vmax.f32 %v9937_v20, 0.0  ;;  %v10411_v9 = vmax.f32 %v10300_v53, 0.0  ;;  %v9747_v30 = vadd.f32 %v26578_v61, %v26499_v35 }
 0x58a   : > { %v9962_v47 = vmax.f32 %v9939_v40, 0.0  ;;  %v10412_v32 = vmax.f32 %v10302_v23, 0.0  ;;  %v9942_v62 = vpop.f32.mrb[138].mxu1  ;;  %v10305_v55 = vpop.f32.mrb[154].mxu0 }
 0x58b   : > { %v26604_v4 = vmax.f32 %v9751_v17, %v9961_v15  ;;  %v26607_v36 = vmax.f32 %v26542_v10, %v10411_v9  ;;  %v9943_v58 = vadd.f32 %v9942_v62, %v26442_v6  ;;  %v10306_v43 = vadd.f32 %v10305_v55, %v26442_v6  ;;  %v9944_v29 = vpop.f32.mrb[139].mxu1  ;;  %v10307_v22 = vpop.f32.mrb[155].mxu0  ;;  %14557 = vmatmul.mubr.msk.f32.gmra.mrb[244].mxu1 %vm9558_vm2, %v26412_v56 }
 0x58c   : > { %v26613_v41 = vmax.f32 %v9752_v26, %v9962_v47  ;;  %v26616_v19 = vmax.f32 %v26548_v51, %v10412_v32  ;;  %v9945_v33 = vadd.f32 %v9944_v29, %v26442_v6  ;;  %v10308_v60 = vadd.f32 %v10307_v22, %v26442_v6  ;;  %12890 = vmatprep.mubr.f32.mxu1 %v19986_v21 }
 0x58d   : > { %v9755_v10 = vmax.f32 %v9733_v11, 0.0  ;;  %v9965_v28 = vmax.f32 %v9943_v58, 0.0  ;;  %v10415_v49 = vmax.f32 %v10306_v43, 0.0  ;;  %v9764_v43 = vmax.f32 %v9747_v30, 0.0 }
 0x58e   : > { %v9966_v14 = vmax.f32 %v9945_v33, 0.0  ;;  %v10416_v63 = vmax.f32 %v10308_v60, 0.0  ;;  %v9948_v51 = vpop.f32.mrb[140].mxu1  ;;  %v10311_v12 = vpop.f32.mrb[156].mxu0 }
 0x58f   : > { %v26625_v54 = vmax.f32 %v9755_v10, %v9965_v28  ;;  %v26628_v16 = vmax.f32 %v26558_v38, %v10415_v49  ;;  %v9949_v48 = vadd.f32 %v9948_v51, %v26476_v13  ;;  %v10312_v37 = vadd.f32 %v10311_v12, %v26476_v13  ;;  %v9950_v3 = vpop.f32.mrb[141].mxu1  ;;  %v10313_v5 = vpop.f32.mrb[157].mxu0  ;;  %14558 = vmatmul.mubr.msk.f32.gmra.mrb[246].mxu1 %vm9558_vm2, %v26495_v2 }
 0x590   : > { %v26634_v8 = vmax.f32 %v9756_v24, %v9966_v14  ;;  %v26637_v0 = vmax.f32 %v26566_v52, %v10416_v63  ;;  %v9951_v27 = vadd.f32 %v9950_v3, %v26476_v13  ;;  %v10314_v25 = vadd.f32 %v10313_v5, %v26476_v13  ;;  %13098 = vmatprep.mubr.f32.mxu1 %v19986_v21 }
 0x591   : > { %v9759_v38 = vmax.f32 %v9739_v7, 0.0  ;;  %v9969_v20 = vmax.f32 %v9949_v48, 0.0  ;;  %v10419_v53 = vmax.f32 %v10312_v37, 0.0 }
 0x592   : > { %v9970_v40 = vmax.f32 %v9951_v27, 0.0  ;;  %v10420_v23 = vmax.f32 %v10314_v25, 0.0  ;;  %v9954_v52 = vpop.f32.mrb[142].mxu1  ;;  %v10317_v17 = vpop.f32.mrb[158].mxu0 }
 0x593   : > { %v26646_v11 = vmax.f32 %v9759_v38, %v9969_v20  ;;  %v26649_v15 = vmax.f32 %v26575_v34, %v10419_v53  ;;  %v9955_v9 = vadd.f32 %v9954_v52, %v26499_v35  ;;  %v10318_v26 = vadd.f32 %v10317_v17, %v26499_v35  ;;  %v9956_v18 = vpop.f32.mrb[143].mxu1  ;;  %v10319_v45 = vpop.f32.mrb[159].mxu0  ;;  %14563 = vmatmul.mubr.msk.f32.vlgmr.msra.gmra.mrb[248].mxu1 %vm9558_vm2, %v26433_v1 }
 0x594   : > { %v26655_v47 = vmax.f32 %v9760_v50, %v9970_v40  ;;  %v26658_v61 = vmax.f32 %v26583_v39, %v10420_v23  ;;  %v9957_v32 = vadd.f32 %v9956_v18, %v26499_v35  ;;  %v10320_v62 = vadd.f32 %v10319_v45, %v26499_v35  ;;  %13104 = vmatprep.mubr.f32.mxu1 %v19986_v21 }
 0x595   : > { %v9763_v34 = vmax.f32 %v9745_v57, 0.0  ;;  %v9973_v55 = vmax.f32 %v9955_v9, 0.0  ;;  %v10423_v58 = vmax.f32 %v10318_v26, 0.0 }
 0x596   : > { %v9974_v29 = vmax.f32 %v9957_v32, 0.0  ;;  %v10424_v22 = vmax.f32 %v10320_v62, 0.0  ;;  %v10162_v33 = vpop.f32.mrb[144].mxu1  ;;  %v10525_v60 = vpop.f32.mrb[160].mxu0 }
 0x597   : > { %v26663_v1 = vmax.f32 %v9763_v34, %v9973_v55  ;;  %v26666_v10 = vmax.f32 %v26590_v42, %v10423_v58  ;;  %v10163_v39 = vadd.f32 %v10162_v33, %v26439_v31  ;;  %v10526_v7 = vadd.f32 %v10525_v60, %v26439_v31  ;;  %v10164_v28 = vpop.f32.mrb[145].mxu1  ;;  %v10527_v49 = vpop.f32.mrb[161].mxu0  ;;  %14564 = vmatmul.mubr.msk.f32.gmra.mrb[250].mxu1 %vm9558_vm2, %v26454_v44 }
 0x598   : > { %v26672_v24 = vmax.f32 %v9764_v43, %v9974_v29  ;;  %v26675_v46 = vmax.f32 %v26596_v59, %v10424_v22  ;;  %v10165_v14 = vadd.f32 %v10164_v28, %v26439_v31  ;;  %v10528_v63 = vadd.f32 %v10527_v49, %v26439_v31  ;;  %13110 = vmatprep.mubr.f32.mxu1 %v19986_v21 }
 0x599   : > { %v10187_v42 = vmax.f32 %v10163_v39, 0.0  ;;  %v10637_v51 = vmax.f32 %v10526_v7, 0.0 }
 0x59a   : > { %v10188_v12 = vmax.f32 %v10165_v14, 0.0  ;;  %v10638_v48 = vmax.f32 %v10528_v63, 0.0  ;;  %v10168_v37 = vpop.f32.mrb[146].mxu1  ;;  %v10531_v3 = vpop.f32.mrb[162].mxu0 }
 0x59b   : > { %v26681_v5 = vmax.f32 %v26604_v4, %v10187_v42  ;;  %v26684_v44 = vmax.f32 %v26607_v36, %v10637_v51  ;;  %v10169_v59 = vadd.f32 %v10168_v37, %v26442_v6  ;;  %v10532_v27 = vadd.f32 %v10531_v3, %v26442_v6  ;;  %v10170_v25 = vpop.f32.mrb[147].mxu1  ;;  %v10533_v38 = vpop.f32.mrb[163].mxu0  ;;  %14565 = vmatmul.mubr.msk.f32.gmra.mrb[252].mxu1 %vm9558_vm2, %v26412_v56 }
 0x59c   : > { %v26691_v57 = vmax.f32 %v26613_v41, %v10188_v12  ;;  %v26694_v20 = vmax.f32 %v26616_v19, %v10638_v48  ;;  %v10171_v4 = vadd.f32 %v10170_v25, %v26442_v6  ;;  %v10534_v36 = vadd.f32 %v10533_v38, %v26442_v6  ;;  %13116 = vmatprep.mubr.f32.mxu1 %v19986_v21 }
 0x59d   : > { %v10191_v53 = vmax.f32 %v10169_v59, 0.0  ;;  %v10641_v50 = vmax.f32 %v10532_v27, 0.0 }
 0x59e   : > { %v10192_v30 = vmax.f32 %v10171_v4, 0.0  ;;  %v10642_v40 = vmax.f32 %v10534_v36, 0.0  ;;  %v10174_v23 = vpop.f32.mrb[148].mxu1  ;;  %v10537_v52 = vpop.f32.mrb[164].mxu0 }
 0x59f   : > { %v26700_v56 = vmax.f32 %v26625_v54, %v10191_v53  ;;  %v26703_v41 = vmax.f32 %v26628_v16, %v10641_v50  ;;  %v10175_v19 = vadd.f32 %v10174_v23, %v26476_v13  ;;  %v10538_v17 = vadd.f32 %v10537_v52, %v26476_v13  ;;  %v10176_v9 = vpop.f32.mrb[149].mxu1  ;;  %v10539_v26 = vpop.f32.mrb[165].mxu0  ;;  %14566 = vmatmul.mubr.msk.f32.gmra.mrb[254].mxu1 %vm9558_vm2, %v26495_v2 }
 0x5a0   : > { %v26710_v21 = vmax.f32 %v26634_v8, %v10192_v30  ;;  %v26713_v18 = vmax.f32 %v26637_v0, %v10642_v40  ;;  %v10177_v54 = vadd.f32 %v10176_v9, %v26476_v13  ;;  %v10540_v16 = vadd.f32 %v10539_v26, %v26476_v13 }
 0x5a1   : > { %v10195_v45 = vmax.f32 %v10175_v19, 0.0  ;;  %v10645_v32 = vmax.f32 %v10538_v17, 0.0 }
 0x5a2   : > { %v10196_v62 = vmax.f32 %v10177_v54, 0.0  ;;  %v10646_v34 = vmax.f32 %v10540_v16, 0.0  ;;  %v10180_v55 = vpop.f32.mrb[150].mxu1  ;;  %v10543_v58 = vpop.f32.mrb[166].mxu0 }
 0x5a3   : > { %v26718_v43 = vmax.f32 %v26646_v11, %v10195_v45  ;;  %v26721_v2 = vmax.f32 %v26649_v15, %v10645_v32  ;;  %v10181_v8 = vadd.f32 %v10180_v55, %v26499_v35  ;;  %v10544_v0 = vadd.f32 %v10543_v58, %v26499_v35  ;;  %v10182_v29 = vpop.f32.mrb[151].mxu1  ;;  %v10545_v22 = vpop.f32.mrb[167].mxu0 }
 0x5a4   : > { %v26726_v33 = vmax.f32 %v26655_v47, %v10196_v62  ;;  %v26729_v60 = vmax.f32 %v26658_v61, %v10646_v34  ;;  %v10183_v39 = vadd.f32 %v10182_v29, %v26499_v35  ;;  %v10546_v11 = vadd.f32 %v10545_v22, %v26499_v35 }
 0x5a5   : > { %v10199_v7 = vmax.f32 %v10181_v8, 0.0  ;;  %v10649_v28 = vmax.f32 %v10544_v0, 0.0 }
 0x5a6   : > { %v10200_v15 = vmax.f32 %v10183_v39, 0.0  ;;  %v10650_v49 = vmax.f32 %v10546_v11, 0.0  ;;  %v10388_v14 = vpop.f32.mrb[152].mxu1  ;;  %v10751_v63 = vpop.f32.mrb[168].mxu0 }
 0x5a7   : > { %v26734_v42 = vmax.f32 %v26663_v1, %v10199_v7  ;;  %v26737_v51 = vmax.f32 %v26666_v10, %v10649_v28  ;;  %v10389_v47 = vadd.f32 %v10388_v14, %v26439_v31  ;;  %v10752_v61 = vadd.f32 %v10751_v63, %v26439_v31  ;;  %v10390_v12 = vpop.f32.mrb[153].mxu1  ;;  %v10753_v48 = vpop.f32.mrb[169].mxu0 }
 0x5a8   : > { %v26742_v37 = vmax.f32 %v26672_v24, %v10200_v15  ;;  %v26745_v3 = vmax.f32 %v26675_v46, %v10650_v49  ;;  %v10391_v59 = vadd.f32 %v10390_v12, %v26439_v31  ;;  %v10754_v1 = vadd.f32 %v10753_v48, %v26439_v31 }
 0x5a9   : > { %v10413_v27 = vmax.f32 %v10389_v47, 0.0  ;;  %v10863_v25 = vmax.f32 %v10752_v61, 0.0 }
 0x5aa   : > { %v10414_v10 = vmax.f32 %v10391_v59, 0.0  ;;  %v10864_v38 = vmax.f32 %v10754_v1, 0.0  ;;  %v10394_v4 = vpop.f32.mrb[154].mxu1  ;;  %v10757_v36 = vpop.f32.mrb[170].mxu0 }
 0x5ab   : > { %v26750_v53 = vmax.f32 %v26681_v5, %v10413_v27  ;;  %v26753_v50 = vmax.f32 %v26684_v44, %v10863_v25  ;;  %v10395_v24 = vadd.f32 %v10394_v4, %v26442_v6  ;;  %v10758_v46 = vadd.f32 %v10757_v36, %v26442_v6  ;;  %v10396_v30 = vpop.f32.mrb[155].mxu1  ;;  %v10759_v40 = vpop.f32.mrb[171].mxu0 }
 0x5ac   : > { %v26758_v23 = vmax.f32 %v26691_v57, %v10414_v10  ;;  %v26761_v52 = vmax.f32 %v26694_v20, %v10864_v38  ;;  %v10397_v19 = vadd.f32 %v10396_v30, %v26442_v6  ;;  %v10760_v5 = vadd.f32 %v10759_v40, %v26442_v6 }
 0x5ad   : > { %v10417_v17 = vmax.f32 %v10395_v24, 0.0  ;;  %v10867_v9 = vmax.f32 %v10758_v46, 0.0 }
 0x5ae   : > { %v10418_v44 = vmax.f32 %v10397_v19, 0.0  ;;  %v10868_v26 = vmax.f32 %v10760_v5, 0.0  ;;  %v10400_v54 = vpop.f32.mrb[156].mxu1  ;;  %v10763_v16 = vpop.f32.mrb[172].mxu0 }
 0x5af   : > { %v26766_v45 = vmax.f32 %v26700_v56, %v10417_v17  ;;  %v26769_v32 = vmax.f32 %v26703_v41, %v10867_v9  ;;  %v10401_v57 = vadd.f32 %v10400_v54, %v26476_v13  ;;  %v10764_v20 = vadd.f32 %v10763_v16, %v26476_v13  ;;  %v10402_v62 = vpop.f32.mrb[157].mxu1  ;;  %v10765_v34 = vpop.f32.mrb[173].mxu0 }
 0x5b0   : > { %v26774_v55 = vmax.f32 %v26710_v21, %v10418_v44  ;;  %v26777_v58 = vmax.f32 %v26713_v18, %v10868_v26  ;;  %v10403_v8 = vadd.f32 %v10402_v62, %v26476_v13  ;;  %v10766_v56 = vadd.f32 %v10765_v34, %v26476_v13 }
 0x5b1   : > { %v10421_v0 = vmax.f32 %v10401_v57, 0.0  ;;  %v10871_v29 = vmax.f32 %v10764_v20, 0.0 }
 0x5b2   : > { %v10422_v41 = vmax.f32 %v10403_v8, 0.0  ;;  %v10872_v22 = vmax.f32 %v10766_v56, 0.0  ;;  %v10406_v39 = vpop.f32.mrb[158].mxu1  ;;  %v10769_v11 = vpop.f32.mrb[174].mxu0 }
 0x5b3   : > { %v26782_v7 = vmax.f32 %v26718_v43, %v10421_v0  ;;  %v26785_v28 = vmax.f32 %v26721_v2, %v10871_v29  ;;  %v10407_v21 = vadd.f32 %v10406_v39, %v26499_v35  ;;  %v10770_v18 = vadd.f32 %v10769_v11, %v26499_v35  ;;  %v10408_v15 = vpop.f32.mrb[159].mxu1  ;;  %v10771_v49 = vpop.f32.mrb[175].mxu0 }
 0x5b4   : > { %v26790_v14 = vmax.f32 %v26726_v33, %v10422_v41  ;;  %v26793_v63 = vmax.f32 %v26729_v60, %v10872_v22  ;;  %v10409_v47 = vadd.f32 %v10408_v15, %v26499_v35  ;;  %v10772_v43 = vadd.f32 %v10771_v49, %v26499_v35 }
 0x5b5   : > { %v10425_v61 = vmax.f32 %v10407_v21, 0.0  ;;  %v10875_v12 = vmax.f32 %v10770_v18, 0.0 }
 0x5b6   : > { %v10426_v2 = vmax.f32 %v10409_v47, 0.0  ;;  %v10876_v48 = vmax.f32 %v10772_v43, 0.0  ;;  %v10614_v59 = vpop.f32.mrb[160].mxu1  ;;  %v10977_v1 = vpop.f32.mrb[176].mxu0 }
 0x5b7   : > { %v26798_v27 = vmax.f32 %v26734_v42, %v10425_v61  ;;  %v26801_v25 = vmax.f32 %v26737_v51, %v10875_v12  ;;  %v10615_v33 = vadd.f32 %v10614_v59, %v26439_v31  ;;  %v10978_v60 = vadd.f32 %v10977_v1, %v26439_v31  ;;  %v10616_v10 = vpop.f32.mrb[161].mxu1  ;;  %v10979_v38 = vpop.f32.mrb[177].mxu0 }
 0x5b8   : > { %v26806_v4 = vmax.f32 %v26742_v37, %v10426_v2  ;;  %v26809_v36 = vmax.f32 %v26745_v3, %v10876_v48  ;;  %v10617_v24 = vadd.f32 %v10616_v10, %v26439_v31  ;;  %v10980_v42 = vadd.f32 %v10979_v38, %v26439_v31 }
 0x5b9   : > { %v10639_v46 = vmax.f32 %v10615_v33, 0.0  ;;  %v11089_v30 = vmax.f32 %v10978_v60, 0.0 }
 0x5ba   : > { %v10640_v51 = vmax.f32 %v10617_v24, 0.0  ;;  %v11090_v40 = vmax.f32 %v10980_v42, 0.0  ;;  %v10620_v19 = vpop.f32.mrb[162].mxu1  ;;  %v10983_v5 = vpop.f32.mrb[178].mxu0 }
 0x5bb   : > { %v26814_v17 = vmax.f32 %v26750_v53, %v10639_v46  ;;  %v26817_v9 = vmax.f32 %v26753_v50, %v11089_v30  ;;  %v10621_v37 = vadd.f32 %v10620_v19, %v26442_v6  ;;  %v10984_v3 = vadd.f32 %v10983_v5, %v26442_v6  ;;  %v10622_v44 = vpop.f32.mrb[163].mxu1  ;;  %v10985_v26 = vpop.f32.mrb[179].mxu0 }
 0x5bc   : > { %v26822_v54 = vmax.f32 %v26758_v23, %v10640_v51  ;;  %v26825_v16 = vmax.f32 %v26761_v52, %v11090_v40  ;;  %v10623_v57 = vadd.f32 %v10622_v44, %v26442_v6  ;;  %v10986_v53 = vadd.f32 %v10985_v26, %v26442_v6 }
 0x5bd   : > { %v10643_v20 = vmax.f32 %v10621_v37, 0.0  ;;  %v11093_v62 = vmax.f32 %v10984_v3, 0.0 }
 0x5be   : > { %v10644_v50 = vmax.f32 %v10623_v57, 0.0  ;;  %v11094_v34 = vmax.f32 %v10986_v53, 0.0  ;;  %v10626_v8 = vpop.f32.mrb[164].mxu1  ;;  %v10989_v56 = vpop.f32.mrb[180].mxu0 }
 0x5bf   : > { %v26830_v0 = vmax.f32 %v26766_v45, %v10643_v20  ;;  %v26833_v29 = vmax.f32 %v26769_v32, %v11093_v62  ;;  %v10627_v23 = vadd.f32 %v10626_v8, %v26476_v13  ;;  %v10990_v52 = vadd.f32 %v10989_v56, %v26476_v13  ;;  %v10628_v41 = vpop.f32.mrb[165].mxu1  ;;  %v10991_v22 = vpop.f32.mrb[181].mxu0 }
 0x5c0   : > { %v26838_v39 = vmax.f32 %v26774_v55, %v10644_v50  ;;  %v26841_v11 = vmax.f32 %v26777_v58, %v11094_v34  ;;  %v10629_v21 = vadd.f32 %v10628_v41, %v26476_v13  ;;  %v10992_v45 = vadd.f32 %v10991_v22, %v26476_v13 }
 0x5c1   : > { %v10647_v18 = vmax.f32 %v10627_v23, 0.0  ;;  %v11097_v15 = vmax.f32 %v10990_v52, 0.0 }
 0x5c2   : > { %v10648_v32 = vmax.f32 %v10629_v21, 0.0  ;;  %v11098_v49 = vmax.f32 %v10992_v45, 0.0  ;;  %v10632_v47 = vpop.f32.mrb[166].mxu1  ;;  %v10995_v43 = vpop.f32.mrb[182].mxu0 }
 0x5c3   : > { %v26846_v61 = vmax.f32 %v26782_v7, %v10647_v18  ;;  %v26849_v12 = vmax.f32 %v26785_v28, %v11097_v15  ;;  %v10633_v55 = vadd.f32 %v10632_v47, %v26499_v35  ;;  %v10996_v58 = vadd.f32 %v10995_v43, %v26499_v35  ;;  %v10634_v2 = vpop.f32.mrb[167].mxu1  ;;  %v10997_v48 = vpop.f32.mrb[183].mxu0 }
 0x5c4   : > { %v26854_v59 = vmax.f32 %v26790_v14, %v10648_v32  ;;  %v26857_v1 = vmax.f32 %v26793_v63, %v11098_v49  ;;  %v10635_v33 = vadd.f32 %v10634_v2, %v26499_v35  ;;  %v10998_v7 = vadd.f32 %v10997_v48, %v26499_v35 }
 0x5c5   : > { %v10651_v60 = vmax.f32 %v10633_v55, 0.0  ;;  %v11101_v10 = vmax.f32 %v10996_v58, 0.0 }
 0x5c6   : > { %v10652_v28 = vmax.f32 %v10635_v33, 0.0  ;;  %v11102_v38 = vmax.f32 %v10998_v7, 0.0  ;;  %v10840_v24 = vpop.f32.mrb[168].mxu1  ;;  %v11203_v42 = vpop.f32.mrb[184].mxu0 }
 0x5c7   : > { %v26862_v46 = vmax.f32 %v26798_v27, %v10651_v60  ;;  %v26865_v30 = vmax.f32 %v26801_v25, %v11101_v10  ;;  %v10841_v14 = vadd.f32 %v10840_v24, %v26439_v31  ;;  %v11204_v63 = vadd.f32 %v11203_v42, %v26439_v31  ;;  %v10842_v51 = vpop.f32.mrb[169].mxu1  ;;  %v11205_v40 = vpop.f32.mrb[185].mxu0 }
 0x5c8   : > { %v26870_v19 = vmax.f32 %v26806_v4, %v10652_v28  ;;  %v26873_v5 = vmax.f32 %v26809_v36, %v11102_v38  ;;  %v10843_v37 = vadd.f32 %v10842_v51, %v26439_v31  ;;  %v11206_v27 = vadd.f32 %v11205_v40, %v26439_v31 }
 0x5c9   : > { %v10865_v3 = vmax.f32 %v10841_v14, 0.0  ;;  %v11315_v44 = vmax.f32 %v11204_v63, 0.0 }
 0x5ca   : > { %v10866_v25 = vmax.f32 %v10843_v37, 0.0  ;;  %v11316_v26 = vmax.f32 %v11206_v27, 0.0  ;;  %v10846_v57 = vpop.f32.mrb[170].mxu1  ;;  %v11209_v53 = vpop.f32.mrb[186].mxu0 }
 0x5cb   : > { %v26878_v20 = vmax.f32 %v26814_v17, %v10865_v3  ;;  %v26881_v62 = vmax.f32 %v26817_v9, %v11315_v44  ;;  %v10847_v4 = vadd.f32 %v10846_v57, %v26442_v6  ;;  %v11210_v36 = vadd.f32 %v11209_v53, %v26442_v6  ;;  %v10848_v50 = vpop.f32.mrb[171].mxu1  ;;  %v11211_v34 = vpop.f32.mrb[187].mxu0 }
 0x5cc   : > { %v26886_v8 = vmax.f32 %v26822_v54, %v10866_v25  ;;  %v26889_v56 = vmax.f32 %v26825_v16, %v11316_v26  ;;  %v10849_v23 = vadd.f32 %v10848_v50, %v26442_v6  ;;  %v11212_v17 = vadd.f32 %v11211_v34, %v26442_v6 }
 0x5cd   : > { %v10869_v52 = vmax.f32 %v10847_v4, 0.0  ;;  %v11319_v41 = vmax.f32 %v11210_v36, 0.0 }
 0x5ce   : > { %v10870_v9 = vmax.f32 %v10849_v23, 0.0  ;;  %v11320_v22 = vmax.f32 %v11212_v17, 0.0  ;;  %v10852_v21 = vpop.f32.mrb[172].mxu1  ;;  %v11215_v45 = vpop.f32.mrb[188].mxu0 }
 0x5cf   : > { %v26894_v18 = vmax.f32 %v26830_v0, %v10869_v52  ;;  %v26897_v15 = vmax.f32 %v26833_v29, %v11319_v41  ;;  %v10853_v54 = vadd.f32 %v10852_v21, %v26476_v13  ;;  %v11216_v16 = vadd.f32 %v11215_v45, %v26476_v13  ;;  %v10854_v32 = vpop.f32.mrb[173].mxu1  ;;  %v11217_v49 = vpop.f32.mrb[189].mxu0 }
 0x5d0   : > { %v26902_v47 = vmax.f32 %v26838_v39, %v10870_v9  ;;  %v26905_v43 = vmax.f32 %v26841_v11, %v11320_v22  ;;  %v10855_v55 = vadd.f32 %v10854_v32, %v26476_v13  ;;  %v11218_v0 = vadd.f32 %v11217_v49, %v26476_v13 }
 0x5d1   : > { %v10873_v58 = vmax.f32 %v10853_v54, 0.0  ;;  %v11323_v2 = vmax.f32 %v11216_v16, 0.0 }
 0x5d2   : > { %v10874_v29 = vmax.f32 %v10855_v55, 0.0  ;;  %v11324_v48 = vmax.f32 %v11218_v0, 0.0  ;;  %v10858_v33 = vpop.f32.mrb[174].mxu1  ;;  %v11221_v7 = vpop.f32.mrb[190].mxu0 }
 0x5d3   : > { %v26910_v60 = vmax.f32 %v26846_v61, %v10873_v58  ;;  %v26913_v10 = vmax.f32 %v26849_v12, %v11323_v2  ;;  %v10859_v39 = vadd.f32 %v10858_v33, %v26499_v35  ;;  %v11222_v11 = vadd.f32 %v11221_v7, %v26499_v35  ;;  %v10860_v28 = vpop.f32.mrb[175].mxu1  ;;  %v11223_v38 = vpop.f32.mrb[191].mxu0 }
 0x5d4   : > { %v26918_v24 = vmax.f32 %v26854_v59, %v10874_v29  ;;  %v26921_v42 = vmax.f32 %v26857_v1, %v11324_v48  ;;  %v10861_v14 = vadd.f32 %v10860_v28, %v26499_v35  ;;  %v11224_v61 = vadd.f32 %v11223_v38, %v26499_v35 }
 0x5d5   : > { %v10877_v63 = vmax.f32 %v10859_v39, 0.0  ;;  %v11327_v51 = vmax.f32 %v11222_v11, 0.0 }
 0x5d6   : > { %v10878_v12 = vmax.f32 %v10861_v14, 0.0  ;;  %v11328_v40 = vmax.f32 %v11224_v61, 0.0  ;;  %v11066_v37 = vpop.f32.mrb[176].mxu1  ;;  %v11429_v27 = vpop.f32.mrb[192].mxu0 }
 0x5d7   : > { %v26926_v3 = vmax.f32 %v26862_v46, %v10877_v63  ;;  %v26929_v44 = vmax.f32 %v26865_v30, %v11327_v51  ;;  %v11067_v59 = vadd.f32 %v11066_v37, %v26439_v31  ;;  %v11430_v1 = vadd.f32 %v11429_v27, %v26439_v31  ;;  %v11068_v25 = vpop.f32.mrb[177].mxu1  ;;  %v11431_v26 = vpop.f32.mrb[193].mxu0 }
 0x5d8   : > { %v26934_v57 = vmax.f32 %v26870_v19, %v10878_v12  ;;  %v26937_v53 = vmax.f32 %v26873_v5, %v11328_v40  ;;  %v11069_v4 = vadd.f32 %v11068_v25, %v26439_v31  ;;  %v11432_v46 = vadd.f32 %v11431_v26, %v26439_v31 }
 0x5d9   : > { %v11091_v36 = vmax.f32 %v11067_v59, 0.0  ;;  %v11541_v50 = vmax.f32 %v11430_v1, 0.0 }
 0x5da   : > { %v11092_v30 = vmax.f32 %v11069_v4, 0.0  ;;  %v11542_v34 = vmax.f32 %v11432_v46, 0.0  ;;  %v11072_v23 = vpop.f32.mrb[178].mxu1  ;;  %v11435_v17 = vpop.f32.mrb[194].mxu0 }
 0x5db   : > { %v26942_v52 = vmax.f32 %v26878_v20, %v11091_v36  ;;  %v26945_v41 = vmax.f32 %v26881_v62, %v11541_v50  ;;  %v11073_v19 = vadd.f32 %v11072_v23, %v26442_v6  ;;  %v11436_v5 = vadd.f32 %v11435_v17, %v26442_v6  ;;  %v11074_v9 = vpop.f32.mrb[179].mxu1  ;;  %v11437_v22 = vpop.f32.mrb[195].mxu0 }
 0x5dc   : > { %v26950_v21 = vmax.f32 %v26886_v8, %v11092_v30  ;;  %v26953_v45 = vmax.f32 %v26889_v56, %v11542_v34  ;;  %v11075_v54 = vadd.f32 %v11074_v9, %v26442_v6  ;;  %v11438_v20 = vadd.f32 %v11437_v22, %v26442_v6 }
 0x5dd   : > { %v11095_v16 = vmax.f32 %v11073_v19, 0.0  ;;  %v11545_v32 = vmax.f32 %v11436_v5, 0.0 }
 0x5de   : > { %v11096_v62 = vmax.f32 %v11075_v54, 0.0  ;;  %v11546_v49 = vmax.f32 %v11438_v20, 0.0  ;;  %v11078_v55 = vpop.f32.mrb[180].mxu1  ;;  %v11441_v0 = vpop.f32.mrb[196].mxu0 }
 0x5df   : > { %v26958_v58 = vmax.f32 %v26894_v18, %v11095_v16  ;;  %v26961_v2 = vmax.f32 %v26897_v15, %v11545_v32  ;;  %v11079_v8 = vadd.f32 %v11078_v55, %v26476_v13  ;;  %v11442_v56 = vadd.f32 %v11441_v0, %v26476_v13  ;;  %v11080_v29 = vpop.f32.mrb[181].mxu1  ;;  %v11443_v48 = vpop.f32.mrb[197].mxu0 }
 0x5e0   : > { %v26966_v33 = vmax.f32 %v26902_v47, %v11096_v62  ;;  %v26969_v7 = vmax.f32 %v26905_v43, %v11546_v49  ;;  %v11081_v39 = vadd.f32 %v11080_v29, %v26476_v13  ;;  %v11444_v18 = vadd.f32 %v11443_v48, %v26476_v13 }
 0x5e1   : > { %v11099_v11 = vmax.f32 %v11079_v8, 0.0  ;;  %v11549_v28 = vmax.f32 %v11442_v56, 0.0 }
 0x5e2   : > { %v11100_v15 = vmax.f32 %v11081_v39, 0.0  ;;  %v11550_v38 = vmax.f32 %v11444_v18, 0.0  ;;  %v11084_v14 = vpop.f32.mrb[182].mxu1  ;;  %v11447_v61 = vpop.f32.mrb[198].mxu0 }
 0x5e3   : > { %v26974_v63 = vmax.f32 %v26910_v60, %v11099_v11  ;;  %v26977_v51 = vmax.f32 %v26913_v10, %v11549_v28  ;;  %v11085_v47 = vadd.f32 %v11084_v14, %v26499_v35  ;;  %v11448_v43 = vadd.f32 %v11447_v61, %v26499_v35  ;;  %v11086_v12 = vpop.f32.mrb[183].mxu1  ;;  %v11449_v40 = vpop.f32.mrb[199].mxu0 }
 0x5e4   : > { %v26982_v37 = vmax.f32 %v26918_v24, %v11100_v15  ;;  %v26985_v27 = vmax.f32 %v26921_v42, %v11550_v38  ;;  %v11087_v59 = vadd.f32 %v11086_v12, %v26499_v35  ;;  %v11450_v60 = vadd.f32 %v11449_v40, %v26499_v35 }
 0x5e5   : > { %v11103_v1 = vmax.f32 %v11085_v47, 0.0  ;;  %v11553_v25 = vmax.f32 %v11448_v43, 0.0 }
 0x5e6   : > { %v11104_v10 = vmax.f32 %v11087_v59, 0.0  ;;  %v11554_v26 = vmax.f32 %v11450_v60, 0.0  ;;  %v11292_v4 = vpop.f32.mrb[184].mxu1  ;;  %v11655_v46 = vpop.f32.mrb[200].mxu0 }
 0x5e7   : > { %v26990_v36 = vmax.f32 %v26926_v3, %v11103_v1  ;;  %v26993_v50 = vmax.f32 %v26929_v44, %v11553_v25  ;;  %v11293_v24 = vadd.f32 %v11292_v4, %v26439_v31  ;;  %v11656_v42 = vadd.f32 %v11655_v46, %v26439_v31  ;;  %v11294_v30 = vpop.f32.mrb[185].mxu1  ;;  %v11657_v34 = vpop.f32.mrb[201].mxu0 }
 0x5e8   : > { %v26998_v23 = vmax.f32 %v26934_v57, %v11104_v10  ;;  %v27001_v17 = vmax.f32 %v26937_v53, %v11554_v26  ;;  %v11295_v19 = vadd.f32 %v11294_v30, %v26439_v31  ;;  %v11658_v3 = vadd.f32 %v11657_v34, %v26439_v31 }
 0x5e9   : > { %v11317_v5 = vmax.f32 %v11293_v24, 0.0  ;;  %v11767_v9 = vmax.f32 %v11656_v42, 0.0 }
 0x5ea   : > { %v11318_v44 = vmax.f32 %v11295_v19, 0.0  ;;  %v11768_v22 = vmax.f32 %v11658_v3, 0.0  ;;  %v11298_v54 = vpop.f32.mrb[186].mxu1  ;;  %v11661_v20 = vpop.f32.mrb[202].mxu0 }
 0x5eb   : > { %v27006_v16 = vmax.f32 %v26942_v52, %v11317_v5  ;;  %v27009_v32 = vmax.f32 %v26945_v41, %v11767_v9  ;;  %v11299_v57 = vadd.f32 %v11298_v54, %v26442_v6  ;;  %v11662_v53 = vadd.f32 %v11661_v20, %v26442_v6  ;;  %v11300_v62 = vpop.f32.mrb[187].mxu1  ;;  %v11663_v49 = vpop.f32.mrb[203].mxu0 }
 0x5ec   : > { %v27014_v55 = vmax.f32 %v26950_v21, %v11318_v44  ;;  %v27017_v0 = vmax.f32 %v26953_v45, %v11768_v22  ;;  %v11301_v8 = vadd.f32 %v11300_v62, %v26442_v6  ;;  %v11664_v52 = vadd.f32 %v11663_v49, %v26442_v6 }
 0x5ed   : > { %v11321_v56 = vmax.f32 %v11299_v57, 0.0  ;;  %v11771_v29 = vmax.f32 %v11662_v53, 0.0 }
 0x5ee   : > { %v11322_v41 = vmax.f32 %v11301_v8, 0.0  ;;  %v11772_v48 = vmax.f32 %v11664_v52, 0.0  ;;  %v11304_v39 = vpop.f32.mrb[188].mxu1  ;;  %v11667_v18 = vpop.f32.mrb[204].mxu0 }
 0x5ef   : > { %v27022_v11 = vmax.f32 %v26958_v58, %v11321_v56  ;;  %v27025_v28 = vmax.f32 %v26961_v2, %v11771_v29  ;;  %v11305_v21 = vadd.f32 %v11304_v39, %v26476_v13  ;;  %v11668_v45 = vadd.f32 %v11667_v18, %v26476_v13  ;;  %v11306_v15 = vpop.f32.mrb[189].mxu1  ;;  %v11669_v38 = vpop.f32.mrb[205].mxu0 }
 0x5f0   : > { %v27030_v14 = vmax.f32 %v26966_v33, %v11322_v41  ;;  %v27033_v61 = vmax.f32 %v26969_v7, %v11772_v48  ;;  %v11307_v47 = vadd.f32 %v11306_v15, %v26476_v13  ;;  %v11670_v58 = vadd.f32 %v11669_v38, %v26476_v13 }
 0x5f1   : > { %v11325_v43 = vmax.f32 %v11305_v21, 0.0  ;;  %v11775_v12 = vmax.f32 %v11668_v45, 0.0 }
 0x5f2   : > { %v11326_v2 = vmax.f32 %v11307_v47, 0.0  ;;  %v11776_v40 = vmax.f32 %v11670_v58, 0.0  ;;  %v11310_v59 = vpop.f32.mrb[190].mxu1  ;;  %v11673_v60 = vpop.f32.mrb[206].mxu0 }
 0x5f3   : > { %v27038_v1 = vmax.f32 %v26974_v63, %v11325_v43  ;;  %v27041_v25 = vmax.f32 %v26977_v51, %v11775_v12  ;;  %v11311_v33 = vadd.f32 %v11310_v59, %v26499_v35  ;;  %v11674_v7 = vadd.f32 %v11673_v60, %v26499_v35  ;;  %v11312_v10 = vpop.f32.mrb[191].mxu1  ;;  %v11675_v26 = vpop.f32.mrb[207].mxu0 }
 0x5f4   : > { %v27046_v4 = vmax.f32 %v26982_v37, %v11326_v2  ;;  %v27049_v46 = vmax.f32 %v26985_v27, %v11776_v40  ;;  %v11313_v24 = vadd.f32 %v11312_v10, %v26499_v35  ;;  %v11676_v63 = vadd.f32 %v11675_v26, %v26499_v35 }
 0x5f5   : > { %v11329_v42 = vmax.f32 %v11311_v33, 0.0  ;;  %v11779_v30 = vmax.f32 %v11674_v7, 0.0 }
 0x5f6   : > { %v11330_v51 = vmax.f32 %v11313_v24, 0.0  ;;  %v11780_v34 = vmax.f32 %v11676_v63, 0.0  ;;  %v11518_v19 = vpop.f32.mrb[192].mxu1  ;;  %v11881_v3 = vpop.f32.mrb[208].mxu0 }
 0x5f7   : > { %v27054_v5 = vmax.f32 %v26990_v36, %v11329_v42  ;;  %v27057_v9 = vmax.f32 %v26993_v50, %v11779_v30  ;;  %v11519_v37 = vadd.f32 %v11518_v19, %v26439_v31  ;;  %v11882_v27 = vadd.f32 %v11881_v3, %v26439_v31  ;;  %v11520_v44 = vpop.f32.mrb[193].mxu1  ;;  %v11883_v22 = vpop.f32.mrb[209].mxu0 }
 0x5f8   : > { %v27062_v54 = vmax.f32 %v26998_v23, %v11330_v51  ;;  %v27065_v20 = vmax.f32 %v27001_v17, %v11780_v34  ;;  %v11521_v57 = vadd.f32 %v11520_v44, %v26439_v31  ;;  %v11884_v36 = vadd.f32 %v11883_v22, %v26439_v31 }
 0x5f9   : > { %v11543_v53 = vmax.f32 %v11519_v37, 0.0  ;;  %v11993_v62 = vmax.f32 %v11882_v27, 0.0 }
 0x5fa   : > { %v11544_v50 = vmax.f32 %v11521_v57, 0.0  ;;  %v11994_v49 = vmax.f32 %v11884_v36, 0.0  ;;  %v11524_v8 = vpop.f32.mrb[194].mxu1  ;;  %v11887_v52 = vpop.f32.mrb[210].mxu0 }
 0x5fb   : > { %v27070_v56 = vmax.f32 %v27006_v16, %v11543_v53  ;;  %v27073_v29 = vmax.f32 %v27009_v32, %v11993_v62  ;;  %v11525_v23 = vadd.f32 %v11524_v8, %v26442_v6  ;;  %v11888_v17 = vadd.f32 %v11887_v52, %v26442_v6  ;;  %v11526_v41 = vpop.f32.mrb[195].mxu1  ;;  %v11889_v48 = vpop.f32.mrb[211].mxu0 }
 0x5fc   : > { %v27078_v39 = vmax.f32 %v27014_v55, %v11544_v50  ;;  %v27081_v18 = vmax.f32 %v27017_v0, %v11994_v49  ;;  %v11527_v21 = vadd.f32 %v11526_v41, %v26442_v6  ;;  %v11890_v16 = vadd.f32 %v11889_v48, %v26442_v6 }
 0x5fd   : > { %v11547_v45 = vmax.f32 %v11525_v23, 0.0  ;;  %v11997_v15 = vmax.f32 %v11888_v17, 0.0 }
 0x5fe   : > { %v11548_v32 = vmax.f32 %v11527_v21, 0.0  ;;  %v11998_v38 = vmax.f32 %v11890_v16, 0.0  ;;  %v11530_v47 = vpop.f32.mrb[196].mxu1  ;;  %v11893_v58 = vpop.f32.mrb[212].mxu0 }
 0x5ff   : > { %v27086_v43 = vmax.f32 %v27022_v11, %v11547_v45  ;;  %v27089_v12 = vmax.f32 %v27025_v28, %v11997_v15  ;;  %v11531_v55 = vadd.f32 %v11530_v47, %v26476_v13  ;;  %v11894_v0 = vadd.f32 %v11893_v58, %v26476_v13  ;;  %v11532_v2 = vpop.f32.mrb[197].mxu1  ;;  %v11895_v40 = vpop.f32.mrb[213].mxu0 }
 0x600   : > { %v27094_v59 = vmax.f32 %v27030_v14, %v11548_v32  ;;  %v27097_v60 = vmax.f32 %v27033_v61, %v11998_v38  ;;  %v11533_v33 = vadd.f32 %v11532_v2, %v26476_v13  ;;  %v11896_v11 = vadd.f32 %v11895_v40, %v26476_v13 }
 0x601   : > { %v11551_v7 = vmax.f32 %v11531_v55, 0.0  ;;  %v12001_v10 = vmax.f32 %v11894_v0, 0.0 }
 0x602   : > { %v11552_v28 = vmax.f32 %v11533_v33, 0.0  ;;  %v12002_v26 = vmax.f32 %v11896_v11, 0.0  ;;  %v11536_v24 = vpop.f32.mrb[198].mxu1  ;;  %v11899_v63 = vpop.f32.mrb[214].mxu0 }
 0x603   : > { %v27102_v42 = vmax.f32 %v27038_v1, %v11551_v7  ;;  %v27105_v30 = vmax.f32 %v27041_v25, %v12001_v10  ;;  %v11537_v14 = vadd.f32 %v11536_v24, %v26499_v35  ;;  %v11900_v61 = vadd.f32 %v11899_v63, %v26499_v35  ;;  %v11538_v51 = vpop.f32.mrb[199].mxu1  ;;  %v11901_v34 = vpop.f32.mrb[215].mxu0 }
 0x604   : > { %v27110_v19 = vmax.f32 %v27046_v4, %v11552_v28  ;;  %v27113_v3 = vmax.f32 %v27049_v46, %v12002_v26  ;;  %v11539_v37 = vadd.f32 %v11538_v51, %v26499_v35  ;;  %v11902_v1 = vadd.f32 %v11901_v34, %v26499_v35 }
 0x605   : > { %v11555_v27 = vmax.f32 %v11537_v14, 0.0  ;;  %v12005_v44 = vmax.f32 %v11900_v61, 0.0 }
 0x606   : > { %v11556_v25 = vmax.f32 %v11539_v37, 0.0  ;;  %v12006_v22 = vmax.f32 %v11902_v1, 0.0  ;;  %v11744_v57 = vpop.f32.mrb[200].mxu1  ;;  %v12107_v36 = vpop.f32.mrb[216].mxu0 }
 0x607   : > { %v27118_v53 = vmax.f32 %v27054_v5, %v11555_v27  ;;  %v27121_v62 = vmax.f32 %v27057_v9, %v12005_v44  ;;  %v11745_v4 = vadd.f32 %v11744_v57, %v26439_v31  ;;  %v12108_v46 = vadd.f32 %v12107_v36, %v26439_v31  ;;  %v11746_v50 = vpop.f32.mrb[201].mxu1  ;;  %v12109_v49 = vpop.f32.mrb[217].mxu0 }
 0x608   : > { %v27126_v8 = vmax.f32 %v27062_v54, %v11556_v25  ;;  %v27129_v52 = vmax.f32 %v27065_v20, %v12006_v22  ;;  %v11747_v23 = vadd.f32 %v11746_v50, %v26439_v31  ;;  %v12110_v5 = vadd.f32 %v12109_v49, %v26439_v31 }
 0x609   : > { %v11769_v17 = vmax.f32 %v11745_v4, 0.0  ;;  %v12219_v41 = vmax.f32 %v12108_v46, 0.0 }
 0x60a   : > { %v11770_v9 = vmax.f32 %v11747_v23, 0.0  ;;  %v12220_v48 = vmax.f32 %v12110_v5, 0.0  ;;  %v11750_v21 = vpop.f32.mrb[202].mxu1  ;;  %v12113_v16 = vpop.f32.mrb[218].mxu0 }
 0x60b   : > { %v27134_v45 = vmax.f32 %v27070_v56, %v11769_v17  ;;  %v27137_v15 = vmax.f32 %v27073_v29, %v12219_v41  ;;  %v11751_v54 = vadd.f32 %v11750_v21, %v26442_v6  ;;  %v12114_v20 = vadd.f32 %v12113_v16, %v26442_v6  ;;  %v11752_v32 = vpop.f32.mrb[203].mxu1  ;;  %v12115_v38 = vpop.f32.mrb[219].mxu0 }
 0x60c   : > { %v27142_v47 = vmax.f32 %v27078_v39, %v11770_v9  ;;  %v27145_v58 = vmax.f32 %v27081_v18, %v12220_v48  ;;  %v11753_v55 = vadd.f32 %v11752_v32, %v26442_v6  ;;  %v12116_v56 = vadd.f32 %v12115_v38, %v26442_v6 }
 0x60d   : > { %v11773_v0 = vmax.f32 %v11751_v54, 0.0  ;;  %v12223_v2 = vmax.f32 %v12114_v20, 0.0 }
 0x60e   : > { %v11774_v29 = vmax.f32 %v11753_v55, 0.0  ;;  %v12224_v40 = vmax.f32 %v12116_v56, 0.0  ;;  %v11756_v33 = vpop.f32.mrb[204].mxu1  ;;  %v12119_v11 = vpop.f32.mrb[220].mxu0 }
 0x60f   : > { %v27150_v7 = vmax.f32 %v27086_v43, %v11773_v0  ;;  %v27153_v10 = vmax.f32 %v27089_v12, %v12223_v2  ;;  %v11757_v39 = vadd.f32 %v11756_v33, %v26476_v13  ;;  %v12120_v18 = vadd.f32 %v12119_v11, %v26476_v13  ;;  %v11758_v28 = vpop.f32.mrb[205].mxu1  ;;  %v12121_v26 = vpop.f32.mrb[221].mxu0 }
 0x610   : > { %v27158_v24 = vmax.f32 %v27094_v59, %v11774_v29  ;;  %v27161_v63 = vmax.f32 %v27097_v60, %v12224_v40  ;;  %v11759_v14 = vadd.f32 %v11758_v28, %v26476_v13  ;;  %v12122_v43 = vadd.f32 %v12121_v26, %v26476_v13 }
 0x611   : > { %v11777_v61 = vmax.f32 %v11757_v39, 0.0  ;;  %v12227_v51 = vmax.f32 %v12120_v18, 0.0 }
 0x612   : > { %v11778_v12 = vmax.f32 %v11759_v14, 0.0  ;;  %v12228_v34 = vmax.f32 %v12122_v43, 0.0  ;;  %v11762_v37 = vpop.f32.mrb[206].mxu1  ;;  %v12125_v1 = vpop.f32.mrb[222].mxu0 }
 0x613   : > { %v27166_v27 = vmax.f32 %v27102_v42, %v11777_v61  ;;  %v27169_v44 = vmax.f32 %v27105_v30, %v12227_v51  ;;  %v11763_v59 = vadd.f32 %v11762_v37, %v26499_v35  ;;  %v12126_v60 = vadd.f32 %v12125_v1, %v26499_v35  ;;  %v11764_v25 = vpop.f32.mrb[207].mxu1  ;;  %v12127_v22 = vpop.f32.mrb[223].mxu0 }
 0x614   : > { %v27174_v57 = vmax.f32 %v27110_v19, %v11778_v12  ;;  %v27177_v36 = vmax.f32 %v27113_v3, %v12228_v34  ;;  %v11765_v4 = vadd.f32 %v11764_v25, %v26499_v35  ;;  %v12128_v42 = vadd.f32 %v12127_v22, %v26499_v35 }
 0x615   : > { %v11781_v46 = vmax.f32 %v11763_v59, 0.0  ;;  %v12231_v50 = vmax.f32 %v12126_v60, 0.0 }
 0x616   : > { %v11782_v30 = vmax.f32 %v11765_v4, 0.0  ;;  %v12232_v49 = vmax.f32 %v12128_v42, 0.0  ;;  %v11970_v23 = vpop.f32.mrb[208].mxu1  ;;  %v12333_v5 = vpop.f32.mrb[224].mxu0 }
 0x617   : > { %v27182_v17 = vmax.f32 %v27118_v53, %v11781_v46  ;;  %v27185_v41 = vmax.f32 %v27121_v62, %v12231_v50  ;;  %v11971_v19 = vadd.f32 %v11970_v23, %v26439_v31  ;;  %v12334_v3 = vadd.f32 %v12333_v5, %v26439_v31  ;;  %v11972_v9 = vpop.f32.mrb[209].mxu1  ;;  %v12335_v48 = vpop.f32.mrb[225].mxu0 }
 0x618   : > { %v27190_v21 = vmax.f32 %v27126_v8, %v11782_v30  ;;  %v27193_v16 = vmax.f32 %v27129_v52, %v12232_v49  ;;  %v11973_v54 = vadd.f32 %v11972_v9, %v26439_v31  ;;  %v12336_v53 = vadd.f32 %v12335_v48, %v26439_v31 }
 0x619   : > { %v11995_v20 = vmax.f32 %v11971_v19, 0.0  ;;  %v12445_v32 = vmax.f32 %v12334_v3, 0.0 }
 0x61a   : > { %v11996_v62 = vmax.f32 %v11973_v54, 0.0  ;;  %v12446_v38 = vmax.f32 %v12336_v53, 0.0  ;;  %v11976_v55 = vpop.f32.mrb[210].mxu1  ;;  %v12339_v56 = vpop.f32.mrb[226].mxu0 }
 0x61b   : > { %v27198_v0 = vmax.f32 %v27134_v45, %v11995_v20  ;;  %v27201_v2 = vmax.f32 %v27137_v15, %v12445_v32  ;;  %v11977_v8 = vadd.f32 %v11976_v55, %v26442_v6  ;;  %v12340_v52 = vadd.f32 %v12339_v56, %v26442_v6  ;;  %v11978_v29 = vpop.f32.mrb[211].mxu1  ;;  %v12341_v40 = vpop.f32.mrb[227].mxu0 }
 0x61c   : > { %v27206_v33 = vmax.f32 %v27142_v47, %v11996_v62  ;;  %v27209_v11 = vmax.f32 %v27145_v58, %v12446_v38  ;;  %v11979_v39 = vadd.f32 %v11978_v29, %v26442_v6  ;;  %v12342_v45 = vadd.f32 %v12341_v40, %v26442_v6 }
 0x61d   : > { %v11999_v18 = vmax.f32 %v11977_v8, 0.0  ;;  %v12449_v28 = vmax.f32 %v12340_v52, 0.0 }
 0x61e   : > { %v12000_v15 = vmax.f32 %v11979_v39, 0.0  ;;  %v12450_v26 = vmax.f32 %v12342_v45, 0.0  ;;  %v11982_v14 = vpop.f32.mrb[212].mxu1  ;;  %v12345_v43 = vpop.f32.mrb[228].mxu0 }
 0x61f   : > { %v27214_v61 = vmax.f32 %v27150_v7, %v11999_v18  ;;  %v27217_v51 = vmax.f32 %v27153_v10, %v12449_v28  ;;  %v11983_v47 = vadd.f32 %v11982_v14, %v26476_v13  ;;  %v12346_v58 = vadd.f32 %v12345_v43, %v26476_v13  ;;  %v11984_v12 = vpop.f32.mrb[213].mxu1  ;;  %v12347_v34 = vpop.f32.mrb[229].mxu0 }
 0x620   : > { %v27222_v37 = vmax.f32 %v27158_v24, %v12000_v15  ;;  %v27225_v1 = vmax.f32 %v27161_v63, %v12450_v26  ;;  %v11985_v59 = vadd.f32 %v11984_v12, %v26476_v13  ;;  %v12348_v7 = vadd.f32 %v12347_v34, %v26476_v13 }
 0x621   : > { %v12003_v60 = vmax.f32 %v11983_v47, 0.0  ;;  %v12453_v25 = vmax.f32 %v12346_v58, 0.0 }
 0x622   : > { %v12004_v10 = vmax.f32 %v11985_v59, 0.0  ;;  %v12454_v22 = vmax.f32 %v12348_v7, 0.0  ;;  %v11988_v4 = vpop.f32.mrb[214].mxu1  ;;  %v12351_v42 = vpop.f32.mrb[230].mxu0 }
 0x623   : > { %v27230_v46 = vmax.f32 %v27166_v27, %v12003_v60  ;;  %v27233_v50 = vmax.f32 %v27169_v44, %v12453_v25  ;;  %v11989_v24 = vadd.f32 %v11988_v4, %v26499_v35  ;;  %v12352_v63 = vadd.f32 %v12351_v42, %v26499_v35  ;;  %v11990_v30 = vpop.f32.mrb[215].mxu1  ;;  %v12353_v49 = vpop.f32.mrb[231].mxu0 }
 0x624   : > { %v27238_v23 = vmax.f32 %v27174_v57, %v12004_v10  ;;  %v27241_v5 = vmax.f32 %v27177_v36, %v12454_v22  ;;  %v11991_v19 = vadd.f32 %v11990_v30, %v26499_v35  ;;  %v12354_v27 = vadd.f32 %v12353_v49, %v26499_v35 }
 0x625   : > { %v12007_v3 = vmax.f32 %v11989_v24, 0.0  ;;  %v12457_v9 = vmax.f32 %v12352_v63, 0.0 }
 0x626   : > { %v12008_v44 = vmax.f32 %v11991_v19, 0.0  ;;  %v12458_v48 = vmax.f32 %v12354_v27, 0.0  ;;  %v12196_v54 = vpop.f32.mrb[216].mxu1  ;;  %v12559_v53 = vpop.f32.mrb[232].mxu0 }
 0x627   : > { %v27246_v20 = vmax.f32 %v27182_v17, %v12007_v3  ;;  %v27249_v32 = vmax.f32 %v27185_v41, %v12457_v9  ;;  %v12197_v57 = vadd.f32 %v12196_v54, %v26439_v31  ;;  %v12560_v36 = vadd.f32 %v12559_v53, %v26439_v31  ;;  %v12198_v62 = vpop.f32.mrb[217].mxu1  ;;  %v12561_v38 = vpop.f32.mrb[233].mxu0 }
 0x628   : > { %v27254_v55 = vmax.f32 %v27190_v21, %v12008_v44  ;;  %v27257_v56 = vmax.f32 %v27193_v16, %v12458_v48  ;;  %v12199_v8 = vadd.f32 %v12198_v62, %v26439_v31  ;;  %v12562_v17 = vadd.f32 %v12561_v38, %v26439_v31 }
 0x629   : > { %v12221_v52 = vmax.f32 %v12197_v57, 0.0  ;;  %v12671_v29 = vmax.f32 %v12560_v36, 0.0 }
 0x62a   : > { %v12222_v41 = vmax.f32 %v12199_v8, 0.0  ;;  %v12672_v40 = vmax.f32 %v12562_v17, 0.0  ;;  %v12202_v39 = vpop.f32.mrb[218].mxu1  ;;  %v12565_v45 = vpop.f32.mrb[234].mxu0 }
 0x62b   : > { %v27262_v18 = vmax.f32 %v27198_v0, %v12221_v52  ;;  %v27265_v28 = vmax.f32 %v27201_v2, %v12671_v29  ;;  %v12203_v21 = vadd.f32 %v12202_v39, %v26442_v6  ;;  %v12566_v16 = vadd.f32 %v12565_v45, %v26442_v6  ;;  %v12204_v15 = vpop.f32.mrb[219].mxu1  ;;  %v12567_v26 = vpop.f32.mrb[235].mxu0 }
 0x62c   : > { %v27270_v14 = vmax.f32 %v27206_v33, %v12222_v41  ;;  %v27273_v43 = vmax.f32 %v27209_v11, %v12672_v40  ;;  %v12205_v47 = vadd.f32 %v12204_v15, %v26442_v6  ;;  %v12568_v0 = vadd.f32 %v12567_v26, %v26442_v6 }
 0x62d   : > { %v12225_v58 = vmax.f32 %v12203_v21, 0.0  ;;  %v12675_v12 = vmax.f32 %v12566_v16, 0.0 }
 0x62e   : > { %v12226_v2 = vmax.f32 %v12205_v47, 0.0  ;;  %v12676_v34 = vmax.f32 %v12568_v0, 0.0  ;;  %v12208_v59 = vpop.f32.mrb[220].mxu1  ;;  %v12571_v7 = vpop.f32.mrb[236].mxu0 }
 0x62f   : > { %v27278_v60 = vmax.f32 %v27214_v61, %v12225_v58  ;;  %v27281_v25 = vmax.f32 %v27217_v51, %v12675_v12  ;;  %v12209_v33 = vadd.f32 %v12208_v59, %v26476_v13  ;;  %v12572_v11 = vadd.f32 %v12571_v7, %v26476_v13  ;;  %v12210_v10 = vpop.f32.mrb[221].mxu1  ;;  %v12573_v22 = vpop.f32.mrb[237].mxu0 }
 0x630   : > { %v27286_v4 = vmax.f32 %v27222_v37, %v12226_v2  ;;  %v27289_v42 = vmax.f32 %v27225_v1, %v12676_v34  ;;  %v12211_v24 = vadd.f32 %v12210_v10, %v26476_v13  ;;  %v12574_v61 = vadd.f32 %v12573_v22, %v26476_v13 }
 0x631   : > { %v12229_v63 = vmax.f32 %v12209_v33, 0.0  ;;  %v12679_v30 = vmax.f32 %v12572_v11, 0.0 }
 0x632   : > { %v12230_v51 = vmax.f32 %v12211_v24, 0.0  ;;  %v12680_v49 = vmax.f32 %v12574_v61, 0.0  ;;  %v12214_v19 = vpop.f32.mrb[222].mxu1  ;;  %v12577_v27 = vpop.f32.mrb[238].mxu0 }
 0x633   : > { %v27294_v3 = vmax.f32 %v27230_v46, %v12229_v63  ;;  %v27297_v9 = vmax.f32 %v27233_v50, %v12679_v30  ;;  %v12215_v37 = vadd.f32 %v12214_v19, %v26499_v35  ;;  %v12578_v1 = vadd.f32 %v12577_v27, %v26499_v35  ;;  %v12216_v44 = vpop.f32.mrb[223].mxu1  ;;  %v12579_v48 = vpop.f32.mrb[239].mxu0 }
 0x634   : > { %v12246_v54 = vmax.f32 %v27238_v23, %v12230_v51  ;;  %v12696_v53 = vmax.f32 %v27241_v5, %v12680_v49  ;;  %v12217_v57 = vadd.f32 %v12216_v44, %v26499_v35  ;;  %v12580_v36 = vadd.f32 %v12579_v48, %v26499_v35 }
 0x635   : > { %v12233_v62 = vmax.f32 %v12215_v37, 0.0  ;;  %v12683_v46 = vmax.f32 %v12578_v1, 0.0 }
 0x636   : > { %v12234_v38 = vmax.f32 %v12217_v57, 0.0  ;;  %v12684_v8 = vmax.f32 %v12580_v36, 0.0  ;;  %v12422_v50 = vpop.f32.mrb[224].mxu1  ;;  %v12785_v17 = vpop.f32.mrb[240].mxu0 }
 0x637   : > { %v27306_v52 = vmax.f32 %v27246_v20, %v12233_v62  ;;  %v27309_v29 = vmax.f32 %v27249_v32, %v12683_v46  ;;  %v12423_v23 = vadd.f32 %v12422_v50, %v26439_v31  ;;  %v12786_v5 = vadd.f32 %v12785_v17, %v26439_v31  ;;  %v12424_v41 = vpop.f32.mrb[225].mxu1  ;;  %v12787_v40 = vpop.f32.mrb[241].mxu0 }
 0x638   : > { %v27314_v39 = vmax.f32 %v27254_v55, %v12234_v38  ;;  %v27317_v45 = vmax.f32 %v27257_v56, %v12684_v8  ;;  %v12425_v21 = vadd.f32 %v12424_v41, %v26439_v31  ;;  %v12788_v20 = vadd.f32 %v12787_v40, %v26439_v31 }
 0x639   : > { %v12447_v16 = vmax.f32 %v12423_v23, 0.0  ;;  %v12897_v15 = vmax.f32 %v12786_v5, 0.0 }
 0x63a   : > { %v12448_v32 = vmax.f32 %v12425_v21, 0.0  ;;  %v12898_v26 = vmax.f32 %v12788_v20, 0.0  ;;  %v12428_v47 = vpop.f32.mrb[226].mxu1  ;;  %v12791_v0 = vpop.f32.mrb[242].mxu0 }
 0x63b   : > { %v27322_v58 = vmax.f32 %v27262_v18, %v12447_v16  ;;  %v27325_v12 = vmax.f32 %v27265_v28, %v12897_v15  ;;  %v12429_v55 = vadd.f32 %v12428_v47, %v26442_v6  ;;  %v12792_v56 = vadd.f32 %v12791_v0, %v26442_v6  ;;  %v12430_v2 = vpop.f32.mrb[227].mxu1  ;;  %v12793_v34 = vpop.f32.mrb[243].mxu0 }
 0x63c   : > { %v27330_v59 = vmax.f32 %v27270_v14, %v12448_v32  ;;  %v27333_v7 = vmax.f32 %v27273_v43, %v12898_v26  ;;  %v12431_v33 = vadd.f32 %v12430_v2, %v26442_v6  ;;  %v12794_v18 = vadd.f32 %v12793_v34, %v26442_v6 }
 0x63d   : > { %v12451_v11 = vmax.f32 %v12429_v55, 0.0  ;;  %v12901_v10 = vmax.f32 %v12792_v56, 0.0 }
 0x63e   : > { %v12452_v28 = vmax.f32 %v12431_v33, 0.0  ;;  %v12902_v22 = vmax.f32 %v12794_v18, 0.0  ;;  %v12434_v24 = vpop.f32.mrb[228].mxu1  ;;  %v12797_v61 = vpop.f32.mrb[244].mxu0 }
 0x63f   : > { %v27338_v63 = vmax.f32 %v27278_v60, %v12451_v11  ;;  %v27341_v30 = vmax.f32 %v27281_v25, %v12901_v10  ;;  %v12435_v14 = vadd.f32 %v12434_v24, %v26476_v13  ;;  %v12798_v43 = vadd.f32 %v12797_v61, %v26476_v13  ;;  %v12436_v51 = vpop.f32.mrb[229].mxu1  ;;  %v12799_v49 = vpop.f32.mrb[245].mxu0 }
 0x640   : > { %v27346_v19 = vmax.f32 %v27286_v4, %v12452_v28  ;;  %v27349_v27 = vmax.f32 %v27289_v42, %v12902_v22  ;;  %v12437_v37 = vadd.f32 %v12436_v51, %v26476_v13  ;;  %v12800_v60 = vadd.f32 %v12799_v49, %v26476_v13 }
 0x641   : > { %v12455_v1 = vmax.f32 %v12435_v14, 0.0  ;;  %v12905_v44 = vmax.f32 %v12798_v43, 0.0 }
 0x642   : > { %v12456_v25 = vmax.f32 %v12437_v37, 0.0  ;;  %v12906_v48 = vmax.f32 %v12800_v60, 0.0  ;;  %v12440_v57 = vpop.f32.mrb[230].mxu1  ;;  %v12803_v42 = vpop.f32.mrb[246].mxu0 }
 0x643   : > { %v27354_v36 = vmax.f32 %v27294_v3, %v12455_v1  ;;  %v27357_v62 = vmax.f32 %v27297_v9, %v12905_v44  ;;  %v12441_v4 = vadd.f32 %v12440_v57, %v26499_v35  ;;  %v12442_v46 = vpop.f32.mrb[231].mxu1  ;;  %v12804_v50 = vadd.f32 %v12803_v42, %v26499_v35  ;;  %v12805_v23 = vpop.f32.mrb[247].mxu0 }
 0x644   : > { %v27360_v38 = vmax.f32 %v12246_v54, %v12456_v25  ;;  %v27362_v8 = vmax.f32 %v12696_v53, %v12906_v48  ;;  %v12443_v17 = vadd.f32 %v12442_v46, %v26499_v35  ;;  %v12806_v3 = vadd.f32 %v12805_v23, %v26499_v35 }
 0x645   : > { %v12459_v5 = vmax.f32 %v12441_v4, 0.0  ;;  %v12909_v41 = vmax.f32 %v12804_v50, 0.0 }
 0x646   : > { %v12460_v9 = vmax.f32 %v12443_v17, 0.0  ;;  %v12648_v40 = vpop.f32.mrb[232].mxu1  ;;  %v12910_v20 = vmax.f32 %v12806_v3, 0.0  ;;  %v13011_v53 = vpop.f32.mrb[248].mxu0 }
 0x647   : > { %v27369_v21 = vmax.f32 %v27306_v52, %v12459_v5  ;;  %v12649_v54 = vadd.f32 %v12648_v40, %v26439_v31  ;;  %v12650_v16 = vpop.f32.mrb[233].mxu1  ;;  %v27373_v15 = vmax.f32 %v27309_v29, %v12909_v41  ;;  %v13012_v26 = vadd.f32 %v13011_v53, %v26439_v31  ;;  %v13013_v0 = vpop.f32.mrb[249].mxu0 }
 0x648   : > { %v27376_v32 = vmax.f32 %v27314_v39, %v12460_v9  ;;  %v12651_v47 = vadd.f32 %v12650_v16, %v26439_v31  ;;  %v27381_v52 = vmax.f32 %v27317_v45, %v12910_v20  ;;  %v13014_v56 = vadd.f32 %v13013_v0, %v26439_v31 }
 0x649   : > { %v12673_v55 = vmax.f32 %v12649_v54, 0.0  ;;  %v13123_v2 = vmax.f32 %v13012_v26, 0.0 }
 0x64a   : > { %v12674_v34 = vmax.f32 %v12651_v47, 0.0  ;;  %v12654_v33 = vpop.f32.mrb[234].mxu1  ;;  %v13124_v39 = vmax.f32 %v13014_v56, 0.0  ;;  %v13017_v45 = vpop.f32.mrb[250].mxu0 }
 0x64b   : > { %v27385_v29 = vmax.f32 %v27322_v58, %v12673_v55  ;;  %v12655_v18 = vadd.f32 %v12654_v33, %v26442_v6  ;;  %v12656_v11 = vpop.f32.mrb[235].mxu1  ;;  %v13139_v10 = vmax.f32 %v27325_v12, %v13123_v2  ;;  %v13018_v14 = vadd.f32 %v13017_v45, %v26442_v6  ;;  %v13019_v43 = vpop.f32.mrb[251].mxu0 }
 0x64c   : > { %v27390_v28 = vmax.f32 %v27330_v59, %v12674_v34  ;;  %v12657_v22 = vadd.f32 %v12656_v11, %v26442_v6  ;;  %v13140_v24 = vmax.f32 %v27333_v7, %v13124_v39  ;;  %v13020_v12 = vadd.f32 %v13019_v43, %v26442_v6 }
 0x64d   : > { %v12677_v61 = vmax.f32 %v12655_v18, 0.0  ;;  %13155 = vst [vmem:[%s27395_s18] sm:$0xff] %v13139_v10  ;;  %v13127_v49 = vmax.f32 %v13018_v14, 0.0 }
 0x64e   : > { %v12678_v58 = vmax.f32 %v12657_v22, 0.0  ;;  %v12660_v51 = vpop.f32.mrb[236].mxu1  ;;  %13156 = vst [vmem:[%s27395_s18 + $0x8] sm:$0xff] %v13140_v24  ;;  %v13128_v1 = vmax.f32 %v13020_v12, 0.0  ;;  %v13023_v44 = vpop.f32.mrb[252].mxu0 }
 0x64f   : > { %v12693_v59 = vmax.f32 %v27338_v63, %v12677_v61  ;;  %v12661_v7 = vadd.f32 %v12660_v51, %v26476_v13  ;;  %v12662_v37 = vpop.f32.mrb[237].mxu1  ;;  %v13143_v48 = vmax.f32 %v27341_v30, %v13127_v49  ;;  %v13024_v4 = vadd.f32 %v13023_v44, %v26476_v13  ;;  %v13025_v42 = vpop.f32.mrb[253].mxu0 }
 0x650   : > { %v12694_v60 = vmax.f32 %v27346_v19, %v12678_v58  ;;  %v12663_v25 = vadd.f32 %v12662_v37, %v26476_v13  ;;  %v13144_v63 = vmax.f32 %v27349_v27, %v13128_v1  ;;  %v13026_v50 = vadd.f32 %v13025_v42, %v26476_v13 }
 0x651   : > { %v12681_v57 = vmax.f32 %v12661_v7, 0.0  ;;  %13159 = vst [vmem:[%s27395_s18 + $0x20] sm:$0xff] %v13143_v48  ;;  %v13131_v23 = vmax.f32 %v13024_v4, 0.0 }
 0x652   : > { %v12682_v46 = vmax.f32 %v12663_v25, 0.0  ;;  %v12666_v17 = vpop.f32.mrb[238].mxu1  ;;  %13160 = vst [vmem:[%s27395_s18 + $0x28] sm:$0xff] %v13144_v63  ;;  %v13132_v41 = vmax.f32 %v13026_v50, 0.0  ;;  %v13029_v9 = vpop.f32.mrb[254].mxu0 }
 0x653   : > { %v12697_v19 = vmax.f32 %v27354_v36, %v12681_v57  ;;  %v12667_v5 = vadd.f32 %v12666_v17, %v26499_v35  ;;  %v12668_v3 = vpop.f32.mrb[239].mxu1  ;;  %v13147_v40 = vmax.f32 %v27357_v62, %v13131_v23  ;;  %v13030_v54 = vadd.f32 %v13029_v9, %v26499_v35  ;;  %v13031_v53 = vpop.f32.mrb[255].mxu0 }
 0x654   : > { %v12698_v30 = vmax.f32 %v27360_v38, %v12682_v46  ;;  %v12669_v27 = vadd.f32 %v12668_v3, %v26499_v35  ;;  %v13148_v36 = vmax.f32 %v27362_v8, %v13132_v41  ;;  %v13032_v26 = vadd.f32 %v13031_v53, %v26499_v35 }
 0x655   : > { %v12685_v20 = vmax.f32 %v12667_v5, 0.0  ;;  %13163 = vst [vmem:[%s27395_s18 + $0x40] sm:$0xff] %v13147_v40  ;;  %v13135_v0 = vmax.f32 %v13030_v54, 0.0 }
 0x656   : > { %v12686_v16 = vmax.f32 %v12669_v27, 0.0  ;;  %v12874_v47 = vpop.f32.mrb[240].mxu1  ;;  %13164 = vst [vmem:[%s27395_s18 + $0x48] sm:$0xff] %v13148_v36  ;;  %v13136_v2 = vmax.f32 %v13032_v26, 0.0 }
 0x657   : > { %v12701_v38 = vmax.f32 %v27369_v21, %v12685_v20  ;;  %v12875_v55 = vadd.f32 %v12874_v47, %v26439_v31  ;;  %v12876_v56 = vpop.f32.mrb[241].mxu1  ;;  %v13151_v8 = vmax.f32 %v27373_v15, %v13135_v0 }
 0x658   : > { %v12702_v62 = vmax.f32 %v27376_v32, %v12686_v16  ;;  %v12877_v34 = vadd.f32 %v12876_v56, %v26439_v31  ;;  %v13152_v39 = vmax.f32 %v27381_v52, %v13136_v2 }
 0x659   : > { %v12899_v33 = vmax.f32 %v12875_v55, 0.0  ;;  %13167 = vst [vmem:[%s27395_s18 + $0x60] sm:$0xff] %v13151_v8 }
 0x65a   : > { %v12900_v18 = vmax.f32 %v12877_v34, 0.0  ;;  %v12880_v11 = vpop.f32.mrb[242].mxu1  ;;  %13168 = vst [vmem:[%s27395_s18 + $0x68] sm:$0xff] %v13152_v39  ;;  %v13195_v34 = vld [vmem:[%s27395_s18 + $0x8] sm:$0xff] (%p20042_p4)  ;;  %v13201_v39 = vld [vmem:[%s27395_s18 + $0x20] sm:$0xff] (%p20042_p4) }
 0x65b   : > { %v12915_v21 = vmax.f32 %v27385_v29, %v12899_v33  ;;  %v12881_v10 = vadd.f32 %v12880_v11, %v26442_v6  ;;  %v12882_v45 = vpop.f32.mrb[243].mxu1  ;;  %13196 = vst [vmem:[%s13180_s14 + $0x8] sm:$0xff] (%p20042_p4), %v13195_v34  ;;  %13202 = vst [vmem:[%s13180_s14 + $0x40] sm:$0xff] (%p20042_p4), %v13201_v39 }
 0x65c   : > { %v12916_v22 = vmax.f32 %v27390_v28, %v12900_v18  ;;  %v12883_v32 = vadd.f32 %v12882_v45, %v26442_v6  ;;  %v13203_v18 = vld [vmem:[%s27395_s18 + $0x28] sm:$0xff] (%p20042_p4) }
 0x65d   : > { %v12903_v24 = vmax.f32 %v12881_v10, 0.0  ;;  %13204 = vst [vmem:[%s13180_s14 + $0x48] sm:$0xff] (%p20042_p4), %v13203_v18  ;;  %v13209_v10 = vld [vmem:[%s27395_s18 + $0x40] sm:$0xff] (%p20042_p4)  ;;  %v13211_v45 = vld [vmem:[%s27395_s18 + $0x48] sm:$0xff] (%p20042_p4) }
 0x65e   : > { %v12904_v61 = vmax.f32 %v12883_v32, 0.0  ;;  %v12886_v14 = vpop.f32.mrb[244].mxu1  ;;  %13210 = vst [vmem:[%s13180_s14 + $0x80] sm:$0xff] (%p20042_p4), %v13209_v10  ;;  %13212 = vst [vmem:[%s13180_s14 + $0x88] sm:$0xff] (%p20042_p4), %v13211_v45 }
 0x65f   : > { %v12919_v15 = vmax.f32 %v12693_v59, %v12903_v24  ;;  %v12887_v43 = vadd.f32 %v12886_v14, %v26476_v13  ;;  %v12888_v52 = vpop.f32.mrb[245].mxu1 }
 0x660   : > { %v12920_v58 = vmax.f32 %v12694_v60, %v12904_v61  ;;  %v12889_v12 = vadd.f32 %v12888_v52, %v26476_v13  ;;  %v13217_v24 = vld [vmem:[%s27395_s18 + $0x60] sm:$0xff] (%p20042_p4) }
 0x661   : > { %v12907_v51 = vmax.f32 %v12887_v43, 0.0  ;;  %v13219_v61 = vld [vmem:[%s27395_s18 + $0x68] sm:$0xff] (%p20042_p4)  ;;  %13218 = vst [vmem:[%s13180_s14 + $0xc0] sm:$0xff] (%p20042_p4), %v13217_v24 }
 0x662   : > { %v12908_v29 = vmax.f32 %v12889_v12, 0.0  ;;  %v12892_v49 = vpop.f32.mrb[246].mxu1  ;;  %13220 = vst [vmem:[%s13180_s14 + $0xc8] sm:$0xff] (%p20042_p4), %v13219_v61 }
 0x663   : > { %v12923_v7 = vmax.f32 %v12697_v19, %v12907_v51  ;;  %v12893_v37 = vadd.f32 %v12892_v49, %v26499_v35  ;;  %v12894_v1 = vpop.f32.mrb[247].mxu1 }
 0x664   : > { %v12924_v28 = vmax.f32 %v12698_v30, %v12908_v29  ;;  %v12895_v44 = vadd.f32 %v12894_v1, %v26499_v35 }
 0x665   : > { %v12911_v25 = vmax.f32 %v12893_v37, 0.0 }
 0x666   : > { %v12912_v48 = vmax.f32 %v12895_v44, 0.0  ;;  %v13100_v59 = vpop.f32.mrb[248].mxu1 }
 0x667   : > { %v12927_v57 = vmax.f32 %v12701_v38, %v12911_v25  ;;  %v13101_v60 = vadd.f32 %v13100_v59, %v26439_v31  ;;  %v13102_v4 = vpop.f32.mrb[249].mxu1 }
 0x668   : > { %v12928_v42 = vmax.f32 %v12702_v62, %v12912_v48  ;;  %v13103_v63 = vadd.f32 %v13102_v4, %v26439_v31 }
 0x669   : > { %v13125_v46 = vmax.f32 %v13101_v60, 0.0 }
 0x66a   : > { %v13126_v50 = vmax.f32 %v13103_v63, 0.0  ;;  %v13106_v17 = vpop.f32.mrb[250].mxu1 }
 0x66b   : > { %v13141_v19 = vmax.f32 %v12915_v21, %v13125_v46  ;;  %v13107_v23 = vadd.f32 %v13106_v17, %v26442_v6  ;;  %v13108_v5 = vpop.f32.mrb[251].mxu1 }
 0x66c   : > { %v13142_v3 = vmax.f32 %v12916_v22, %v13126_v50  ;;  %v13109_v30 = vadd.f32 %v13108_v5, %v26442_v6 }
 0x66d   : > { %13157 = vst [vmem:[%s27395_s18 + $0x10] sm:$0xff] %v13141_v19  ;;  %v13129_v41 = vmax.f32 %v13107_v23, 0.0 }
 0x66e   : > { %13158 = vst [vmem:[%s27395_s18 + $0x18] sm:$0xff] %v13142_v3  ;;  %v13130_v9 = vmax.f32 %v13109_v30, 0.0  ;;  %v13112_v27 = vpop.f32.mrb[252].mxu1 }
 0x66f   : > { %v13145_v40 = vmax.f32 %v12919_v15, %v13129_v41  ;;  %v13113_v31 = vadd.f32 %v13112_v27, %v26476_v13  ;;  %v13114_v20 = vpop.f32.mrb[253].mxu1 }
 0x670   : > { %v13146_v54 = vmax.f32 %v12920_v58, %v13130_v9  ;;  %v13115_v53 = vadd.f32 %v13114_v20, %v26476_v13 }
 0x671   : > { %13161 = vst [vmem:[%s27395_s18 + $0x30] sm:$0xff] %v13145_v40  ;;  %v13133_v36 = vmax.f32 %v13113_v31, 0.0 }
 0x672   : > { %13162 = vst [vmem:[%s27395_s18 + $0x38] sm:$0xff] %v13146_v54  ;;  %v13134_v6 = vmax.f32 %v13115_v53, 0.0  ;;  %v13118_v16 = vpop.f32.mrb[254].mxu1 }
 0x673   : > { %v13149_v26 = vmax.f32 %v12923_v7, %v13133_v36  ;;  %v13119_v47 = vadd.f32 %v13118_v16, %v26499_v35  ;;  %v13120_v38 = vpop.f32.mrb[255].mxu1 }
 0x674   : > { %v13150_v0 = vmax.f32 %v12924_v28, %v13134_v6  ;;  %v13121_v55 = vadd.f32 %v13120_v38, %v26499_v35  ;;  %13177 = sbr.rel (!%p20042_p4) target bundleno = 1667 (0x683), region = 44  ;;  %v13193_v35 = vld [vmem:[%s27395_s18] sm:$0xff] (%p20042_p4)  ;;  %v13197_v8 = vld [vmem:[%s27395_s18 + $0x10] sm:$0xff] (%p20042_p4) }
 0x675   : > { %13165 = vst [vmem:[%s27395_s18 + $0x50] sm:$0xff] %v13149_v26  ;;  %v13137_v56 = vmax.f32 %v13119_v47, 0.0  ;;  %v13199_v33 = vld [vmem:[%s27395_s18 + $0x18] sm:$0xff] (%p20042_p4)  ;;  %13194 = vst [vmem:[%s13180_s14] sm:$0xff] (%p20042_p4), %v13193_v35 }
 0x676   : > { %13166 = vst [vmem:[%s27395_s18 + $0x58] sm:$0xff] %v13150_v0  ;;  %v13138_v62 = vmax.f32 %v13121_v55, 0.0  ;;  %13198 = vst [vmem:[%s13180_s14 + $0x10] sm:$0xff] (%p20042_p4), %v13197_v8 }
 0x677   : > { %v13153_v2 = vmax.f32 %v12927_v57, %v13137_v56  ;;  %13200 = vst [vmem:[%s13180_s14 + $0x18] sm:$0xff] (%p20042_p4), %v13199_v33 }
 0x678   : > { %v13154_v13 = vmax.f32 %v12928_v42, %v13138_v62  ;;  %v13205_v11 = vld [vmem:[%s27395_s18 + $0x30] sm:$0xff] (%p20042_p4) }
 0x679   : > { %13169 = vst [vmem:[%s27395_s18 + $0x70] sm:$0xff] %v13153_v2  ;;  %v13207_v21 = vld [vmem:[%s27395_s18 + $0x38] sm:$0xff] (%p20042_p4)  ;;  %13206 = vst [vmem:[%s13180_s14 + $0x50] sm:$0xff] (%p20042_p4), %v13205_v11 }
 0x67a   : > { %13170 = vst [vmem:[%s27395_s18 + $0x78] sm:$0xff] %v13154_v13  ;;  %13208 = vst [vmem:[%s13180_s14 + $0x58] sm:$0xff] (%p20042_p4), %v13207_v21 }
 0x67c   : > { %v13213_v22 = vld [vmem:[%s27395_s18 + $0x50] sm:$0xff] }
 0x67d   : > { %v13215_v32 = vld [vmem:[%s27395_s18 + $0x58] sm:$0xff]  ;;  %13214 = vst [vmem:[%s13180_s14 + $0x90] sm:$0xff] %v13213_v22 }
 0x67e   : > { %13216 = vst [vmem:[%s13180_s14 + $0x98] sm:$0xff] %v13215_v32 }
 0x680   : > { %v13221_v14 = vld [vmem:[%s27395_s18 + $0x70] sm:$0xff] }
 0x681   : > { %13222 = vst [vmem:[%s13180_s14 + $0xd0] sm:$0xff] %v13221_v14  ;;  %v13223_v15 = vld [vmem:[%s27395_s18 + $0x78] sm:$0xff] }
 0x682   : > { %13224 = vst [vmem:[%s13180_s14 + $0xd8] sm:$0xff] %v13223_v15 }
 0x683 PF: > { %p12_p8 = scmp.ge.s32.totalorder %s20032_s22, 4   ;;  %s28053_s18 = smov %s19972_s19 }
 0x684   : > { %s28054_s19 = smov %s20040_s25  ;;  %s28055_s20 = smov %s20032_s22 }
 0x685   :  { %14 = sbr.rel (!%p12_p8) target bundleno = 2 (0x2), region = 93 }

</bundles_post_ra>
